<compile_context>
chip_gen: v6e
topology: v6e:2x2x1
jax: 0.10.0
libtpu: 0.0.40
codegen_flags: <defaults>
</compile_context>

<pallas_src>
import functools

import jax
import jax.numpy as jnp
from jax.experimental import pallas as pl


# ----------------------------------------------------------------------------
# Pallas kernels (single whole-array blocks -- shapes are tiny at B=2)
# ----------------------------------------------------------------------------
def _conv1_pool_packed_kernel(x_ref, w_ref, b_ref, o_ref):
    """conv1 + bias + ReLU + 2x2 maxpool, pool members packed into lanes.

    x: (M, 36) bf16   im2col features ordered (pool member g, kh, kw), Cin=1
    w: (36, 64) bf16  block-diagonal: rows 9g:9g+9 x cols 16g:16g+16 = conv1 W
    b: (1, 64)  f32   conv1 bias tiled 4x along lanes
    o: (M, 16)  bf16  rows ordered (batch, h_out, w_out)
    """
    n = o_ref.shape[1]
    y = jnp.dot(x_ref[...], w_ref[...],
                preferred_element_type=jnp.float32) + b_ref[...]
    # 2x2 maxpool == elementwise max over the four 16-lane column groups.
    p = y[:, 0:n]
    for g in range(1, 4):
        p = jnp.maximum(p, y[:, g * n:(g + 1) * n])
    o_ref[...] = jnp.maximum(p, 0.0).astype(o_ref.dtype)


def _conv_relu_pool_kernel(x_ref, w_ref, b_ref, o_ref):
    """conv + bias + ReLU + 2x2 maxpool; pool members grouped on leading axis.

    x: (4, M, K) bf16, w: (K, N) bf16, b: (1, N) f32, o: (M, N) bf16."""
    w = w_ref[...]
    b = b_ref[...]

    def member(g):
        return jnp.dot(x_ref[g], w, preferred_element_type=jnp.float32) + b

    p = jnp.maximum(jnp.maximum(member(0), member(1)),
                    jnp.maximum(member(2), member(3)))
    o_ref[...] = jnp.maximum(p, 0.0).astype(o_ref.dtype)


def _conv3_fc_fused_kernel(batch, x_ref, w3_ref, b3_ref, w1_ref, b1_ref,
                           w2_ref, b2_ref, wf_ref, bf_ref, o_ref):
    """conv3+ReLU fused with fc1+ReLU, fc2+ReLU, fc3.

    x:  (S*BP, 9*Cin) bf16  conv3 im2col, rows ordered (spatial s, padded batch)
    w3: (9*Cin, C) bf16, b3: (1, C) f32
    w1: (S, C, F1) bf16     fc1 weight regrouped per spatial position
    w2: (F1, F2) bf16, wf: (F2, 10) bf16, biases f32
    o:  (batch, 10) f32
    """
    S = w1_ref.shape[0]                 # 49 spatial positions
    C = w3_ref.shape[1]                 # 32 conv3 channels
    BP = x_ref.shape[0] // S            # batch rows per spatial position (8)

    # conv3 + ReLU on all (padded) rows: a single GEMM.
    h = jnp.dot(x_ref[...], w3_ref[...], preferred_element_type=jnp.float32)
    h = jnp.maximum(h + b3_ref[...], 0.0)

    # (S*BP, C) -> (S, BP, C) is an exact sublane-tile split (BP == 8, f32).
    # fc1 as a batched contraction over the S spatial positions:
    #   y[b, o] = sum_s sum_c h[s, b, c] * w1[s, c, o]
    h3 = h.reshape(S, BP, C).astype(jnp.bfloat16)
    part = jax.lax.dot_general(
        h3, w1_ref[...],
        dimension_numbers=(((2,), (1,)), ((0,), (0,))),
        preferred_element_type=jnp.float32)                 # (S, BP, F1)
    a = jnp.sum(part, axis=0)[:batch, :] + b1_ref[...]      # (batch, F1)
    a = jnp.maximum(a, 0.0).astype(jnp.bfloat16)

    a = jnp.dot(a, w2_ref[...], preferred_element_type=jnp.float32) + b2_ref[...]
    a = jnp.maximum(a, 0.0).astype(jnp.bfloat16)

    out = jnp.dot(a, wf_ref[...], preferred_element_type=jnp.float32) + bf_ref[...]
    o_ref[...] = out.astype(o_ref.dtype)


# ----------------------------------------------------------------------------
# pallas_call wrappers
# ----------------------------------------------------------------------------
def _full_block(shape):
    n = len(shape)
    return pl.BlockSpec(shape, lambda: (0,) * n)


def conv1_relu_pool_packed(x_packed, w_blk, b_row):
    M = x_packed.shape[0]
    n_out = w_blk.shape[1] // 4
    return pl.pallas_call(
        _conv1_pool_packed_kernel,
        out_shape=jax.ShapeDtypeStruct((M, n_out), jnp.bfloat16),
        in_specs=[_full_block(x_packed.shape),
                  _full_block(w_blk.shape),
                  _full_block(b_row.shape)],
        out_specs=_full_block((M, n_out)),
    )(x_packed, w_blk, b_row)


def conv_relu_pool(x_grouped, w_mat, b_row):
    _, M, _ = x_grouped.shape
    N = w_mat.shape[1]
    return pl.pallas_call(
        _conv_relu_pool_kernel,
        out_shape=jax.ShapeDtypeStruct((M, N), jnp.bfloat16),
        in_specs=[_full_block(x_grouped.shape),
                  _full_block(w_mat.shape),
                  _full_block(b_row.shape)],
        out_specs=_full_block((M, N)),
    )(x_grouped, w_mat, b_row)


def conv3_fc_fused(x3, w3, b3, w1, b1, w2, b2, wf, bf, *, batch):
    args = (x3, w3, b3, w1, b1, w2, b2, wf, bf)
    n_cls = wf.shape[1]
    return pl.pallas_call(
        functools.partial(_conv3_fc_fused_kernel, batch),
        out_shape=jax.ShapeDtypeStruct((batch, n_cls), jnp.float32),
        in_specs=[_full_block(a.shape) for a in args],
        out_specs=_full_block((batch, n_cls)),
    )(*args)


# ----------------------------------------------------------------------------
# Host-side glue: im2col window extraction (pure data movement)
# TODO(synk): 3x3 zero-pad + sliding-window (im2col) extraction has no clean
# single Pallas op without risky in-kernel reshapes; kept as host-side XLA.
# ----------------------------------------------------------------------------
def _im2col_conv1_pool_packed(x_nhwc):
    """(B, H, W, 1) -> (B*Ho*Wo, 36) bf16; features ordered (pool member, kh, kw)."""
    B, H, W, C = x_nhwc.shape
    Ho, Wo = H // 2, W // 2
    xp = jnp.pad(x_nhwc, ((0, 0), (1, 1), (1, 1), (0, 0)))
    cols = []
    for dh in range(2):
        for dw in range(2):
            for kh in range(3):
                for kw in range(3):
                    cols.append(xp[:, dh + kh::2, dw + kw::2, :][:, :Ho, :Wo, :])
    packed = jnp.concatenate(cols, axis=-1)                     # (B, Ho, Wo, 36*C)
    return packed.reshape(B * Ho * Wo, 36 * C).astype(jnp.bfloat16)


def _im2col_3x3_pad1_pool_grouped(x_nhwc):
    """(B,H,W,C) -> (4, B*Ho*Wo, 9C) bf16; leading axis = 2x2-pool member."""
    B, H, W, C = x_nhwc.shape
    Ho, Wo = H // 2, W // 2
    xp = jnp.pad(x_nhwc, ((0, 0), (1, 1), (1, 1), (0, 0)))
    groups = []
    for dh in range(2):
        for dw in range(2):
            cols = []
            for kh in range(3):
                for kw in range(3):
                    cols.append(xp[:, dh + kh::2, dw + kw::2, :][:, :Ho, :Wo, :])
            groups.append(jnp.concatenate(cols, axis=-1).reshape(B * Ho * Wo, 9 * C))
    return jnp.stack(groups, axis=0).astype(jnp.bfloat16)


def _im2col_3x3_pad1_spatial_major(x_nhwc, pad_batch_to=8):
    """(B,H,W,C) -> (H*W*pad_batch_to, 9C) bf16, rows ordered (h, w, batch),
    batch group zero-padded to pad_batch_to rows (sublane-tile aligned)."""
    B, H, W, C = x_nhwc.shape
    xp = jnp.pad(x_nhwc, ((0, 0), (1, 1), (1, 1), (0, 0)))
    cols = [xp[:, kh:kh + H, kw:kw + W, :] for kh in range(3) for kw in range(3)]
    y = jnp.concatenate(cols, axis=-1)                          # (B, H, W, 9C)
    y = jnp.transpose(y, (1, 2, 0, 3)).reshape(H * W, B, 9 * C)
    y = jnp.pad(y, ((0, 0), (0, pad_batch_to - B), (0, 0)))
    return y.reshape(H * W * pad_batch_to, 9 * C).astype(jnp.bfloat16)


# ----------------------------------------------------------------------------
# Parameters (PyTorch-native layouts) + one-time kernel-layout conversion
# ----------------------------------------------------------------------------
def init_params(key):
    """Parameters in native PyTorch layouts (Conv2d OIHW, Linear (out, in))."""
    ks = jax.random.split(key, 12)

    def he(k, shape, fan_in):
        return jax.random.normal(k, shape, jnp.float32) * jnp.sqrt(2.0 / fan_in)

    p = {}
    p["conv1_w"] = he(ks[0], (16, 1, 3, 3), 1 * 9)
    p["conv1_b"] = 0.1 * jax.random.normal(ks[1], (16,), jnp.float32)
    p["conv2_w"] = he(ks[2], (32, 16, 3, 3), 16 * 9)
    p["conv2_b"] = 0.1 * jax.random.normal(ks[3], (32,), jnp.float32)
    p["conv3_w"] = he(ks[4], (32, 32, 3, 3), 32 * 9)
    p["conv3_b"] = 0.1 * jax.random.normal(ks[5], (32,), jnp.float32)
    p["fc1_w"] = he(ks[6], (512, 32 * 7 * 7), 32 * 7 * 7)
    p["fc1_b"] = 0.1 * jax.random.normal(ks[7], (512,), jnp.float32)
    p["fc2_w"] = he(ks[8], (256, 512), 512)
    p["fc2_b"] = 0.1 * jax.random.normal(ks[9], (256,), jnp.float32)
    p["fc3_w"] = he(ks[10], (10, 256), 256)
    p["fc3_b"] = 0.1 * jax.random.normal(ks[11], (10,), jnp.float32)
    return p


def prepare_params(p):
    """One-time layout/dtype conversion: conv OIHW -> (9*Cin, Cout) GEMM mats,
    Linear (out,in) -> (in,out), PyTorch's NCHW flatten folded into fc1's
    weight, weights cast to bfloat16 (biases stay f32)."""
    bf = jnp.bfloat16
    q = {}

    def conv_mat(w):  # (Cout,Cin,3,3) -> (9*Cin, Cout), feature order (kh,kw,cin)
        cout, cin = w.shape[0], w.shape[1]
        return jnp.transpose(w, (2, 3, 1, 0)).reshape(9 * cin, cout)

    # conv1: block-diagonal weight for the lane-packed pool-fused kernel.
    w1m = conv_mat(p["conv1_w"])                                # (9, 16)
    wblk = jnp.zeros((36, 64), jnp.float32)
    for g in range(4):
        wblk = wblk.at[g * 9:(g + 1) * 9, g * 16:(g + 1) * 16].set(w1m)
    q["conv1_wblk"] = wblk.astype(bf)
    q["conv1_b4"] = jnp.tile(p["conv1_b"].reshape(1, 16), (1, 4))   # (1, 64) f32

    q["conv2_w"] = conv_mat(p["conv2_w"]).astype(bf)            # (144, 32)
    q["conv2_b"] = p["conv2_b"].reshape(1, 32)
    q["conv3_w"] = conv_mat(p["conv3_w"]).astype(bf)            # (288, 32)
    q["conv3_b"] = p["conv3_b"].reshape(1, 32)

    # fc1: PyTorch NCHW flatten index is c*49 + h*7 + w; regroup the weight to
    # (spatial s, channel c, out) so the fused kernel contracts (s, c) directly.
    w1 = p["fc1_w"].reshape(512, 32, 7, 7)                      # (out, c, h, w)
    q["fc1_w"] = jnp.transpose(w1, (2, 3, 1, 0)).reshape(49, 32, 512).astype(bf)
    q["fc1_b"] = p["fc1_b"].reshape(1, 512)
    q["fc2_w"] = p["fc2_w"].T.astype(bf)                        # (512, 256)
    q["fc2_b"] = p["fc2_b"].reshape(1, 256)
    q["fc3_w"] = p["fc3_w"].T.astype(bf)                        # (256, 10)
    q["fc3_b"] = p["fc3_b"].reshape(1, 10)
    return q


# ----------------------------------------------------------------------------
# Forward pass (semantics of ReluNetWide.forward)
# ----------------------------------------------------------------------------
def relu_net_wide_forward(q, x_nchw):
    """x_nchw: (B, 1, 28, 28) float32 -> logits (B, 10) float32."""
    B = x_nchw.shape[0]
    assert B <= 8, "fused conv3+FC kernel pads the batch group to 8 rows"
    x = jnp.transpose(x_nchw, (0, 2, 3, 1))                     # NHWC (B,28,28,1)

    # conv1 + ReLU + 2x2 maxpool (pool members lane-packed, block-diag weight)
    x = conv1_relu_pool_packed(_im2col_conv1_pool_packed(x),
                               q["conv1_wblk"], q["conv1_b4"])  # (B*14*14, 16)
    x = x.reshape(B, 14, 14, 16)

    # conv2 + ReLU + 2x2 maxpool (pool members grouped on leading axis)
    x = conv_relu_pool(_im2col_3x3_pad1_pool_grouped(x),
                       q["conv2_w"], q["conv2_b"])              # (B*7*7, 32)
    x = x.reshape(B, 7, 7, 32)

    # conv3 + ReLU + fc1 + ReLU + fc2 + ReLU + fc3 (single fused kernel)
    x3 = _im2col_3x3_pad1_spatial_major(x)                      # (49*8, 288)
    return conv3_fc_fused(x3, q["conv3_w"], q["conv3_b"],
                          q["fc1_w"], q["fc1_b"], q["fc2_w"], q["fc2_b"],
                          q["fc3_w"], q["fc3_b"], batch=B)


# ----------------------------------------------------------------------------
# Pure-JAX reference (mirror of the PyTorch module) for a correctness check
# ----------------------------------------------------------------------------
def reference_forward(p, x):
    hi = jax.lax.Precision.HIGHEST

    def conv(v, w, b):
        y = jax.lax.conv_general_dilated(
            v, w, window_strides=(1, 1), padding=((1, 1), (1, 1)),
            dimension_numbers=("NCHW", "OIHW", "NCHW"), precision=hi)
        return y + b.reshape(1, -1, 1, 1)

    def pool(v):
        return jax.lax.reduce_window(v, -jnp.inf, jax.lax.max,
                                     (1, 1, 2, 2), (1, 1, 2, 2), "VALID")

    relu = lambda v: jnp.maximum(v, 0.0)
    x = pool(relu(conv(x, p["conv1_w"], p["conv1_b"])))
    x = pool(relu(conv(x, p["conv2_w"], p["conv2_b"])))
    x = relu(conv(x, p["conv3_w"], p["conv3_b"]))
    x = x.reshape(x.shape[0], -1)                               # NCHW flatten
    x = relu(jnp.dot(x, p["fc1_w"].T, precision=hi) + p["fc1_b"])
    x = relu(jnp.dot(x, p["fc2_w"].T, precision=hi) + p["fc2_b"])
    return jnp.dot(x, p["fc3_w"].T, precision=hi) + p["fc3_b"]


if __name__ == "__main__":
    key = jax.random.PRNGKey(0)
    k_param, k_x = jax.random.split(key)
    torch_params = init_params(k_param)
    params = prepare_params(torch_params)        # one-time layout conversion
    # fc1 expects 32*7*7 after two 2x2 pools -> input must be (B, 1, 28, 28).
    x = jax.random.normal(k_x, (2, 1, 28, 28), jnp.float32)

    fwd = jax.jit(relu_net_wide_forward)
    out = jax.block_until_ready(fwd(params, x))

    assert out.shape == (2, 10)
    assert bool(jnp.all(jnp.isfinite(out)))

    # Cross-check against the pure-JAX replica of the PyTorch forward.
    # Kernels use bf16 inputs with f32 accumulation, the reference is full f32
    # HIGHEST precision, so compare with a relative tolerance.
    ref = reference_forward(torch_params, x)
    err = float(jnp.max(jnp.abs(out - ref)))
    scale = float(jnp.max(jnp.abs(ref)))
    assert err <= 0.07 * max(scale, 1.0), (
        f"mismatch vs reference: max abs err={err}, ref scale={scale}")

    print("KERNEL_OK")
</pallas_src>

<mosaic_0001>
module attributes {stable_mosaic.version = 11 : i64} {
  func.func @_conv1_pool_packed_kernel(%arg0: memref<392x36xbf16, #tpu.memory_space<vmem>>, %arg1: memref<36x64xbf16, #tpu.memory_space<vmem>>, %arg2: memref<1x64xf32, #tpu.memory_space<vmem>>, %arg3: memref<392x16xbf16, #tpu.memory_space<vmem>>) attributes {dimension_semantics = [], scalar_prefetch = 0 : i64, scratch_operands = 0 : i64, tpu.core_type = #tpu.core_type<tc>} {
    %c0 = arith.constant 0 : index
    %c0_0 = arith.constant 0 : index
    %0 = vector.load %arg0[%c0, %c0_0] : memref<392x36xbf16, #tpu.memory_space<vmem>>, vector<392x36xbf16>
    %c0_1 = arith.constant 0 : index
    %c0_2 = arith.constant 0 : index
    %1 = vector.load %arg1[%c0_1, %c0_2] : memref<36x64xbf16, #tpu.memory_space<vmem>>, vector<36x64xbf16>
    %cst = arith.constant dense<0.000000e+00> : vector<392x64xf32>
    %2 = tpu.matmul %0, %1, %cst {dimension_numbers = #tpu.dot_dimension_numbers<[1], [0], [0], [1], [0, 0, 1, 1], [], []>} : vector<392x36xbf16>, vector<36x64xbf16>, vector<392x64xf32> -> vector<392x64xf32>
    %c0_3 = arith.constant 0 : index
    %c0_4 = arith.constant 0 : index
    %3 = vector.load %arg2[%c0_3, %c0_4] : memref<1x64xf32, #tpu.memory_space<vmem>>, vector<1x64xf32>
    %4 = vector.broadcast %3 : vector<1x64xf32> to vector<392x64xf32>
    %5 = arith.addf %2, %4 : vector<392x64xf32>
    %6 = vector.extract_strided_slice %5 {offsets = [0, 0], sizes = [392, 16], strides = [1, 1]} : vector<392x64xf32> to vector<392x16xf32>
    %7 = vector.extract_strided_slice %5 {offsets = [0, 16], sizes = [392, 16], strides = [1, 1]} : vector<392x64xf32> to vector<392x16xf32>
    %8 = arith.maximumf %6, %7 : vector<392x16xf32>
    %9 = vector.extract_strided_slice %5 {offsets = [0, 32], sizes = [392, 16], strides = [1, 1]} : vector<392x64xf32> to vector<392x16xf32>
    %10 = arith.maximumf %8, %9 : vector<392x16xf32>
    %11 = vector.extract_strided_slice %5 {offsets = [0, 48], sizes = [392, 16], strides = [1, 1]} : vector<392x64xf32> to vector<392x16xf32>
    %12 = arith.maximumf %10, %11 : vector<392x16xf32>
    %cst_5 = arith.constant 0.000000e+00 : f32
    %13 = vector.broadcast %cst_5 : f32 to vector<392x16xf32>
    %14 = arith.maximumf %12, %13 : vector<392x16xf32>
    %15 = arith.truncf %14 : vector<392x16xf32> to vector<392x16xbf16>
    %c0_6 = arith.constant 0 : index
    %c0_7 = arith.constant 0 : index
    %16 = vector.load %arg3[%c0_6, %c0_7] : memref<392x16xbf16, #tpu.memory_space<vmem>>, vector<392x16xbf16>
    tpu.vector_store %arg3[%c0_6, %c0_7], %15 {strides = array<i32>} : memref<392x16xbf16, #tpu.memory_space<vmem>>, vector<392x16xbf16>,
    return
  }
}

module attributes {stable_mosaic.version = 11 : i64} {
  func.func @_conv_relu_pool_kernel(%arg0: memref<4x98x144xbf16, #tpu.memory_space<vmem>>, %arg1: memref<144x32xbf16, #tpu.memory_space<vmem>>, %arg2: memref<1x32xf32, #tpu.memory_space<vmem>>, %arg3: memref<98x32xbf16, #tpu.memory_space<vmem>>) attributes {dimension_semantics = [], scalar_prefetch = 0 : i64, scratch_operands = 0 : i64, tpu.core_type = #tpu.core_type<tc>} {
    %c0 = arith.constant 0 : index
    %c0_0 = arith.constant 0 : index
    %0 = vector.load %arg1[%c0, %c0_0] : memref<144x32xbf16, #tpu.memory_space<vmem>>, vector<144x32xbf16>
    %c0_1 = arith.constant 0 : index
    %c0_2 = arith.constant 0 : index
    %1 = vector.load %arg2[%c0_1, %c0_2] : memref<1x32xf32, #tpu.memory_space<vmem>>, vector<1x32xf32>
    %c0_3 = arith.constant 0 : index
    %c0_4 = arith.constant 0 : index
    %c0_5 = arith.constant 0 : index
    %2 = vector.load %arg0[%c0_3, %c0_4, %c0_5] : memref<4x98x144xbf16, #tpu.memory_space<vmem>>, vector<1x98x144xbf16>
    %3 = vector.shape_cast %2 : vector<1x98x144xbf16> to vector<98x144xbf16>
    %cst = arith.constant dense<0.000000e+00> : vector<98x32xf32>
    %4 = tpu.matmul %3, %0, %cst {dimension_numbers = #tpu.dot_dimension_numbers<[1], [0], [0], [1], [0, 0, 1, 1], [], []>} : vector<98x144xbf16>, vector<144x32xbf16>, vector<98x32xf32> -> vector<98x32xf32>
    %5 = vector.broadcast %1 : vector<1x32xf32> to vector<98x32xf32>
    %6 = arith.addf %4, %5 : vector<98x32xf32>
    %c1 = arith.constant 1 : index
    %c0_6 = arith.constant 0 : index
    %c0_7 = arith.constant 0 : index
    %7 = vector.load %arg0[%c1, %c0_6, %c0_7] : memref<4x98x144xbf16, #tpu.memory_space<vmem>>, vector<1x98x144xbf16>
    %8 = vector.shape_cast %7 : vector<1x98x144xbf16> to vector<98x144xbf16>
    %cst_8 = arith.constant dense<0.000000e+00> : vector<98x32xf32>
    %9 = tpu.matmul %8, %0, %cst_8 {dimension_numbers = #tpu.dot_dimension_numbers<[1], [0], [0], [1], [0, 0, 1, 1], [], []>} : vector<98x144xbf16>, vector<144x32xbf16>, vector<98x32xf32> -> vector<98x32xf32>
    %10 = vector.broadcast %1 : vector<1x32xf32> to vector<98x32xf32>
    %11 = arith.addf %9, %10 : vector<98x32xf32>
    %12 = arith.maximumf %6, %11 : vector<98x32xf32>
    %c2 = arith.constant 2 : index
    %c0_9 = arith.constant 0 : index
    %c0_10 = arith.constant 0 : index
    %13 = vector.load %arg0[%c2, %c0_9, %c0_10] : memref<4x98x144xbf16, #tpu.memory_space<vmem>>, vector<1x98x144xbf16>
    %14 = vector.shape_cast %13 : vector<1x98x144xbf16> to vector<98x144xbf16>
    %cst_11 = arith.constant dense<0.000000e+00> : vector<98x32xf32>
    %15 = tpu.matmul %14, %0, %cst_11 {dimension_numbers = #tpu.dot_dimension_numbers<[1], [0], [0], [1], [0, 0, 1, 1], [], []>} : vector<98x144xbf16>, vector<144x32xbf16>, vector<98x32xf32> -> vector<98x32xf32>
    %16 = vector.broadcast %1 : vector<1x32xf32> to vector<98x32xf32>
    %17 = arith.addf %15, %16 : vector<98x32xf32>
    %c3 = arith.constant 3 : index
    %c0_12 = arith.constant 0 : index
    %c0_13 = arith.constant 0 : index
    %18 = vector.load %arg0[%c3, %c0_12, %c0_13] : memref<4x98x144xbf16, #tpu.memory_space<vmem>>, vector<1x98x144xbf16>
    %19 = vector.shape_cast %18 : vector<1x98x144xbf16> to vector<98x144xbf16>
    %cst_14 = arith.constant dense<0.000000e+00> : vector<98x32xf32>
    %20 = tpu.matmul %19, %0, %cst_14 {dimension_numbers = #tpu.dot_dimension_numbers<[1], [0], [0], [1], [0, 0, 1, 1], [], []>} : vector<98x144xbf16>, vector<144x32xbf16>, vector<98x32xf32> -> vector<98x32xf32>
    %21 = vector.broadcast %1 : vector<1x32xf32> to vector<98x32xf32>
    %22 = arith.addf %20, %21 : vector<98x32xf32>
    %23 = arith.maximumf %17, %22 : vector<98x32xf32>
    %24 = arith.maximumf %12, %23 : vector<98x32xf32>
    %cst_15 = arith.constant 0.000000e+00 : f32
    %25 = vector.broadcast %cst_15 : f32 to vector<98x32xf32>
    %26 = arith.maximumf %24, %25 : vector<98x32xf32>
    %27 = arith.truncf %26 : vector<98x32xf32> to vector<98x32xbf16>
    %c0_16 = arith.constant 0 : index
    %c0_17 = arith.constant 0 : index
    %28 = vector.load %arg3[%c0_16, %c0_17] : memref<98x32xbf16, #tpu.memory_space<vmem>>, vector<98x32xbf16>
    tpu.vector_store %arg3[%c0_16, %c0_17], %27 {strides = array<i32>} : memref<98x32xbf16, #tpu.memory_space<vmem>>, vector<98x32xbf16>,
    return
  }
}

module attributes {stable_mosaic.version = 11 : i64} {
  func.func @_conv3_fc_fused_kernel(%arg0: memref<392x288xbf16, #tpu.memory_space<vmem>>, %arg1: memref<288x32xbf16, #tpu.memory_space<vmem>>, %arg2: memref<1x32xf32, #tpu.memory_space<vmem>>, %arg3: memref<49x32x512xbf16, #tpu.memory_space<vmem>>, %arg4: memref<1x512xf32, #tpu.memory_space<vmem>>, %arg5: memref<512x256xbf16, #tpu.memory_space<vmem>>, %arg6: memref<1x256xf32, #tpu.memory_space<vmem>>, %arg7: memref<256x10xbf16, #tpu.memory_space<vmem>>, %arg8: memref<1x10xf32, #tpu.memory_space<vmem>>, %arg9: memref<2x10xf32, #tpu.memory_space<vmem>>) attributes {dimension_semantics = [], scalar_prefetch = 0 : i64, scratch_operands = 0 : i64, tpu.core_type = #tpu.core_type<tc>} {
    %c0 = arith.constant 0 : index
    %c0_0 = arith.constant 0 : index
    %0 = vector.load %arg0[%c0, %c0_0] : memref<392x288xbf16, #tpu.memory_space<vmem>>, vector<392x288xbf16>
    %c0_1 = arith.constant 0 : index
    %c0_2 = arith.constant 0 : index
    %1 = vector.load %arg1[%c0_1, %c0_2] : memref<288x32xbf16, #tpu.memory_space<vmem>>, vector<288x32xbf16>
    %cst = arith.constant dense<0.000000e+00> : vector<392x32xf32>
    %2 = tpu.matmul %0, %1, %cst {dimension_numbers = #tpu.dot_dimension_numbers<[1], [0], [0], [1], [0, 0, 1, 1], [], []>} : vector<392x288xbf16>, vector<288x32xbf16>, vector<392x32xf32> -> vector<392x32xf32>
    %c0_3 = arith.constant 0 : index
    %c0_4 = arith.constant 0 : index
    %3 = vector.load %arg2[%c0_3, %c0_4] : memref<1x32xf32, #tpu.memory_space<vmem>>, vector<1x32xf32>
    %4 = vector.broadcast %3 : vector<1x32xf32> to vector<392x32xf32>
    %5 = arith.addf %2, %4 : vector<392x32xf32>
    %cst_5 = arith.constant 0.000000e+00 : f32
    %6 = vector.broadcast %cst_5 : f32 to vector<392x32xf32>
    %7 = arith.maximumf %5, %6 : vector<392x32xf32>
    %8 = vector.shape_cast %7 : vector<392x32xf32> to vector<49x8x32xf32>
    %9 = arith.truncf %8 : vector<49x8x32xf32> to vector<49x8x32xbf16>
    %c0_6 = arith.constant 0 : index
    %c0_7 = arith.constant 0 : index
    %c0_8 = arith.constant 0 : index
    %10 = vector.load %arg3[%c0_6, %c0_7, %c0_8] : memref<49x32x512xbf16, #tpu.memory_space<vmem>>, vector<49x32x512xbf16>
    %cst_9 = arith.constant dense<0.000000e+00> : vector<49x8x512xf32>
    %11 = tpu.matmul %9, %10, %cst_9 {dimension_numbers = #tpu.dot_dimension_numbers<[2], [1], [1], [2], [0, 0, 0, 1, 1, 2], [0], [0]>} : vector<49x8x32xbf16>, vector<49x32x512xbf16>, vector<49x8x512xf32> -> vector<49x8x512xf32>
    %cst_10 = arith.constant dense<0.000000e+00> : vector<8x512xf32>
    %12 = vector.multi_reduction <add>, %11, %cst_10 [0] : vector<49x8x512xf32> to vector<8x512xf32>
    %13 = vector.extract_strided_slice %12 {offsets = [0, 0], sizes = [2, 512], strides = [1, 1]} : vector<8x512xf32> to vector<2x512xf32>
    %c0_11 = arith.constant 0 : index
    %c0_12 = arith.constant 0 : index
    %14 = vector.load %arg4[%c0_11, %c0_12] : memref<1x512xf32, #tpu.memory_space<vmem>>, vector<1x512xf32>
    %15 = vector.broadcast %14 : vector<1x512xf32> to vector<2x512xf32>
    %16 = arith.addf %13, %15 : vector<2x512xf32>
    %cst_13 = arith.constant 0.000000e+00 : f32
    %17 = vector.broadcast %cst_13 : f32 to vector<2x512xf32>
    %18 = arith.maximumf %16, %17 : vector<2x512xf32>
    %19 = arith.truncf %18 : vector<2x512xf32> to vector<2x512xbf16>
    %c0_14 = arith.constant 0 : index
    %c0_15 = arith.constant 0 : index
    %20 = vector.load %arg5[%c0_14, %c0_15] : memref<512x256xbf16, #tpu.memory_space<vmem>>, vector<512x256xbf16>
    %cst_16 = arith.constant dense<0.000000e+00> : vector<2x256xf32>
    %21 = tpu.matmul %19, %20, %cst_16 {dimension_numbers = #tpu.dot_dimension_numbers<[1], [0], [0], [1], [0, 0, 1, 1], [], []>} : vector<2x512xbf16>, vector<512x256xbf16>, vector<2x256xf32> -> vector<2x256xf32>
    %c0_17 = arith.constant 0 : index
    %c0_18 = arith.constant 0 : index
    %22 = vector.load %arg6[%c0_17, %c0_18] : memref<1x256xf32, #tpu.memory_space<vmem>>, vector<1x256xf32>
    %23 = vector.broadcast %22 : vector<1x256xf32> to vector<2x256xf32>
    %24 = arith.addf %21, %23 : vector<2x256xf32>
    %cst_19 = arith.constant 0.000000e+00 : f32
    %25 = vector.broadcast %cst_19 : f32 to vector<2x256xf32>
    %26 = arith.maximumf %24, %25 : vector<2x256xf32>
    %27 = arith.truncf %26 : vector<2x256xf32> to vector<2x256xbf16>
    %c0_20 = arith.constant 0 : index
    %c0_21 = arith.constant 0 : index
    %28 = vector.load %arg7[%c0_20, %c0_21] : memref<256x10xbf16, #tpu.memory_space<vmem>>, vector<256x10xbf16>
    %cst_22 = arith.constant dense<0.000000e+00> : vector<2x10xf32>
    %29 = tpu.matmul %27, %28, %cst_22 {dimension_numbers = #tpu.dot_dimension_numbers<[1], [0], [0], [1], [0, 0, 1, 1], [], []>} : vector<2x256xbf16>, vector<256x10xbf16>, vector<2x10xf32> -> vector<2x10xf32>
    %c0_23 = arith.constant 0 : index
    %c0_24 = arith.constant 0 : index
    %30 = vector.load %arg8[%c0_23, %c0_24] : memref<1x10xf32, #tpu.memory_space<vmem>>, vector<1x10xf32>
    %31 = vector.broadcast %30 : vector<1x10xf32> to vector<2x10xf32>
    %32 = arith.addf %29, %31 : vector<2x10xf32>
    %c0_25 = arith.constant 0 : index
    %c0_26 = arith.constant 0 : index
    %33 = vector.load %arg9[%c0_25, %c0_26] : memref<2x10xf32, #tpu.memory_space<vmem>>, vector<2x10xf32>
    tpu.vector_store %arg9[%c0_25, %c0_26], %32 {strides = array<i32>} : memref<2x10xf32, #tpu.memory_space<vmem>>, vector<2x10xf32>,
    return
  }
}

</mosaic_0001>

<bundles_post_ra>
// kernel: relu_net_wide_forward.3
= control target key start
LH: loop header
LB: loop body
LE: loop exit
PB: predicated region body
PF: predicated region fallthrough
CT: control target
= control target key end

     0   :  { %vm290_vm0 = vcmask 1041408   ;;  %v2148_v0 = vmov 0.0   ;;  %vm2149_vm1 = vmmov 0   ;;  %vm214_vm2 = vcmask 293888   ;;  %s2152_s14 = smov 80   ;;  %s2896_s1 = inlined_call_operand.vmem [shape: bf16[36,64], index: 1, kind: input, shape index: {}]   ;;  %s2897_s0 = inlined_call_operand.vmem [shape: bf16[392,36], index: 0, kind: input, shape index: {}]   ;;  %s2898_s2 = inlined_call_operand.vmem [shape: f32[1,64], index: 2, kind: input, shape index: {}]   ;;  %s2899_s3 = inlined_call_operand.vmem [shape: bf16[392,16], index: 3, kind: output, shape index: {}]  }
   0x1   :  { %1643 = vmatprep.subr.bf16.mxu0 %v2148_v0  ;;  %1749 = vmatprep.subr.bf16.mxu1 %v2148_v0  ;;  %v2120_v1 = vld [vmem:[%s2896_s1 + $0x10] ss:$0 sps:$4 sm:$0x33]   ;;  %v2121_v3 = vld [vmem:[%s2896_s1 + $0x8] sm:$0xff]   ;;  %v2122_v4 = vld [vmem:[%s2896_s1] sm:$0xff]   ;;  %vm1409_vm3 = vcmask 125952  }
   0x2   :  { %1649 = vmatprep.mubr.msk.bf16.mxu0 %vm2149_vm1, %v2148_v0  ;;  %1701 = vmatprep.mubr.msk.bf16.mxu1 %vm2149_vm1, %v2148_v0  ;;  %v292_v2 = vsel %vm290_vm0, %v2120_v1, 0  ;;  %v2123_v5 = vld [vmem:[%s2897_s0] sm:$0xff]   ;;  %v2124_v6 = vld [vmem:[%s2897_s0 + $0x68] sm:$0xff]   ;;  %v2126_v8 = vld [vmem:[%s2897_s0 + $0x70] sm:$0xff]  }
   0x3   :  { %1644 = vmatpush3.bf16.msra.mxu0 %v292_v2  ;;  %1752 = vmatpush3.bf16.msra.mxu1 %v292_v2  ;;  %v2125_v7 = vld [vmem:[%s2897_s0 + $0x8] sm:$0xff]   ;;  %v2127_v9 = vld [vmem:[%s2897_s0 + $0x10] sm:$0xff]   ;;  %v2128_v10 = vld [vmem:[%s2897_s0 + $0x78] sm:$0xff]  }
   0x4   :  { %1645 = vmatprep.subr.bf16.mxu0 %v2148_v0  ;;  %1750 = vmatprep.subr.bf16.mxu1 %v2148_v0  ;;  %v2129_v11 = vld [vmem:[%s2897_s0 + $0x80] sm:$0xff]   ;;  %v2130_v12 = vld [vmem:[%s2897_s0 + $0x18] sm:$0xff]   ;;  %v2132_v14 = vld [vmem:[%s2897_s0 + $0x88] sm:$0xff]  }
   0x5   :  { %v2131_v13 = vld [vmem:[%s2897_s0 + $0x20] sm:$0xff]   ;;  %v2133_v15 = vld [vmem:[%s2897_s0 + $0x90] sm:$0xff]   ;;  %v2134_v16 = vld [vmem:[%s2897_s0 + $0x28] sm:$0xff]  }
   0x6   :  { %v2135_v17 = vld [vmem:[%s2897_s0 + $0x30] sm:$0xff]   ;;  %v2136_v18 = vld [vmem:[%s2897_s0 + $0x98] sm:$0xff]   ;;  %v2137_v19 = vld [vmem:[%s2897_s0 + $0xa0] sm:$0xff]  }
   0x7   :  { %1646 = vmatpush3.bf16.msra.mxu0 %v2121_v3  ;;  %1753 = vmatpush3.bf16.msra.mxu1 %v2121_v3  ;;  %v2138_v20 = vld [vmem:[%s2897_s0 + $0x38] sm:$0xff]   ;;  %v2139_v21 = vld [vmem:[%s2897_s0 + $0x40] sm:$0xff]   ;;  %v2140_v22 = vld [vmem:[%s2897_s0 + $0xa8] sm:$0xff]  }
   0x8   :  { %1647 = vmatprep.subr.bf16.mxu0 %v2148_v0  ;;  %1751 = vmatprep.subr.bf16.mxu1 %v2148_v0  ;;  %v2141_v23 = vld [vmem:[%s2897_s0 + $0xb0] sm:$0xff]   ;;  %v2142_v24 = vld [vmem:[%s2897_s0 + $0x48] sm:$0xff]   ;;  %v2144_v26 = vld [vmem:[%s2897_s0 + $0xb8] sm:$0xff]  }
   0x9   :  { %v2143_v25 = vld [vmem:[%s2897_s0 + $0x50] sm:$0xff]   ;;  %v2145_v27 = vld [vmem:[%s2897_s0 + $0x58] sm:$0xff]   ;;  %v2146_v28 = vld [vmem:[%s2897_s0 + $0xc0] ss:$0 sps:$4 sm:$0xff]  }
   0xa   :  { %v2147_v29 = vld [vmem:[%s2897_s0 + $0x60] sm:$0xff]   ;;  %s2150_s0 = smov 112  }
   0xb   :  { %1648 = vmatpush3.bf16.msra.mxu0 %v2122_v4  ;;  %1754 = vmatpush3.bf16.msra.mxu1 %v2122_v4  ;;  %v2341_v32 = vld [vmem:[%s2898_s2] ss:$0 sm:$0xff]  ;;  %s2151_s2 = smov 96  }
   0xe   :  { %1650 = vmatmul.mubr.msk.bf16.vlgmr.msra.gmra.mxu0 %vm214_vm2, %v2123_v5  ;;  %1702 = vmatmul.mubr.msk.bf16.vlgmr.msra.gmra.mxu1 %vm214_vm2, %v2124_v6 }
   0xf   :  { %1653 = vmatprep.mubr.msk.bf16.mxu0 %vm2149_vm1, %v2148_v0  ;;  %1705 = vmatprep.mubr.msk.bf16.mxu1 %vm2149_vm1, %v2148_v0 }
  0x16   :  { %1654 = vmatmul.mubr.msk.bf16.gmra.mxu0 %vm214_vm2, %v2125_v7  ;;  %1706 = vmatmul.mubr.msk.bf16.gmra.mxu1 %vm214_vm2, %v2126_v8 }
  0x17   :  { %1657 = vmatprep.mubr.msk.bf16.mxu0 %vm2149_vm1, %v2148_v0  ;;  %1709 = vmatprep.mubr.msk.bf16.mxu1 %vm2149_vm1, %v2148_v0 }
  0x1e   :  { %1658 = vmatmul.mubr.msk.bf16.gmra.mxu0 %vm214_vm2, %v2127_v9  ;;  %1710 = vmatmul.mubr.msk.bf16.gmra.mxu1 %vm214_vm2, %v2128_v10 }
  0x1f   :  { %1713 = vmatprep.mubr.msk.bf16.mxu1 %vm2149_vm1, %v2148_v0  ;;  %1661 = vmatprep.mubr.msk.bf16.mxu0 %vm2149_vm1, %v2148_v0 }
  0x26   :  { %1714 = vmatmul.mubr.msk.bf16.gmra.mxu1 %vm214_vm2, %v2129_v11  ;;  %1662 = vmatmul.mubr.msk.bf16.gmra.mxu0 %vm214_vm2, %v2130_v12 }
  0x27   :  { %1665 = vmatprep.mubr.msk.bf16.mxu0 %vm2149_vm1, %v2148_v0  ;;  %1717 = vmatprep.mubr.msk.bf16.mxu1 %vm2149_vm1, %v2148_v0 }
  0x2e   :  { %1666 = vmatmul.mubr.msk.bf16.gmra.mxu0 %vm214_vm2, %v2131_v13  ;;  %1718 = vmatmul.mubr.msk.bf16.gmra.mxu1 %vm214_vm2, %v2132_v14 }
  0x2f   :  { %1721 = vmatprep.mubr.msk.bf16.mxu1 %vm2149_vm1, %v2148_v0  ;;  %1669 = vmatprep.mubr.msk.bf16.mxu0 %vm2149_vm1, %v2148_v0 }
  0x36   :  { %1722 = vmatmul.mubr.msk.bf16.gmra.mxu1 %vm214_vm2, %v2133_v15  ;;  %1670 = vmatmul.mubr.msk.bf16.gmra.mxu0 %vm214_vm2, %v2134_v16 }
  0x37   :  { %1673 = vmatprep.mubr.msk.bf16.mxu0 %vm2149_vm1, %v2148_v0  ;;  %1725 = vmatprep.mubr.msk.bf16.mxu1 %vm2149_vm1, %v2148_v0 }
  0x3e   :  { %1674 = vmatmul.mubr.msk.bf16.gmra.mxu0 %vm214_vm2, %v2135_v17  ;;  %1726 = vmatmul.mubr.msk.bf16.gmra.mxu1 %vm214_vm2, %v2136_v18 }
  0x3f   :  { %1729 = vmatprep.mubr.msk.bf16.mxu1 %vm2149_vm1, %v2148_v0  ;;  %1677 = vmatprep.mubr.msk.bf16.mxu0 %vm2149_vm1, %v2148_v0 }
  0x46   :  { %1730 = vmatmul.mubr.msk.bf16.gmra.mxu1 %vm214_vm2, %v2137_v19  ;;  %1678 = vmatmul.mubr.msk.bf16.gmra.mxu0 %vm214_vm2, %v2138_v20 }
  0x47   :  { %1681 = vmatprep.mubr.msk.bf16.mxu0 %vm2149_vm1, %v2148_v0  ;;  %1733 = vmatprep.mubr.msk.bf16.mxu1 %vm2149_vm1, %v2148_v0 }
  0x4e   :  { %1682 = vmatmul.mubr.msk.bf16.gmra.mxu0 %vm214_vm2, %v2139_v21  ;;  %1734 = vmatmul.mubr.msk.bf16.gmra.mxu1 %vm214_vm2, %v2140_v22 }
  0x4f   :  { %1737 = vmatprep.mubr.msk.bf16.mxu1 %vm2149_vm1, %v2148_v0  ;;  %1685 = vmatprep.mubr.msk.bf16.mxu0 %vm2149_vm1, %v2148_v0 }
  0x56   :  { %1738 = vmatmul.mubr.msk.bf16.gmra.mxu1 %vm214_vm2, %v2141_v23  ;;  %1686 = vmatmul.mubr.msk.bf16.gmra.mxu0 %vm214_vm2, %v2142_v24 }
  0x57   :  { %1689 = vmatprep.mubr.msk.bf16.mxu0 %vm2149_vm1, %v2148_v0  ;;  %1741 = vmatprep.mubr.msk.bf16.mxu1 %vm2149_vm1, %v2148_v0 }
  0x5e   :  { %1690 = vmatmul.mubr.msk.bf16.gmra.mxu0 %vm214_vm2, %v2143_v25  ;;  %1742 = vmatmul.mubr.msk.bf16.gmra.mxu1 %vm214_vm2, %v2144_v26 }
  0x5f   :  { %1693 = vmatprep.mubr.msk.bf16.mxu0 %vm2149_vm1, %v2148_v0  ;;  %1745 = vmatprep.mubr.msk.bf16.mxu1 %vm2149_vm1, %v2148_v0 }
  0x66   :  { %1694 = vmatmul.mubr.msk.bf16.gmra.mxu0 %vm214_vm2, %v2145_v27  ;;  %1746 = vmatmul.mubr.msk.bf16.gmra.mxu1 %vm214_vm2, %v2146_v28 }
  0x67   :  { %1697 = vmatprep.mubr.msk.bf16.mxu0 %vm2149_vm1, %v2148_v0 }
  0x6e   :  { %1698 = vmatmul.mubr.msk.bf16.gmra.mxu0 %vm214_vm2, %v2147_v29 }
  0xce   :  { %v328_v30 = vpop.f32.mrf.mxu0  ;;  %v432_v31 = vpop.f32.mrf.mxu1 }
  0xcf   :  { %v2344_v37 = vadd.f32 %v2341_v32, %v328_v30  ;;  %v2347_v38 = vadd.f32 %v2341_v32, %v432_v31 }
  0xd0   :  { %v1651_v33 = vpop.f32.mrf.mxu0  ;;  %v1703_v34 = vpop.f32.mrf.mxu1 }
  0xd2   :  { %v331_v35 = vpop.f32.mrf.mxu0  ;;  %v435_v36 = vpop.f32.mrf.mxu1 }
  0xd3   :  { %v2350_v39 = vadd.f32 %v2341_v32, %v331_v35  ;;  %v2353_v40 = vadd.f32 %v2341_v32, %v435_v36 }
  0xd4   :  { %v1652_v41 = vpop.f32.mrf.mxu0  ;;  %v1704_v42 = vpop.f32.mrf.mxu1 }
  0xd5   :  { %v1765_v43 = vpack.i.bf16 %v2353_v40, %v2347_v38  ;;  %v1760_v44 = vpack.i.bf16 %v2350_v39, %v2344_v37 }
  0xd6   :  { %v336_v45 = vpop.f32.mrf.mxu0  ;;  %v440_v46 = vpop.f32.mrf.mxu1 }
  0xd7   :  { %1766 = vrot.lane.b32.xlu1 %v1765_v43, %s2150_s0  ;;  %1761 = vrot.lane.b32.xlu0 %v1760_v44, %s2150_s0  ;;  %v2364_v53 = vadd.f32 %v2341_v32, %v336_v45  ;;  %v2367_v54 = vadd.f32 %v2341_v32, %v440_v46 }
  0xd8   :  { %v1655_v47 = vpop.f32.mrf.mxu0  ;;  %v1707_v48 = vpop.f32.mrf.mxu1 }
  0xda   :  { %v339_v49 = vpop.f32.mrf.mxu0  ;;  %v443_v50 = vpop.f32.mrf.mxu1 }
  0xdb   :  { %1771 = vrot.lane.b32.xlu1 %v1760_v44, %s2151_s2  ;;  %1776 = vrot.lane.b32.xlu0 %v1765_v43, %s2151_s2  ;;  %v2370_v55 = vadd.f32 %v2341_v32, %v339_v49  ;;  %v2373_v56 = vadd.f32 %v2341_v32, %v443_v50 }
  0xdc   :  { %v1656_v51 = vpop.f32.mrf.mxu0  ;;  %v1708_v52 = vpop.f32.mrf.mxu1 }
  0xdd   :  { %v1805_v61 = vpack.i.bf16 %v2373_v56, %v2367_v54  ;;  %v1790_v62 = vpack.i.bf16 %v2370_v55, %v2364_v53 }
  0xde   :  { %v344_v57 = vpop.f32.mrf.mxu0  ;;  %v448_v58 = vpop.f32.mrf.mxu1 }
  0xdf   :  { %1786 = vrot.lane.b32.xlu1 %v1765_v43, %s2152_s14  ;;  %1781 = vrot.lane.b32.xlu0 %v1760_v44, %s2152_s14  ;;  %v2384_v3 = vadd.f32 %v2341_v32, %v344_v57  ;;  %v2392_v9 = vadd.f32 %v2341_v32, %v448_v58 }
  0xe0   :  { %v1659_v59 = vpop.f32.mrf.mxu0  ;;  %v1711_v60 = vpop.f32.mrf.mxu1 }
  0xe2   :  { %v347_v63 = vpop.f32.mrf.mxu0  ;;  %v451_v0 = vpop.f32.mrf.mxu1 }
  0xe3   :  { %1806 = vrot.lane.b32.xlu1 %v1805_v61, %s2151_s2  ;;  %1791 = vrot.lane.b32.xlu0 %v1790_v62, %s2150_s0  ;;  %v2387_v4 = vadd.f32 %v2341_v32, %v347_v63  ;;  %v2395_v10 = vadd.f32 %v2341_v32, %v451_v0 }
  0xe4   :  { %v1660_v1 = vpop.f32.mrf.mxu0  ;;  %v1712_v2 = vpop.f32.mrf.mxu1 }
  0xe5   :  { %v1820_v11 = vpack.i.bf16 %v2387_v4, %v2384_v3  ;;  %v1825_v16 = vpack.i.bf16 %v2395_v10, %v2392_v9 }
  0xe6   :  { %v456_v5 = vpop.f32.mrf.mxu1  ;;  %v352_v6 = vpop.f32.mrf.mxu0 }
  0xe7   :  { %1811 = vrot.lane.b32.xlu1 %v1790_v62, %s2152_s14  ;;  %1796 = vrot.lane.b32.xlu0 %v1805_v61, %s2150_s0  ;;  %v2408_v25 = vadd.f32 %v2341_v32, %v456_v5  ;;  %v2411_v26 = vadd.f32 %v2341_v32, %v352_v6 }
  0xe8   :  { %v1715_v7 = vpop.f32.mrf.mxu1  ;;  %v1663_v8 = vpop.f32.mrf.mxu0 }
  0xea   :  { %v459_v12 = vpop.f32.mrf.mxu1  ;;  %v355_v13 = vpop.f32.mrf.mxu0 }
  0xeb   :  { %1801 = vrot.lane.b32.xlu0 %v1790_v62, %s2151_s2  ;;  %1821 = vrot.lane.b32.xlu1 %v1820_v11, %s2150_s0  ;;  %v2414_v27 = vadd.f32 %v2341_v32, %v459_v12  ;;  %v2417_v28 = vadd.f32 %v2341_v32, %v355_v13 }
  0xec   :  { %v1716_v14 = vpop.f32.mrf.mxu1  ;;  %v1664_v15 = vpop.f32.mrf.mxu0 }
  0xed   :  { %v1855_v34 = vpack.i.bf16 %v2414_v27, %v2408_v25  ;;  %v1850_v35 = vpack.i.bf16 %v2417_v28, %v2411_v26 }
  0xee   :  { %v360_v17 = vpop.f32.mrf.mxu0  ;;  %v464_v18 = vpop.f32.mrf.mxu1 }
  0xef   :  { %1816 = vrot.lane.b32.xlu0 %v1805_v61, %s2152_s14  ;;  %1826 = vrot.lane.b32.xlu1 %v1825_v16, %s2150_s0  ;;  %v2430_v48 = vadd.f32 %v2341_v32, %v360_v17  ;;  %v2433_v49 = vadd.f32 %v2341_v32, %v464_v18 }
  0xf0   :  { %v1667_v19 = vpop.f32.mrf.mxu0  ;;  %v1719_v20 = vpop.f32.mrf.mxu1 }
  0xf2   :  { %v363_v21 = vpop.f32.mrf.mxu0  ;;  %v467_v22 = vpop.f32.mrf.mxu1 }
  0xf3   :  { %1836 = vrot.lane.b32.xlu0 %v1825_v16, %s2151_s2  ;;  %1831 = vrot.lane.b32.xlu1 %v1820_v11, %s2151_s2  ;;  %v2436_v50 = vadd.f32 %v2341_v32, %v363_v21  ;;  %v2439_v51 = vadd.f32 %v2341_v32, %v467_v22 }
  0xf4   :  { %v1668_v23 = vpop.f32.mrf.mxu0  ;;  %v1720_v24 = vpop.f32.mrf.mxu1 }
  0xf5   :  { %v1885_v60 = vpack.i.bf16 %v2439_v51, %v2433_v49  ;;  %v1880_v61 = vpack.i.bf16 %v2436_v50, %v2430_v48 }
  0xf6   :  { %v472_v29 = vpop.f32.mrf.mxu1  ;;  %v368_v30 = vpop.f32.mrf.mxu0 }
  0xf7   :  { %1841 = vrot.lane.b32.xlu0 %v1820_v11, %s2152_s14  ;;  %1846 = vrot.lane.b32.xlu1 %v1825_v16, %s2152_s14  ;;  %v2452_v8 = vadd.f32 %v2341_v32, %v472_v29  ;;  %v2455_v11 = vadd.f32 %v2341_v32, %v368_v30 }
  0xf8   :  { %v1723_v31 = vpop.f32.mrf.mxu1  ;;  %v1671_v33 = vpop.f32.mrf.mxu0 }
  0xfa   :  { %v475_v36 = vpop.f32.mrf.mxu1  ;;  %v371_v41 = vpop.f32.mrf.mxu0 }
  0xfb   :  { %1856 = vrot.lane.b32.xlu0 %v1855_v34, %s2150_s0  ;;  %1851 = vrot.lane.b32.xlu1 %v1850_v35, %s2150_s0  ;;  %v2458_v12 = vadd.f32 %v2341_v32, %v475_v36  ;;  %v2461_v13 = vadd.f32 %v2341_v32, %v371_v41 }
  0xfc   :  { %v1724_v42 = vpop.f32.mrf.mxu1  ;;  %v1672_v43 = vpop.f32.mrf.mxu0 }
  0xfd   :  { %v1915_v18 = vpack.i.bf16 %v2458_v12, %v2452_v8  ;;  %v1910_v19 = vpack.i.bf16 %v2461_v13, %v2455_v11 }
  0xfe   :  { %v376_v44 = vpop.f32.mrf.mxu0  ;;  %v480_v45 = vpop.f32.mrf.mxu1 }
  0xff   :  { %1861 = vrot.lane.b32.xlu0 %v1850_v35, %s2151_s2  ;;  %1866 = vrot.lane.b32.xlu1 %v1855_v34, %s2151_s2  ;;  %v2482_v33 = vadd.f32 %v2341_v32, %v376_v44 }
 0x100   :  { %v1675_v46 = vpop.f32.mrf.mxu0  ;;  %v1727_v47 = vpop.f32.mrf.mxu1 }
 0x102   :  { %v379_v52 = vpop.f32.mrf.mxu0  ;;  %v483_v57 = vpop.f32.mrf.mxu1 }
 0x103   :  { %1876 = vrot.lane.b32.xlu0 %v1855_v34, %s2152_s14  ;;  %1871 = vrot.lane.b32.xlu1 %v1850_v35, %s2152_s14  ;;  %v2485_v34 = vadd.f32 %v2341_v32, %v480_v45  ;;  %v2488_v35 = vadd.f32 %v2341_v32, %v379_v52  ;;  %v2491_v36 = vadd.f32 %v2341_v32, %v483_v57 }
 0x104   :  { %v1676_v58 = vpop.f32.mrf.mxu0  ;;  %v1728_v59 = vpop.f32.mrf.mxu1 }
 0x105   :  { %v1945_v44 = vpack.i.bf16 %v2491_v36, %v2485_v34  ;;  %v1940_v45 = vpack.i.bf16 %v2488_v35, %v2482_v33 }
 0x106   :  { %v488_v62 = vpop.f32.mrf.mxu1  ;;  %v384_v63 = vpop.f32.mrf.mxu0 }
 0x107   :  { %1886 = vrot.lane.b32.xlu1 %v1885_v60, %s2150_s0  ;;  %1881 = vrot.lane.b32.xlu0 %v1880_v61, %s2150_s0 }
 0x108   :  { %v1731_v0 = vpop.f32.mrf.mxu1  ;;  %v1679_v1 = vpop.f32.mrf.mxu0 }
 0x109   :  { %v2504_v1 = vadd.f32 %v2341_v32, %v488_v62 }
 0x10a   :  { %v491_v2 = vpop.f32.mrf.mxu1  ;;  %v387_v5 = vpop.f32.mrf.mxu0 }
 0x10b   :  { %1891 = vrot.lane.b32.xlu1 %v1880_v61, %s2151_s2  ;;  %1896 = vrot.lane.b32.xlu0 %v1885_v60, %s2151_s2 }
 0x10c   :  { %v1732_v6 = vpop.f32.mrf.mxu1  ;;  %v1680_v7 = vpop.f32.mrf.mxu0 }
 0x10d   :  { %v2507_v6 = vadd.f32 %v2341_v32, %v384_v63  ;;  %v2510_v7 = vadd.f32 %v2341_v32, %v491_v2 }
 0x10e   :  { %v2463_v14 = vpop.f32.mrf.mxu0  ;;  %v2465_v15 = vpop.f32.mrf.mxu1 }
 0x10f   :  { %1906 = vrot.lane.b32.xlu1 %v1885_v60, %s2152_s14  ;;  %1901 = vrot.lane.b32.xlu0 %v1880_v61, %s2152_s14  ;;  %v1975_v63 = vpack.i.bf16 %v2510_v7, %v2504_v1 }
 0x110   :  { %v1683_v16 = vpop.f32.mrf.mxu0  ;;  %v1735_v17 = vpop.f32.mrf.mxu1 }
 0x111   :  { %v2513_v16 = vadd.f32 %v2341_v32, %v387_v5 }
 0x112   :  { %v395_v20 = vpop.f32.mrf.mxu0  ;;  %v499_v21 = vpop.f32.mrf.mxu1 }
 0x113   :  { %1916 = vrot.lane.b32.xlu0 %v1915_v18, %s2150_s0  ;;  %1911 = vrot.lane.b32.xlu1 %v1910_v19, %s2150_s0  ;;  %v1970_v2 = vpack.i.bf16 %v2513_v16, %v2507_v6 }
 0x114   :  { %v1684_v22 = vpop.f32.mrf.mxu0  ;;  %v1736_v23 = vpop.f32.mrf.mxu1 }
 0x116   :  { %v2475_v24 = vpop.f32.mrf.mxu1  ;;  %v2477_v29 = vpop.f32.mrf.mxu0 }
 0x117   :  { %1921 = vrot.lane.b32.xlu0 %v1910_v19, %s2151_s2  ;;  %1926 = vrot.lane.b32.xlu1 %v1915_v18, %s2151_s2 }
 0x118   :  { %v1739_v30 = vpop.f32.mrf.mxu1  ;;  %v1687_v31 = vpop.f32.mrf.mxu0 }
 0x11a   :  { %v507_v41 = vpop.f32.mrf.mxu1  ;;  %v403_v42 = vpop.f32.mrf.mxu0 }
 0x11b   :  { %1936 = vrot.lane.b32.xlu0 %v1915_v18, %s2152_s14  ;;  %1931 = vrot.lane.b32.xlu1 %v1910_v19, %s2152_s14 }
 0x11c   :  { %v1740_v43 = vpop.f32.mrf.mxu1  ;;  %v1688_v46 = vpop.f32.mrf.mxu0 }
 0x11d   :  { %v2535_v46 = vadd.f32 %v2341_v32, %v2463_v14 }
 0x11e   :  { %v408_v47 = vpop.f32.mrf.mxu0  ;;  %v512_v52 = vpop.f32.mrf.mxu1 }
 0x11f   :  { %1946 = vrot.lane.b32.xlu1 %v1945_v44, %s2150_s0  ;;  %1941 = vrot.lane.b32.xlu0 %v1940_v45, %s2150_s0 }
 0x120   :  { %v1691_v57 = vpop.f32.mrf.mxu0  ;;  %v1743_v58 = vpop.f32.mrf.mxu1 }
 0x121   :  { %v2545_v57 = vadd.f32 %v2341_v32, %v499_v21  ;;  %v2565_v21 = vadd.f32 %v2341_v32, %v2477_v29  ;;  %v2584_v29 = vadd.f32 %v2341_v32, %v408_v47 }
 0x122   :  { %v411_v59 = vpop.f32.mrf.mxu0  ;;  %v515_v60 = vpop.f32.mrf.mxu1 }
 0x123   :  { %1951 = vrot.lane.b32.xlu1 %v1940_v45, %s2151_s2  ;;  %1956 = vrot.lane.b32.xlu0 %v1945_v44, %s2151_s2  ;;  %2909 = vst [vmem:[#allocation3_spill] sm:$0xff] %v2565_v21  ;;  %2912 = vst [vmem:[#allocation6_spill] sm:$0xff] %v2584_v29 }
 0x124   :  { %v1692_v61 = vpop.f32.mrf.mxu0  ;;  %v1744_v0 = vpop.f32.mrf.mxu1 }
 0x125   :  { %v2568_v0 = vadd.f32 %v2341_v32, %v507_v41  ;;  %v2587_v41 = vadd.f32 %v2341_v32, %v512_v52 }
 0x126   :  { %v2515_v17 = vpop.f32.mrf.mxu0  ;;  %v2517_v18 = vpop.f32.mrf.mxu1 }
 0x127   :  { %1966 = vrot.lane.b32.xlu1 %v1945_v44, %s2152_s14  ;;  %1961 = vrot.lane.b32.xlu0 %v1940_v45, %s2152_s14  ;;  %v2539_v44 = vadd.f32 %v2341_v32, %v2465_v15  ;;  %v2542_v45 = vadd.f32 %v2341_v32, %v395_v20  ;;  %v2561_v20 = vadd.f32 %v2341_v32, %v2475_v24 }
 0x128   :  { %v1695_v19 = vpop.f32.mrf.mxu0  ;;  %v1747_v62 = vpop.f32.mrf.mxu1  ;;  %2910 = vst [vmem:[#allocation4_spill] sm:$0xff] %v2568_v0  ;;  %2913 = vst [vmem:[#allocation7_spill] sm:$0xff] %v2587_v41 }
 0x129   :  { %v2005_v14 = vpack.i.bf16 %v2545_v57, %v2539_v44  ;;  %v2000_v15 = vpack.i.bf16 %v2542_v45, %v2535_v46  ;;  %2908 = vst [vmem:[#allocation2_spill] sm:$0xff] %v2561_v20  ;;  %v2571_v19 = vadd.f32 %v2341_v32, %v403_v42  ;;  %v2035_v62 = vpack.i.bf16 %v2568_v0, %v2561_v20 }
 0x12a   :  { %v2525_v22 = vpop.f32.mrf.mxu0  ;;  %v523_v5 = vpop.f32.mrf.mxu1  ;;  %v2590_v42 = vadd.f32 %v2341_v32, %v411_v59 }
 0x12b   :  { %1976 = vrot.lane.b32.xlu0 %v1975_v63, %s2150_s0  ;;  %1971 = vrot.lane.b32.xlu1 %v1970_v2, %s2150_s0  ;;  %2911 = vst [vmem:[#allocation5_spill] sm:$0xff] %v2571_v19  ;;  %v2030_v24 = vpack.i.bf16 %v2571_v19, %v2565_v21 }
 0x12c   :  { %v1696_v23 = vpop.f32.mrf.mxu0  ;;  %v1748_v30 = vpop.f32.mrf.mxu1  ;;  %2914 = vst [vmem:[#allocation8_spill] sm:$0xff] %v2590_v42 }
 0x12e   :  { %v2529_v31 = vpop.f32.mrf.mxu0 }
 0x12f   :  { %1981 = vrot.lane.b32.xlu0 %v1970_v2, %s2151_s2  ;;  %1986 = vrot.lane.b32.xlu1 %v1975_v63, %s2151_s2 }
 0x130   :  { %v1699_v43 = vpop.f32.mrf.mxu0 }
 0x132   :  { %v2547_v58 = vpop.f32.mrf.mxu0 }
 0x133   :  { %1996 = vrot.lane.b32.xlu0 %v1975_v63, %s2152_s14  ;;  %1991 = vrot.lane.b32.xlu1 %v1970_v2, %s2152_s14  ;;  %v2593_v63 = vadd.f32 %v2341_v32, %v515_v60  ;;  %v2060_v60 = vpack.i.bf16 %v2590_v42, %v2584_v29 }
 0x134   :  { %v1700_v61 = vpop.f32.mrf.mxu0 }
 0x135   :  { %2915 = vst [vmem:[#allocation9_spill] sm:$0xff] %v2593_v63  ;;  %v2600_v59 = vpack.i.bf16 %v2593_v63, %v2587_v41 }
 0x137   :  { %2006 = vrot.lane.b32.xlu1 %v2005_v14, %s2150_s0  ;;  %2001 = vrot.lane.b32.xlu0 %v2000_v15, %s2150_s0 }
 0x13b   :  { %2011 = vrot.lane.b32.xlu1 %v2000_v15, %s2151_s2  ;;  %2016 = vrot.lane.b32.xlu0 %v2005_v14, %s2151_s2 }
 0x13f   :  { %2026 = vrot.lane.b32.xlu1 %v2005_v14, %s2152_s14  ;;  %2021 = vrot.lane.b32.xlu0 %v2000_v15, %s2152_s14 }
 0x143   :  { %2036 = vrot.lane.b32.xlu0 %v2035_v62, %s2150_s0  ;;  %2031 = vrot.lane.b32.xlu1 %v2030_v24, %s2150_s0 }
 0x147   :  { %2041 = vrot.lane.b32.xlu0 %v2030_v24, %s2151_s2  ;;  %2046 = vrot.lane.b32.xlu1 %v2035_v62, %s2151_s2 }
 0x149   :  { %v1767_v2 = vpop.permute.xlu1 %1766  ;;  %v1762_v5 = vpop.permute.xlu0 %1761 }
 0x14a   :  { %v1769_v23 = vunpack.i.h.bf16 %v1767_v2  ;;  %v1768_v30 = vunpack.i.l.bf16 %v1767_v2  ;;  %v1764_v43 = vunpack.i.h.bf16 %v1762_v5  ;;  %v1763_v61 = vunpack.i.l.bf16 %v1762_v5 }
 0x14b   :  { %2056 = vrot.lane.b32.xlu0 %v2035_v62, %s2152_s14  ;;  %2051 = vrot.lane.b32.xlu1 %v2030_v24, %s2152_s14 }
 0x14c   :  { %v749_v47 = vmax.f32 %v2353_v40, %v1769_v23  ;;  %v748_v5 = vmax.f32 %v2347_v38, %v1768_v30  ;;  %v723_v62 = vmax.f32 %v2350_v39, %v1764_v43  ;;  %v722_v24 = vmax.f32 %v2344_v37, %v1763_v61 }
 0x14d   :  { %v1772_v52 = vpop.permute.xlu1 %1771  ;;  %v1777_v14 = vpop.permute.xlu0 %1776  ;;  %v2612_v38 = vadd.f32 %v2341_v32, %v2517_v18 }
 0x14e   :  { %v1774_v15 = vunpack.i.h.bf16 %v1772_v52  ;;  %v1773_v21 = vunpack.i.l.bf16 %v1772_v52  ;;  %v1779_v2 = vunpack.i.h.bf16 %v1777_v14  ;;  %v1778_v19 = vunpack.i.l.bf16 %v1777_v14 }
 0x14f   :  { %2066 = vrot.lane.b32.xlu1 %v2600_v59, %s2150_s0  ;;  %2061 = vrot.lane.b32.xlu0 %v2060_v60, %s2150_s0 }
 0x150   :  { %v918_v40 = vmax.f32 %v722_v24, %v1773_v21  ;;  %v919_v23 = vmax.f32 %v723_v62, %v1774_v15  ;;  %v945_v41 = vmax.f32 %v749_v47, %v1779_v2  ;;  %v944_v63 = vmax.f32 %v748_v5, %v1778_v19 }
 0x151   :  { %v1787_v29 = vpop.permute.xlu1 %1786  ;;  %v1782_v42 = vpop.permute.xlu0 %1781  ;;  %v2619_v19 = vadd.f32 %v2341_v32, %v2515_v17 }
 0x152   :  { %v1789_v52 = vunpack.i.h.bf16 %v1787_v29  ;;  %v1788_v20 = vunpack.i.l.bf16 %v1787_v29  ;;  %v1784_v14 = vunpack.i.h.bf16 %v1782_v42  ;;  %v1783_v0 = vunpack.i.l.bf16 %v1782_v42 }
 0x153   :  { %2071 = vrot.lane.b32.xlu1 %v2060_v60, %s2151_s2  ;;  %2076 = vrot.lane.b32.xlu0 %v2600_v59, %s2151_s2  ;;  %v2623_v29 = vadd.f32 %v2341_v32, %v2525_v22 }
 0x154   :  { %v1140_v37 = vmax.f32 %v944_v63, %v1788_v20  ;;  %v1141_v39 = vmax.f32 %v945_v41, %v1789_v52  ;;  %v1114_v21 = vmax.f32 %v918_v40, %v1783_v0  ;;  %v1115_v30 = vmax.f32 %v919_v23, %v1784_v14 }
 0x155   :  { %v1807_v42 = vpop.permute.xlu1 %1806  ;;  %v1792_v18 = vpop.permute.xlu0 %1791  ;;  %v2085_v22 = vpack.i.bf16 %v2623_v29, %v2619_v19  ;;  %v2648_v40 = vadd.f32 %v2341_v32, %v2529_v31  ;;  %v2652_v23 = vadd.f32 %v2341_v32, %v2547_v58 }
 0x156   :  { %v1189_v43 = vmax.f32 %v1140_v37, 0.0  ;;  %v1190_v61 = vmax.f32 %v1141_v39, 0.0  ;;  %v1163_v47 = vmax.f32 %v1114_v21, 0.0  ;;  %v1164_v15 = vmax.f32 %v1115_v30, 0.0 }
 0x157   :  { %867 = vrot.lane.b32.xlu1 %v2612_v38, %s2151_s2  ;;  %2081 = vrot.lane.b32.xlu0 %v2060_v60, %s2152_s14  ;;  %v1794_v60 = vunpack.i.h.bf16 %v1792_v18  ;;  %v1793_v5 = vunpack.i.l.bf16 %v1792_v18  ;;  %v1808_v32 = vunpack.i.l.bf16 %v1807_v42  ;;  %v2105_v58 = vpack.i.bf16 %v2652_v23, %v2648_v40 }
 0x158   :  { %v1592_v20 = vpack.c.bf16 %v1189_v43, %v1189_v43  ;;  %v1593_v0 = vpack.c.bf16 %v1190_v61, %v1190_v61  ;;  %v1566_v17 = vpack.c.bf16 %v1163_v47, %v1163_v47  ;;  %v1567_v41 = vpack.c.bf16 %v1164_v15, %v1164_v15 }
 0x159   :  { %v1812_v63 = vpop.permute.xlu1 %1811  ;;  %v1797_v2 = vpop.permute.xlu0 %1796  ;;  %v725_v21 = vmax.f32 %v2370_v55, %v1794_v60  ;;  %v724_v31 = vmax.f32 %v2364_v53, %v1793_v5  ;;  %v1809_v43 = vunpack.i.h.bf16 %v1807_v42 }
 0x15a   :  { %1436 = vst.msk [vmem:[%s2899_s3 + $0x68] sm:$0xf] %vm1409_vm3, %v1592_v20  ;;  %1437 = vst.msk [vmem:[%s2899_s3 + $0x6c] sm:$0xf] %vm1409_vm3, %v1593_v0  ;;  %v1799_v62 = vunpack.i.h.bf16 %v1797_v2  ;;  %v1798_v24 = vunpack.i.l.bf16 %v1797_v2  ;;  %v1813_v61 = vunpack.i.l.bf16 %v1812_v63 }
 0x15b   :  { %1410 = vst.msk [vmem:[%s2899_s3] sm:$0xf] %vm1409_vm3, %v1566_v17  ;;  %1411 = vst.msk [vmem:[%s2899_s3 + $0x4] sm:$0xf] %vm1409_vm3, %v1567_v41  ;;  %671 = vrot.lane.b32.xlu0 %v2612_v38, %s2150_s0  ;;  %2086 = vrot.lane.b32.xlu1 %v2085_v22, %s2150_s0 }
 0x15c   :  { %v751_v52 = vmax.f32 %v2373_v56, %v1799_v62  ;;  %v750_v14 = vmax.f32 %v2367_v54, %v1798_v24  ;;  %v1814_v56 = vunpack.i.h.bf16 %v1812_v63 }
 0x15d   :  { %v1802_v37 = vpop.permute.xlu0 %1801  ;;  %v1822_v39 = vpop.permute.xlu1 %1821 }
 0x15e   :  { %v1804_v30 = vunpack.i.h.bf16 %v1802_v37  ;;  %v1803_v18 = vunpack.i.l.bf16 %v1802_v37  ;;  %v1824_v15 = vunpack.i.h.bf16 %v1822_v39  ;;  %v1823_v20 = vunpack.i.l.bf16 %v1822_v39 }
 0x15f   :  { %2091 = vrot.lane.b32.xlu0 %v2085_v22, %s2151_s2  ;;  %2096 = vrot.lane.b32.xlu1 %v2085_v22, %s2152_s14  ;;  %v946_v0 = vmax.f32 %v750_v14, %v1808_v32  ;;  %v947_v53 = vmax.f32 %v751_v52, %v1809_v43 }
 0x160   :  { %v920_v54 = vmax.f32 %v724_v31, %v1803_v18  ;;  %v921_v47 = vmax.f32 %v725_v21, %v1804_v30  ;;  %v727_v39 = vmax.f32 %v2387_v4, %v1824_v15  ;;  %v726_v14 = vmax.f32 %v2384_v3, %v1823_v20 }
 0x161   :  { %v1817_v55 = vpop.permute.xlu0 %1816  ;;  %v1827_v17 = vpop.permute.xlu1 %1826 }
 0x162   :  { %v1116_v41 = vmax.f32 %v920_v54, %v1813_v61  ;;  %v1117_v2 = vmax.f32 %v921_v47, %v1814_v56  ;;  %v1819_v42 = vunpack.i.h.bf16 %v1817_v55  ;;  %v1818_v60 = vunpack.i.l.bf16 %v1817_v55 }
 0x163   :  { %v1829_v5 = vunpack.i.h.bf16 %v1827_v17  ;;  %v1828_v62 = vunpack.i.l.bf16 %v1827_v17  ;;  %2106 = vrot.lane.b32.xlu1 %v2105_v58, %s2151_s2  ;;  %2101 = vrot.lane.b32.xlu0 %v2105_v58, %s2150_s0 }
 0x164   :  { %v1165_v22 = vmax.f32 %v1116_v41, 0.0  ;;  %v1166_v63 = vmax.f32 %v1117_v2, 0.0  ;;  %v1142_v24 = vmax.f32 %v946_v0, %v1818_v60  ;;  %v1143_v37 = vmax.f32 %v947_v53, %v1819_v42 }
 0x165   :  { %v753_v52 = vmax.f32 %v2395_v10, %v1829_v5  ;;  %v752_v21 = vmax.f32 %v2392_v9, %v1828_v62  ;;  %v1837_v31 = vpop.permute.xlu0 %1836  ;;  %v1832_v30 = vpop.permute.xlu1 %1831 }
 0x166   :  { %v1568_v18 = vpack.c.bf16 %v1165_v22, %v1165_v22  ;;  %v1569_v43 = vpack.c.bf16 %v1166_v63, %v1166_v63  ;;  %v1191_v32 = vmax.f32 %v1142_v24, 0.0  ;;  %v1192_v56 = vmax.f32 %v1143_v37, 0.0 }
 0x167   :  { %v1839_v61 = vunpack.i.h.bf16 %v1837_v31  ;;  %v1838_v54 = vunpack.i.l.bf16 %v1837_v31  ;;  %v1834_v47 = vunpack.i.h.bf16 %v1832_v30  ;;  %v1833_v55 = vunpack.i.l.bf16 %v1832_v30  ;;  %2116 = vrot.lane.b32.xlu1 %v2600_v59, %s2152_s14  ;;  %2111 = vrot.lane.b32.xlu0 %v2105_v58, %s2152_s14 }
 0x168   :  { %1412 = vst.msk [vmem:[%s2899_s3 + $0x8] sm:$0xf] %vm1409_vm3, %v1568_v18  ;;  %1413 = vst.msk [vmem:[%s2899_s3 + $0xc] sm:$0xf] %vm1409_vm3, %v1569_v43  ;;  %v1594_v3 = vpack.c.bf16 %v1191_v32, %v1191_v32  ;;  %v1595_v4 = vpack.c.bf16 %v1192_v56, %v1192_v56 }
 0x169   :  { %v948_v9 = vmax.f32 %v752_v21, %v1838_v54  ;;  %v949_v10 = vmax.f32 %v753_v52, %v1839_v61  ;;  %v922_v15 = vmax.f32 %v726_v14, %v1833_v55  ;;  %v923_v20 = vmax.f32 %v727_v39, %v1834_v47  ;;  %v1842_v0 = vpop.permute.xlu0 %1841  ;;  %v1847_v59 = vpop.permute.xlu1 %1846 }
 0x16a   :  { %1438 = vst.msk [vmem:[%s2899_s3 + $0x70] sm:$0xf] %vm1409_vm3, %v1594_v3  ;;  %1439 = vst.msk [vmem:[%s2899_s3 + $0x74] sm:$0xf] %vm1409_vm3, %v1595_v4  ;;  %v1844_v58 = vunpack.i.h.bf16 %v1842_v0  ;;  %v1843_v53 = vunpack.i.l.bf16 %v1842_v0  ;;  %v1849_v17 = vunpack.i.h.bf16 %v1847_v59  ;;  %v1848_v41 = vunpack.i.l.bf16 %v1847_v59 }
 0x16b   :  { %1063 = vrot.lane.b32.xlu0 %v2612_v38, %s2152_s14 }
 0x16c   :  { %v1118_v2 = vmax.f32 %v922_v15, %v1843_v53  ;;  %v1119_v42 = vmax.f32 %v923_v20, %v1844_v58  ;;  %v1144_v60 = vmax.f32 %v948_v9, %v1848_v41  ;;  %v1145_v5 = vmax.f32 %v949_v10, %v1849_v17 }
 0x16d   :  { %v1857_v62 = vpop.permute.xlu0 %1856  ;;  %v1852_v22 = vpop.permute.xlu1 %1851 }
 0x16e   :  { %v1167_v63 = vmax.f32 %v1118_v2, 0.0  ;;  %v1168_v24 = vmax.f32 %v1119_v42, 0.0  ;;  %v1193_v37 = vmax.f32 %v1144_v60, 0.0  ;;  %v1194_v39 = vmax.f32 %v1145_v5, 0.0 }
 0x16f   :  { %v1859_v14 = vunpack.i.h.bf16 %v1857_v62  ;;  %v1858_v52 = vunpack.i.l.bf16 %v1857_v62  ;;  %v1854_v21 = vunpack.i.h.bf16 %v1852_v22  ;;  %v1853_v31 = vunpack.i.l.bf16 %v1852_v22 }
 0x170   :  { %v1570_v30 = vpack.c.bf16 %v1167_v63, %v1167_v63  ;;  %v1571_v18 = vpack.c.bf16 %v1168_v24, %v1168_v24  ;;  %v1596_v43 = vpack.c.bf16 %v1193_v37, %v1193_v37  ;;  %v1597_v32 = vpack.c.bf16 %v1194_v39, %v1194_v39 }
 0x171   :  { %v1862_v56 = vpop.permute.xlu0 %1861  ;;  %v1867_v61 = vpop.permute.xlu1 %1866  ;;  %v755_v4 = vmax.f32 %v2414_v27, %v1859_v14  ;;  %v754_v9 = vmax.f32 %v2408_v25, %v1858_v52  ;;  %v729_v10 = vmax.f32 %v2417_v28, %v1854_v21  ;;  %v728_v15 = vmax.f32 %v2411_v26, %v1853_v31 }
 0x172   :  { %1414 = vst.msk [vmem:[%s2899_s3 + $0x10] sm:$0xf] %vm1409_vm3, %v1570_v30  ;;  %1415 = vst.msk [vmem:[%s2899_s3 + $0x14] sm:$0xf] %vm1409_vm3, %v1571_v18  ;;  %v1864_v54 = vunpack.i.h.bf16 %v1862_v56  ;;  %v1863_v47 = vunpack.i.l.bf16 %v1862_v56  ;;  %v1869_v55 = vunpack.i.h.bf16 %v1867_v61  ;;  %v1868_v3 = vunpack.i.l.bf16 %v1867_v61 }
 0x173   :  { %1440 = vst.msk [vmem:[%s2899_s3 + $0x78] sm:$0xf] %vm1409_vm3, %v1596_v43  ;;  %1441 = vst.msk [vmem:[%s2899_s3 + $0x7c] sm:$0xf] %vm1409_vm3, %v1597_v32 }
 0x174   :  { %v924_v20 = vmax.f32 %v728_v15, %v1863_v47  ;;  %v925_v0 = vmax.f32 %v729_v10, %v1864_v54  ;;  %v951_v59 = vmax.f32 %v755_v4, %v1869_v55  ;;  %v950_v58 = vmax.f32 %v754_v9, %v1868_v3 }
 0x175   :  { %v1877_v53 = vpop.permute.xlu0 %1876  ;;  %v1872_v17 = vpop.permute.xlu1 %1871 }
 0x176   :  { %v1879_v41 = vunpack.i.h.bf16 %v1877_v53  ;;  %v1878_v2 = vunpack.i.l.bf16 %v1877_v53  ;;  %v1874_v42 = vunpack.i.h.bf16 %v1872_v17  ;;  %v1873_v60 = vunpack.i.l.bf16 %v1872_v17 }
 0x178   :  { %v1146_v5 = vmax.f32 %v950_v58, %v1878_v2  ;;  %v1147_v62 = vmax.f32 %v951_v59, %v1879_v41  ;;  %v1120_v22 = vmax.f32 %v924_v20, %v1873_v60  ;;  %v1121_v27 = vmax.f32 %v925_v0, %v1874_v42 }
 0x179   :  { %v1887_v63 = vpop.permute.xlu1 %1886  ;;  %v1882_v25 = vpop.permute.xlu0 %1881 }
 0x17a   :  { %v1195_v24 = vmax.f32 %v1146_v5, 0.0  ;;  %v1196_v28 = vmax.f32 %v1147_v62, 0.0  ;;  %v1169_v37 = vmax.f32 %v1120_v22, 0.0  ;;  %v1170_v26 = vmax.f32 %v1121_v27, 0.0 }
 0x17b   :  { %v1889_v39 = vunpack.i.h.bf16 %v1887_v63  ;;  %v1888_v14 = vunpack.i.l.bf16 %v1887_v63  ;;  %v1884_v52 = vunpack.i.h.bf16 %v1882_v25  ;;  %v1883_v21 = vunpack.i.l.bf16 %v1882_v25 }
 0x17c   :  { %v1598_v31 = vpack.c.bf16 %v1195_v24, %v1195_v24  ;;  %v1599_v30 = vpack.c.bf16 %v1196_v28, %v1196_v28  ;;  %v1572_v18 = vpack.c.bf16 %v1169_v37, %v1169_v37  ;;  %v1573_v43 = vpack.c.bf16 %v1170_v26, %v1170_v26 }
 0x17d   :  { %v1892_v32 = vpop.permute.xlu1 %1891  ;;  %v1897_v56 = vpop.permute.xlu0 %1896  ;;  %v757_v3 = vmax.f32 %v2439_v51, %v1889_v39  ;;  %v756_v4 = vmax.f32 %v2433_v49, %v1888_v14  ;;  %v731_v9 = vmax.f32 %v2436_v50, %v1884_v52  ;;  %v730_v10 = vmax.f32 %v2430_v48, %v1883_v21 }
 0x17e   :  { %1442 = vst.msk [vmem:[%s2899_s3 + $0x80] sm:$0xf] %vm1409_vm3, %v1598_v31  ;;  %1443 = vst.msk [vmem:[%s2899_s3 + $0x84] sm:$0xf] %vm1409_vm3, %v1599_v30  ;;  %v1894_v61 = vunpack.i.h.bf16 %v1892_v32  ;;  %v1893_v54 = vunpack.i.l.bf16 %v1892_v32  ;;  %v1899_v47 = vunpack.i.h.bf16 %v1897_v56  ;;  %v1898_v55 = vunpack.i.l.bf16 %v1897_v56 }
 0x17f   :  { %1416 = vst.msk [vmem:[%s2899_s3 + $0x18] sm:$0xf] %vm1409_vm3, %v1572_v18  ;;  %1417 = vst.msk [vmem:[%s2899_s3 + $0x1c] sm:$0xf] %vm1409_vm3, %v1573_v43 }
 0x180   :  { %v926_v15 = vmax.f32 %v730_v10, %v1893_v54  ;;  %v927_v20 = vmax.f32 %v731_v9, %v1894_v61  ;;  %v953_v0 = vmax.f32 %v757_v3, %v1899_v47  ;;  %v952_v59 = vmax.f32 %v756_v4, %v1898_v55 }
 0x181   :  { %v1907_v58 = vpop.permute.xlu1 %1906  ;;  %v1902_v53 = vpop.permute.xlu0 %1901 }
 0x182   :  { %v1909_v17 = vunpack.i.h.bf16 %v1907_v58  ;;  %v1908_v41 = vunpack.i.l.bf16 %v1907_v58  ;;  %v1904_v2 = vunpack.i.h.bf16 %v1902_v53  ;;  %v1903_v42 = vunpack.i.l.bf16 %v1902_v53 }
 0x184   :  { %v1148_v60 = vmax.f32 %v952_v59, %v1908_v41  ;;  %v1149_v5 = vmax.f32 %v953_v0, %v1909_v17  ;;  %v1122_v62 = vmax.f32 %v926_v15, %v1903_v42  ;;  %v1123_v51 = vmax.f32 %v927_v20, %v1904_v2 }
 0x185   :  { %v1917_v22 = vpop.permute.xlu0 %1916  ;;  %v1912_v49 = vpop.permute.xlu1 %1911 }
 0x186   :  { %v1197_v27 = vmax.f32 %v1148_v60, 0.0  ;;  %v1198_v50 = vmax.f32 %v1149_v5, 0.0  ;;  %v1171_v63 = vmax.f32 %v1122_v62, 0.0  ;;  %v1172_v48 = vmax.f32 %v1123_v51, 0.0 }
 0x187   :  { %v1919_v25 = vunpack.i.h.bf16 %v1917_v22  ;;  %v1918_v24 = vunpack.i.l.bf16 %v1917_v22  ;;  %v1914_v28 = vunpack.i.h.bf16 %v1912_v49  ;;  %v1913_v37 = vunpack.i.l.bf16 %v1912_v49 }
 0x188   :  { %v1600_v26 = vpack.c.bf16 %v1197_v27, %v1197_v27  ;;  %v1601_v39 = vpack.c.bf16 %v1198_v50, %v1198_v50  ;;  %v1574_v14 = vpack.c.bf16 %v1171_v63, %v1171_v63  ;;  %v1575_v52 = vpack.c.bf16 %v1172_v48, %v1172_v48 }
 0x189   :  { %v1922_v21 = vpop.permute.xlu0 %1921  ;;  %v1927_v31 = vpop.permute.xlu1 %1926  ;;  %v759_v56 = vmax.f32 %v2458_v12, %v1919_v25  ;;  %v758_v61 = vmax.f32 %v2452_v8, %v1918_v24  ;;  %v733_v54 = vmax.f32 %v2461_v13, %v1914_v28  ;;  %v732_v47 = vmax.f32 %v2455_v11, %v1913_v37 }
 0x18a   :  { %1444 = vst.msk [vmem:[%s2899_s3 + $0x88] sm:$0xf] %vm1409_vm3, %v1600_v26  ;;  %1445 = vst.msk [vmem:[%s2899_s3 + $0x8c] sm:$0xf] %vm1409_vm3, %v1601_v39  ;;  %v1924_v30 = vunpack.i.h.bf16 %v1922_v21  ;;  %v1923_v18 = vunpack.i.l.bf16 %v1922_v21  ;;  %v1929_v43 = vunpack.i.h.bf16 %v1927_v31  ;;  %v1928_v32 = vunpack.i.l.bf16 %v1927_v31 }
 0x18b   :  { %1418 = vst.msk [vmem:[%s2899_s3 + $0x20] sm:$0xf] %vm1409_vm3, %v1574_v14  ;;  %1419 = vst.msk [vmem:[%s2899_s3 + $0x24] sm:$0xf] %vm1409_vm3, %v1575_v52 }
 0x18c   :  { %v928_v55 = vmax.f32 %v732_v47, %v1923_v18  ;;  %v929_v3 = vmax.f32 %v733_v54, %v1924_v30  ;;  %v955_v4 = vmax.f32 %v759_v56, %v1929_v43  ;;  %v954_v9 = vmax.f32 %v758_v61, %v1928_v32 }
 0x18d   :  { %v1937_v10 = vpop.permute.xlu0 %1936  ;;  %v1932_v15 = vpop.permute.xlu1 %1931 }
 0x18e   :  { %v1939_v20 = vunpack.i.h.bf16 %v1937_v10  ;;  %v1938_v0 = vunpack.i.l.bf16 %v1937_v10  ;;  %v1934_v59 = vunpack.i.h.bf16 %v1932_v15  ;;  %v1933_v58 = vunpack.i.l.bf16 %v1932_v15 }
 0x190   :  { %v1150_v53 = vmax.f32 %v954_v9, %v1938_v0  ;;  %v1151_v17 = vmax.f32 %v955_v4, %v1939_v20  ;;  %v1124_v41 = vmax.f32 %v928_v55, %v1933_v58  ;;  %v1125_v12 = vmax.f32 %v929_v3, %v1934_v59 }
 0x191   :  { %v1947_v2 = vpop.permute.xlu1 %1946  ;;  %v1942_v8 = vpop.permute.xlu0 %1941 }
 0x192   :  { %v1199_v42 = vmax.f32 %v1150_v53, 0.0  ;;  %v1200_v13 = vmax.f32 %v1151_v17, 0.0  ;;  %v1173_v60 = vmax.f32 %v1124_v41, 0.0  ;;  %v1174_v11 = vmax.f32 %v1125_v12, 0.0 }
 0x193   :  { %v1949_v5 = vunpack.i.h.bf16 %v1947_v2  ;;  %v1948_v62 = vunpack.i.l.bf16 %v1947_v2  ;;  %v1944_v51 = vunpack.i.h.bf16 %v1942_v8  ;;  %v1943_v22 = vunpack.i.l.bf16 %v1942_v8 }
 0x194   :  { %v1602_v49 = vpack.c.bf16 %v1199_v42, %v1199_v42  ;;  %v1603_v27 = vpack.c.bf16 %v1200_v13, %v1200_v13  ;;  %v1576_v50 = vpack.c.bf16 %v1173_v60, %v1173_v60  ;;  %v1577_v63 = vpack.c.bf16 %v1174_v11, %v1174_v11 }
 0x195   :  { %v1952_v48 = vpop.permute.xlu1 %1951  ;;  %v1957_v25 = vpop.permute.xlu0 %1956  ;;  %v761_v39 = vmax.f32 %v2491_v36, %v1949_v5  ;;  %v760_v14 = vmax.f32 %v2485_v34, %v1948_v62  ;;  %v735_v52 = vmax.f32 %v2488_v35, %v1944_v51  ;;  %v734_v21 = vmax.f32 %v2482_v33, %v1943_v22 }
 0x196   :  { %1446 = vst.msk [vmem:[%s2899_s3 + $0x90] sm:$0xf] %vm1409_vm3, %v1602_v49  ;;  %1447 = vst.msk [vmem:[%s2899_s3 + $0x94] sm:$0xf] %vm1409_vm3, %v1603_v27  ;;  %v1954_v24 = vunpack.i.h.bf16 %v1952_v48  ;;  %v1953_v28 = vunpack.i.l.bf16 %v1952_v48  ;;  %v1959_v37 = vunpack.i.h.bf16 %v1957_v25  ;;  %v1958_v26 = vunpack.i.l.bf16 %v1957_v25 }
 0x197   :  { %1420 = vst.msk [vmem:[%s2899_s3 + $0x28] sm:$0xf] %vm1409_vm3, %v1576_v50  ;;  %1421 = vst.msk [vmem:[%s2899_s3 + $0x2c] sm:$0xf] %vm1409_vm3, %v1577_v63 }
 0x198   :  { %v930_v31 = vmax.f32 %v734_v21, %v1953_v28  ;;  %v931_v30 = vmax.f32 %v735_v52, %v1954_v24  ;;  %v957_v18 = vmax.f32 %v761_v39, %v1959_v37  ;;  %v956_v43 = vmax.f32 %v760_v14, %v1958_v26 }
 0x199   :  { %v1967_v32 = vpop.permute.xlu1 %1966  ;;  %v1962_v56 = vpop.permute.xlu0 %1961 }
 0x19a   :  { %v1969_v61 = vunpack.i.h.bf16 %v1967_v32  ;;  %v1968_v54 = vunpack.i.l.bf16 %v1967_v32  ;;  %v1964_v47 = vunpack.i.h.bf16 %v1962_v56  ;;  %v1963_v55 = vunpack.i.l.bf16 %v1962_v56 }
 0x19c   :  { %v1152_v3 = vmax.f32 %v956_v43, %v1968_v54  ;;  %v1153_v4 = vmax.f32 %v957_v18, %v1969_v61  ;;  %v1126_v9 = vmax.f32 %v930_v31, %v1963_v55  ;;  %v1127_v36 = vmax.f32 %v931_v30, %v1964_v47 }
 0x19d   :  { %v1977_v10 = vpop.permute.xlu0 %1976  ;;  %v1972_v34 = vpop.permute.xlu1 %1971 }
 0x19e   :  { %v1201_v15 = vmax.f32 %v1152_v3, 0.0  ;;  %v1202_v35 = vmax.f32 %v1153_v4, 0.0  ;;  %v1175_v20 = vmax.f32 %v1126_v9, 0.0  ;;  %v1176_v33 = vmax.f32 %v1127_v36, 0.0 }
 0x19f   :  { %v1979_v0 = vunpack.i.h.bf16 %v1977_v10  ;;  %v1978_v59 = vunpack.i.l.bf16 %v1977_v10  ;;  %v1974_v58 = vunpack.i.h.bf16 %v1972_v34  ;;  %v1973_v53 = vunpack.i.l.bf16 %v1972_v34 }
 0x1a0   :  { %v1604_v17 = vpack.c.bf16 %v1201_v15, %v1201_v15  ;;  %v1605_v41 = vpack.c.bf16 %v1202_v35, %v1202_v35  ;;  %v1578_v12 = vpack.c.bf16 %v1175_v20, %v1175_v20  ;;  %v1579_v2 = vpack.c.bf16 %v1176_v33, %v1176_v33 }
 0x1a1   :  { %v1982_v8 = vpop.permute.xlu0 %1981  ;;  %v1987_v42 = vpop.permute.xlu1 %1986  ;;  %v763_v62 = vmax.f32 %v2510_v7, %v1979_v0  ;;  %v762_v51 = vmax.f32 %v2504_v1, %v1978_v59  ;;  %v737_v22 = vmax.f32 %v2513_v16, %v1974_v58  ;;  %v736_v49 = vmax.f32 %v2507_v6, %v1973_v53 }
 0x1a2   :  { %1448 = vst.msk [vmem:[%s2899_s3 + $0x98] sm:$0xf] %vm1409_vm3, %v1604_v17  ;;  %1449 = vst.msk [vmem:[%s2899_s3 + $0x9c] sm:$0xf] %vm1409_vm3, %v1605_v41  ;;  %v1984_v13 = vunpack.i.h.bf16 %v1982_v8  ;;  %v1983_v60 = vunpack.i.l.bf16 %v1982_v8  ;;  %v1989_v11 = vunpack.i.h.bf16 %v1987_v42  ;;  %v1988_v5 = vunpack.i.l.bf16 %v1987_v42 }
 0x1a3   :  { %1422 = vst.msk [vmem:[%s2899_s3 + $0x30] sm:$0xf] %vm1409_vm3, %v1578_v12  ;;  %1423 = vst.msk [vmem:[%s2899_s3 + $0x34] sm:$0xf] %vm1409_vm3, %v1579_v2 }
 0x1a4   :  { %v932_v27 = vmax.f32 %v736_v49, %v1983_v60  ;;  %v933_v50 = vmax.f32 %v737_v22, %v1984_v13  ;;  %v959_v63 = vmax.f32 %v763_v62, %v1989_v11  ;;  %v958_v48 = vmax.f32 %v762_v51, %v1988_v5 }
 0x1a5   :  { %v1997_v25 = vpop.permute.xlu0 %1996  ;;  %v1992_v24 = vpop.permute.xlu1 %1991 }
 0x1a6   :  { %v1999_v28 = vunpack.i.h.bf16 %v1997_v25  ;;  %v1998_v37 = vunpack.i.l.bf16 %v1997_v25  ;;  %v1994_v26 = vunpack.i.h.bf16 %v1992_v24  ;;  %v1993_v39 = vunpack.i.l.bf16 %v1992_v24 }
 0x1a8   :  { %v1154_v14 = vmax.f32 %v958_v48, %v1998_v37  ;;  %v1155_v52 = vmax.f32 %v959_v63, %v1999_v28  ;;  %v1128_v21 = vmax.f32 %v932_v27, %v1993_v39  ;;  %v1129_v7 = vmax.f32 %v933_v50, %v1994_v26 }
 0x1a9   :  { %v2007_v31 = vpop.permute.xlu1 %2006  ;;  %v2002_v1 = vpop.permute.xlu0 %2001 }
 0x1aa   :  { %v1203_v30 = vmax.f32 %v1154_v14, 0.0  ;;  %v1204_v16 = vmax.f32 %v1155_v52, 0.0  ;;  %v1177_v18 = vmax.f32 %v1128_v21, 0.0  ;;  %v1178_v6 = vmax.f32 %v1129_v7, 0.0  ;;  %v2916_v7 = vld [vmem:[#allocation4_spill] sm:$0xff] }
 0x1ab   :  { %v2009_v43 = vunpack.i.h.bf16 %v2007_v31  ;;  %v2008_v32 = vunpack.i.l.bf16 %v2007_v31  ;;  %v2004_v56 = vunpack.i.h.bf16 %v2002_v1  ;;  %v2003_v61 = vunpack.i.l.bf16 %v2002_v1  ;;  %v2917_v1 = vld [vmem:[#allocation2_spill] sm:$0xff] }
 0x1ac   :  { %v1606_v54 = vpack.c.bf16 %v1203_v30, %v1203_v30  ;;  %v1607_v47 = vpack.c.bf16 %v1204_v16, %v1204_v16  ;;  %v1580_v55 = vpack.c.bf16 %v1177_v18, %v1177_v18  ;;  %v1581_v3 = vpack.c.bf16 %v1178_v6, %v1178_v6  ;;  %v2918_v16 = vld [vmem:[#allocation5_spill] sm:$0xff]  ;;  %v2919_v6 = vld [vmem:[#allocation3_spill] sm:$0xff] }
 0x1ad   :  { %v2012_v4 = vpop.permute.xlu1 %2011  ;;  %v2017_v9 = vpop.permute.xlu0 %2016  ;;  %v765_v35 = vmax.f32 %v2545_v57, %v2009_v43  ;;  %v764_v20 = vmax.f32 %v2539_v44, %v2008_v32  ;;  %v739_v33 = vmax.f32 %v2542_v45, %v2004_v56  ;;  %v738_v0 = vmax.f32 %v2535_v46, %v2003_v61 }
 0x1ae   :  { %1450 = vst.msk [vmem:[%s2899_s3 + $0xa0] sm:$0xf] %vm1409_vm3, %v1606_v54  ;;  %1451 = vst.msk [vmem:[%s2899_s3 + $0xa4] sm:$0xf] %vm1409_vm3, %v1607_v47  ;;  %v2014_v36 = vunpack.i.h.bf16 %v2012_v4  ;;  %v2013_v10 = vunpack.i.l.bf16 %v2012_v4  ;;  %v2019_v34 = vunpack.i.h.bf16 %v2017_v9  ;;  %v2018_v15 = vunpack.i.l.bf16 %v2017_v9 }
 0x1af   :  { %1424 = vst.msk [vmem:[%s2899_s3 + $0x38] sm:$0xf] %vm1409_vm3, %v1580_v55  ;;  %1425 = vst.msk [vmem:[%s2899_s3 + $0x3c] sm:$0xf] %vm1409_vm3, %v1581_v3 }
 0x1b0   :  { %v934_v59 = vmax.f32 %v738_v0, %v2013_v10  ;;  %v935_v58 = vmax.f32 %v739_v33, %v2014_v36  ;;  %v961_v53 = vmax.f32 %v765_v35, %v2019_v34  ;;  %v960_v17 = vmax.f32 %v764_v20, %v2018_v15 }
 0x1b1   :  { %v2027_v41 = vpop.permute.xlu1 %2026  ;;  %v2022_v12 = vpop.permute.xlu0 %2021 }
 0x1b2   :  { %v2029_v2 = vunpack.i.h.bf16 %v2027_v41  ;;  %v2028_v8 = vunpack.i.l.bf16 %v2027_v41  ;;  %v2024_v42 = vunpack.i.h.bf16 %v2022_v12  ;;  %v2023_v13 = vunpack.i.l.bf16 %v2022_v12 }
 0x1b4   :  { %v1156_v60 = vmax.f32 %v960_v17, %v2028_v8  ;;  %v1157_v11 = vmax.f32 %v961_v53, %v2029_v2  ;;  %v1130_v5 = vmax.f32 %v934_v59, %v2023_v13  ;;  %v1131_v57 = vmax.f32 %v935_v58, %v2024_v42 }
 0x1b5   :  { %v2037_v62 = vpop.permute.xlu0 %2036  ;;  %v2032_v44 = vpop.permute.xlu1 %2031 }
 0x1b6   :  { %v1205_v51 = vmax.f32 %v1156_v60, 0.0  ;;  %v1206_v45 = vmax.f32 %v1157_v11, 0.0  ;;  %v1179_v22 = vmax.f32 %v1130_v5, 0.0  ;;  %v1180_v46 = vmax.f32 %v1131_v57, 0.0  ;;  %v2920_v57 = vld [vmem:[#allocation8_spill] sm:$0xff] }
 0x1b7   :  { %v2039_v49 = vunpack.i.h.bf16 %v2037_v62  ;;  %v2038_v27 = vunpack.i.l.bf16 %v2037_v62  ;;  %v2034_v50 = vunpack.i.h.bf16 %v2032_v44  ;;  %v2033_v63 = vunpack.i.l.bf16 %v2032_v44  ;;  %v2921_v44 = vld [vmem:[#allocation6_spill] sm:$0xff] }
 0x1b8   :  { %v1608_v48 = vpack.c.bf16 %v1205_v51, %v1205_v51  ;;  %v1609_v25 = vpack.c.bf16 %v1206_v45, %v1206_v45  ;;  %v1582_v24 = vpack.c.bf16 %v1179_v22, %v1179_v22  ;;  %v1583_v28 = vpack.c.bf16 %v1180_v46, %v1180_v46 }
 0x1b9   :  { %v2042_v37 = vpop.permute.xlu0 %2041  ;;  %v2047_v26 = vpop.permute.xlu1 %2046  ;;  %v767_v31 = vmax.f32 %v2916_v7, %v2039_v49  ;;  %v766_v30 = vmax.f32 %v2917_v1, %v2038_v27  ;;  %v741_v18 = vmax.f32 %v2918_v16, %v2034_v50  ;;  %v740_v43 = vmax.f32 %v2919_v6, %v2033_v63 }
 0x1ba   :  { %1452 = vst.msk [vmem:[%s2899_s3 + $0xa8] sm:$0xf] %vm1409_vm3, %v1608_v48  ;;  %1453 = vst.msk [vmem:[%s2899_s3 + $0xac] sm:$0xf] %vm1409_vm3, %v1609_v25  ;;  %v2044_v39 = vunpack.i.h.bf16 %v2042_v37  ;;  %v2043_v14 = vunpack.i.l.bf16 %v2042_v37  ;;  %v2049_v52 = vunpack.i.h.bf16 %v2047_v26  ;;  %v2048_v21 = vunpack.i.l.bf16 %v2047_v26 }
 0x1bb   :  { %1426 = vst.msk [vmem:[%s2899_s3 + $0x40] sm:$0xf] %vm1409_vm3, %v1582_v24  ;;  %1427 = vst.msk [vmem:[%s2899_s3 + $0x44] sm:$0xf] %vm1409_vm3, %v1583_v28 }
 0x1bc   :  { %v936_v32 = vmax.f32 %v740_v43, %v2043_v14  ;;  %v937_v56 = vmax.f32 %v741_v18, %v2044_v39  ;;  %v963_v61 = vmax.f32 %v767_v31, %v2049_v52  ;;  %v962_v54 = vmax.f32 %v766_v30, %v2048_v21 }
 0x1bd   :  { %v2057_v47 = vpop.permute.xlu0 %2056  ;;  %v2052_v55 = vpop.permute.xlu1 %2051 }
 0x1be   :  { %v2059_v3 = vunpack.i.h.bf16 %v2057_v47  ;;  %v2058_v4 = vunpack.i.l.bf16 %v2057_v47  ;;  %v2054_v9 = vunpack.i.h.bf16 %v2052_v55  ;;  %v2053_v36 = vunpack.i.l.bf16 %v2052_v55  ;;  %v2922_v55 = vld [vmem:[#allocation9_spill] sm:$0xff] }
 0x1c0   :  { %v1158_v10 = vmax.f32 %v962_v54, %v2058_v4  ;;  %v1159_v34 = vmax.f32 %v963_v61, %v2059_v3  ;;  %v1132_v15 = vmax.f32 %v936_v32, %v2053_v36  ;;  %v1133_v35 = vmax.f32 %v937_v56, %v2054_v9  ;;  %v2923_v36 = vld [vmem:[#allocation7_spill] sm:$0xff] }
 0x1c1   :  { %v2067_v20 = vpop.permute.xlu1 %2066  ;;  %v2062_v33 = vpop.permute.xlu0 %2061 }
 0x1c2   :  { %v1207_v0 = vmax.f32 %v1158_v10, 0.0  ;;  %v1208_v59 = vmax.f32 %v1159_v34, 0.0  ;;  %v1181_v58 = vmax.f32 %v1132_v15, 0.0  ;;  %v1182_v53 = vmax.f32 %v1133_v35, 0.0 }
 0x1c3   :  { %v2064_v17 = vunpack.i.h.bf16 %v2062_v33  ;;  %v2063_v41 = vunpack.i.l.bf16 %v2062_v33  ;;  %v2069_v21 = vunpack.i.h.bf16 %v2067_v20  ;;  %v2068_v7 = vunpack.i.l.bf16 %v2067_v20 }
 0x1c4   :  { %v1610_v12 = vpack.c.bf16 %v1207_v0, %v1207_v0  ;;  %v1611_v2 = vpack.c.bf16 %v1208_v59, %v1208_v59  ;;  %v1584_v8 = vpack.c.bf16 %v1181_v58, %v1181_v58  ;;  %v1585_v42 = vpack.c.bf16 %v1182_v53, %v1182_v53 }
 0x1c5   :  { %v2072_v13 = vpop.permute.xlu1 %2071  ;;  %v2077_v60 = vpop.permute.xlu0 %2076  ;;  %v743_v62 = vmax.f32 %v2920_v57, %v2064_v17  ;;  %v742_v51 = vmax.f32 %v2921_v44, %v2063_v41  ;;  %v769_v3 = vmax.f32 %v2922_v55, %v2069_v21  ;;  %v768_v10 = vmax.f32 %v2923_v36, %v2068_v7 }
 0x1c6   :  { %1454 = vst.msk [vmem:[%s2899_s3 + $0xb0] sm:$0xf] %vm1409_vm3, %v1610_v12  ;;  %1455 = vst.msk [vmem:[%s2899_s3 + $0xb4] sm:$0xf] %vm1409_vm3, %v1611_v2  ;;  %v2074_v11 = vunpack.i.h.bf16 %v2072_v13  ;;  %v2073_v5 = vunpack.i.l.bf16 %v2072_v13  ;;  %v2079_v43 = vunpack.i.h.bf16 %v2077_v60  ;;  %v2078_v32 = vunpack.i.l.bf16 %v2077_v60 }
 0x1c7   :  { %1428 = vst.msk [vmem:[%s2899_s3 + $0x48] sm:$0xf] %vm1409_vm3, %v1584_v8  ;;  %1429 = vst.msk [vmem:[%s2899_s3 + $0x4c] sm:$0xf] %vm1409_vm3, %v1585_v42 }
 0x1c8   :  { %v938_v46 = vmax.f32 %v742_v51, %v2073_v5  ;;  %v939_v49 = vmax.f32 %v743_v62, %v2074_v11  ;;  %v965_v35 = vmax.f32 %v769_v3, %v2079_v43 }
 0x1c9   :  { %v2850_v45 = vpop.permute.xlu1 %867  ;;  %v2082_v22 = vpop.permute.xlu0 %2081 }
 0x1ca   :  { %v2084_v27 = vunpack.i.h.bf16 %v2082_v22  ;;  %v2083_v50 = vunpack.i.l.bf16 %v2082_v22 }
 0x1cc   :  { %v1134_v63 = vmax.f32 %v938_v46, %v2083_v50  ;;  %v1135_v48 = vmax.f32 %v939_v49, %v2084_v27 }
 0x1cd   :  { %v672_v25 = vpop.permute.xlu0 %671  ;;  %v2087_v24 = vpop.permute.xlu1 %2086 }
 0x1ce   :  { %v1183_v28 = vmax.f32 %v1134_v63, 0.0  ;;  %v1184_v37 = vmax.f32 %v1135_v48, 0.0  ;;  %v2089_v26 = vunpack.i.h.bf16 %v2087_v24  ;;  %v2088_v39 = vunpack.i.l.bf16 %v2087_v24 }
 0x1cf   :  { %v770_v33 = vmax.f32 %v2612_v38, %v672_v25 }
 0x1d0   :  { %v1586_v14 = vpack.c.bf16 %v1183_v28, %v1183_v28  ;;  %v1587_v52 = vpack.c.bf16 %v1184_v37, %v1184_v37  ;;  %v745_v30 = vmax.f32 %v2623_v29, %v2089_v26  ;;  %v744_v16 = vmax.f32 %v2619_v19, %v2088_v39 }
 0x1d1   :  { %v2092_v31 = vpop.permute.xlu0 %2091  ;;  %v2097_v1 = vpop.permute.xlu1 %2096  ;;  %v964_v19 = vmax.f32 %v768_v10, %v2078_v32 }
 0x1d2   :  { %1430 = vst.msk [vmem:[%s2899_s3 + $0x50] sm:$0xf] %vm1409_vm3, %v1586_v14  ;;  %1431 = vst.msk [vmem:[%s2899_s3 + $0x54] sm:$0xf] %vm1409_vm3, %v1587_v52  ;;  %v2094_v18 = vunpack.i.h.bf16 %v2092_v31  ;;  %v2093_v6 = vunpack.i.l.bf16 %v2092_v31  ;;  %v2099_v54 = vunpack.i.h.bf16 %v2097_v1  ;;  %v2098_v47 = vunpack.i.l.bf16 %v2097_v1 }
 0x1d4   :  { %v940_v56 = vmax.f32 %v744_v16, %v2093_v6  ;;  %v941_v61 = vmax.f32 %v745_v30, %v2094_v18 }
 0x1d5   :  { %v2107_v4 = vpop.permute.xlu1 %2106  ;;  %v2102_v9 = vpop.permute.xlu0 %2101 }
 0x1d6   :  { %v1136_v34 = vmax.f32 %v940_v56, %v2098_v47  ;;  %v1137_v15 = vmax.f32 %v941_v61, %v2099_v54  ;;  %v2104_v29 = vunpack.i.h.bf16 %v2102_v9  ;;  %v2103_v20 = vunpack.i.l.bf16 %v2102_v9 }
 0x1d7   :  { %v2109_v58 = vunpack.i.h.bf16 %v2107_v4  ;;  %v2108_v53 = vunpack.i.l.bf16 %v2107_v4 }
 0x1d8   :  { %v1185_v0 = vmax.f32 %v1136_v34, 0.0  ;;  %v1186_v59 = vmax.f32 %v1137_v15, 0.0  ;;  %v747_v17 = vmax.f32 %v2652_v23, %v2104_v29  ;;  %v746_v41 = vmax.f32 %v2648_v40, %v2103_v20 }
 0x1d9   :  { %v2117_v12 = vpop.permute.xlu1 %2116  ;;  %v2112_v2 = vpop.permute.xlu0 %2111  ;;  %v966_v23 = vmax.f32 %v770_v33, %v2850_v45 }
 0x1da   :  { %v1588_v8 = vpack.c.bf16 %v1185_v0, %v1185_v0  ;;  %v1589_v42 = vpack.c.bf16 %v1186_v59, %v1186_v59  ;;  %v2119_v13 = vunpack.i.h.bf16 %v2117_v12  ;;  %v2118_v60 = vunpack.i.l.bf16 %v2117_v12 }
 0x1db   :  { %v2114_v11 = vunpack.i.h.bf16 %v2112_v2  ;;  %v2113_v5 = vunpack.i.l.bf16 %v2112_v2  ;;  %v942_v57 = vmax.f32 %v746_v41, %v2108_v53  ;;  %v943_v62 = vmax.f32 %v747_v17, %v2109_v58 }
 0x1dc   :  { %1432 = vst.msk [vmem:[%s2899_s3 + $0x58] sm:$0xf] %vm1409_vm3, %v1588_v8  ;;  %1433 = vst.msk [vmem:[%s2899_s3 + $0x5c] sm:$0xf] %vm1409_vm3, %v1589_v42  ;;  %v1161_v38 = vmax.f32 %v965_v35, %v2119_v13  ;;  %v1160_v40 = vmax.f32 %v964_v19, %v2118_v60 }
 0x1dd   :  { %v1138_v44 = vmax.f32 %v942_v57, %v2113_v5  ;;  %v1139_v51 = vmax.f32 %v943_v62, %v2114_v11  ;;  %v1064_v22 = vpop.permute.xlu0 %1063 }
 0x1de   :  { %v1210_v46 = vmax.f32 %v1161_v38, 0.0  ;;  %v1209_v49 = vmax.f32 %v1160_v40, 0.0  ;;  %v1162_v27 = vmax.f32 %v966_v23, %v1064_v22 }
 0x1df   :  { %v1187_v50 = vmax.f32 %v1138_v44, 0.0  ;;  %v1188_v63 = vmax.f32 %v1139_v51, 0.0 }
 0x1e0   :  { %v1613_v48 = vpack.c.bf16 %v1210_v46, %v1210_v46  ;;  %v1612_v25 = vpack.c.bf16 %v1209_v49, %v1209_v49  ;;  %v1211_v24 = vmax.f32 %v1162_v27, 0.0 }
 0x1e1   :  { %v1590_v28 = vpack.c.bf16 %v1187_v50, %v1187_v50  ;;  %v1591_v37 = vpack.c.bf16 %v1188_v63, %v1188_v63 }
 0x1e2   :  { %1457 = vst.msk [vmem:[%s2899_s3 + $0xbc] sm:$0xf] %vm1409_vm3, %v1613_v48  ;;  %1456 = vst.msk [vmem:[%s2899_s3 + $0xb8] sm:$0xf] %vm1409_vm3, %v1612_v25  ;;  %v1614_v45 = vpack.c.bf16 %v1211_v24, %v1211_v24 }
 0x1e3   :  { %1434 = vst.msk [vmem:[%s2899_s3 + $0x60] sm:$0xf] %vm1409_vm3, %v1590_v28  ;;  %1435 = vst.msk [vmem:[%s2899_s3 + $0x64] sm:$0xf] %vm1409_vm3, %v1591_v37 }
 0x1e4   :  { %1458 = vst.msk [vmem:[%s2899_s3 + $0xc0] sm:$0xf] %vm1409_vm3, %v1614_v45 }

// kernel: relu_net_wide_forward.4
= control target key start
LH: loop header
LB: loop body
LE: loop exit
PB: predicated region body
PF: predicated region fallthrough
CT: control target
= control target key end

     0   :  { %v1199_v0 = vmov 0   ;;  %vm167_vm0 = vcmask 130048   ;;  %vm931_vm1 = vcmask 257024   ;;  %vm944_vm2 = vcmask 253952   ;;  %s1683_s1 = inlined_call_operand.vmem [shape: bf16[144,32], index: 1, kind: input, shape index: {}]   ;;  %s1684_s0 = inlined_call_operand.vmem [shape: bf16[4,98,144], index: 0, kind: input, shape index: {}]   ;;  %s1685_s2 = inlined_call_operand.vmem [shape: f32[1,32], index: 2, kind: input, shape index: {}]   ;;  %s1686_s3 = inlined_call_operand.vmem [shape: bf16[98,32], index: 3, kind: output, shape index: {}]  }
   0x1   :  { %189 = vmatprep.subr.bf16.mxu0 %v1199_v0  ;;  %372 = vmatprep.subr.bf16.mxu1 %v1199_v0  ;;  %v1110_v1 = vld [vmem:[%s1683_s1 + $0x38] sm:$0xff]   ;;  %v1111_v2 = vld [vmem:[%s1683_s1 + $0x30] sm:$0xff]   ;;  %v1233_v3 = vld [vmem:[%s1683_s1 + $0x28] sm:$0xff]  }
   0x2   :  { %190 = vmatpush1.bf16.msra.mxu0 %v1110_v1  ;;  %373 = vmatpush1.bf16.msra.mxu1 %v1110_v1  ;;  %v1240_v4 = vld [vmem:[%s1683_s1 + $0x20] sm:$0xff]   ;;  %v1124_v6 = vld [vmem:[%s1684_s0 + $0x6c] ss:$8 sps:$4 sm:$0xff]   ;;  %v1259_v7 = vld [vmem:[%s1683_s1 + $0x18] sm:$0xff]  }
   0x3   :  { %191 = vmatprep.subr.bf16.mxu0 %v1199_v0  ;;  %374 = vmatprep.subr.bf16.mxu1 %v1199_v0  ;;  %v1121_v5 = vld [vmem:[%s1684_s0 + $0x4] ss:$8 sps:$4 sm:$0xff]   ;;  %v1268_v8 = vld [vmem:[%s1683_s1 + $0x10] sm:$0xff]   ;;  %v1119_v12 = vld [vmem:[%s1684_s0] ss:$8 sps:$4 sm:$0xff]  }
   0x4   :  { %974 = vmatprep.mubr.msk.bf16.mxu0 %vm167_vm0, %v1121_v5  ;;  %1008 = vmatprep.mubr.msk.bf16.mxu1 %vm167_vm0, %v1124_v6  ;;  %v1277_v9 = vld [vmem:[%s1683_s1 + $0x8] sm:$0xff]   ;;  %v1286_v10 = vld [vmem:[%s1683_s1] sm:$0xff]   ;;  %v1125_v14 = vld [vmem:[%s1684_s0 + $0x14] ss:$8 sps:$4 sm:$0xff]  }
   0x5   :  { %v1295_v11 = vld [vmem:[%s1683_s1 + $0x40] sm:$0xff]   ;;  %v1122_v13 = vld [vmem:[%s1684_s0 + $0x68] ss:$8 sps:$4 sm:$0xff]   ;;  %v1133_v19 = vld [vmem:[%s1684_s0 + $0x8c] ss:$8 sps:$4 sm:$0xff]  }
   0x6   :  { %192 = vmatpush1.bf16.msra.mxu0 %v1111_v2  ;;  %375 = vmatpush1.bf16.msra.mxu1 %v1111_v2  ;;  %v1127_v15 = vld [vmem:[%s1684_s0 + $0x7c] ss:$8 sps:$4 sm:$0xff]   ;;  %v1129_v16 = vld [vmem:[%s1684_s0 + $0x10] ss:$8 sps:$4 sm:$0xff]   ;;  %v1135_v20 = vld [vmem:[%s1684_s0 + $0x20] ss:$8 sps:$4 sm:$0xff]  }
   0x7   :  { %193 = vmatprep.subr.bf16.mxu0 %v1199_v0  ;;  %376 = vmatprep.subr.bf16.mxu1 %v1199_v0  ;;  %v1130_v17 = vld [vmem:[%s1684_s0 + $0x78] ss:$8 sps:$4 sm:$0xff]   ;;  %v1131_v18 = vld [vmem:[%s1684_s0 + $0x24] ss:$8 sps:$4 sm:$0xff]   ;;  %v1136_v21 = vld [vmem:[%s1684_s0 + $0x88] ss:$8 sps:$4 sm:$0xff]  }
   0x8   :  { %v1137_v22 = vld [vmem:[%s1684_s0 + $0x34] ss:$8 sps:$4 sm:$0xff]   ;;  %v1141_v24 = vld [vmem:[%s1684_s0 + $0x30] ss:$8 sps:$4 sm:$0xff]   ;;  %v1143_v26 = vld [vmem:[%s1684_s0 + $0x44] ss:$8 sps:$4 sm:$0xff]  }
   0x9   :  { %v1139_v23 = vld [vmem:[%s1684_s0 + $0x9c] ss:$8 sps:$4 sm:$0xff]   ;;  %v1142_v25 = vld [vmem:[%s1684_s0 + $0x98] ss:$8 sps:$4 sm:$0xff]   ;;  %v1145_v27 = vld [vmem:[%s1684_s0 + $0xac] ss:$8 sps:$4 sm:$0xff]  }
   0xa   :  { %194 = vmatpush1.bf16.msra.mxu0 %v1233_v3  ;;  %377 = vmatpush1.bf16.msra.mxu1 %v1233_v3  ;;  %v1147_v28 = vld [vmem:[%s1684_s0 + $0x40] ss:$8 sps:$4 sm:$0xff]   ;;  %v1149_v30 = vld [vmem:[%s1684_s0 + $0x54] ss:$8 sps:$4 sm:$0xff]   ;;  %v1153_v34 = vld [vmem:[%s1684_s0 + $0x50] ss:$8 sps:$4 sm:$0xff]  }
   0xb   :  { %195 = vmatprep.subr.bf16.mxu0 %v1199_v0  ;;  %378 = vmatprep.subr.bf16.mxu1 %v1199_v0  ;;  %v1148_v29 = vld [vmem:[%s1684_s0 + $0xa8] ss:$8 sps:$4 sm:$0xff]   ;;  %v1151_v31 = vld [vmem:[%s1684_s0 + $0xbc] ss:$8 sps:$4 sm:$0xff]   ;;  %v1154_v35 = vld [vmem:[%s1684_s0 + $0xb8] ss:$8 sps:$4 sm:$0xff]  }
   0xc   :  { %v46_v32 = vld [vmem:[%s1684_s0 + $0x60] sm:$0x11]  ;;  %v993_v33 = vld [vmem:[%s1684_s0 + $0xc8] sm:$0x11]  ;;  %v1161_v40 = vld [vmem:[%s1684_s0 + $0xd4] ss:$8 sps:$4 sm:$0xff]  }
   0xd   :  { %v964_v36 = vcombine.high %v46_v32, %v46_v32  ;;  %v1007_v37 = vcombine.high %v993_v33, %v993_v33  ;;  %v963_v38 = vcombine.low %v46_v32, %v46_v32  ;;  %v1006_v39 = vcombine.low %v993_v33, %v993_v33  ;;  %v1164_v41 = vld [vmem:[%s1684_s0 + $0x13c] ss:$8 sps:$4 sm:$0xff]   ;;  %v1159_v42 = vld [vmem:[%s1684_s0 + $0xd0] ss:$8 sps:$4 sm:$0xff]   ;;  %v1167_v45 = vld [vmem:[%s1684_s0 + $0x14c] ss:$8 sps:$4 sm:$0xff]  }
   0xe   :  { %196 = vmatpush1.bf16.msra.mxu0 %v1240_v4  ;;  %379 = vmatpush1.bf16.msra.mxu1 %v1240_v4  ;;  %v1162_v43 = vld [vmem:[%s1684_s0 + $0x138] ss:$8 sps:$4 sm:$0xff]   ;;  %v1165_v44 = vld [vmem:[%s1684_s0 + $0xe4] ss:$8 sps:$4 sm:$0xff]   ;;  %v1170_v47 = vld [vmem:[%s1684_s0 + $0x148] ss:$8 sps:$4 sm:$0xff]  }
   0xf   :  { %197 = vmatprep.subr.bf16.mxu0 %v1199_v0  ;;  %380 = vmatprep.subr.bf16.mxu1 %v1199_v0  ;;  %v1169_v46 = vld [vmem:[%s1684_s0 + $0xe0] ss:$8 sps:$4 sm:$0xff]   ;;  %v1171_v48 = vld [vmem:[%s1684_s0 + $0xf4] ss:$8 sps:$4 sm:$0xff]   ;;  %v1175_v50 = vld [vmem:[%s1684_s0 + $0xf0] ss:$8 sps:$4 sm:$0xff]  }
  0x10   :  { %v1173_v49 = vld [vmem:[%s1684_s0 + $0x15c] ss:$8 sps:$4 sm:$0xff]   ;;  %v1176_v51 = vld [vmem:[%s1684_s0 + $0x158] ss:$8 sps:$4 sm:$0xff]   ;;  %v1179_v53 = vld [vmem:[%s1684_s0 + $0x16c] ss:$8 sps:$4 sm:$0xff]  }
  0x11   :  { %v1177_v52 = vld [vmem:[%s1684_s0 + $0x104] ss:$8 sps:$4 sm:$0xff]   ;;  %v1181_v54 = vld [vmem:[%s1684_s0 + $0x100] ss:$8 sps:$4 sm:$0xff]   ;;  %v1183_v56 = vld [vmem:[%s1684_s0 + $0x114] ss:$8 sps:$4 sm:$0xff]  }
  0x12   :  { %198 = vmatpush1.bf16.msra.mxu0 %v1259_v7  ;;  %381 = vmatpush1.bf16.msra.mxu1 %v1259_v7  ;;  %v1182_v55 = vld [vmem:[%s1684_s0 + $0x168] ss:$8 sps:$4 sm:$0xff]   ;;  %v1185_v57 = vld [vmem:[%s1684_s0 + $0x17c] ss:$8 sps:$4 sm:$0xff]   ;;  %v1188_v59 = vld [vmem:[%s1684_s0 + $0x178] ss:$8 sps:$4 sm:$0xff]  }
  0x13   :  { %199 = vmatprep.subr.bf16.mxu0 %v1199_v0  ;;  %382 = vmatprep.subr.bf16.mxu1 %v1199_v0  ;;  %v1187_v58 = vld [vmem:[%s1684_s0 + $0x110] ss:$8 sps:$4 sm:$0xff]   ;;  %v1189_v60 = vld [vmem:[%s1684_s0 + $0x124] ss:$8 sps:$4 sm:$0xff]  }
  0x14   :  { %v1191_v61 = vld [vmem:[%s1684_s0 + $0x18c] ss:$8 sps:$4 sm:$0xff]   ;;  %v1061_v63 = vld [vmem:[%s1684_s0 + $0x198] sm:$0x11] }
  0x15   :  { %v1027_v62 = vld [vmem:[%s1684_s0 + $0x130] sm:$0x11]  ;;  %v1074_v5 = vcombine.low %v1061_v63, %v1061_v63 }
  0x16   :  { %200 = vmatpush1.bf16.msra.mxu0 %v1268_v8  ;;  %383 = vmatpush1.bf16.msra.mxu1 %v1268_v8 }
  0x17   :  { %201 = vmatprep.subr.bf16.mxu0 %v1199_v0  ;;  %384 = vmatprep.subr.bf16.mxu1 %v1199_v0 }
  0x1a   :  { %202 = vmatpush1.bf16.msra.mxu0 %v1277_v9  ;;  %385 = vmatpush1.bf16.msra.mxu1 %v1277_v9 }
  0x1b   :  { %203 = vmatprep.subr.bf16.mxu0 %v1199_v0  ;;  %386 = vmatprep.subr.bf16.mxu1 %v1199_v0 }
  0x1e   :  { %204 = vmatpush1.bf16.msra.mxu0 %v1286_v10  ;;  %387 = vmatpush1.bf16.msra.mxu1 %v1286_v10 }
  0x1f   :  { %219 = vmatprep.subr.bf16.mxu0 %v1199_v0  ;;  %402 = vmatprep.subr.bf16.mxu1 %v1199_v0 }
  0x22   :  { %220 = vmatpush2.bf16.msra.mxu0 %v1295_v11  ;;  %403 = vmatpush2.bf16.msra.mxu1 %v1295_v11 }
  0x23   :  { %568 = vmatprep.subr.bf16.mxu0 %v1199_v0  ;;  %751 = vmatprep.subr.bf16.mxu1 %v1199_v0 }
  0x25   :  { %222 = vmatmul.mubr.bf16.vlgmr.msra.gmra.mxu0 %v1119_v12  ;;  %405 = vmatmul.mubr.bf16.vlgmr.msra.gmra.mxu1 %v1122_v13 }
  0x26   :  { %569 = vmatpush1.bf16.msra.mxu0 %v1110_v1  ;;  %752 = vmatpush1.bf16.msra.mxu1 %v1110_v1  ;;  %v1194_v1 = vld [vmem:[%s1684_s0 + $0x188] ss:$8 sps:$4 sm:$0xff]  }
  0x27   :  { %975 = vmatprep.mubr.msk.bf16.mxu0 %vm167_vm0, %v1125_v14  ;;  %1009 = vmatprep.mubr.msk.bf16.mxu1 %vm167_vm0, %v1127_v15 }
  0x28   :  { %570 = vmatprep.subr.bf16.mxu0 %v1199_v0  ;;  %753 = vmatprep.subr.bf16.mxu1 %v1199_v0 }
  0x2a   :  { %571 = vmatpush1.bf16.msra.mxu0 %v1111_v2  ;;  %754 = vmatpush1.bf16.msra.mxu1 %v1111_v2  ;;  %v1041_v2 = vcombine.high %v1027_v62, %v1027_v62 }
  0x2b   :  { %572 = vmatprep.subr.bf16.mxu0 %v1199_v0  ;;  %755 = vmatprep.subr.bf16.mxu1 %v1199_v0 }
  0x2d   :  { %230 = vmatmul.mubr.bf16.gmra.mxu0 %v1129_v16  ;;  %413 = vmatmul.mubr.bf16.gmra.mxu1 %v1130_v17 }
  0x2e   :  { %573 = vmatpush1.bf16.msra.mxu0 %v1233_v3  ;;  %756 = vmatpush1.bf16.msra.mxu1 %v1233_v3  ;;  %v1075_v3 = vcombine.high %v1061_v63, %v1061_v63 }
  0x2f   :  { %976 = vmatprep.mubr.msk.bf16.mxu0 %vm167_vm0, %v1131_v18  ;;  %1010 = vmatprep.mubr.msk.bf16.mxu1 %vm167_vm0, %v1133_v19 }
  0x30   :  { %574 = vmatprep.subr.bf16.mxu0 %v1199_v0  ;;  %757 = vmatprep.subr.bf16.mxu1 %v1199_v0 }
  0x32   :  { %575 = vmatpush1.bf16.msra.mxu0 %v1240_v4  ;;  %758 = vmatpush1.bf16.msra.mxu1 %v1240_v4  ;;  %v1040_v4 = vcombine.low %v1027_v62, %v1027_v62 }
  0x33   :  { %576 = vmatprep.subr.bf16.mxu0 %v1199_v0  ;;  %759 = vmatprep.subr.bf16.mxu1 %v1199_v0 }
  0x35   :  { %238 = vmatmul.mubr.bf16.gmra.mxu0 %v1135_v20  ;;  %421 = vmatmul.mubr.bf16.gmra.mxu1 %v1136_v21 }
  0x36   :  { %977 = vmatprep.mubr.msk.bf16.mxu0 %vm167_vm0, %v1137_v22  ;;  %1011 = vmatprep.mubr.msk.bf16.mxu1 %vm167_vm0, %v1139_v23 }
  0x37   :  { %577 = vmatpush1.bf16.msra.mxu0 %v1259_v7  ;;  %760 = vmatpush1.bf16.msra.mxu1 %v1259_v7 }
  0x38   :  { %578 = vmatprep.subr.bf16.mxu0 %v1199_v0  ;;  %761 = vmatprep.subr.bf16.mxu1 %v1199_v0 }
  0x3b   :  { %579 = vmatpush1.bf16.msra.mxu0 %v1268_v8  ;;  %762 = vmatpush1.bf16.msra.mxu1 %v1268_v8 }
  0x3c   :  { %580 = vmatprep.subr.bf16.mxu0 %v1199_v0  ;;  %763 = vmatprep.subr.bf16.mxu1 %v1199_v0 }
  0x3d   :  { %246 = vmatmul.mubr.bf16.gmra.mxu0 %v1141_v24  ;;  %429 = vmatmul.mubr.bf16.gmra.mxu1 %v1142_v25 }
  0x3e   :  { %978 = vmatprep.mubr.msk.bf16.mxu0 %vm167_vm0, %v1143_v26  ;;  %1012 = vmatprep.mubr.msk.bf16.mxu1 %vm167_vm0, %v1145_v27 }
  0x3f   :  { %581 = vmatpush1.bf16.msra.mxu0 %v1277_v9  ;;  %764 = vmatpush1.bf16.msra.mxu1 %v1277_v9 }
  0x40   :  { %582 = vmatprep.subr.bf16.mxu0 %v1199_v0  ;;  %765 = vmatprep.subr.bf16.mxu1 %v1199_v0 }
  0x43   :  { %583 = vmatpush1.bf16.msra.mxu0 %v1286_v10  ;;  %766 = vmatpush1.bf16.msra.mxu1 %v1286_v10 }
  0x44   :  { %598 = vmatprep.subr.bf16.mxu0 %v1199_v0  ;;  %781 = vmatprep.subr.bf16.mxu1 %v1199_v0  ;;  %v1193_v0 = vld [vmem:[%s1684_s0 + $0x120] ss:$8 sps:$4 sm:$0xff]  }
  0x45   :  { %254 = vmatmul.mubr.bf16.gmra.mxu0 %v1147_v28  ;;  %437 = vmatmul.mubr.bf16.gmra.mxu1 %v1148_v29 }
  0x46   :  { %979 = vmatprep.mubr.msk.bf16.mxu0 %vm167_vm0, %v1149_v30  ;;  %1013 = vmatprep.mubr.msk.bf16.mxu1 %vm167_vm0, %v1151_v31 }
  0x47   :  { %599 = vmatpush2.bf16.msra.mxu0 %v1295_v11  ;;  %782 = vmatpush2.bf16.msra.mxu1 %v1295_v11 }
  0x4d   :  { %262 = vmatmul.mubr.bf16.gmra.mxu0 %v1153_v34  ;;  %445 = vmatmul.mubr.bf16.gmra.mxu1 %v1154_v35 }
  0x4e   :  { %980 = vmatprep.mubr.msk.bf16.mxu0 %vm167_vm0, %v964_v36  ;;  %1014 = vmatprep.mubr.msk.bf16.mxu1 %vm167_vm0, %v1007_v37 }
  0x55   :  { %270 = vmatmul.mubr.bf16.gmra.mxu0 %v963_v38  ;;  %453 = vmatmul.mubr.bf16.gmra.mxu1 %v1006_v39 }
  0x56   :  { %1042 = vmatprep.mubr.msk.bf16.mxu0 %vm167_vm0, %v1161_v40  ;;  %1076 = vmatprep.mubr.msk.bf16.mxu1 %vm167_vm0, %v1164_v41 }
  0x5d   :  { %601 = vmatmul.mubr.bf16.vlgmr.msra.gmra.mxu0 %v1159_v42  ;;  %784 = vmatmul.mubr.bf16.vlgmr.msra.gmra.mxu1 %v1162_v43 }
  0x5e   :  { %1043 = vmatprep.mubr.msk.bf16.mxu0 %vm167_vm0, %v1165_v44  ;;  %1077 = vmatprep.mubr.msk.bf16.mxu1 %vm167_vm0, %v1167_v45 }
  0x65   :  { %609 = vmatmul.mubr.bf16.gmra.mxu0 %v1169_v46  ;;  %792 = vmatmul.mubr.bf16.gmra.mxu1 %v1170_v47 }
  0x66   :  { %1044 = vmatprep.mubr.msk.bf16.mxu0 %vm167_vm0, %v1171_v48  ;;  %1078 = vmatprep.mubr.msk.bf16.mxu1 %vm167_vm0, %v1173_v49 }
  0x6d   :  { %617 = vmatmul.mubr.bf16.gmra.mxu0 %v1175_v50  ;;  %800 = vmatmul.mubr.bf16.gmra.mxu1 %v1176_v51 }
  0x6e   :  { %1045 = vmatprep.mubr.msk.bf16.mxu0 %vm167_vm0, %v1177_v52  ;;  %1079 = vmatprep.mubr.msk.bf16.mxu1 %vm167_vm0, %v1179_v53 }
  0x75   :  { %625 = vmatmul.mubr.bf16.gmra.mxu0 %v1181_v54  ;;  %808 = vmatmul.mubr.bf16.gmra.mxu1 %v1182_v55 }
  0x76   :  { %1046 = vmatprep.mubr.msk.bf16.mxu0 %vm167_vm0, %v1183_v56  ;;  %1080 = vmatprep.mubr.msk.bf16.mxu1 %vm167_vm0, %v1185_v57 }
  0x7d   :  { %633 = vmatmul.mubr.bf16.gmra.mxu0 %v1187_v58  ;;  %816 = vmatmul.mubr.bf16.gmra.mxu1 %v1188_v59  ;;  %v1556_v58 = vld [vmem:[%s1685_s2] ss:$0 sm:$0xff] }
  0x7e   :  { %1047 = vmatprep.mubr.msk.bf16.mxu0 %vm167_vm0, %v1189_v60  ;;  %1081 = vmatprep.mubr.msk.bf16.mxu1 %vm167_vm0, %v1191_v61 }
  0x85   :  { %641 = vmatmul.mubr.bf16.gmra.mxu0 %v1193_v0  ;;  %824 = vmatmul.mubr.bf16.gmra.mxu1 %v1194_v1 }
  0x86   :  { %1048 = vmatprep.mubr.msk.bf16.mxu0 %vm167_vm0, %v1041_v2  ;;  %1082 = vmatprep.mubr.msk.bf16.mxu1 %vm167_vm0, %v1075_v3 }
  0x8d   :  { %649 = vmatmul.mubr.bf16.gmra.mxu0 %v1040_v4  ;;  %832 = vmatmul.mubr.bf16.gmra.mxu1 %v1074_v5 }
  0xe5   :  { %v223_v6 = vpop.f32.mrf.mxu0  ;;  %v406_v7 = vpop.f32.mrf.mxu1 }
  0xe6   :  { %v224_v63 = vadd.f32 %v1556_v58, %v223_v6  ;;  %v407_v0 = vadd.f32 %v1556_v58, %v406_v7 }
  0xe7   :  { %v225_v8 = vpop.f32.mrf.mxu0  ;;  %v408_v9 = vpop.f32.mrf.mxu1 }
  0xe9   :  { %v226_v10 = vpop.f32.mrf.mxu0  ;;  %v409_v11 = vpop.f32.mrf.mxu1 }
  0xea   :  { %v227_v5 = vadd.f32 %v1556_v58, %v226_v10  ;;  %v410_v8 = vadd.f32 %v1556_v58, %v409_v11 }
  0xeb   :  { %v228_v12 = vpop.f32.mrf.mxu0  ;;  %v411_v13 = vpop.f32.mrf.mxu1 }
  0xec   :  { %v460_v13 = vmax.f32 %v224_v63, %v407_v0 }
  0xed   :  { %v1509_v14 = vpop.f32.mrf.mxu0  ;;  %v1511_v15 = vpop.f32.mrf.mxu1 }
  0xee   :  { %v415_v10 = vadd.f32 %v1556_v58, %v1511_v15 }
  0xef   :  { %v233_v16 = vpop.f32.mrf.mxu0  ;;  %v416_v17 = vpop.f32.mrf.mxu1 }
  0xf1   :  { %v1513_v18 = vpop.f32.mrf.mxu0  ;;  %v1515_v19 = vpop.f32.mrf.mxu1 }
  0xf3   :  { %v236_v20 = vpop.f32.mrf.mxu0  ;;  %v419_v21 = vpop.f32.mrf.mxu1 }
  0xf5   :  { %v1517_v22 = vpop.f32.mrf.mxu0  ;;  %v1519_v23 = vpop.f32.mrf.mxu1 }
  0xf6   :  { %v240_v0 = vadd.f32 %v1556_v58, %v1517_v22 }
  0xf7   :  { %v241_v24 = vpop.f32.mrf.mxu0  ;;  %v424_v25 = vpop.f32.mrf.mxu1 }
  0xf8   :  { %v461_v24 = vmax.f32 %v227_v5, %v410_v8 }
  0xf9   :  { %v1521_v26 = vpop.f32.mrf.mxu0  ;;  %v1523_v27 = vpop.f32.mrf.mxu1 }
  0xfa   :  { %v243_v22 = vadd.f32 %v1556_v58, %v1521_v26 }
  0xfb   :  { %v244_v28 = vpop.f32.mrf.mxu0  ;;  %v427_v29 = vpop.f32.mrf.mxu1 }
  0xfc   :  { %v232_v29 = vadd.f32 %v1556_v58, %v1509_v14  ;;  %v418_v14 = vadd.f32 %v1556_v58, %v1515_v19 }
  0xfd   :  { %v1525_v30 = vpop.f32.mrf.mxu0  ;;  %v1527_v31 = vpop.f32.mrf.mxu1 }
  0xfe   :  { %v462_v15 = vmax.f32 %v232_v29, %v415_v10 }
  0xff   :  { %v249_v32 = vpop.f32.mrf.mxu0  ;;  %v432_v33 = vpop.f32.mrf.mxu1 }
 0x101   :  { %v1529_v34 = vpop.f32.mrf.mxu0  ;;  %v1531_v35 = vpop.f32.mrf.mxu1 }
 0x103   :  { %v252_v36 = vpop.f32.mrf.mxu0  ;;  %v435_v37 = vpop.f32.mrf.mxu1 }
 0x105   :  { %v1533_v38 = vpop.f32.mrf.mxu0  ;;  %v1535_v39 = vpop.f32.mrf.mxu1 }
 0x107   :  { %v257_v40 = vpop.f32.mrf.mxu0  ;;  %v440_v41 = vpop.f32.mrf.mxu1 }
 0x109   :  { %v1537_v42 = vpop.f32.mrf.mxu0  ;;  %v1539_v43 = vpop.f32.mrf.mxu1 }
 0x10b   :  { %v260_v44 = vpop.f32.mrf.mxu0  ;;  %v443_v45 = vpop.f32.mrf.mxu1 }
 0x10c   :  { %v235_v45 = vadd.f32 %v1556_v58, %v1513_v18 }
 0x10d   :  { %v1541_v46 = vpop.f32.mrf.mxu0  ;;  %v1543_v47 = vpop.f32.mrf.mxu1 }
 0x10f   :  { %v265_v48 = vpop.f32.mrf.mxu0  ;;  %v448_v49 = vpop.f32.mrf.mxu1 }
 0x111   :  { %v1545_v50 = vpop.f32.mrf.mxu0  ;;  %v1547_v51 = vpop.f32.mrf.mxu1 }
 0x113   :  { %v268_v52 = vpop.f32.mrf.mxu0  ;;  %v451_v53 = vpop.f32.mrf.mxu1 }
 0x115   :  { %v1549_v54 = vpop.f32.mrf.mxu0  ;;  %v1551_v55 = vpop.f32.mrf.mxu1 }
 0x117   :  { %v273_v56 = vpop.f32.mrf.mxu0  ;;  %v456_v57 = vpop.f32.mrf.mxu1 }
 0x119   :  { %v274_v59 = vpop.f32.mrf.mxu0  ;;  %v457_v60 = vpop.f32.mrf.mxu1 }
 0x11b   :  { %v275_v61 = vpop.f32.mrf.mxu0  ;;  %v458_v62 = vpop.f32.mrf.mxu1 }
 0x11c   :  { %v463_v62 = vmax.f32 %v235_v45, %v418_v14 }
 0x11d   :  { %v602_v1 = vpop.f32.mrf.mxu0  ;;  %v785_v2 = vpop.f32.mrf.mxu1 }
 0x11e   :  { %v603_v3 = vadd.f32 %v1556_v58, %v602_v1  ;;  %v786_v4 = vadd.f32 %v1556_v58, %v785_v2  ;;  %v423_v1 = vadd.f32 %v1556_v58, %v1519_v23  ;;  %v426_v23 = vadd.f32 %v1556_v58, %v1523_v27 }
 0x11f   :  { %v604_v9 = vpop.f32.mrf.mxu0  ;;  %v787_v12 = vpop.f32.mrf.mxu1 }
 0x120   :  { %v839_v16 = vmax.f32 %v603_v3, %v786_v4  ;;  %v465_v10 = vmax.f32 %v243_v22, %v426_v23 }
 0x121   :  { %v605_v17 = vpop.f32.mrf.mxu0  ;;  %v788_v20 = vpop.f32.mrf.mxu1 }
 0x122   :  { %v852_v21 = vmax.f32 %v460_v13, %v839_v16  ;;  %v606_v6 = vadd.f32 %v1556_v58, %v605_v17  ;;  %v789_v7 = vadd.f32 %v1556_v58, %v788_v20  ;;  %v464_v20 = vmax.f32 %v240_v0, %v423_v1 }
 0x123   :  { %v607_v25 = vpop.f32.mrf.mxu0  ;;  %v790_v28 = vpop.f32.mrf.mxu1  ;;  %v439_v0 = vadd.f32 %v1556_v58, %v1535_v39  ;;  %v442_v39 = vadd.f32 %v1556_v58, %v1539_v43 }
 0x124   :  { %v865_v11 = vmax.f32 %v852_v21, 0.0  ;;  %v840_v32 = vmax.f32 %v606_v6, %v789_v7 }
 0x125   :  { %v610_v33 = vpop.f32.mrf.mxu0  ;;  %v793_v36 = vpop.f32.mrf.mxu1 }
 0x126   :  { %v1096_v37 = vpack.c.bf16 %v865_v11, %v865_v11  ;;  %v853_v40 = vmax.f32 %v461_v24, %v840_v32  ;;  %v611_v41 = vadd.f32 %v1556_v58, %v610_v33  ;;  %v794_v44 = vadd.f32 %v1556_v58, %v793_v36 }
 0x127   :  { %v612_v48 = vpop.f32.mrf.mxu0  ;;  %v795_v49 = vpop.f32.mrf.mxu1  ;;  %v248_v32 = vadd.f32 %v1556_v58, %v1525_v30  ;;  %v431_v33 = vadd.f32 %v1556_v58, %v1527_v31  ;;  %v251_v30 = vadd.f32 %v1556_v58, %v1529_v34  ;;  %v434_v31 = vadd.f32 %v1556_v58, %v1531_v35 }
 0x128   :  { %932 = vst.msk [vmem:[%s1686_s3] sm:$0xf] %vm931_vm1, %v1096_v37  ;;  %v866_v52 = vmax.f32 %v853_v40, 0.0  ;;  %v841_v53 = vmax.f32 %v611_v41, %v794_v44 }
 0x129   :  { %v613_v56 = vpop.f32.mrf.mxu0  ;;  %v796_v57 = vpop.f32.mrf.mxu1 }
 0x12a   :  { %v1097_v59 = vpack.c.bf16 %v866_v52, %v866_v52  ;;  %v854_v60 = vmax.f32 %v462_v15, %v841_v53  ;;  %v614_v61 = vadd.f32 %v1556_v58, %v613_v56  ;;  %v797_v18 = vadd.f32 %v1556_v58, %v796_v57 }
 0x12b   :  { %v615_v19 = vpop.f32.mrf.mxu0  ;;  %v798_v63 = vpop.f32.mrf.mxu1  ;;  %v466_v52 = vmax.f32 %v248_v32, %v431_v33 }
 0x12c   :  { %933 = vst.msk [vmem:[%s1686_s3 + $0x4] sm:$0xf] %vm931_vm1, %v1097_v59  ;;  %v867_v2 = vmax.f32 %v854_v60, 0.0  ;;  %v842_v3 = vmax.f32 %v614_v61, %v797_v18  ;;  %v256_v63 = vadd.f32 %v1556_v58, %v1533_v38  ;;  %v259_v38 = vadd.f32 %v1556_v58, %v1537_v42 }
 0x12d   :  { %v618_v4 = vpop.f32.mrf.mxu0  ;;  %v801_v5 = vpop.f32.mrf.mxu1 }
 0x12e   :  { %v1098_v8 = vpack.c.bf16 %v867_v2, %v867_v2  ;;  %v855_v9 = vmax.f32 %v463_v62, %v842_v3  ;;  %v619_v12 = vadd.f32 %v1556_v58, %v618_v4  ;;  %v802_v13 = vadd.f32 %v1556_v58, %v801_v5 }
 0x12f   :  { %v620_v16 = vpop.f32.mrf.mxu0  ;;  %v803_v17 = vpop.f32.mrf.mxu1  ;;  %v467_v62 = vmax.f32 %v251_v30, %v434_v31  ;;  %v468_v23 = vmax.f32 %v256_v63, %v439_v0 }
 0x130   :  { %934 = vst.msk [vmem:[%s1686_s3 + $0x8] sm:$0xf] %vm931_vm1, %v1098_v8  ;;  %v868_v21 = vmax.f32 %v855_v9, 0.0  ;;  %v843_v6 = vmax.f32 %v619_v12, %v802_v13 }
 0x131   :  { %v621_v7 = vpop.f32.mrf.mxu0  ;;  %v804_v24 = vpop.f32.mrf.mxu1 }
 0x132   :  { %v1099_v25 = vpack.c.bf16 %v868_v21, %v868_v21  ;;  %v856_v28 = vmax.f32 %v464_v20, %v843_v6  ;;  %v622_v29 = vadd.f32 %v1556_v58, %v621_v7  ;;  %v805_v26 = vadd.f32 %v1556_v58, %v804_v24 }
 0x133   :  { %v623_v27 = vpop.f32.mrf.mxu0  ;;  %v806_v11 = vpop.f32.mrf.mxu1 }
 0x134   :  { %935 = vst.msk [vmem:[%s1686_s3 + $0xc] sm:$0xf] %vm931_vm1, %v1099_v25  ;;  %v869_v36 = vmax.f32 %v856_v28, 0.0  ;;  %v844_v37 = vmax.f32 %v622_v29, %v805_v26  ;;  %v469_v25 = vmax.f32 %v259_v38, %v442_v39  ;;  %v264_v29 = vadd.f32 %v1556_v58, %v1541_v46 }
 0x135   :  { %v626_v40 = vpop.f32.mrf.mxu0  ;;  %v809_v41 = vpop.f32.mrf.mxu1  ;;  %v447_v26 = vadd.f32 %v1556_v58, %v1543_v47  ;;  %v267_v46 = vadd.f32 %v1556_v58, %v1545_v50  ;;  %v450_v47 = vadd.f32 %v1556_v58, %v1547_v51 }
 0x136   :  { %v1100_v44 = vpack.c.bf16 %v869_v36, %v869_v36  ;;  %v857_v45 = vmax.f32 %v465_v10, %v844_v37  ;;  %v627_v14 = vadd.f32 %v1556_v58, %v626_v40  ;;  %v810_v48 = vadd.f32 %v1556_v58, %v809_v41 }
 0x137   :  { %v628_v49 = vpop.f32.mrf.mxu0  ;;  %v811_v15 = vpop.f32.mrf.mxu1 }
 0x138   :  { %936 = vst.msk [vmem:[%s1686_s3 + $0x10] sm:$0xf] %vm931_vm1, %v1100_v44  ;;  %v870_v53 = vmax.f32 %v857_v45, 0.0  ;;  %v845_v56 = vmax.f32 %v627_v14, %v810_v48  ;;  %v470_v45 = vmax.f32 %v264_v29, %v447_v26 }
 0x139   :  { %v629_v57 = vpop.f32.mrf.mxu0  ;;  %v812_v59 = vpop.f32.mrf.mxu1 }
 0x13a   :  { %v1101_v60 = vpack.c.bf16 %v870_v53, %v870_v53  ;;  %v858_v61 = vmax.f32 %v466_v52, %v845_v56  ;;  %v630_v18 = vadd.f32 %v1556_v58, %v629_v57  ;;  %v813_v34 = vadd.f32 %v1556_v58, %v812_v59 }
 0x13b   :  { %v631_v35 = vpop.f32.mrf.mxu0  ;;  %v814_v19 = vpop.f32.mrf.mxu1  ;;  %v471_v53 = vmax.f32 %v267_v46, %v450_v47  ;;  %v272_v57 = vadd.f32 %v1556_v58, %v1549_v54  ;;  %v455_v59 = vadd.f32 %v1556_v58, %v1551_v55 }
 0x13c   :  { %937 = vst.msk [vmem:[%s1686_s3 + $0x14] sm:$0xf] %vm931_vm1, %v1101_v60  ;;  %v871_v1 = vmax.f32 %v858_v61, 0.0  ;;  %v846_v2 = vmax.f32 %v630_v18, %v813_v34 }
 0x13d   :  { %v634_v3 = vpop.f32.mrf.mxu0  ;;  %v817_v4 = vpop.f32.mrf.mxu1 }
 0x13e   :  { %v1102_v5 = vpack.c.bf16 %v871_v1, %v871_v1  ;;  %v859_v8 = vmax.f32 %v467_v62, %v846_v2  ;;  %v635_v9 = vadd.f32 %v1556_v58, %v634_v3  ;;  %v818_v12 = vadd.f32 %v1556_v58, %v817_v4 }
 0x13f   :  { %v636_v13 = vpop.f32.mrf.mxu0  ;;  %v819_v22 = vpop.f32.mrf.mxu1  ;;  %v472_v1 = vmax.f32 %v272_v57, %v455_v59 }
 0x140   :  { %938 = vst.msk [vmem:[%s1686_s3 + $0x18] sm:$0xf] %vm931_vm1, %v1102_v5  ;;  %v872_v16 = vmax.f32 %v859_v8, 0.0  ;;  %v847_v17 = vmax.f32 %v635_v9, %v818_v12 }
 0x141   :  { %v637_v20 = vpop.f32.mrf.mxu0  ;;  %v820_v21 = vpop.f32.mrf.mxu1 }
 0x142   :  { %v1103_v6 = vpack.c.bf16 %v872_v16, %v872_v16  ;;  %v860_v7 = vmax.f32 %v468_v23, %v847_v17  ;;  %v638_v24 = vadd.f32 %v1556_v58, %v637_v20  ;;  %v821_v42 = vadd.f32 %v1556_v58, %v820_v21 }
 0x143   :  { %v639_v43 = vpop.f32.mrf.mxu0  ;;  %v822_v28 = vpop.f32.mrf.mxu1 }
 0x144   :  { %939 = vst.msk [vmem:[%s1686_s3 + $0x1c] sm:$0xf] %vm931_vm1, %v1103_v6  ;;  %v873_v10 = vmax.f32 %v860_v7, 0.0  ;;  %v848_v27 = vmax.f32 %v638_v24, %v821_v42 }
 0x145   :  { %v642_v11 = vpop.f32.mrf.mxu0  ;;  %v825_v32 = vpop.f32.mrf.mxu1 }
 0x146   :  { %v1104_v33 = vpack.c.bf16 %v873_v10, %v873_v10  ;;  %v861_v36 = vmax.f32 %v469_v25, %v848_v27  ;;  %v643_v37 = vadd.f32 %v1556_v58, %v642_v11  ;;  %v826_v40 = vadd.f32 %v1556_v58, %v825_v32 }
 0x147   :  { %v644_v41 = vpop.f32.mrf.mxu0  ;;  %v827_v44 = vpop.f32.mrf.mxu1 }
 0x148   :  { %940 = vst.msk [vmem:[%s1686_s3 + $0x20] sm:$0xf] %vm931_vm1, %v1104_v33  ;;  %v874_v14 = vmax.f32 %v861_v36, 0.0  ;;  %v849_v48 = vmax.f32 %v643_v37, %v826_v40 }
 0x149   :  { %v645_v30 = vpop.f32.mrf.mxu0  ;;  %v828_v31 = vpop.f32.mrf.mxu1 }
 0x14a   :  { %v1105_v49 = vpack.c.bf16 %v874_v14, %v874_v14  ;;  %v862_v15 = vmax.f32 %v470_v45, %v849_v48  ;;  %v646_v52 = vadd.f32 %v1556_v58, %v645_v30  ;;  %v829_v50 = vadd.f32 %v1556_v58, %v828_v31 }
 0x14b   :  { %v647_v51 = vpop.f32.mrf.mxu0  ;;  %v830_v56 = vpop.f32.mrf.mxu1 }
 0x14c   :  { %941 = vst.msk [vmem:[%s1686_s3 + $0x24] sm:$0xf] %vm931_vm1, %v1105_v49  ;;  %v875_v60 = vmax.f32 %v862_v15, 0.0  ;;  %v850_v61 = vmax.f32 %v646_v52, %v829_v50 }
 0x14d   :  { %v650_v18 = vpop.f32.mrf.mxu0  ;;  %v833_v34 = vpop.f32.mrf.mxu1 }
 0x14e   :  { %v1106_v62 = vpack.c.bf16 %v875_v60, %v875_v60  ;;  %v863_v35 = vmax.f32 %v471_v53, %v850_v61  ;;  %v651_v19 = vadd.f32 %v1556_v58, %v650_v18  ;;  %v834_v63 = vadd.f32 %v1556_v58, %v833_v34 }
 0x14f   :  { %v652_v0 = vpop.f32.mrf.mxu0  ;;  %v835_v54 = vpop.f32.mrf.mxu1 }
 0x150   :  { %942 = vst.msk [vmem:[%s1686_s3 + $0x28] sm:$0xf] %vm931_vm1, %v1106_v62  ;;  %v876_v55 = vmax.f32 %v863_v35, 0.0  ;;  %v851_v2 = vmax.f32 %v651_v19, %v834_v63 }
 0x151   :  { %v653_v3 = vpop.f32.mrf.mxu0  ;;  %v836_v4 = vpop.f32.mrf.mxu1 }
 0x152   :  { %v1107_v5 = vpack.c.bf16 %v876_v55, %v876_v55  ;;  %v864_v8 = vmax.f32 %v472_v1, %v851_v2 }
 0x153   :  { %v654_v9 = vpop.f32.mrf.mxu0  ;;  %v837_v12 = vpop.f32.mrf.mxu1 }
 0x154   :  { %943 = vst.msk [vmem:[%s1686_s3 + $0x2c] sm:$0xf] %vm931_vm1, %v1107_v5  ;;  %v877_v58 = vmax.f32 %v864_v8, 0.0 }
 0x156   :  { %v1108_v38 = vpack.c.bf16 %v877_v58, %v877_v58 }
 0x158   :  { %945 = vst.msk [vmem:[%s1686_s3 + $0x30] sm:$0x1] %vm944_vm2, %v1108_v38 }

// kernel: relu_net_wide_forward.5
= control target key start
LH: loop header
LB: loop body
LE: loop exit
PB: predicated region body
PF: predicated region fallthrough
CT: control target
= control target key end

     0   :  { %v13258_v1 = vmov 0   ;;  %v10399_v3 = vmov 0.0   ;;  %vm10400_vm0 = vmmov 0   ;;  %vm653_vm1 = vcmask 261120   ;;  %s13248_s0 = inlined_call_operand.vmem [shape: bf16[392,288], index: 0, kind: input, shape index: {}]   ;;  %s13249_s1 = inlined_call_operand.vmem [shape: bf16[288,32], index: 1, kind: input, shape index: {}]   ;;  %s13250_s2 = inlined_call_operand.vmem [shape: f32[1,32], index: 2, kind: input, shape index: {}]   ;;  %s13251_s3 = inlined_call_operand.vmem [shape: bf16[49,32,512], index: 3, kind: input, shape index: {}]   ;;  %s13252_s4 = inlined_call_operand.vmem [shape: f32[1,512], index: 4, kind: input, shape index: {}]   ;;  %s13253_s5 = inlined_call_operand.vmem [shape: bf16[512,256], index: 5, kind: input, shape index: {}]   ;;  %s13254_s6 = inlined_call_operand.vmem [shape: f32[1,256], index: 6, kind: input, shape index: {}]   ;;  %s13255_s7 = inlined_call_operand.vmem [shape: bf16[256,10], index: 7, kind: input, shape index: {}]   ;;  %s13256_s8 = inlined_call_operand.vmem [shape: f32[1,10], index: 8, kind: input, shape index: {}]   ;;  %s13257_s9 = inlined_call_operand.hbm [shape: f32[2,10], index: 9, kind: output, shape index: {}]  }
   0x1   :  { %v9558_v0 = vld [vmem:[%s13249_s1 + $0x38] sm:$0xff]   ;;  %729 = vmatprep.subr.bf16.mxu0 %v13258_v1  ;;  %v9559_v2 = vld [vmem:[%s13249_s1 + $0x30] sm:$0xff]   ;;  %9550 = vmatprep.subr.bf16.mxu1 %v10399_v3  ;;  %v9560_v4 = vld [vmem:[%s13249_s1 + $0x28] sm:$0xff]  }
   0x2   :  { %730 = vmatpush1.bf16.msra.mxu0 %v9558_v0  ;;  %9454 = vmatprep.mubr.msk.bf16.mxu1 %vm10400_vm0, %v10399_v3  ;;  %v9561_v5 = vld [vmem:[%s13249_s1 + $0x20] sm:$0xff]   ;;  %v9562_v6 = vld [vmem:[%s13249_s1 + $0x18] sm:$0xff]   ;;  %v9563_v7 = vld [vmem:[%s13249_s1 + $0x10] sm:$0xff]  }
   0x3   :  { %731 = vmatprep.subr.bf16.mxu0 %v13258_v1  ;;  %v9576_v8 = vld [vmem:[%s13248_s0 + $0x4] ss:$12 sps:$4 sm:$0xff]   ;;  %v9577_v9 = vld [vmem:[%s13249_s1 + $0x88] sm:$0xff]   ;;  %v9566_v14 = vld [vmem:[%s13249_s1 + $0x78] sm:$0xff]  }
   0x4   :  { %761 = vmatprep.mubr.bf16.mxu0 %v9576_v8  ;;  %9552 = vmatpush3.bf16.msra.mxu1 %v9577_v9  ;;  %v9580_v10 = vld [vmem:[%s13249_s1 + $0x80] sm:$0xff]   ;;  %v9564_v11 = vld [vmem:[%s13249_s1 + $0x8] sm:$0xff]   ;;  %v9567_v16 = vld [vmem:[%s13249_s1 + $0x70] sm:$0xff]  }
   0x5   :  { %9551 = vmatprep.subr.bf16.mxu1 %v10399_v3  ;;  %v9582_v12 = vld [vmem:[%s13248_s0 + $0x20] ss:$12 sps:$4 sm:$0xff]   ;;  %v9586_v15 = vld [vmem:[%s13248_s0 + $0x38] ss:$12 sps:$4 sm:$0xff]   ;;  %v9590_v18 = vld [vmem:[%s13248_s0 + $0x50] ss:$12 sps:$4 sm:$0xff]  }
   0x6   :  { %732 = vmatpush1.bf16.msra.mxu0 %v9559_v2  ;;  %v9565_v13 = vld [vmem:[%s13249_s1] sm:$0xff]   ;;  %v9568_v17 = vld [vmem:[%s13249_s1 + $0x68] sm:$0xff]   ;;  %v9570_v20 = vld [vmem:[%s13249_s1 + $0x58] sm:$0xff]  }
   0x7   :  { %733 = vmatprep.subr.bf16.mxu0 %v13258_v1  ;;  %v9569_v19 = vld [vmem:[%s13249_s1 + $0x60] sm:$0xff]   ;;  %v9594_v21 = vld [vmem:[%s13248_s0 + $0x68] ss:$12 sps:$4 sm:$0xff]   ;;  %v9606_v31 = vld [vmem:[%s13248_s0 + $0xb0] ss:$12 sps:$4 sm:$0xff]  }
   0x8   :  { %9553 = vmatpush3.bf16.msra.mxu1 %v9580_v10  ;;  %v9571_v22 = vld [vmem:[%s13249_s1 + $0x50] sm:$0xff]   ;;  %v9572_v23 = vld [vmem:[%s13249_s1 + $0x48] sm:$0xff]   ;;  %v9573_v25 = vld [vmem:[%s13249_s1 + $0x40] sm:$0xff]  }
   0x9   :  { %v9598_v24 = vld [vmem:[%s13248_s0 + $0x80] ss:$12 sps:$4 sm:$0xff]   ;;  %v9578_v27 = vld [vmem:[%s13248_s0 + $0x1c] ss:$12 sps:$4 sm:$0xff]   ;;  %v9602_v28 = vld [vmem:[%s13248_s0 + $0x98] ss:$12 sps:$4 sm:$0xff]  }
   0xa   :  { %734 = vmatpush1.bf16.msra.mxu0 %v9560_v4  ;;  %v9574_v26 = vld [vmem:[%s13248_s0] ss:$12 sps:$4 sm:$0xff]   ;;  %v9581_v29 = vld [vmem:[%s13248_s0 + $0x18] ss:$12 sps:$4 sm:$0xff]   ;;  %v9585_v32 = vld [vmem:[%s13248_s0 + $0x30] ss:$12 sps:$4 sm:$0xff]  }
   0xb   :  { %735 = vmatprep.subr.bf16.mxu0 %v13258_v1  ;;  %9455 = vmatmul.mubr.msk.bf16.vlgmr.msra.gmra.mxu1 %vm653_vm1, %v9582_v12  ;;  %v9583_v30 = vld [vmem:[%s13248_s0 + $0x34] ss:$12 sps:$4 sm:$0xff]   ;;  %v9587_v33 = vld [vmem:[%s13248_s0 + $0x4c] ss:$12 sps:$4 sm:$0xff]   ;;  %v9591_v36 = vld [vmem:[%s13248_s0 + $0x64] ss:$12 sps:$4 sm:$0xff]  }
   0xc   :  { %9458 = vmatprep.mubr.msk.bf16.mxu1 %vm10400_vm0, %v10399_v3  ;;  %v9610_v34 = vld [vmem:[%s13248_s0 + $0xc8] ss:$12 sps:$4 sm:$0xff]   ;;  %v9614_v37 = vld [vmem:[%s13248_s0 + $0xe0] ss:$12 sps:$4 sm:$0xff]   ;;  %v9618_v40 = vld [vmem:[%s13248_s0 + $0xf8] ss:$12 sps:$4 sm:$0xff]  }
   0xd   :  { %v9589_v35 = vld [vmem:[%s13248_s0 + $0x48] ss:$12 sps:$4 sm:$0xff]   ;;  %v9593_v38 = vld [vmem:[%s13248_s0 + $0x60] ss:$12 sps:$4 sm:$0xff]   ;;  %v9597_v41 = vld [vmem:[%s13248_s0 + $0x78] ss:$12 sps:$4 sm:$0xff]  }
   0xe   :  { %736 = vmatpush1.bf16.msra.mxu0 %v9561_v5  ;;  %v9595_v39 = vld [vmem:[%s13248_s0 + $0x7c] ss:$12 sps:$4 sm:$0xff]   ;;  %v9599_v42 = vld [vmem:[%s13248_s0 + $0x94] ss:$12 sps:$4 sm:$0xff]   ;;  %v9603_v45 = vld [vmem:[%s13248_s0 + $0xac] ss:$12 sps:$4 sm:$0xff]  }
   0xf   :  { %737 = vmatprep.subr.bf16.mxu0 %v13258_v1  ;;  %v9622_v43 = vld [vmem:[%s13248_s0 + $0x110] ss:$12 sps:$4 sm:$0xff]   ;;  %v9626_v46 = vld [vmem:[%s13248_s0 + $0x128] ss:$12 sps:$4 sm:$0xff]   ;;  %v9630_v49 = vld [vmem:[%s13248_s0 + $0x140] ss:$12 sps:$4 sm:$0xff]  }
  0x10   :  { %v9601_v44 = vld [vmem:[%s13248_s0 + $0x90] ss:$12 sps:$4 sm:$0xff]   ;;  %v9605_v47 = vld [vmem:[%s13248_s0 + $0xa8] ss:$12 sps:$4 sm:$0xff]   ;;  %v9609_v50 = vld [vmem:[%s13248_s0 + $0xc0] ss:$12 sps:$4 sm:$0xff]  }
  0x11   :  { %v9607_v48 = vld [vmem:[%s13248_s0 + $0xc4] ss:$12 sps:$4 sm:$0xff]   ;;  %v9611_v51 = vld [vmem:[%s13248_s0 + $0xdc] ss:$12 sps:$4 sm:$0xff]   ;;  %v9615_v54 = vld [vmem:[%s13248_s0 + $0xf4] ss:$12 sps:$4 sm:$0xff]  }
  0x12   :  { %738 = vmatpush1.bf16.msra.mxu0 %v9562_v6  ;;  %v9634_v52 = vld [vmem:[%s13248_s0 + $0x158] ss:$12 sps:$4 sm:$0xff]   ;;  %v9638_v55 = vld [vmem:[%s13248_s0 + $0x170] ss:$12 sps:$4 sm:$0xff]   ;;  %v9642_v59 = vld [vmem:[%s13248_s0 + $0x188] ss:$12 sps:$4 sm:$0xff]  }
  0x13   :  { %739 = vmatprep.subr.bf16.mxu0 %v13258_v1  ;;  %9459 = vmatmul.mubr.msk.bf16.gmra.mxu1 %vm653_vm1, %v9586_v15  ;;  %v9613_v53 = vld [vmem:[%s13248_s0 + $0xd8] ss:$12 sps:$4 sm:$0xff]   ;;  %v9617_v56 = vld [vmem:[%s13248_s0 + $0xf0] ss:$12 sps:$4 sm:$0xff]   ;;  %v9621_v60 = vld [vmem:[%s13248_s0 + $0x108] ss:$12 sps:$4 sm:$0xff]  }
  0x14   :  { %9462 = vmatprep.mubr.msk.bf16.mxu1 %vm10400_vm0, %v10399_v3  ;;  %v9619_v57 = vld [vmem:[%s13248_s0 + $0x10c] ss:$12 sps:$4 sm:$0xff]   ;;  %v9623_v61 = vld [vmem:[%s13248_s0 + $0x124] ss:$12 sps:$4 sm:$0xff]   ;;  %v9627_v4 = vld [vmem:[%s13248_s0 + $0x13c] ss:$12 sps:$4 sm:$0xff]  }
  0x15   :  { %v9677_v58 = vld [vmem:[%s13251_s3 + $0xec] ss:$16 sps:$4 sm:$0xff]   ;;  %v9678_v62 = vld [vmem:[%s13251_s3 + $0x20] ss:$16 sps:$4 sm:$0xff]   ;;  %v9680_v63 = vld [vmem:[%s13251_s3 + $0x24] ss:$16 sps:$4 sm:$0xff]  }
  0x16   :  { %740 = vmatpush1.bf16.msra.mxu0 %v9563_v7  ;;  %v9646_v0 = vld [vmem:[%s13248_s0 + $0x1a0] ss:$12 sps:$4 sm:$0xff]   ;;  %1738 = vmatprep.subr.bf16.mxu1 %v9680_v63  ;;  %v9650_v5 = vld [vmem:[%s13248_s0 + $0x1b8] ss:$12 sps:$4 sm:$0xff]   ;;  %v9654_v8 = vld [vmem:[%s13248_s0 + $0x1d0] ss:$12 sps:$4 sm:$0xff]  }
  0x17   :  { %741 = vmatprep.subr.bf16.mxu0 %v13258_v1  ;;  %1739 = vmatpush1.bf16.msra.mxu1 %v9678_v62  ;;  %v9625_v2 = vld [vmem:[%s13248_s0 + $0x120] ss:$12 sps:$4 sm:$0xff]   ;;  %v9629_v6 = vld [vmem:[%s13248_s0 + $0x138] ss:$12 sps:$4 sm:$0xff]   ;;  %v9637_v12 = vld [vmem:[%s13248_s0 + $0x168] ss:$12 sps:$4 sm:$0xff]  }
  0x18   :  { %v9631_v7 = vld [vmem:[%s13248_s0 + $0x154] ss:$12 sps:$4 sm:$0xff]  }
  0x19   :  { %v9641_v15 = vld [vmem:[%s13248_s0 + $0x180] ss:$12 sps:$4 sm:$0xff]  }
  0x1a   :  { %742 = vmatpush1.bf16.msra.mxu0 %v9564_v11  ;;  %v9658_v11 = vld [vmem:[%s13248_s0 + $0x1e8] ss:$12 sps:$4 sm:$0xff]  }
  0x1b   :  { %743 = vmatprep.subr.bf16.mxu0 %v13258_v1  ;;  %9463 = vmatmul.mubr.msk.bf16.gmra.mxu1 %vm653_vm1, %v9590_v18  ;;  %v9645_v18 = vld [vmem:[%s13248_s0 + $0x198] ss:$12 sps:$4 sm:$0xff]  }
  0x1c   :  { %9466 = vmatprep.mubr.msk.bf16.mxu1 %vm10400_vm0, %v10399_v3 }
  0x1e   :  { %744 = vmatpush1.bf16.msra.mxu0 %v9565_v13  ;;  %v9639_v13 = vld [vmem:[%s13248_s0 + $0x184] ss:$12 sps:$4 sm:$0xff]  }
  0x1f   :  { %745 = vmatprep.subr.bf16.mxu0 %v13258_v1 }
  0x22   :  { %746 = vmatpush2.bf16.msra.mxu0 %v9566_v14  ;;  %v9662_v14 = vld [vmem:[%s13248_s0 + $0x200] ss:$12 sps:$4 sm:$0xff]  }
  0x23   :  { %747 = vmatprep.subr.bf16.mxu0 %v13258_v1  ;;  %9467 = vmatmul.mubr.msk.bf16.gmra.mxu1 %vm653_vm1, %v9594_v21  ;;  %v9649_v21 = vld [vmem:[%s13248_s0 + $0x1b0] ss:$12 sps:$4 sm:$0xff]  }
  0x24   :  { %9470 = vmatprep.mubr.msk.bf16.mxu1 %vm10400_vm0, %v10399_v3 }
  0x26   :  { %748 = vmatpush2.bf16.msra.mxu0 %v9567_v16  ;;  %v9643_v16 = vld [vmem:[%s13248_s0 + $0x19c] ss:$12 sps:$4 sm:$0xff]  }
  0x27   :  { %749 = vmatprep.subr.bf16.mxu0 %v13258_v1 }
  0x2a   :  { %750 = vmatpush2.bf16.msra.mxu0 %v9568_v17  ;;  %v9666_v17 = vld [vmem:[%s13248_s0 + $0x218] ss:$12 sps:$4 sm:$0xff]  }
  0x2b   :  { %751 = vmatprep.subr.bf16.mxu0 %v13258_v1  ;;  %9471 = vmatmul.mubr.msk.bf16.gmra.mxu1 %vm653_vm1, %v9598_v24  ;;  %v9653_v24 = vld [vmem:[%s13248_s0 + $0x1c8] ss:$12 sps:$4 sm:$0xff]  }
  0x2c   :  { %9474 = vmatprep.mubr.msk.bf16.mxu1 %vm10400_vm0, %v10399_v3 }
  0x2e   :  { %752 = vmatpush2.bf16.msra.mxu0 %v9569_v19  ;;  %v9647_v19 = vld [vmem:[%s13248_s0 + $0x1b4] ss:$12 sps:$4 sm:$0xff]  }
  0x2f   :  { %753 = vmatprep.subr.bf16.mxu0 %v13258_v1 }
  0x32   :  { %754 = vmatpush2.bf16.msra.mxu0 %v9570_v20  ;;  %v9670_v20 = vld [vmem:[%s13248_s0 + $0x230] ss:$12 sps:$4 sm:$0xff]  }
  0x33   :  { %755 = vmatprep.subr.bf16.mxu0 %v13258_v1  ;;  %9475 = vmatmul.mubr.msk.bf16.gmra.mxu1 %vm653_vm1, %v9602_v28  ;;  %v9659_v28 = vld [vmem:[%s13248_s0 + $0x1fc] ss:$12 sps:$4 sm:$0xff]  }
  0x34   :  { %9478 = vmatprep.mubr.msk.bf16.mxu1 %vm10400_vm0, %v10399_v3 }
  0x36   :  { %756 = vmatpush2.bf16.msra.mxu0 %v9571_v22  ;;  %v9651_v22 = vld [vmem:[%s13248_s0 + $0x1cc] ss:$12 sps:$4 sm:$0xff]  }
  0x37   :  { %757 = vmatprep.subr.bf16.mxu0 %v13258_v1 }
  0x3a   :  { %758 = vmatpush2.bf16.msra.mxu0 %v9572_v23  ;;  %v9673_v23 = vld [vmem:[%s13248_s0 + $0x248] ss:$0 sps:$4 sm:$0xff]  }
  0x3b   :  { %759 = vmatprep.subr.bf16.mxu0 %v13258_v1  ;;  %9479 = vmatmul.mubr.msk.bf16.gmra.mxu1 %vm653_vm1, %v9606_v31 }
  0x3c   :  { %9482 = vmatprep.mubr.msk.bf16.mxu1 %vm10400_vm0, %v10399_v3 }
  0x3e   :  { %760 = vmatpush2.bf16.msra.mxu0 %v9573_v25  ;;  %v9655_v25 = vld [vmem:[%s13248_s0 + $0x1e4] ss:$12 sps:$4 sm:$0xff]  }
  0x3f   :  { %9446 = vmatprep.subr.bf16.mxu0 %v10399_v3 }
  0x41   :  { %762 = vmatmul.mubr.bf16.vlgmr.msra.gmra.mxu0 %v9574_v26 }
  0x42   :  { %9447 = vmatpush3.bf16.msra.mxu0 %v9577_v9  ;;  %769 = vmatprep.mubr.bf16.mxu0 %v9578_v27  ;;  %v9633_v9 = vld [vmem:[%s13248_s0 + $0x150] ss:$12 sps:$4 sm:$0xff]   ;;  %v9657_v27 = vld [vmem:[%s13248_s0 + $0x1e0] ss:$12 sps:$4 sm:$0xff]  }
  0x43   :  { %9448 = vmatprep.subr.bf16.mxu0 %v10399_v3  ;;  %9483 = vmatmul.mubr.msk.bf16.gmra.mxu1 %vm653_vm1, %v9610_v34  ;;  %v9663_v34 = vld [vmem:[%s13248_s0 + $0x214] ss:$12 sps:$4 sm:$0xff]  }
  0x44   :  { %9486 = vmatprep.mubr.msk.bf16.mxu1 %vm10400_vm0, %v10399_v3 }
  0x46   :  { %9449 = vmatpush3.bf16.msra.mxu0 %v9580_v10  ;;  %v9635_v10 = vld [vmem:[%s13248_s0 + $0x16c] ss:$12 sps:$4 sm:$0xff]  }
  0x47   :  { %2154 = vmatprep.subr.bf16.mxu0 %v9677_v58 }
  0x49   :  { %770 = vmatmul.mubr.bf16.gmra.mxu0 %v9581_v29 }
  0x4a   :  { %777 = vmatprep.mubr.bf16.mxu0 %v9583_v30 }
  0x4b   :  { %9487 = vmatmul.mubr.msk.bf16.gmra.mxu1 %vm653_vm1, %v9614_v37 }
  0x4c   :  { %9490 = vmatprep.mubr.msk.bf16.mxu1 %vm10400_vm0, %v10399_v3 }
  0x51   :  { %778 = vmatmul.mubr.bf16.gmra.mxu0 %v9585_v32 }
  0x52   :  { %785 = vmatprep.mubr.bf16.mxu0 %v9587_v33  ;;  %v9661_v33 = vld [vmem:[%s13248_s0 + $0x1f8] ss:$12 sps:$4 sm:$0xff]  }
  0x53   :  { %9491 = vmatmul.mubr.msk.bf16.gmra.mxu1 %vm653_vm1, %v9618_v40  ;;  %v9667_v40 = vld [vmem:[%s13248_s0 + $0x22c] ss:$12 sps:$4 sm:$0xff]  }
  0x54   :  { %9494 = vmatprep.mubr.msk.bf16.mxu1 %vm10400_vm0, %v10399_v3 }
  0x59   :  { %786 = vmatmul.mubr.bf16.gmra.mxu0 %v9589_v35 }
  0x5a   :  { %793 = vmatprep.mubr.bf16.mxu0 %v9591_v36 }
  0x5b   :  { %9495 = vmatmul.mubr.msk.bf16.gmra.mxu1 %vm653_vm1, %v9622_v43  ;;  %v130_v43 = vld [vmem:[%s13248_s0 + $0x240] sm:$0xff] }
  0x5c   :  { %9498 = vmatprep.mubr.msk.bf16.mxu1 %vm10400_vm0, %v10399_v3 }
  0x61   :  { %794 = vmatmul.mubr.bf16.gmra.mxu0 %v9593_v38 }
  0x62   :  { %801 = vmatprep.mubr.bf16.mxu0 %v9595_v39  ;;  %v9665_v39 = vld [vmem:[%s13248_s0 + $0x210] ss:$12 sps:$4 sm:$0xff]  }
  0x63   :  { %9499 = vmatmul.mubr.msk.bf16.gmra.mxu1 %vm653_vm1, %v9626_v46  ;;  %v9753_v46 = vld [vmem:[%s13251_s3] ss:$16 sps:$4 sm:$0xff]  }
  0x64   :  { %9502 = vmatprep.mubr.msk.bf16.mxu1 %vm10400_vm0, %v10399_v3 }
  0x69   :  { %802 = vmatmul.mubr.bf16.gmra.mxu0 %v9597_v41 }
  0x6a   :  { %809 = vmatprep.mubr.bf16.mxu0 %v9599_v42 }
  0x6b   :  { %9503 = vmatmul.mubr.msk.bf16.gmra.mxu1 %vm653_vm1, %v9630_v49 }
  0x6c   :  { %9506 = vmatprep.mubr.msk.bf16.mxu1 %vm10400_vm0, %v10399_v3 }
  0x71   :  { %810 = vmatmul.mubr.bf16.gmra.mxu0 %v9601_v44 }
  0x72   :  { %817 = vmatprep.mubr.bf16.mxu0 %v9603_v45 }
  0x73   :  { %9507 = vmatmul.mubr.msk.bf16.gmra.mxu1 %vm653_vm1, %v9634_v52 }
  0x74   :  { %9510 = vmatprep.mubr.msk.bf16.mxu1 %vm10400_vm0, %v10399_v3 }
  0x79   :  { %818 = vmatmul.mubr.bf16.gmra.mxu0 %v9605_v47  ;;  %v9755_v47 = vld [vmem:[%s13251_s3 + $0x4] ss:$16 sps:$4 sm:$0xff]  }
  0x7a   :  { %825 = vmatprep.mubr.bf16.mxu0 %v9607_v48  ;;  %v9669_v48 = vld [vmem:[%s13248_s0 + $0x228] ss:$12 sps:$4 sm:$0xff]   ;;  %1740 = vmatprep.subr.bf16.mxu1 %v9755_v47 }
  0x7b   :  { %9511 = vmatmul.mubr.msk.bf16.gmra.mxu1 %vm653_vm1, %v9638_v55 }
  0x7c   :  { %9514 = vmatprep.mubr.msk.bf16.mxu1 %vm10400_vm0, %v10399_v3  ;;  %1741 = vmatpush1.bf16.msra.mxu1 %v9753_v46 }
  0x81   :  { %826 = vmatmul.mubr.bf16.gmra.mxu0 %v9609_v50  ;;  %v8781_v50 = vcombine.high %v130_v43, %v130_v43 }
  0x82   :  { %833 = vmatprep.mubr.bf16.mxu0 %v9611_v51 }
  0x83   :  { %9515 = vmatmul.mubr.msk.bf16.gmra.mxu1 %vm653_vm1, %v9642_v59 }
  0x84   :  { %9518 = vmatprep.mubr.msk.bf16.mxu1 %vm10400_vm0, %v10399_v3 }
  0x89   :  { %834 = vmatmul.mubr.bf16.gmra.mxu0 %v9613_v53 }
  0x8a   :  { %841 = vmatprep.mubr.bf16.mxu0 %v9615_v54  ;;  %v8780_v54 = vcombine.low %v130_v43, %v130_v43 }
  0x8b   :  { %9519 = vmatmul.mubr.msk.bf16.gmra.mxu1 %vm653_vm1, %v9646_v0 }
  0x8c   :  { %9522 = vmatprep.mubr.msk.bf16.mxu1 %vm10400_vm0, %v10399_v3 }
  0x91   :  { %842 = vmatmul.mubr.bf16.gmra.mxu0 %v9617_v56 }
  0x92   :  { %849 = vmatprep.mubr.bf16.mxu0 %v9619_v57 }
  0x93   :  { %9523 = vmatmul.mubr.msk.bf16.gmra.mxu1 %vm653_vm1, %v9650_v5 }
  0x94   :  { %9526 = vmatprep.mubr.msk.bf16.mxu1 %vm10400_vm0, %v10399_v3 }
  0x99   :  { %850 = vmatmul.mubr.bf16.gmra.mxu0 %v9621_v60 }
  0x9a   :  { %857 = vmatprep.mubr.bf16.mxu0 %v9623_v61 }
  0x9b   :  { %9527 = vmatmul.mubr.msk.bf16.gmra.mxu1 %vm653_vm1, %v9654_v8 }
  0x9c   :  { %9530 = vmatprep.mubr.msk.bf16.mxu1 %vm10400_vm0, %v10399_v3 }
  0xa1   :  { %858 = vmatmul.mubr.bf16.gmra.mxu0 %v9625_v2 }
  0xa2   :  { %865 = vmatprep.mubr.bf16.mxu0 %v9627_v4 }
  0xa3   :  { %9531 = vmatmul.mubr.msk.bf16.gmra.mxu1 %vm653_vm1, %v9658_v11 }
  0xa4   :  { %9534 = vmatprep.mubr.msk.bf16.mxu1 %vm10400_vm0, %v10399_v3 }
  0xa9   :  { %866 = vmatmul.mubr.bf16.gmra.mxu0 %v9629_v6 }
  0xaa   :  { %873 = vmatprep.mubr.bf16.mxu0 %v9631_v7 }
  0xab   :  { %9535 = vmatmul.mubr.msk.bf16.gmra.mxu1 %vm653_vm1, %v9662_v14 }
  0xac   :  { %9538 = vmatprep.mubr.msk.bf16.mxu1 %vm10400_vm0, %v10399_v3 }
  0xb1   :  { %874 = vmatmul.mubr.bf16.gmra.mxu0 %v9633_v9 }
  0xb2   :  { %881 = vmatprep.mubr.bf16.mxu0 %v9635_v10 }
  0xb3   :  { %9539 = vmatmul.mubr.msk.bf16.gmra.mxu1 %vm653_vm1, %v9666_v17 }
  0xb4   :  { %9542 = vmatprep.mubr.msk.bf16.mxu1 %vm10400_vm0, %v10399_v3 }
  0xb9   :  { %882 = vmatmul.mubr.bf16.gmra.mxu0 %v9637_v12 }
  0xba   :  { %889 = vmatprep.mubr.bf16.mxu0 %v9639_v13 }
  0xbb   :  { %9543 = vmatmul.mubr.msk.bf16.gmra.mxu1 %vm653_vm1, %v9670_v20 }
  0xbc   :  { %9546 = vmatprep.mubr.msk.bf16.mxu1 %vm10400_vm0, %v10399_v3 }
  0xc1   :  { %890 = vmatmul.mubr.bf16.gmra.mxu0 %v9641_v15 }
  0xc2   :  { %897 = vmatprep.mubr.bf16.mxu0 %v9643_v16 }
  0xc3   :  { %9547 = vmatmul.mubr.msk.bf16.gmra.mxu1 %vm653_vm1, %v9673_v23 }
  0xc4   :  { %1758 = vmatprep.mubr.bf16.mxu1 %v13258_v1 }
  0xc9   :  { %898 = vmatmul.mubr.bf16.gmra.mxu0 %v9645_v18 }
  0xca   :  { %905 = vmatprep.mubr.bf16.mxu0 %v9647_v19 }
  0xcb   :  { %v10803_v26 = vpop.f32.mrf.mxu1 }
  0xcd   :  { %v9456_v29 = vpop.f32.mrf.mxu1 }
  0xcf   :  { %v10811_v30 = vpop.f32.mrf.mxu1 }
  0xd1   :  { %906 = vmatmul.mubr.bf16.gmra.mxu0 %v9649_v21  ;;  %v9457_v31 = vpop.f32.mrf.mxu1 }
  0xd2   :  { %913 = vmatprep.mubr.bf16.mxu0 %v9651_v22 }
  0xd3   :  { %v10813_v32 = vpop.f32.mrf.mxu1 }
  0xd5   :  { %v9460_v35 = vpop.f32.mrf.mxu1 }
  0xd7   :  { %v10821_v36 = vpop.f32.mrf.mxu1 }
  0xd9   :  { %914 = vmatmul.mubr.bf16.gmra.mxu0 %v9653_v24  ;;  %v9461_v37 = vpop.f32.mrf.mxu1 }
  0xda   :  { %921 = vmatprep.mubr.bf16.mxu0 %v9655_v25 }
  0xdb   :  { %v10823_v38 = vpop.f32.mrf.mxu1 }
  0xdd   :  { %v9464_v41 = vpop.f32.mrf.mxu1 }
  0xdf   :  { %v10831_v42 = vpop.f32.mrf.mxu1 }
  0xe1   :  { %922 = vmatmul.mubr.bf16.gmra.mxu0 %v9657_v27  ;;  %v9465_v44 = vpop.f32.mrf.mxu1 }
  0xe2   :  { %929 = vmatprep.mubr.bf16.mxu0 %v9659_v28 }
  0xe3   :  { %v10836_v45 = vpop.f32.mrf.mxu1 }
  0xe5   :  { %v9468_v49 = vpop.f32.mrf.mxu1 }
  0xe7   :  { %v10847_v51 = vpop.f32.mrf.mxu1 }
  0xe9   :  { %930 = vmatmul.mubr.bf16.gmra.mxu0 %v9661_v33  ;;  %v9469_v52 = vpop.f32.mrf.mxu1 }
  0xea   :  { %937 = vmatprep.mubr.bf16.mxu0 %v9663_v34 }
  0xeb   :  { %v10849_v53 = vpop.f32.mrf.mxu1 }
  0xed   :  { %v9472_v55 = vpop.f32.mrf.mxu1 }
  0xef   :  { %v10851_v56 = vpop.f32.mrf.mxu1 }
  0xf1   :  { %938 = vmatmul.mubr.bf16.gmra.mxu0 %v9665_v39  ;;  %v9473_v58 = vpop.f32.mrf.mxu1 }
  0xf2   :  { %945 = vmatprep.mubr.bf16.mxu0 %v9667_v40 }
  0xf3   :  { %v10857_v60 = vpop.f32.mrf.mxu1 }
  0xf9   :  { %946 = vmatmul.mubr.bf16.gmra.mxu0 %v9669_v48 }
  0xfa   :  { %953 = vmatprep.mubr.bf16.mxu0 %v8781_v50 }
 0x101   :  { %v10853_v57 = vpop.f32.mrf.mxu0  ;;  %954 = vmatmul.mubr.bf16.gmra.mxu0 %v8780_v54 }
 0x102   :  { %9450 = vmatprep.mubr.msk.bf16.mxu0 %vm10400_vm0, %v10399_v3 }
 0x103   :  { %v765_v59 = vpop.f32.mrf.mxu0 }
 0x104   :  { %14 = vsyncpa [#allocation3], 0  ;;  %v9674_v62 = vld [vmem:[%s13248_s0 + $0x8] ss:$12 sps:$4 sm:$0xff]   ;;  %v9476_v63 = vpop.f32.mrf.mxu1  ;;  %v9683_v3 = vld [vmem:[%s13251_s3 + $0xcc] ss:$16 sps:$4 sm:$0xff]  }
 0x105   :  { %v10859_v61 = vpop.f32.mrf.mxu0  ;;  %v9675_v0 = vld [vmem:[%s13251_s3 + $0xe8] ss:$16 sps:$4 sm:$0xff]   ;;  %v10875_v5 = vld [vmem:[%s13250_s2] ss:$0 sm:$0xff]  ;;  %v9686_v11 = vld [vmem:[%s13251_s3 + $0x12c] ss:$16 sps:$4 sm:$0xff]  }
 0x106   :  { %v10870_v4 = vpop.f32.mrf.mxu1  ;;  %v9681_v9 = vld [vmem:[%s13251_s3 + $0xc8] ss:$16 sps:$4 sm:$0xff]   ;;  %v9689_v29 = vld [vmem:[%s13251_s3 + $0x10c] ss:$16 sps:$4 sm:$0xff]   ;;  %vm8691_vm2 = vcmask 74752  }
 0x107   :  { %v768_v2 = vpop.f32.mrf.mxu0  ;;  %v9684_v25 = vld [vmem:[%s13251_s3 + $0x128] ss:$16 sps:$4 sm:$0xff]   ;;  %v9692_v39 = vld [vmem:[%s13251_s3 + $0x16c] ss:$16 sps:$4 sm:$0xff]  }
 0x108   :  { %v9477_v7 = vpop.f32.mrf.mxu1  ;;  %v9687_v34 = vld [vmem:[%s13251_s3 + $0x108] ss:$16 sps:$4 sm:$0xff]   ;;  %v9695_v49 = vld [vmem:[%s13251_s3 + $0x14c] ss:$16 sps:$4 sm:$0xff]  }
 0x109   :  { %v771_v6 = vpop.f32.mrf.mxu0  ;;  %9451 = vmatmul.mubr.msk.bf16.vlgmr.msra.gmra.mxu0 %vm653_vm1, %v9674_v62  ;;  %v9690_v44 = vld [vmem:[%s13251_s3 + $0x168] ss:$16 sps:$4 sm:$0xff]   ;;  %v9698_v62 = vld [vmem:[%s13251_s3 + $0x1ac] ss:$16 sps:$4 sm:$0xff]  }
 0x10a   :  { %v772_v8 = vadd.f32 %v10875_v5, %v771_v6  ;;  %2155 = vmatpush1.bf16.msra.mxu0 %v9675_v0  ;;  %2174 = vmatprep.mubr.bf16.mxu0 %v13258_v1  ;;  %v10886_v12 = vpop.f32.mrf.mxu1  ;;  %v9693_v55 = vld [vmem:[%s13251_s3 + $0x148] ss:$16 sps:$4 sm:$0xff]  }
 0x10b   :  { %v773_v10 = vpop.f32.mrf.mxu0  ;;  %2156 = vmatprep.subr.bf16.mxu0 %v9683_v3  ;;  %v9696_v3 = vld [vmem:[%s13251_s3 + $0x1a8] ss:$16 sps:$4 sm:$0xff]  }
 0x10c   :  { %v10889_v13 = vadd.f32 %v10803_v26, %v772_v8  ;;  %v9480_v15 = vpop.f32.mrf.mxu1 }
 0x10d   :  { %v774_v14 = vpop.f32.mrf.mxu0  ;;  %v9699_v15 = vld [vmem:[%s13251_s3 + $0x188] ss:$16 sps:$4 sm:$0xff]  }
 0x10e   :  { %v775_v16 = vadd.f32 %v10875_v5, %v774_v14  ;;  %2157 = vmatpush1.bf16.msra.mxu0 %v9681_v9  ;;  %v10892_v18 = vpop.f32.mrf.mxu1  ;;  %v9701_v9 = vld [vmem:[%s13251_s3 + $0x18c] ss:$16 sps:$4 sm:$0xff]  }
 0x10f   :  { %v776_v17 = vpop.f32.mrf.mxu0  ;;  %2279 = vmatprep.subr.bf16.mxu0 %v9686_v11 }
 0x110   :  { %v1007_v19 = vadd.f32 %v10811_v30, %v775_v16  ;;  %v9481_v21 = vpop.f32.mrf.mxu1 }
 0x111   :  { %v779_v20 = vpop.f32.mrf.mxu0 }
 0x112   :  { %v1196_v22 = vmax.f32 %v1007_v19, 0.0  ;;  %v780_v23 = vadd.f32 %v10875_v5, %v779_v20  ;;  %v10899_v26 = vpop.f32.mrf.mxu1  ;;  %v9704_v19 = vld [vmem:[%s13251_s3 + $0x1ec] ss:$16 sps:$4 sm:$0xff]  }
 0x113   :  { %v781_v24 = vpop.f32.mrf.mxu0 }
 0x114   :  { %v10901_v27 = vpack.c.bf16 %v1196_v22, %v1196_v22  ;;  %v1012_v28 = vadd.f32 %v10813_v32, %v780_v23  ;;  %v9484_v31 = vpop.f32.mrf.mxu1  ;;  %v9702_v23 = vld [vmem:[%s13251_s3 + $0x1e8] ss:$16 sps:$4 sm:$0xff]  }
 0x115   :  { %v782_v30 = vpop.f32.mrf.mxu0 }
 0x116   :  { %8865 = vmatmul.mubr.msk.bf16.vlgmr.msra.gmra.mxu0 %vm653_vm1, %v10901_v27  ;;  %v10913_v35 = vpop.f32.mrf.mxu1  ;;  %v1197_v32 = vmax.f32 %v1012_v28, 0.0  ;;  %v783_v37 = vadd.f32 %v10875_v5, %v782_v30 }
 0x117   :  { %v784_v33 = vpop.f32.mrf.mxu0  ;;  %2280 = vmatpush1.bf16.msra.mxu0 %v9684_v25  ;;  %2299 = vmatprep.mubr.bf16.mxu0 %v13258_v1 }
 0x118   :  { %2281 = vmatprep.subr.bf16.mxu0 %v9689_v29  ;;  %v9485_v41 = vpop.f32.mrf.mxu1  ;;  %v10924_v47 = vpack.c.bf16 %v1197_v32, %v1197_v32  ;;  %v1015_v48 = vadd.f32 %v10821_v36, %v783_v37  ;;  %v9707_v29 = vld [vmem:[%s13251_s3 + $0x1cc] ss:$16 sps:$4 sm:$0xff]  }
 0x119   :  { %v787_v40 = vpop.f32.mrf.mxu0 }
 0x11a   :  { %v10922_v46 = vpop.f32.mrf.mxu1  ;;  %v1198_v36 = vmax.f32 %v1015_v48, 0.0  ;;  %v788_v59 = vadd.f32 %v10875_v5, %v787_v40 }
 0x11b   :  { %v789_v43 = vpop.f32.mrf.mxu0  ;;  %2282 = vmatpush1.bf16.msra.mxu0 %v9687_v34  ;;  %v9705_v34 = vld [vmem:[%s13251_s3 + $0x1c8] ss:$16 sps:$4 sm:$0xff]  }
 0x11c   :  { %2404 = vmatprep.subr.bf16.mxu0 %v9692_v39  ;;  %v9488_v52 = vpop.f32.mrf.mxu1  ;;  %v10947_v7 = vpack.c.bf16 %v1198_v36, %v1198_v36  ;;  %v1020_v8 = vadd.f32 %v10823_v38, %v788_v59  ;;  %v9710_v39 = vld [vmem:[%s13251_s3 + $0x22c] ss:$16 sps:$4 sm:$0xff]   ;;  %v9711_v59 = vld [vmem:[%s13251_s3 + $0x208] ss:$16 sps:$4 sm:$0xff]  }
 0x11d   :  { %v790_v50 = vpop.f32.mrf.mxu0  ;;  %v9713_v52 = vld [vmem:[%s13251_s3 + $0x20c] ss:$16 sps:$4 sm:$0xff]  }
 0x11e   :  { %8875 = vmatmul.mubr.msk.bf16.vlgmr.msra.gmra.mxu0 %vm653_vm1, %v10924_v47  ;;  %v10936_v58 = vpop.f32.mrf.mxu1  ;;  %v1199_v38 = vmax.f32 %v1020_v8, 0.0  ;;  %v791_v17 = vadd.f32 %v10875_v5, %v790_v50 }
 0x11f   :  { %v792_v54 = vpop.f32.mrf.mxu0  ;;  %2405 = vmatpush1.bf16.msra.mxu0 %v9690_v44  ;;  %2424 = vmatprep.mubr.bf16.mxu0 %v13258_v1  ;;  %v9708_v44 = vld [vmem:[%s13251_s3 + $0x228] ss:$16 sps:$4 sm:$0xff]  }
 0x120   :  { %2406 = vmatprep.subr.bf16.mxu0 %v9695_v49  ;;  %v9489_v0 = vpop.f32.mrf.mxu1  ;;  %v10972_v25 = vpack.c.bf16 %v1199_v38, %v1199_v38  ;;  %v1023_v28 = vadd.f32 %v10831_v42, %v791_v17 }
 0x121   :  { %v795_v63 = vpop.f32.mrf.mxu0  ;;  %v9716_v0 = vld [vmem:[%s13251_s3 + $0x26c] ss:$16 sps:$4 sm:$0xff]  }
 0x122   :  { %v10945_v6 = vpop.f32.mrf.mxu1  ;;  %v1200_v32 = vmax.f32 %v1023_v28, 0.0  ;;  %v796_v37 = vadd.f32 %v10875_v5, %v795_v63  ;;  %v9722_v28 = vld [vmem:[%s13251_s3 + $0x2ac] ss:$16 sps:$4 sm:$0xff]  }
 0x123   :  { %v797_v2 = vpop.f32.mrf.mxu0  ;;  %2407 = vmatpush1.bf16.msra.mxu0 %v9693_v55 }
 0x124   :  { %2529 = vmatprep.subr.bf16.mxu0 %v9698_v62  ;;  %v9492_v11 = vpop.f32.mrf.mxu1  ;;  %v10999_v49 = vpack.c.bf16 %v1200_v32, %v1200_v32  ;;  %v1028_v50 = vadd.f32 %v10836_v45, %v796_v37 }
 0x125   :  { %v798_v10 = vpop.f32.mrf.mxu0 }
 0x126   :  { %8885 = vmatmul.mubr.msk.bf16.vlgmr.msra.gmra.mxu0 %vm653_vm1, %v10947_v7  ;;  %v10959_v16 = vpop.f32.mrf.mxu1  ;;  %v1201_v62 = vmax.f32 %v1028_v50, 0.0  ;;  %v799_v63 = vadd.f32 %v10875_v5, %v798_v10  ;;  %v9723_v50 = vld [vmem:[%s13251_s3 + $0x288] ss:$16 sps:$4 sm:$0xff]  }
 0x127   :  { %v800_v14 = vpop.f32.mrf.mxu0  ;;  %2530 = vmatpush1.bf16.msra.mxu0 %v9696_v3  ;;  %2549 = vmatprep.mubr.bf16.mxu0 %v13258_v1 }
 0x128   :  { %2531 = vmatprep.subr.bf16.mxu0 %v9701_v9  ;;  %v9493_v21 = vpop.f32.mrf.mxu1  ;;  %v9714_v9 = vld [vmem:[%s13251_s3 + $0x268] ss:$16 sps:$4 sm:$0xff]   ;;  %v11026_v14 = vpack.c.bf16 %v1201_v62, %v1201_v62  ;;  %v1031_v10 = vadd.f32 %v10847_v51, %v799_v63 }
 0x129   :  { %v10965_v20 = vpop.f32.mrf.mxu0  ;;  %v9717_v21 = vld [vmem:[%s13251_s3 + $0x248] ss:$16 sps:$4 sm:$0xff]  }
 0x12a   :  { %v10970_v24 = vpop.f32.mrf.mxu1 }
 0x12b   :  { %v805_v22 = vpop.f32.mrf.mxu0  ;;  %2532 = vmatpush1.bf16.msra.mxu0 %v9699_v15  ;;  %v9719_v15 = vld [vmem:[%s13251_s3 + $0x24c] ss:$16 sps:$4 sm:$0xff]  }
 0x12c   :  { %2654 = vmatprep.subr.bf16.mxu0 %v9704_v19  ;;  %v9496_v31 = vpop.f32.mrf.mxu1  ;;  %v1202_v22 = vmax.f32 %v1031_v10, 0.0 }
 0x12d   :  { %v10978_v30 = vpop.f32.mrf.mxu0 }
 0x12e   :  { %8895 = vmatmul.mubr.msk.bf16.vlgmr.msra.gmra.mxu0 %vm653_vm1, %v10972_v25  ;;  %v10986_v42 = vpop.f32.mrf.mxu1  ;;  %v11054_v37 = vpack.c.bf16 %v1202_v22, %v1202_v22 }
 0x12f   :  { %v808_v33 = vpop.f32.mrf.mxu0  ;;  %2655 = vmatpush1.bf16.msra.mxu0 %v9702_v23  ;;  %2674 = vmatprep.mubr.bf16.mxu0 %v13258_v1  ;;  %v804_v23 = vadd.f32 %v10875_v5, %v10965_v20 }
 0x130   :  { %2656 = vmatprep.subr.bf16.mxu0 %v9707_v29  ;;  %v9497_v41 = vpop.f32.mrf.mxu1 }
 0x131   :  { %v10992_v40 = vpop.f32.mrf.mxu0  ;;  %v1036_v20 = vadd.f32 %v10849_v53, %v804_v23 }
 0x132   :  { %v10997_v48 = vpop.f32.mrf.mxu1 }
 0x133   :  { %v813_v43 = vpop.f32.mrf.mxu0  ;;  %2657 = vmatpush1.bf16.msra.mxu0 %v9705_v34  ;;  %v9720_v34 = vld [vmem:[%s13251_s3 + $0x2a8] ss:$16 sps:$4 sm:$0xff]  }
 0x134   :  { %2779 = vmatprep.subr.bf16.mxu0 %v9710_v39  ;;  %v9500_v55 = vpop.f32.mrf.mxu1  ;;  %v9725_v39 = vld [vmem:[%s13251_s3 + $0x28c] ss:$16 sps:$4 sm:$0xff]  }
 0x135   :  { %v11005_v54 = vpop.f32.mrf.mxu0  ;;  %v807_v55 = vadd.f32 %v10875_v5, %v10978_v30 }
 0x136   :  { %8905 = vmatmul.mubr.msk.bf16.vlgmr.msra.gmra.mxu0 %vm653_vm1, %v10999_v49  ;;  %v11013_v45 = vpop.f32.mrf.mxu1 }
 0x137   :  { %v816_v36 = vpop.f32.mrf.mxu0  ;;  %2780 = vmatpush1.bf16.msra.mxu0 %v9708_v44  ;;  %2799 = vmatprep.mubr.bf16.mxu0 %v13258_v1  ;;  %v1039_v30 = vadd.f32 %v10851_v56, %v807_v55  ;;  %v9729_v56 = vld [vmem:[%s13251_s3 + $0x2c8] ss:$16 sps:$4 sm:$0xff]   ;;  %v9737_v55 = vld [vmem:[%s13251_s3 + $0x30c] ss:$16 sps:$4 sm:$0xff]  }
 0x138   :  { %2781 = vmatprep.subr.bf16.mxu0 %v9713_v52  ;;  %v9501_v3 = vpop.f32.mrf.mxu1  ;;  %v1203_v52 = vmax.f32 %v1036_v20, 0.0  ;;  %v9728_v36 = vld [vmem:[%s13251_s3 + $0x2ec] ss:$16 sps:$4 sm:$0xff]  }
 0x139   :  { %v11019_v2 = vpop.f32.mrf.mxu0  ;;  %v1204_v23 = vmax.f32 %v1039_v30, 0.0 }
 0x13a   :  { %v11024_v11 = vpop.f32.mrf.mxu1 }
 0x13b   :  { %v821_v8 = vpop.f32.mrf.mxu0  ;;  %2782 = vmatpush1.bf16.msra.mxu0 %v9711_v59 }
 0x13c   :  { %2904 = vmatprep.subr.bf16.mxu0 %v9716_v0  ;;  %v9504_v17 = vpop.f32.mrf.mxu1  ;;  %v9726_v0 = vld [vmem:[%s13251_s3 + $0x2e8] ss:$16 sps:$4 sm:$0xff]   ;;  %v11082_v8 = vpack.c.bf16 %v1203_v52, %v1203_v52 }
 0x13d   :  { %v11032_v38 = vpop.f32.mrf.mxu0 }
 0x13e   :  { %8915 = vmatmul.mubr.msk.bf16.vlgmr.msra.gmra.mxu0 %vm653_vm1, %v11026_v14  ;;  %v11040_v51 = vpop.f32.mrf.mxu1 }
 0x13f   :  { %v824_v19 = vpop.f32.mrf.mxu0  ;;  %2905 = vmatpush1.bf16.msra.mxu0 %v9714_v9  ;;  %2924 = vmatprep.mubr.bf16.mxu0 %v13258_v1  ;;  %v9731_v9 = vld [vmem:[%s13251_s3 + $0x2cc] ss:$16 sps:$4 sm:$0xff]  }
 0x140   :  { %2906 = vmatprep.subr.bf16.mxu0 %v9719_v15  ;;  %v9505_v31 = vpop.f32.mrf.mxu1  ;;  %v9830_v19 = vld [vmem:[%s13251_s3 + $0x2c] ss:$16 sps:$4 sm:$0xff]  }
 0x141   :  { %v11047_v29 = vpop.f32.mrf.mxu0  ;;  %1779 = vmatprep.subr.bf16.mxu1 %v9830_v19 }
 0x142   :  { %v11052_v32 = vpop.f32.mrf.mxu1 }
 0x143   :  { %v829_v33 = vpop.f32.mrf.mxu0  ;;  %2907 = vmatpush1.bf16.msra.mxu0 %v9717_v21 }
 0x144   :  { %3029 = vmatprep.subr.bf16.mxu0 %v9722_v28  ;;  %v9508_v43 = vpop.f32.mrf.mxu1  ;;  %v812_v28 = vadd.f32 %v10875_v5, %v10992_v40  ;;  %v9734_v33 = vld [vmem:[%s13251_s3 + $0x32c] ss:$16 sps:$4 sm:$0xff]  }
 0x145   :  { %v11060_v41 = vpop.f32.mrf.mxu0 }
 0x146   :  { %8925 = vmatmul.mubr.msk.bf16.vlgmr.msra.gmra.mxu0 %vm653_vm1, %v11054_v37  ;;  %v11068_v53 = vpop.f32.mrf.mxu1 }
 0x147   :  { %v832_v44 = vpop.f32.mrf.mxu0  ;;  %3030 = vmatpush1.bf16.msra.mxu0 %v9720_v34  ;;  %3049 = vmatprep.mubr.bf16.mxu0 %v13258_v1 }
 0x148   :  { %3031 = vmatprep.subr.bf16.mxu0 %v9725_v39  ;;  %v9509_v62 = vpop.f32.mrf.mxu1  ;;  %v9732_v44 = vld [vmem:[%s13251_s3 + $0x328] ss:$16 sps:$4 sm:$0xff]  }
 0x149   :  { %v11075_v59 = vpop.f32.mrf.mxu0 }
 0x14a   :  { %v11080_v3 = vpop.f32.mrf.mxu1 }
 0x14b   :  { %v837_v63 = vpop.f32.mrf.mxu0  ;;  %3032 = vmatpush1.bf16.msra.mxu0 %v9723_v50  ;;  %v1044_v50 = vadd.f32 %v10857_v60, %v812_v28  ;;  %v9735_v60 = vld [vmem:[%s13251_s3 + $0x308] ss:$16 sps:$4 sm:$0xff]  }
 0x14c   :  { %3154 = vmatprep.subr.bf16.mxu0 %v9728_v36  ;;  %v9512_v15 = vpop.f32.mrf.mxu1 }
 0x14d   :  { %v838_v10 = vpop.f32.mrf.mxu0  ;;  %v1205_v30 = vmax.f32 %v1044_v50, 0.0  ;;  %v9740_v15 = vld [vmem:[%s13251_s3 + $0x36c] ss:$16 sps:$4 sm:$0xff]  }
 0x14e   :  { %v839_v17 = vadd.f32 %v10875_v5, %v838_v10  ;;  %8935 = vmatmul.mubr.msk.bf16.vlgmr.msra.gmra.mxu0 %vm653_vm1, %v11082_v8  ;;  %v11098_v22 = vpop.f32.mrf.mxu1 }
 0x14f   :  { %v840_v21 = vpop.f32.mrf.mxu0  ;;  %3155 = vmatpush1.bf16.msra.mxu0 %v9726_v0  ;;  %3174 = vmatprep.mubr.bf16.mxu0 %v13258_v1 }
 0x150   :  { %v11103_v31 = vadd.f32 %v10936_v58, %v839_v17  ;;  %3156 = vmatprep.subr.bf16.mxu0 %v9731_v9  ;;  %v9513_v20 = vpop.f32.mrf.mxu1  ;;  %v11114_v58 = vpack.c.bf16 %v1204_v23, %v1204_v23  ;;  %v815_v9 = vadd.f32 %v10875_v5, %v11005_v54  ;;  %v9738_v23 = vld [vmem:[%s13251_s3 + $0x368] ss:$16 sps:$4 sm:$0xff]   ;;  %v11146_v54 = vpack.c.bf16 %v1205_v30, %v1205_v30 }
 0x151   :  { %v843_v34 = vpop.f32.mrf.mxu0 }
 0x152   :  { %v844_v39 = vadd.f32 %v10875_v5, %v843_v34  ;;  %v11112_v40 = vpop.f32.mrf.mxu1  ;;  %v9743_v34 = vld [vmem:[%s13251_s3 + $0x34c] ss:$16 sps:$4 sm:$0xff]  }
 0x153   :  { %v845_v43 = vpop.f32.mrf.mxu0  ;;  %3157 = vmatpush1.bf16.msra.mxu0 %v9729_v56 }
 0x154   :  { %v11118_v52 = vadd.f32 %v10945_v6, %v844_v39  ;;  %3279 = vmatprep.subr.bf16.mxu0 %v9734_v33  ;;  %v9516_v62 = vpop.f32.mrf.mxu1 }
 0x155   :  { %v846_v36 = vpop.f32.mrf.mxu0  ;;  %v9746_v62 = vld [vmem:[%s13251_s3 + $0x3ac] ss:$16 sps:$4 sm:$0xff]  }
 0x156   :  { %v847_v63 = vadd.f32 %v10875_v5, %v846_v36  ;;  %8945 = vmatmul.mubr.msk.bf16.vlgmr.msra.gmra.mxu0 %vm653_vm1, %v11114_v58  ;;  %v11130_v6 = vpop.f32.mrf.mxu1 }
 0x157   :  { %v848_v0 = vpop.f32.mrf.mxu0  ;;  %3280 = vmatpush1.bf16.msra.mxu0 %v9732_v44  ;;  %3299 = vmatprep.mubr.bf16.mxu0 %v13258_v1 }
 0x158   :  { %v11135_v10 = vadd.f32 %v10959_v16, %v847_v63  ;;  %3281 = vmatprep.subr.bf16.mxu0 %v9737_v55  ;;  %v9517_v19 = vpop.f32.mrf.mxu1  ;;  %v1047_v16 = vadd.f32 %v10870_v4, %v815_v9  ;;  %v9741_v4 = vld [vmem:[%s13251_s3 + $0x348] ss:$16 sps:$4 sm:$0xff]   ;;  %v820_v55 = vadd.f32 %v10875_v5, %v11019_v2 }
 0x159   :  { %v851_v17 = vpop.f32.mrf.mxu0  ;;  %v9744_v9 = vld [vmem:[%s13251_s3 + $0x3a8] ss:$16 sps:$4 sm:$0xff]   ;;  %v9749_v19 = vld [vmem:[%s13251_s3 + $0x38c] ss:$16 sps:$4 sm:$0xff]  }
 0x15a   :  { %v852_v21 = vadd.f32 %v10875_v5, %v851_v17  ;;  %v11144_v28 = vpop.f32.mrf.mxu1  ;;  %v1206_v50 = vmax.f32 %v1047_v16, 0.0 }
 0x15b   :  { %v853_v56 = vpop.f32.mrf.mxu0  ;;  %3282 = vmatpush1.bf16.msra.mxu0 %v9735_v60 }
 0x15c   :  { %v11150_v33 = vadd.f32 %v10970_v24, %v852_v21  ;;  %3404 = vmatprep.subr.bf16.mxu0 %v9740_v15  ;;  %v9520_v39 = vpop.f32.mrf.mxu1  ;;  %v11178_v2 = vpack.c.bf16 %v1206_v50, %v1206_v50 }
 0x15d   :  { %v854_v20 = vpop.f32.mrf.mxu0 }
 0x15e   :  { %v855_v43 = vadd.f32 %v10875_v5, %v854_v20  ;;  %8955 = vmatmul.mubr.msk.bf16.vlgmr.msra.gmra.mxu0 %vm653_vm1, %v11146_v54  ;;  %v11162_v24 = vpop.f32.mrf.mxu1  ;;  %v823_v20 = vadd.f32 %v10875_v5, %v11032_v38 }
 0x15f   :  { %v856_v44 = vpop.f32.mrf.mxu0  ;;  %3405 = vmatpush1.bf16.msra.mxu0 %v9738_v23  ;;  %3424 = vmatprep.mubr.bf16.mxu0 %v13258_v1 }
 0x160   :  { %v11167_v36 = vadd.f32 %v10986_v42, %v855_v43  ;;  %3406 = vmatprep.subr.bf16.mxu0 %v9743_v34  ;;  %v9521_v0 = vpop.f32.mrf.mxu1  ;;  %v1052_v42 = vadd.f32 %v10886_v12, %v820_v55  ;;  %v9747_v12 = vld [vmem:[%s13251_s3 + $0x388] ss:$16 sps:$4 sm:$0xff]   ;;  %v9752_v43 = vld [vmem:[%s13251_s3 + $0x3ec] ss:$16 sps:$4 sm:$0xff]  }
 0x161   :  { %v859_v63 = vpop.f32.mrf.mxu0 }
 0x162   :  { %v860_v60 = vadd.f32 %v10875_v5, %v859_v63  ;;  %v11176_v15 = vpop.f32.mrf.mxu1  ;;  %v1207_v34 = vmax.f32 %v1052_v42, 0.0 }
 0x163   :  { %v861_v30 = vpop.f32.mrf.mxu0  ;;  %3407 = vmatpush1.bf16.msra.mxu0 %v9741_v4 }
 0x164   :  { %v11182_v17 = vadd.f32 %v10997_v48, %v860_v60  ;;  %3529 = vmatprep.subr.bf16.mxu0 %v9746_v62  ;;  %v9524_v56 = vpop.f32.mrf.mxu1  ;;  %v9750_v62 = vld [vmem:[%s13251_s3 + $0x3e8] ss:$16 sps:$4 sm:$0xff]   ;;  %v11210_v38 = vpack.c.bf16 %v1207_v34, %v1207_v34  ;;  %v9758_v60 = vld [vmem:[%s13251_s3 + $0x3cc] ss:$16 sps:$4 sm:$0xff]  }
 0x165   :  { %v862_v21 = vpop.f32.mrf.mxu0  ;;  %v828_v56 = vadd.f32 %v10875_v5, %v11047_v29 }
 0x166   :  { %v863_v23 = vadd.f32 %v10875_v5, %v862_v21  ;;  %8965 = vmatmul.mubr.msk.bf16.vlgmr.msra.gmra.mxu0 %vm653_vm1, %v11178_v2  ;;  %v11194_v48 = vpop.f32.mrf.mxu1 }
 0x167   :  { %v864_v16 = vpop.f32.mrf.mxu0  ;;  %3530 = vmatpush1.bf16.msra.mxu0 %v9744_v9  ;;  %3549 = vmatprep.mubr.bf16.mxu0 %v13258_v1 }
 0x168   :  { %v11199_v39 = vadd.f32 %v11013_v45, %v863_v23  ;;  %3531 = vmatprep.subr.bf16.mxu0 %v9749_v19  ;;  %v9525_v4 = vpop.f32.mrf.mxu1  ;;  %v1055_v45 = vadd.f32 %v10892_v18, %v823_v20  ;;  %v9756_v18 = vld [vmem:[%s13251_s3 + $0x3c8] ss:$16 sps:$4 sm:$0xff]   ;;  %v9761_v16 = vld [vmem:[%s13251_s3 + $0x42c] ss:$16 sps:$4 sm:$0xff]  }
 0x169   :  { %v867_v44 = vpop.f32.mrf.mxu0 }
 0x16a   :  { %v868_v50 = vadd.f32 %v10875_v5, %v867_v44  ;;  %v11208_v63 = vpop.f32.mrf.mxu1  ;;  %v1208_v21 = vmax.f32 %v1055_v45, 0.0  ;;  %v9759_v44 = vld [vmem:[%s13251_s3 + $0x428] ss:$16 sps:$4 sm:$0xff]  }
 0x16b   :  { %v869_v55 = vpop.f32.mrf.mxu0  ;;  %3532 = vmatpush1.bf16.msra.mxu0 %v9747_v12 }
 0x16c   :  { %v11214_v0 = vadd.f32 %v11024_v11, %v868_v50  ;;  %3654 = vmatprep.subr.bf16.mxu0 %v9752_v43  ;;  %v9528_v9 = vpop.f32.mrf.mxu1  ;;  %v11242_v29 = vpack.c.bf16 %v1208_v21, %v1208_v21  ;;  %v9764_v55 = vld [vmem:[%s13251_s3 + $0x40c] ss:$16 sps:$4 sm:$0xff]  }
 0x16d   :  { %v870_v30 = vpop.f32.mrf.mxu0 }
 0x16e   :  { %v871_v42 = vadd.f32 %v10875_v5, %v870_v30  ;;  %8975 = vmatmul.mubr.msk.bf16.vlgmr.msra.gmra.mxu0 %vm653_vm1, %v11210_v38  ;;  %v11226_v11 = vpop.f32.mrf.mxu1 }
 0x16f   :  { %v872_v19 = vpop.f32.mrf.mxu0  ;;  %3655 = vmatpush1.bf16.msra.mxu0 %v9750_v62  ;;  %3674 = vmatprep.mubr.bf16.mxu0 %v13258_v1 }
 0x170   :  { %v11231_v23 = vadd.f32 %v11040_v51, %v871_v42  ;;  %3656 = vmatprep.subr.bf16.mxu0 %v9758_v60  ;;  %v9529_v34 = vpop.f32.mrf.mxu1  ;;  %v1060_v51 = vadd.f32 %v10899_v26, %v828_v56  ;;  %v9762_v26 = vld [vmem:[%s13251_s3 + $0x408] ss:$16 sps:$4 sm:$0xff]   ;;  %v831_v42 = vadd.f32 %v10875_v5, %v11060_v41 }
 0x171   :  { %v875_v12 = vpop.f32.mrf.mxu0  ;;  %v9765_v34 = vld [vmem:[%s13251_s3 + $0x468] ss:$16 sps:$4 sm:$0xff]  }
 0x172   :  { %v876_v20 = vadd.f32 %v10875_v5, %v875_v12  ;;  %v11240_v4 = vpop.f32.mrf.mxu1  ;;  %v1209_v9 = vmax.f32 %v1060_v51, 0.0 }
 0x173   :  { %v877_v43 = vpop.f32.mrf.mxu0  ;;  %3657 = vmatpush1.bf16.msra.mxu0 %v9756_v18  ;;  %v9767_v18 = vld [vmem:[%s13251_s3 + $0x46c] ss:$16 sps:$4 sm:$0xff]  }
 0x174   :  { %v11246_v50 = vadd.f32 %v11052_v32, %v876_v20  ;;  %3779 = vmatprep.subr.bf16.mxu0 %v9761_v16  ;;  %v9532_v45 = vpop.f32.mrf.mxu1  ;;  %v11274_v41 = vpack.c.bf16 %v1209_v9, %v1209_v9  ;;  %v9773_v9 = vld [vmem:[%s13251_s3 + $0x4ac] ss:$16 sps:$4 sm:$0xff]  }
 0x175   :  { %v878_v62 = vpop.f32.mrf.mxu0 }
 0x176   :  { %v879_v60 = vadd.f32 %v10875_v5, %v878_v62  ;;  %8985 = vmatmul.mubr.msk.bf16.vlgmr.msra.gmra.mxu0 %vm653_vm1, %v11242_v29  ;;  %v11258_v32 = vpop.f32.mrf.mxu1 }
 0x177   :  { %v880_v30 = vpop.f32.mrf.mxu0  ;;  %3780 = vmatpush1.bf16.msra.mxu0 %v9759_v44  ;;  %3799 = vmatprep.mubr.bf16.mxu0 %v13258_v1  ;;  %v9770_v44 = vld [vmem:[%s13251_s3 + $0x44c] ss:$16 sps:$4 sm:$0xff]  }
 0x178   :  { %v11263_v19 = vadd.f32 %v11068_v53, %v879_v60  ;;  %3781 = vmatprep.subr.bf16.mxu0 %v9764_v55  ;;  %v9533_v56 = vpop.f32.mrf.mxu1  ;;  %v1063_v53 = vadd.f32 %v10913_v35, %v831_v42  ;;  %v9768_v35 = vld [vmem:[%s13251_s3 + $0x448] ss:$16 sps:$4 sm:$0xff]   ;;  %v836_v30 = vadd.f32 %v10875_v5, %v11075_v59 }
 0x179   :  { %v883_v21 = vpop.f32.mrf.mxu0 }
 0x17a   :  { %v884_v16 = vadd.f32 %v10875_v5, %v883_v21  ;;  %v11272_v20 = vpop.f32.mrf.mxu1  ;;  %v1210_v60 = vmax.f32 %v1063_v53, 0.0  ;;  %v9776_v53 = vld [vmem:[%s13251_s3 + $0x48c] ss:$16 sps:$4 sm:$0xff]  }
 0x17b   :  { %v885_v12 = vpop.f32.mrf.mxu0  ;;  %3782 = vmatpush1.bf16.msra.mxu0 %v9762_v26 }
 0x17c   :  { %v11278_v43 = vadd.f32 %v11080_v3, %v884_v16  ;;  %3904 = vmatprep.subr.bf16.mxu0 %v9767_v18  ;;  %v9536_v55 = vpop.f32.mrf.mxu1  ;;  %v9771_v16 = vld [vmem:[%s13251_s3 + $0x4a8] ss:$16 sps:$4 sm:$0xff]   ;;  %v11306_v59 = vpack.c.bf16 %v1210_v60, %v1210_v60  ;;  %v9779_v60 = vld [vmem:[%s13251_s3 + $0x4ec] ss:$16 sps:$4 sm:$0xff]  }
 0x17d   :  { %v886_v51 = vpop.f32.mrf.mxu0 }
 0x17e   :  { %v887_v62 = vadd.f32 %v10875_v5, %v886_v51  ;;  %8995 = vmatmul.mubr.msk.bf16.vlgmr.msra.gmra.mxu0 %vm653_vm1, %v11274_v41  ;;  %v11290_v3 = vpop.f32.mrf.mxu1 }
 0x17f   :  { %v888_v45 = vpop.f32.mrf.mxu0  ;;  %3905 = vmatpush1.bf16.msra.mxu0 %v9765_v34  ;;  %3924 = vmatprep.mubr.bf16.mxu0 %v13258_v1 }
 0x180   :  { %v11295_v26 = vadd.f32 %v11098_v22, %v887_v62  ;;  %3906 = vmatprep.subr.bf16.mxu0 %v9770_v44  ;;  %v9537_v18 = vpop.f32.mrf.mxu1  ;;  %v1068_v22 = vadd.f32 %v10922_v46, %v836_v30  ;;  %v9774_v46 = vld [vmem:[%s13251_s3 + $0x488] ss:$16 sps:$4 sm:$0xff]  }
 0x181   :  { %v891_v42 = vpop.f32.mrf.mxu0 }
 0x182   :  { %v892_v21 = vadd.f32 %v10875_v5, %v891_v42  ;;  %v11304_v12 = vpop.f32.mrf.mxu1  ;;  %v1211_v45 = vmax.f32 %v1068_v22, 0.0  ;;  %v9782_v22 = vld [vmem:[%s13251_s3 + $0x4cc] ss:$16 sps:$4 sm:$0xff]  }
 0x183   :  { %v893_v56 = vpop.f32.mrf.mxu0  ;;  %3907 = vmatpush1.bf16.msra.mxu0 %v9768_v35 }
 0x184   :  { %v11310_v34 = vadd.f32 %v11112_v40, %v892_v21  ;;  %4029 = vmatprep.subr.bf16.mxu0 %v9773_v9  ;;  %v9540_v51 = vpop.f32.mrf.mxu1  ;;  %v9777_v21 = vld [vmem:[%s13251_s3 + $0x4e8] ss:$16 sps:$4 sm:$0xff]  }
 0x185   :  { %v894_v44 = vpop.f32.mrf.mxu0 }
 0x186   :  { %v895_v55 = vadd.f32 %v10875_v5, %v894_v44  ;;  %9005 = vmatmul.mubr.msk.bf16.vlgmr.msra.gmra.mxu0 %vm653_vm1, %v11306_v59  ;;  %v11322_v40 = vpop.f32.mrf.mxu1 }
 0x187   :  { %v896_v62 = vpop.f32.mrf.mxu0  ;;  %4030 = vmatpush1.bf16.msra.mxu0 %v9771_v16  ;;  %4049 = vmatprep.mubr.bf16.mxu0 %v13258_v1  ;;  %v11336_v16 = vpack.c.bf16 %v1211_v45, %v1211_v45 }
 0x188   :  { %v11325_v35 = vadd.f32 %v11130_v6, %v895_v55  ;;  %4031 = vmatprep.subr.bf16.mxu0 %v9776_v53  ;;  %v9541_v9 = vpop.f32.mrf.mxu1  ;;  %v9780_v62 = vld [vmem:[%s13251_s3 + $0x4c8] ss:$16 sps:$4 sm:$0xff]  }
 0x189   :  { %v899_v30 = vpop.f32.mrf.mxu0 }
 0x18a   :  { %v900_v42 = vadd.f32 %v10875_v5, %v899_v30  ;;  %v11334_v56 = vpop.f32.mrf.mxu1 }
 0x18b   :  { %v901_v18 = vpop.f32.mrf.mxu0  ;;  %4032 = vmatpush1.bf16.msra.mxu0 %v9774_v46  ;;  %v1212_v46 = vmax.f32 %v11103_v31, 0.0 }
 0x18c   :  { %v11339_v6 = vadd.f32 %v11144_v28, %v900_v42  ;;  %4154 = vmatprep.subr.bf16.mxu0 %v9779_v60  ;;  %v9544_v44 = vpop.f32.mrf.mxu1  ;;  %v9785_v60 = vld [vmem:[%s13251_s3 + $0x52c] ss:$16 sps:$4 sm:$0xff]  }
 0x18d   :  { %v902_v53 = vpop.f32.mrf.mxu0  ;;  %v11366_v31 = vpack.c.bf16 %v1212_v46, %v1212_v46  ;;  %v9786_v46 = vld [vmem:[%s13251_s3 + $0x508] ss:$16 sps:$4 sm:$0xff]  }
 0x18e   :  { %v903_v51 = vadd.f32 %v10875_v5, %v902_v53  ;;  %9015 = vmatmul.mubr.msk.bf16.vlgmr.msra.gmra.mxu0 %vm653_vm1, %v11336_v16  ;;  %v11351_v28 = vpop.f32.mrf.mxu1 }
 0x18f   :  { %v904_v55 = vpop.f32.mrf.mxu0  ;;  %4155 = vmatpush1.bf16.msra.mxu0 %v9777_v21  ;;  %4174 = vmatprep.mubr.bf16.mxu0 %v13258_v1  ;;  %v9783_v21 = vld [vmem:[%s13251_s3 + $0x528] ss:$16 sps:$4 sm:$0xff]  }
 0x190   :  { %v11355_v45 = vadd.f32 %v11162_v24, %v903_v51  ;;  %4156 = vmatprep.subr.bf16.mxu0 %v9782_v22  ;;  %v9545_v9 = vpop.f32.mrf.mxu1  ;;  %v9788_v22 = vld [vmem:[%s13251_s3 + $0x50c] ss:$16 sps:$4 sm:$0xff]  }
 0x191   :  { %v907_v30 = vpop.f32.mrf.mxu0  ;;  %v9791_v9 = vld [vmem:[%s13251_s3 + $0x56c] ss:$16 sps:$4 sm:$0xff]  }
 0x192   :  { %v908_v42 = vadd.f32 %v10875_v5, %v907_v30  ;;  %v11364_v53 = vpop.f32.mrf.mxu1 }
 0x193   :  { %v909_v18 = vpop.f32.mrf.mxu0  ;;  %4157 = vmatpush1.bf16.msra.mxu0 %v9780_v62 }
 0x194   :  { %v11369_v24 = vadd.f32 %v11176_v15, %v908_v42  ;;  %4279 = vmatprep.subr.bf16.mxu0 %v9785_v60  ;;  %v9548_v51 = vpop.f32.mrf.mxu1  ;;  %v1213_v60 = vmax.f32 %v11118_v52, 0.0 }
 0x195   :  { %v910_v44 = vpop.f32.mrf.mxu0  ;;  %v9789_v51 = vld [vmem:[%s13251_s3 + $0x568] ss:$16 sps:$4 sm:$0xff]  }
 0x196   :  { %v911_v55 = vadd.f32 %v10875_v5, %v910_v44  ;;  %9025 = vmatmul.mubr.msk.bf16.vlgmr.msra.gmra.mxu0 %vm653_vm1, %v11366_v31  ;;  %v1190_v15 = vpop.f32.mrf.mxu1 }
 0x197   :  { %v912_v62 = vpop.f32.mrf.mxu0  ;;  %4280 = vmatpush1.bf16.msra.mxu0 %v9783_v21  ;;  %4299 = vmatprep.mubr.bf16.mxu0 %v13258_v1  ;;  %v9792_v15 = vld [vmem:[%s13251_s3 + $0x548] ss:$16 sps:$4 sm:$0xff]  }
 0x198   :  { %v11383_v30 = vadd.f32 %v11194_v48, %v911_v55  ;;  %4281 = vmatprep.subr.bf16.mxu0 %v9788_v22  ;;  %v9549_v18 = vpop.f32.mrf.mxu1  ;;  %v11392_v62 = vpack.c.bf16 %v1213_v60, %v1213_v60  ;;  %v9794_v48 = vld [vmem:[%s13251_s3 + $0x54c] ss:$16 sps:$4 sm:$0xff]  }
 0x199   :  { %v915_v42 = vpop.f32.mrf.mxu0 }
 0x19a   :  { %v916_v21 = vadd.f32 %v10875_v5, %v915_v42 }
 0x19b   :  { %v917_v44 = vpop.f32.mrf.mxu0  ;;  %4282 = vmatpush1.bf16.msra.mxu0 %v9786_v46 }
 0x19c   :  { %v11395_v52 = vadd.f32 %v11208_v63, %v916_v21  ;;  %4404 = vmatprep.subr.bf16.mxu0 %v9791_v9  ;;  %v1214_v63 = vmax.f32 %v11135_v10, 0.0  ;;  %v9797_v9 = vld [vmem:[%s13251_s3 + $0x5ac] ss:$16 sps:$4 sm:$0xff]   ;;  %v9795_v44 = vld [vmem:[%s13251_s3 + $0x5a8] ss:$16 sps:$4 sm:$0xff]  }
 0x19d   :  { %v918_v22 = vpop.f32.mrf.mxu0 }
 0x19e   :  { %v919_v55 = vadd.f32 %v10875_v5, %v918_v22  ;;  %9035 = vmatmul.mubr.msk.bf16.vlgmr.msra.gmra.mxu0 %vm653_vm1, %v11392_v62 }
 0x19f   :  { %v920_v46 = vpop.f32.mrf.mxu0  ;;  %4405 = vmatpush1.bf16.msra.mxu0 %v9789_v51  ;;  %4424 = vmatprep.mubr.bf16.mxu0 %v13258_v1  ;;  %v11418_v51 = vpack.c.bf16 %v1214_v63, %v1214_v63  ;;  %v9803_v63 = vld [vmem:[%s13251_s3 + $0x5ec] ss:$16 sps:$4 sm:$0xff]  }
 0x1a0   :  { %v11409_v60 = vadd.f32 %v11226_v11, %v919_v55  ;;  %4406 = vmatprep.subr.bf16.mxu0 %v9794_v48  ;;  %v9800_v11 = vld [vmem:[%s13251_s3 + $0x58c] ss:$16 sps:$4 sm:$0xff]   ;;  %v9798_v46 = vld [vmem:[%s13251_s3 + $0x588] ss:$16 sps:$4 sm:$0xff]  }
 0x1a1   :  { %v923_v42 = vpop.f32.mrf.mxu0 }
 0x1a2   :  { %v924_v18 = vadd.f32 %v10875_v5, %v923_v42 }
 0x1a3   :  { %v925_v21 = vpop.f32.mrf.mxu0  ;;  %4407 = vmatpush1.bf16.msra.mxu0 %v9792_v15 }
 0x1a4   :  { %v11421_v10 = vadd.f32 %v11240_v4, %v924_v18  ;;  %4529 = vmatprep.subr.bf16.mxu0 %v9797_v9  ;;  %v1215_v4 = vmax.f32 %v11150_v33, 0.0  ;;  %v9801_v21 = vld [vmem:[%s13251_s3 + $0x5e8] ss:$16 sps:$4 sm:$0xff]  }
 0x1a5   :  { %v926_v48 = vpop.f32.mrf.mxu0 }
 0x1a6   :  { %v927_v22 = vadd.f32 %v10875_v5, %v926_v48  ;;  %9045 = vmatmul.mubr.msk.bf16.vlgmr.msra.gmra.mxu0 %vm653_vm1, %v11418_v51 }
 0x1a7   :  { %v928_v55 = vpop.f32.mrf.mxu0  ;;  %4530 = vmatpush1.bf16.msra.mxu0 %v9795_v44  ;;  %4549 = vmatprep.mubr.bf16.mxu0 %v13258_v1  ;;  %v11444_v44 = vpack.c.bf16 %v1215_v4, %v1215_v4  ;;  %v9809_v4 = vld [vmem:[%s13251_s3 + $0x62c] ss:$16 sps:$4 sm:$0xff]  }
 0x1a8   :  { %v11435_v15 = vadd.f32 %v11258_v32, %v927_v22  ;;  %4531 = vmatprep.subr.bf16.mxu0 %v9800_v11  ;;  %v9806_v32 = vld [vmem:[%s13251_s3 + $0x5cc] ss:$16 sps:$4 sm:$0xff]   ;;  %v9804_v55 = vld [vmem:[%s13251_s3 + $0x5c8] ss:$16 sps:$4 sm:$0xff]  }
 0x1a9   :  { %v931_v9 = vpop.f32.mrf.mxu0 }
 0x1aa   :  { %v932_v42 = vadd.f32 %v10875_v5, %v931_v9 }
 0x1ab   :  { %v933_v18 = vpop.f32.mrf.mxu0  ;;  %4532 = vmatpush1.bf16.msra.mxu0 %v9798_v46 }
 0x1ac   :  { %v11447_v33 = vadd.f32 %v11272_v20, %v932_v42  ;;  %4654 = vmatprep.subr.bf16.mxu0 %v9803_v63  ;;  %v1216_v20 = vmax.f32 %v11167_v36, 0.0  ;;  %v9807_v18 = vld [vmem:[%s13251_s3 + $0x628] ss:$16 sps:$4 sm:$0xff]  }
 0x1ad   :  { %v934_v11 = vpop.f32.mrf.mxu0 }
 0x1ae   :  { %v935_v48 = vadd.f32 %v10875_v5, %v934_v11  ;;  %9055 = vmatmul.mubr.msk.bf16.vlgmr.msra.gmra.mxu0 %vm653_vm1, %v11444_v44 }
 0x1af   :  { %v936_v22 = vpop.f32.mrf.mxu0  ;;  %4655 = vmatpush1.bf16.msra.mxu0 %v9801_v21  ;;  %4674 = vmatprep.mubr.bf16.mxu0 %v13258_v1  ;;  %v11470_v21 = vpack.c.bf16 %v1216_v20, %v1216_v20 }
 0x1b0   :  { %v11461_v46 = vadd.f32 %v11290_v3, %v935_v48  ;;  %4656 = vmatprep.subr.bf16.mxu0 %v9806_v32  ;;  %v9812_v3 = vld [vmem:[%s13251_s3 + $0x60c] ss:$16 sps:$4 sm:$0xff]   ;;  %v9810_v22 = vld [vmem:[%s13251_s3 + $0x608] ss:$16 sps:$4 sm:$0xff]  }
 0x1b1   :  { %v939_v63 = vpop.f32.mrf.mxu0 }
 0x1b2   :  { %v940_v9 = vadd.f32 %v10875_v5, %v939_v63 }
 0x1b3   :  { %v941_v42 = vpop.f32.mrf.mxu0  ;;  %4657 = vmatpush1.bf16.msra.mxu0 %v9804_v55 }
 0x1b4   :  { %v11473_v36 = vadd.f32 %v11304_v12, %v940_v9  ;;  %4779 = vmatprep.subr.bf16.mxu0 %v9809_v4  ;;  %v1217_v12 = vmax.f32 %v11182_v17, 0.0  ;;  %v11495_v4 = vld [vmem:[%s13250_s2] ss:$0 sm:$0xff]  ;;  %v9813_v17 = vld [vmem:[%s13251_s3 + $0x668] ss:$16 sps:$4 sm:$0xff]   ;;  %s10401_s2 = smov [#allocation2]  }
 0x1b5   :  { %v942_v32 = vpop.f32.mrf.mxu0  ;;  %s8699_s30 = sshll.u32 %s10401_s2, 4  ;;  %s8700_s30 = int_to_ptr.vmem [resolvable:$true] %s8699_s30 }
 0x1b6   :  { %v943_v11 = vadd.f32 %v10875_v5, %v942_v32  ;;  %9065 = vmatmul.mubr.msk.bf16.vlgmr.msra.gmra.mxu0 %vm653_vm1, %v11470_v21  ;;  %v9815_v5 = vld [vmem:[%s13251_s3 + $0x66c] ss:$16 sps:$4 sm:$0xff]   ;;  %s10376_s10 = scalar_lea.vmem %s8700_s30, 32  ;;  %p10381_p1 = scmp.lt.s32.totalorder %s8700_s30, %s8700_s30 }
 0x1b7   :  { %v944_v48 = vpop.f32.mrf.mxu0  ;;  %4780 = vmatpush1.bf16.msra.mxu0 %v9807_v18  ;;  %4799 = vmatprep.mubr.bf16.mxu0 %v13258_v1  ;;  %v9818_v18 = vld [vmem:[%s13251_s3 + $0x64c] ss:$16 sps:$4 sm:$0xff]   ;;  %p10377_p0 = scmp.ne.s32.totalorder %s8700_s30, %s10376_s10  ;;  %p10382_p2 = scmp.lt.s32.totalorder %s10376_s10, %s10376_s10 }
 0x1b8   :  { %v11487_v55 = vadd.f32 %v11322_v40, %v943_v11  ;;  %4781 = vmatprep.subr.bf16.mxu0 %v9812_v3  ;;  %v11501_v40 = vpack.c.bf16 %v1217_v12, %v1217_v12  ;;  %v9816_v48 = vld [vmem:[%s13251_s3 + $0x648] ss:$16 sps:$4 sm:$0xff]   ;;  %v9821_v12 = vld [vmem:[%s13251_s3 + $0x6ac] ss:$16 sps:$4 sm:$0xff]  }
 0x1b9   :  { %v947_v20 = vpop.f32.mrf.mxu0  ;;  %p10383_p3 = por %p10382_p2, %p10381_p1 }
 0x1ba   :  { %v948_v63 = vadd.f32 %v11495_v4, %v947_v20 }
 0x1bb   :  { %v949_v9 = vpop.f32.mrf.mxu0  ;;  %4782 = vmatpush1.bf16.msra.mxu0 %v9810_v22  ;;  %p10384_p4 = pnand %p10383_p3, %p10377_p0 }
 0x1bc   :  { %v11504_v42 = vadd.f32 %v11334_v56, %v948_v63  ;;  %4904 = vmatprep.subr.bf16.mxu0 %v9815_v5  ;;  %v1218_v56 = vmax.f32 %v11199_v39, 0.0  ;;  %v9819_v9 = vld [vmem:[%s13251_s3 + $0x6a8] ss:$16 sps:$4 sm:$0xff]  }
 0x1bd   :  { %v950_v3 = vpop.f32.mrf.mxu0 }
 0x1be   :  { %v951_v32 = vadd.f32 %v11495_v4, %v950_v3  ;;  %9075 = vmatmul.mubr.msk.bf16.vlgmr.msra.gmra.mxu0 %vm653_vm1, %v11501_v40 }
 0x1bf   :  { %v952_v11 = vpop.f32.mrf.mxu0  ;;  %4905 = vmatpush1.bf16.msra.mxu0 %v9813_v17  ;;  %4924 = vmatprep.mubr.bf16.mxu0 %v13258_v1  ;;  %v11527_v17 = vpack.c.bf16 %v1218_v56, %v1218_v56 }
 0x1c0   :  { %v11518_v22 = vadd.f32 %v11351_v28, %v951_v32  ;;  %4906 = vmatprep.subr.bf16.mxu0 %v9818_v18  ;;  %v9824_v28 = vld [vmem:[%s13251_s3 + $0x68c] ss:$16 sps:$4 sm:$0xff]   ;;  %v9822_v32 = vld [vmem:[%s13251_s3 + $0x688] ss:$16 sps:$4 sm:$0xff]   ;;  %v1219_v11 = vmax.f32 %v11214_v0, 0.0 }
 0x1c1   :  { %v955_v5 = vpop.f32.mrf.mxu0 }
 0x1c2   :  { %v956_v20 = vadd.f32 %v11495_v4, %v955_v5 }
 0x1c3   :  { %v957_v63 = vpop.f32.mrf.mxu0  ;;  %4907 = vmatpush1.bf16.msra.mxu0 %v9816_v48  ;;  %v9827_v48 = vld [vmem:[%s13251_s3 + $0x6ec] ss:$16 sps:$4 sm:$0xff]  }
 0x1c4   :  { %v11530_v39 = vadd.f32 %v11364_v53, %v956_v20  ;;  %5029 = vmatprep.subr.bf16.mxu0 %v9821_v12  ;;  %v764_v53 = vadd.f32 %v11495_v4, %v10853_v57  ;;  %v9825_v20 = vld [vmem:[%s13251_s3 + $0x6e8] ss:$16 sps:$4 sm:$0xff]   ;;  %v11550_v63 = vpack.c.bf16 %v1219_v11, %v1219_v11  ;;  %v9833_v57 = vld [vmem:[%s13251_s3 + $0x6cc] ss:$16 sps:$4 sm:$0xff]   ;;  %v1220_v11 = vmax.f32 %v11231_v23, 0.0 }
 0x1c5   :  { %v958_v18 = vpop.f32.mrf.mxu0  ;;  %v9837_v23 = vld [vmem:[%s13251_s3 + $0x728] ss:$16 sps:$4 sm:$0xff]  }
 0x1c6   :  { %9085 = vmatmul.mubr.msk.bf16.vlgmr.msra.gmra.mxu0 %vm653_vm1, %v11527_v17 }
 0x1c7   :  { %v959_v3 = vpop.f32.mrf.mxu0  ;;  %5030 = vmatpush1.bf16.msra.mxu0 %v9819_v9  ;;  %5049 = vmatprep.mubr.bf16.mxu0 %v13258_v1 }
 0x1c8   :  { %5031 = vmatprep.subr.bf16.mxu0 %v9824_v28  ;;  %v9828_v28 = vld [vmem:[%s13251_s3 + $0x28] ss:$16 sps:$4 sm:$0xff]   ;;  %v9836_v3 = vld [vmem:[%s13251_s3 + $0xc] ss:$16 sps:$4 sm:$0xff]  }
 0x1c9   :  { %v995_v56 = vpop.f32.mrf.mxu0 }
 0x1ca   :  { %v996_v12 = vadd.f32 %v995_v56, %v764_v53  ;;  %v9831_v53 = vld [vmem:[%s13251_s3 + $0x6c8] ss:$16 sps:$4 sm:$0xff]  }
 0x1cb   :  { %v9452_v5 = vpop.f32.mrf.mxu0  ;;  %5032 = vmatpush1.bf16.msra.mxu0 %v9822_v32  ;;  %v9834_v56 = vld [vmem:[%s13251_s3 + $0x8] ss:$16 sps:$4 sm:$0xff]  }
 0x1cc   :  { %v1193_v9 = vmax.f32 %v996_v12, 0.0  ;;  %5154 = vmatprep.subr.bf16.mxu0 %v9827_v48  ;;  %v9839_v48 = vld [vmem:[%s13251_s3 + $0x72c] ss:$16 sps:$4 sm:$0xff]   ;;  %v9842_v12 = vld [vmem:[%s13251_s3 + $0x64] ss:$16 sps:$4 sm:$0xff]   ;;  %v767_v5 = vadd.f32 %v11495_v4, %v10859_v61 }
 0x1cd   :  { %v998_v0 = vpop.f32.mrf.mxu0  ;;  %v9848_v61 = vld [vmem:[%s13251_s3 + $0x44] ss:$16 sps:$4 sm:$0xff]   ;;  %v9843_v4 = vld [vmem:[%s13251_s3 + $0x708] ss:$16 sps:$4 sm:$0xff]  }
 0x1ce   :  { %v1242_v18 = vpack.c.bf16 %v1193_v9, %v1193_v9  ;;  %9095 = vmatmul.mubr.msk.bf16.vlgmr.msra.gmra.mxu0 %vm653_vm1, %v11550_v63  ;;  %v9845_v9 = vld [vmem:[%s13251_s3 + $0x70c] ss:$16 sps:$4 sm:$0xff]  }
 0x1cf   :  { %v9453_v32 = vpop.f32.mrf.mxu0  ;;  %5155 = vmatpush1.bf16.msra.mxu0 %v9825_v20  ;;  %5174 = vmatprep.mubr.bf16.mxu0 %v13258_v1  ;;  %v11584_v20 = vpack.c.bf16 %v1220_v11, %v1220_v11  ;;  %v9846_v11 = vld [vmem:[%s13251_s3 + $0x40] ss:$16 sps:$4 sm:$0xff]  }
 0x1d0   :  { %8834 = vmatmul.mubr.msk.bf16.vlgmr.msra.gmra.mxu1 %vm653_vm1, %v1242_v18  ;;  %5156 = vmatprep.subr.bf16.mxu0 %v9833_v57  ;;  %v9840_v57 = vld [vmem:[%s13251_s3 + $0x60] ss:$16 sps:$4 sm:$0xff]   ;;  %v1221_v32 = vmax.f32 %v11246_v50, 0.0  ;;  %v9854_v50 = vld [vmem:[%s13251_s3 + $0x6c] ss:$16 sps:$4 sm:$0xff]  }
 0x1d1   :  { %1780 = vmatpush1.bf16.msra.mxu1 %v9828_v28  ;;  %1799 = vmatprep.mubr.bf16.mxu1 %v13258_v1  ;;  %v999_v28 = vadd.f32 %v998_v0, %v767_v5  ;;  %v9857_v5 = vld [vmem:[%s13251_s3 + $0x74c] ss:$16 sps:$4 sm:$0xff]  }
 0x1d2   :  { %1781 = vmatprep.subr.bf16.mxu1 %v9836_v3 }
 0x1d3   :  { %5157 = vmatpush1.bf16.msra.mxu0 %v9831_v53  ;;  %v9851_v53 = vld [vmem:[%s13251_s3 + $0x76c] ss:$16 sps:$4 sm:$0xff]  }
 0x1d4   :  { %5279 = vmatprep.subr.bf16.mxu0 %v9839_v48  ;;  %v1194_v48 = vmax.f32 %v999_v28, 0.0 }
 0x1d5   :  { %1782 = vmatpush1.bf16.msra.mxu1 %v9834_v56 }
 0x1d6   :  { %v11592_v3 = vpop.f32.mrf.mxu0  ;;  %9105 = vmatmul.mubr.msk.bf16.vlgmr.msra.gmra.mxu0 %vm653_vm1, %v11584_v20  ;;  %1863 = vmatprep.subr.bf16.mxu1 %v9842_v12  ;;  %v11620_v12 = vpack.c.bf16 %v1221_v32, %v1221_v32  ;;  %v1222_v32 = vmax.f32 %v11263_v19, 0.0  ;;  %v9866_v19 = vld [vmem:[%s13251_s3 + $0xa4] ss:$16 sps:$4 sm:$0xff]  }
 0x1d7   :  { %5280 = vmatpush1.bf16.msra.mxu0 %v9837_v23  ;;  %5299 = vmatprep.mubr.bf16.mxu0 %v13258_v1 }
 0x1d8   :  { %8835 = vmatmul.mubr.msk.bf16.vlgmr.msra.gmra.mxu1 %vm653_vm1, %v1242_v18  ;;  %v11605_v0 = vpop.f32.mrf.mxu0  ;;  %5281 = vmatprep.subr.bf16.mxu0 %v9845_v9  ;;  %v9849_v18 = vld [vmem:[%s13251_s3 + $0x768] ss:$16 sps:$4 sm:$0xff]  }
 0x1d9   :  { %1864 = vmatpush1.bf16.msra.mxu1 %v9840_v57  ;;  %1883 = vmatprep.mubr.bf16.mxu1 %v13258_v1  ;;  %v9852_v9 = vld [vmem:[%s13251_s3 + $0x68] ss:$16 sps:$4 sm:$0xff]   ;;  %v1243_v57 = vpack.c.bf16 %v1194_v48, %v1194_v48 }
 0x1da   :  { %v2180_v56 = vpop.f32.mrf.mxu0  ;;  %1865 = vmatprep.subr.bf16.mxu1 %v9848_v61  ;;  %v9860_v61 = vld [vmem:[%s13251_s3 + $0x4c] ss:$16 sps:$4 sm:$0xff]   ;;  %v9858_v48 = vld [vmem:[%s13251_s3 + $0x48] ss:$16 sps:$4 sm:$0xff]  }
 0x1db   :  { %5282 = vmatpush1.bf16.msra.mxu0 %v9843_v4  ;;  %v9855_v4 = vld [vmem:[%s13251_s3 + $0x748] ss:$16 sps:$4 sm:$0xff]  }
 0x1dc   :  { %v2181_v23 = vpop.f32.mrf.mxu0  ;;  %5404 = vmatprep.subr.bf16.mxu0 %v9851_v53 }
 0x1dd   :  { %1866 = vmatpush1.bf16.msra.mxu1 %v9846_v11  ;;  %v9863_v11 = vld [vmem:[%s13251_s3 + $0x7ac] ss:$16 sps:$4 sm:$0xff]  }
 0x1de   :  { %v11628_v28 = vpop.f32.mrf.mxu0  ;;  %9115 = vmatmul.mubr.msk.bf16.vlgmr.msra.gmra.mxu0 %vm653_vm1, %v11620_v12  ;;  %1904 = vmatprep.subr.bf16.mxu1 %v9854_v50  ;;  %v9861_v50 = vld [vmem:[%s13251_s3 + $0x7a8] ss:$16 sps:$4 sm:$0xff]  }
 0x1df   :  { %5405 = vmatpush1.bf16.msra.mxu0 %v9849_v18  ;;  %5424 = vmatprep.mubr.bf16.mxu0 %v13258_v1  ;;  %v11656_v18 = vpack.c.bf16 %v1222_v32, %v1222_v32  ;;  %v9867_v32 = vld [vmem:[%s13251_s3 + $0x788] ss:$16 sps:$4 sm:$0xff]  }
 0x1e0   :  { %8844 = vmatmul.mubr.msk.bf16.vlgmr.msra.gmra.mxu1 %vm653_vm1, %v1243_v57  ;;  %v11641_v53 = vpop.f32.mrf.mxu0  ;;  %5406 = vmatprep.subr.bf16.mxu0 %v9857_v5  ;;  %v9869_v5 = vld [vmem:[%s13251_s3 + $0x78c] ss:$16 sps:$4 sm:$0xff]  }
 0x1e1   :  { %1905 = vmatpush1.bf16.msra.mxu1 %v9852_v9  ;;  %1924 = vmatprep.mubr.bf16.mxu1 %v13258_v1  ;;  %13280 = vst [vmem:[#allocation5_spill] sm:$0xff] %v11656_v18  ;;  %v9864_v9 = vld [vmem:[%s13251_s3 + $0xa0] ss:$16 sps:$4 sm:$0xff]  }
 0x1e2   :  { %v2305_v56 = vpop.f32.mrf.mxu0  ;;  %1906 = vmatprep.subr.bf16.mxu1 %v9860_v61 }
 0x1e3   :  { %5407 = vmatpush1.bf16.msra.mxu0 %v9855_v4  ;;  %v9872_v4 = vld [vmem:[%s13251_s3 + $0x84] ss:$16 sps:$4 sm:$0xff]   ;;  %v9875_v56 = vld [vmem:[%s13251_s3 + $0x7ec] ss:$16 sps:$4 sm:$0xff]  }
 0x1e4   :  { %v2306_v23 = vpop.f32.mrf.mxu0  ;;  %5529 = vmatprep.subr.bf16.mxu0 %v9863_v11  ;;  %v1223_v11 = vmax.f32 %v11278_v43, 0.0  ;;  %v9878_v43 = vld [vmem:[%s13251_s3 + $0xac] ss:$16 sps:$4 sm:$0xff]  }
 0x1e5   :  { %1907 = vmatpush1.bf16.msra.mxu1 %v9858_v48 }
 0x1e6   :  { %v11664_v61 = vpop.f32.mrf.mxu0  ;;  %9125 = vmatmul.mubr.msk.bf16.vlgmr.msra.gmra.mxu0 %vm653_vm1, %v11656_v18  ;;  %1988 = vmatprep.subr.bf16.mxu1 %v9866_v19  ;;  %v9870_v19 = vld [vmem:[%s13251_s3 + $0x80] ss:$16 sps:$4 sm:$0xff]   ;;  %v9893_v18 = vld [vmem:[%s13251_s3 + $0x80c] ss:$16 sps:$4 sm:$0xff]  }
 0x1e7   :  { %5530 = vmatpush1.bf16.msra.mxu0 %v9861_v50  ;;  %5549 = vmatprep.mubr.bf16.mxu0 %v13258_v1  ;;  %v1195_v50 = vmax.f32 %v10889_v13, 0.0  ;;  %v9876_v13 = vld [vmem:[%s13251_s3 + $0xa8] ss:$16 sps:$4 sm:$0xff]  }
 0x1e8   :  { %8845 = vmatmul.mubr.msk.bf16.vlgmr.msra.gmra.mxu1 %vm653_vm1, %v1243_v57  ;;  %v11677_v48 = vpop.f32.mrf.mxu0  ;;  %5531 = vmatprep.subr.bf16.mxu0 %v9869_v5  ;;  %v9873_v57 = vld [vmem:[%s13251_s3 + $0x7e8] ss:$16 sps:$4 sm:$0xff]   ;;  %v11693_v5 = vpack.c.bf16 %v1223_v11, %v1223_v11 }
 0x1e9   :  { %1989 = vmatpush1.bf16.msra.mxu1 %v9864_v9  ;;  %2008 = vmatprep.mubr.bf16.mxu1 %v13258_v1  ;;  %v9881_v1 = vld [vmem:[%s13251_s3 + $0x7cc] ss:$16 sps:$4 sm:$0xff]   ;;  %v9879_v11 = vld [vmem:[%s13251_s3 + $0x7c8] ss:$16 sps:$4 sm:$0xff]  }
 0x1ea   :  { %v2430_v23 = vpop.f32.mrf.mxu0  ;;  %1990 = vmatprep.subr.bf16.mxu1 %v9872_v4  ;;  %13281 = vst [vmem:[#allocation6_spill] sm:$0xff] %v11693_v5  ;;  %v1244_v4 = vpack.c.bf16 %v1195_v50, %v1195_v50 }
 0x1eb   :  { %5532 = vmatpush1.bf16.msra.mxu0 %v9867_v32  ;;  %v9884_v32 = vld [vmem:[%s13251_s3 + $0x8c] ss:$16 sps:$4 sm:$0xff]  }
 0x1ec   :  { %v2431_v9 = vpop.f32.mrf.mxu0  ;;  %5654 = vmatprep.subr.bf16.mxu0 %v9875_v56  ;;  %v13282_v56 = vmov 0  }
 0x1ed   :  { %1991 = vmatpush1.bf16.msra.mxu1 %v9870_v19  ;;  %v1224_v19 = vmax.f32 %v11295_v26, 0.0  ;;  %v9890_v26 = vld [vmem:[%s13251_s3 + $0xe4] ss:$16 sps:$4 sm:$0xff]  }
 0x1ee   :  { %v11701_v23 = vpop.f32.mrf.mxu0  ;;  %9135 = vmatmul.mubr.msk.bf16.vlgmr.msra.gmra.mxu0 %vm653_vm1, %v11693_v5  ;;  %2029 = vmatprep.subr.bf16.mxu1 %v9878_v43  ;;  %v9887_v43 = vld [vmem:[%s13251_s3 + $0x82c] ss:$16 sps:$4 sm:$0xff]  }
 0x1ef   :  { %5655 = vmatpush1.bf16.msra.mxu0 %v9873_v57  ;;  %5674 = vmatprep.mubr.bf16.mxu0 %v13282_v56  ;;  %v9882_v57 = vld [vmem:[%s13251_s3 + $0x88] ss:$16 sps:$4 sm:$0xff]   ;;  %v11729_v5 = vpack.c.bf16 %v1224_v19, %v1224_v19 }
 0x1f0   :  { %8854 = vmatmul.mubr.msk.bf16.vlgmr.msra.gmra.mxu1 %vm653_vm1, %v1244_v4  ;;  %v11714_v50 = vpop.f32.mrf.mxu0  ;;  %5656 = vmatprep.subr.bf16.mxu0 %v9881_v1  ;;  %v9885_v1 = vld [vmem:[%s13251_s3 + $0x828] ss:$16 sps:$4 sm:$0xff]  }
 0x1f1   :  { %2030 = vmatpush1.bf16.msra.mxu1 %v9876_v13  ;;  %2049 = vmatprep.mubr.bf16.mxu1 %v13282_v56  ;;  %13283 = vst [vmem:[#allocation7_spill] sm:$0xff] %v11729_v5  ;;  %v9891_v19 = vld [vmem:[%s13251_s3 + $0x808] ss:$16 sps:$4 sm:$0xff]  }
 0x1f2   :  { %v2555_v9 = vpop.f32.mrf.mxu0  ;;  %2031 = vmatprep.subr.bf16.mxu1 %v9884_v32  ;;  %v9888_v32 = vld [vmem:[%s13251_s3 + $0xe0] ss:$16 sps:$4 sm:$0xff]  }
 0x1f3   :  { %5657 = vmatpush1.bf16.msra.mxu0 %v9879_v11  ;;  %v9896_v11 = vld [vmem:[%s13251_s3 + $0xc4] ss:$16 sps:$4 sm:$0xff]  }
 0x1f4   :  { %v2556_v13 = vpop.f32.mrf.mxu0  ;;  %5779 = vmatprep.subr.bf16.mxu0 %v9887_v43  ;;  %v1225_v43 = vmax.f32 %v11310_v34, 0.0  ;;  %v9902_v34 = vld [vmem:[%s13251_s3 + $0x124] ss:$16 sps:$4 sm:$0xff]  }
 0x1f5   :  { %2032 = vmatpush1.bf16.msra.mxu1 %v9882_v57 }
 0x1f6   :  { %v11737_v9 = vpop.f32.mrf.mxu0  ;;  %9145 = vmatmul.mubr.msk.bf16.vlgmr.msra.gmra.mxu0 %vm653_vm1, %v11729_v5  ;;  %2113 = vmatprep.subr.bf16.mxu1 %v9890_v26  ;;  %v9899_v26 = vld [vmem:[%s13251_s3 + $0x86c] ss:$16 sps:$4 sm:$0xff]  }
 0x1f7   :  { %5780 = vmatpush1.bf16.msra.mxu0 %v9885_v1  ;;  %5799 = vmatprep.mubr.bf16.mxu0 %v13282_v56  ;;  %v9894_v1 = vld [vmem:[%s13251_s3 + $0xc0] ss:$16 sps:$4 sm:$0xff]   ;;  %v9905_v5 = vld [vmem:[%s13251_s3 + $0x84c] ss:$16 sps:$4 sm:$0xff]  }
 0x1f8   :  { %8855 = vmatmul.mubr.msk.bf16.vlgmr.msra.gmra.mxu1 %vm653_vm1, %v1244_v4  ;;  %v11750_v57 = vpop.f32.mrf.mxu0  ;;  %5781 = vmatprep.subr.bf16.mxu0 %v9893_v18  ;;  %v9897_v18 = vld [vmem:[%s13251_s3 + $0x868] ss:$16 sps:$4 sm:$0xff]   ;;  %v11765_v4 = vpack.c.bf16 %v1225_v43, %v1225_v43 }
 0x1f9   :  { %2114 = vmatpush1.bf16.msra.mxu1 %v9888_v32  ;;  %2133 = vmatprep.mubr.bf16.mxu1 %v13282_v56  ;;  %v9903_v43 = vld [vmem:[%s13251_s3 + $0x848] ss:$16 sps:$4 sm:$0xff]  }
 0x1fa   :  { %v2680_v13 = vpop.f32.mrf.mxu0  ;;  %2115 = vmatprep.subr.bf16.mxu1 %v9896_v11  ;;  %13284 = vst [vmem:[#allocation8_spill] sm:$0xff] %v11765_v4  ;;  %v9900_v11 = vld [vmem:[%s13251_s3 + $0x120] ss:$16 sps:$4 sm:$0xff]  }
 0x1fb   :  { %5782 = vmatpush1.bf16.msra.mxu0 %v9891_v19  ;;  %v9908_v19 = vld [vmem:[%s13251_s3 + $0x104] ss:$16 sps:$4 sm:$0xff]  }
 0x1fc   :  { %v2681_v32 = vpop.f32.mrf.mxu0  ;;  %5904 = vmatprep.subr.bf16.mxu0 %v9899_v26  ;;  %v1226_v26 = vmax.f32 %v11325_v35, 0.0  ;;  %v9909_v35 = vld [vmem:[%s13251_s3 + $0x8a8] ss:$16 sps:$4 sm:$0xff]  }
 0x1fd   :  { %2116 = vmatpush1.bf16.msra.mxu1 %v9894_v1 }
 0x1fe   :  { %v11773_v13 = vpop.f32.mrf.mxu0  ;;  %9155 = vmatmul.mubr.msk.bf16.vlgmr.msra.gmra.mxu0 %vm653_vm1, %v11765_v4  ;;  %2238 = vmatprep.subr.bf16.mxu1 %v9902_v34  ;;  %v9911_v34 = vld [vmem:[%s13251_s3 + $0x8ac] ss:$16 sps:$4 sm:$0xff]  }
 0x1ff   :  { %5905 = vmatpush1.bf16.msra.mxu0 %v9897_v18  ;;  %5924 = vmatprep.mubr.bf16.mxu0 %v13282_v56  ;;  %v9906_v18 = vld [vmem:[%s13251_s3 + $0x100] ss:$16 sps:$4 sm:$0xff]   ;;  %v9917_v4 = vld [vmem:[%s13251_s3 + $0x88c] ss:$16 sps:$4 sm:$0xff]  }
 0x200   :  { %8864 = vmatmul.mubr.msk.bf16.vlgmr.msra.gmra.mxu1 %vm653_vm1, %v10901_v27  ;;  %v11787_v1 = vpop.f32.mrf.mxu0  ;;  %5906 = vmatprep.subr.bf16.mxu0 %v9905_v5  ;;  %v9914_v27 = vld [vmem:[%s13251_s3 + $0x164] ss:$16 sps:$4 sm:$0xff]   ;;  %v11802_v5 = vpack.c.bf16 %v1226_v26, %v1226_v26  ;;  %v9915_v26 = vld [vmem:[%s13251_s3 + $0x888] ss:$16 sps:$4 sm:$0xff]  }
 0x201   :  { %2239 = vmatpush1.bf16.msra.mxu1 %v9900_v11  ;;  %2258 = vmatprep.mubr.bf16.mxu1 %v13282_v56 }
 0x202   :  { %v2805_v32 = vpop.f32.mrf.mxu0  ;;  %2240 = vmatprep.subr.bf16.mxu1 %v9908_v19  ;;  %13285 = vst [vmem:[#allocation9_spill] sm:$0xff] %v11802_v5  ;;  %v9912_v19 = vld [vmem:[%s13251_s3 + $0x160] ss:$16 sps:$4 sm:$0xff]  }
 0x203   :  { %5907 = vmatpush1.bf16.msra.mxu0 %v9903_v43  ;;  %v9920_v43 = vld [vmem:[%s13251_s3 + $0x144] ss:$16 sps:$4 sm:$0xff]  }
 0x204   :  { %v2806_v11 = vpop.f32.mrf.mxu0  ;;  %6029 = vmatprep.subr.bf16.mxu0 %v9911_v34  ;;  %v1227_v34 = vmax.f32 %v11339_v6, 0.0  ;;  %v9921_v6 = vld [vmem:[%s13251_s3 + $0x8e8] ss:$16 sps:$4 sm:$0xff]  }
 0x205   :  { %2241 = vmatpush1.bf16.msra.mxu1 %v9906_v18 }
 0x206   :  { %v11810_v32 = vpop.f32.mrf.mxu0  ;;  %9165 = vmatmul.mubr.msk.bf16.vlgmr.msra.gmra.mxu0 %vm653_vm1, %v11802_v5  ;;  %2363 = vmatprep.subr.bf16.mxu1 %v9914_v27  ;;  %v9923_v27 = vld [vmem:[%s13251_s3 + $0x8ec] ss:$16 sps:$4 sm:$0xff]  }
 0x207   :  { %6030 = vmatpush1.bf16.msra.mxu0 %v9909_v35  ;;  %6049 = vmatprep.mubr.bf16.mxu0 %v13282_v56  ;;  %v9918_v35 = vld [vmem:[%s13251_s3 + $0x140] ss:$16 sps:$4 sm:$0xff]   ;;  %v9929_v5 = vld [vmem:[%s13251_s3 + $0x8cc] ss:$16 sps:$4 sm:$0xff]  }
 0x208   :  { %8874 = vmatmul.mubr.msk.bf16.vlgmr.msra.gmra.mxu1 %vm653_vm1, %v10924_v47  ;;  %v11824_v18 = vpop.f32.mrf.mxu0  ;;  %6031 = vmatprep.subr.bf16.mxu0 %v9917_v4  ;;  %v9926_v47 = vld [vmem:[%s13251_s3 + $0x1a4] ss:$16 sps:$4 sm:$0xff]   ;;  %v11839_v4 = vpack.c.bf16 %v1227_v34, %v1227_v34  ;;  %v9927_v34 = vld [vmem:[%s13251_s3 + $0x8c8] ss:$16 sps:$4 sm:$0xff]  }
 0x209   :  { %2364 = vmatpush1.bf16.msra.mxu1 %v9912_v19  ;;  %2383 = vmatprep.mubr.bf16.mxu1 %v13282_v56 }
 0x20a   :  { %v2930_v11 = vpop.f32.mrf.mxu0  ;;  %2365 = vmatprep.subr.bf16.mxu1 %v9920_v43  ;;  %13286 = vst [vmem:[#allocation10_spill] sm:$0xff] %v11839_v4  ;;  %v9924_v43 = vld [vmem:[%s13251_s3 + $0x1a0] ss:$16 sps:$4 sm:$0xff]  }
 0x20b   :  { %6032 = vmatpush1.bf16.msra.mxu0 %v9915_v26  ;;  %v9932_v26 = vld [vmem:[%s13251_s3 + $0x184] ss:$16 sps:$4 sm:$0xff]  }
 0x20c   :  { %v2931_v19 = vpop.f32.mrf.mxu0  ;;  %6154 = vmatprep.subr.bf16.mxu0 %v9923_v27  ;;  %v1228_v27 = vmax.f32 %v11355_v45, 0.0  ;;  %v9933_v45 = vld [vmem:[%s13251_s3 + $0x928] ss:$16 sps:$4 sm:$0xff]  }
 0x20d   :  { %2366 = vmatpush1.bf16.msra.mxu1 %v9918_v35 }
 0x20e   :  { %v11847_v11 = vpop.f32.mrf.mxu0  ;;  %9175 = vmatmul.mubr.msk.bf16.vlgmr.msra.gmra.mxu0 %vm653_vm1, %v11839_v4  ;;  %2488 = vmatprep.subr.bf16.mxu1 %v9926_v47  ;;  %v9935_v47 = vld [vmem:[%s13251_s3 + $0x92c] ss:$16 sps:$4 sm:$0xff]  }
 0x20f   :  { %6155 = vmatpush1.bf16.msra.mxu0 %v9921_v6  ;;  %6174 = vmatprep.mubr.bf16.mxu0 %v13282_v56  ;;  %v9930_v6 = vld [vmem:[%s13251_s3 + $0x180] ss:$16 sps:$4 sm:$0xff]   ;;  %v9941_v4 = vld [vmem:[%s13251_s3 + $0x90c] ss:$16 sps:$4 sm:$0xff]  }
 0x210   :  { %8884 = vmatmul.mubr.msk.bf16.vlgmr.msra.gmra.mxu1 %vm653_vm1, %v10947_v7  ;;  %v11861_v35 = vpop.f32.mrf.mxu0  ;;  %6156 = vmatprep.subr.bf16.mxu0 %v9929_v5  ;;  %v9938_v7 = vld [vmem:[%s13251_s3 + $0x1e4] ss:$16 sps:$4 sm:$0xff]   ;;  %v11876_v5 = vpack.c.bf16 %v1228_v27, %v1228_v27  ;;  %v9939_v27 = vld [vmem:[%s13251_s3 + $0x908] ss:$16 sps:$4 sm:$0xff]  }
 0x211   :  { %2489 = vmatpush1.bf16.msra.mxu1 %v9924_v43  ;;  %2508 = vmatprep.mubr.bf16.mxu1 %v13282_v56 }
 0x212   :  { %v3055_v19 = vpop.f32.mrf.mxu0  ;;  %2490 = vmatprep.subr.bf16.mxu1 %v9932_v26  ;;  %13287 = vst [vmem:[#allocation11_spill] sm:$0xff] %v11876_v5  ;;  %v9936_v26 = vld [vmem:[%s13251_s3 + $0x1e0] ss:$16 sps:$4 sm:$0xff]  }
 0x213   :  { %6157 = vmatpush1.bf16.msra.mxu0 %v9927_v34  ;;  %v9944_v34 = vld [vmem:[%s13251_s3 + $0x1c4] ss:$16 sps:$4 sm:$0xff]  }
 0x214   :  { %v3056_v43 = vpop.f32.mrf.mxu0  ;;  %6279 = vmatprep.subr.bf16.mxu0 %v9935_v47  ;;  %v1229_v47 = vmax.f32 %v11369_v24, 0.0  ;;  %v9945_v24 = vld [vmem:[%s13251_s3 + $0x968] ss:$16 sps:$4 sm:$0xff]  }
 0x215   :  { %2491 = vmatpush1.bf16.msra.mxu1 %v9930_v6 }
 0x216   :  { %v11884_v19 = vpop.f32.mrf.mxu0  ;;  %9185 = vmatmul.mubr.msk.bf16.vlgmr.msra.gmra.mxu0 %vm653_vm1, %v11876_v5  ;;  %2613 = vmatprep.subr.bf16.mxu1 %v9938_v7  ;;  %v9947_v7 = vld [vmem:[%s13251_s3 + $0x96c] ss:$16 sps:$4 sm:$0xff]  }
 0x217   :  { %6280 = vmatpush1.bf16.msra.mxu0 %v9933_v45  ;;  %6299 = vmatprep.mubr.bf16.mxu0 %v13282_v56  ;;  %v9942_v45 = vld [vmem:[%s13251_s3 + $0x1c0] ss:$16 sps:$4 sm:$0xff]   ;;  %v9953_v5 = vld [vmem:[%s13251_s3 + $0x94c] ss:$16 sps:$4 sm:$0xff]  }
 0x218   :  { %8894 = vmatmul.mubr.msk.bf16.vlgmr.msra.gmra.mxu1 %vm653_vm1, %v10972_v25  ;;  %v11898_v6 = vpop.f32.mrf.mxu0  ;;  %6281 = vmatprep.subr.bf16.mxu0 %v9941_v4  ;;  %v9950_v25 = vld [vmem:[%s13251_s3 + $0x224] ss:$16 sps:$4 sm:$0xff]   ;;  %v11913_v4 = vpack.c.bf16 %v1229_v47, %v1229_v47  ;;  %v9951_v47 = vld [vmem:[%s13251_s3 + $0x948] ss:$16 sps:$4 sm:$0xff]  }
 0x219   :  { %2614 = vmatpush1.bf16.msra.mxu1 %v9936_v26  ;;  %2633 = vmatprep.mubr.bf16.mxu1 %v13282_v56 }
 0x21a   :  { %v3180_v43 = vpop.f32.mrf.mxu0  ;;  %2615 = vmatprep.subr.bf16.mxu1 %v9944_v34  ;;  %13288 = vst [vmem:[#allocation12_spill] sm:$0xff] %v11913_v4  ;;  %v9948_v34 = vld [vmem:[%s13251_s3 + $0x220] ss:$16 sps:$4 sm:$0xff]  }
 0x21b   :  { %6282 = vmatpush1.bf16.msra.mxu0 %v9939_v27  ;;  %v9956_v27 = vld [vmem:[%s13251_s3 + $0x204] ss:$16 sps:$4 sm:$0xff]  }
 0x21c   :  { %v3181_v26 = vpop.f32.mrf.mxu0  ;;  %6404 = vmatprep.subr.bf16.mxu0 %v9947_v7  ;;  %v1230_v7 = vmax.f32 %v11383_v30, 0.0  ;;  %v9957_v30 = vld [vmem:[%s13251_s3 + $0x9a8] ss:$16 sps:$4 sm:$0xff]  }
 0x21d   :  { %2616 = vmatpush1.bf16.msra.mxu1 %v9942_v45 }
 0x21e   :  { %v11921_v43 = vpop.f32.mrf.mxu0  ;;  %9195 = vmatmul.mubr.msk.bf16.vlgmr.msra.gmra.mxu0 %vm653_vm1, %v11913_v4  ;;  %2738 = vmatprep.subr.bf16.mxu1 %v9950_v25  ;;  %v9959_v25 = vld [vmem:[%s13251_s3 + $0x9ac] ss:$16 sps:$4 sm:$0xff]  }
 0x21f   :  { %6405 = vmatpush1.bf16.msra.mxu0 %v9945_v24  ;;  %6424 = vmatprep.mubr.bf16.mxu0 %v13282_v56  ;;  %v9954_v24 = vld [vmem:[%s13251_s3 + $0x200] ss:$16 sps:$4 sm:$0xff]   ;;  %v9965_v4 = vld [vmem:[%s13251_s3 + $0x98c] ss:$16 sps:$4 sm:$0xff]  }
 0x220   :  { %8904 = vmatmul.mubr.msk.bf16.vlgmr.msra.gmra.mxu1 %vm653_vm1, %v10999_v49  ;;  %v11935_v45 = vpop.f32.mrf.mxu0  ;;  %6406 = vmatprep.subr.bf16.mxu0 %v9953_v5  ;;  %v9962_v49 = vld [vmem:[%s13251_s3 + $0x264] ss:$16 sps:$4 sm:$0xff]   ;;  %v11950_v5 = vpack.c.bf16 %v1230_v7, %v1230_v7  ;;  %v9963_v7 = vld [vmem:[%s13251_s3 + $0x988] ss:$16 sps:$4 sm:$0xff]  }
 0x221   :  { %2739 = vmatpush1.bf16.msra.mxu1 %v9948_v34  ;;  %2758 = vmatprep.mubr.bf16.mxu1 %v13282_v56 }
 0x222   :  { %v3305_v26 = vpop.f32.mrf.mxu0  ;;  %2740 = vmatprep.subr.bf16.mxu1 %v9956_v27  ;;  %13289 = vst [vmem:[#allocation13_spill] sm:$0xff] %v11950_v5  ;;  %v9960_v27 = vld [vmem:[%s13251_s3 + $0x260] ss:$16 sps:$4 sm:$0xff]  }
 0x223   :  { %6407 = vmatpush1.bf16.msra.mxu0 %v9951_v47  ;;  %v9968_v47 = vld [vmem:[%s13251_s3 + $0x244] ss:$16 sps:$4 sm:$0xff]  }
 0x224   :  { %v3306_v34 = vpop.f32.mrf.mxu0  ;;  %6529 = vmatprep.subr.bf16.mxu0 %v9959_v25  ;;  %v1231_v25 = vmax.f32 %v11395_v52, 0.0  ;;  %v9969_v52 = vld [vmem:[%s13251_s3 + $0x9e8] ss:$16 sps:$4 sm:$0xff]  }
 0x225   :  { %2741 = vmatpush1.bf16.msra.mxu1 %v9954_v24 }
 0x226   :  { %v11958_v26 = vpop.f32.mrf.mxu0  ;;  %9205 = vmatmul.mubr.msk.bf16.vlgmr.msra.gmra.mxu0 %vm653_vm1, %v11950_v5  ;;  %2863 = vmatprep.subr.bf16.mxu1 %v9962_v49  ;;  %v9971_v49 = vld [vmem:[%s13251_s3 + $0x9ec] ss:$16 sps:$4 sm:$0xff]  }
 0x227   :  { %6530 = vmatpush1.bf16.msra.mxu0 %v9957_v30  ;;  %6549 = vmatprep.mubr.bf16.mxu0 %v13282_v56  ;;  %v9966_v30 = vld [vmem:[%s13251_s3 + $0x240] ss:$16 sps:$4 sm:$0xff]   ;;  %v9977_v5 = vld [vmem:[%s13251_s3 + $0x9cc] ss:$16 sps:$4 sm:$0xff]  }
 0x228   :  { %8914 = vmatmul.mubr.msk.bf16.vlgmr.msra.gmra.mxu1 %vm653_vm1, %v11026_v14  ;;  %v11972_v24 = vpop.f32.mrf.mxu0  ;;  %6531 = vmatprep.subr.bf16.mxu0 %v9965_v4  ;;  %v9974_v14 = vld [vmem:[%s13251_s3 + $0x2a4] ss:$16 sps:$4 sm:$0xff]   ;;  %v11987_v4 = vpack.c.bf16 %v1231_v25, %v1231_v25  ;;  %v9975_v25 = vld [vmem:[%s13251_s3 + $0x9c8] ss:$16 sps:$4 sm:$0xff]  }
 0x229   :  { %2864 = vmatpush1.bf16.msra.mxu1 %v9960_v27  ;;  %2883 = vmatprep.mubr.bf16.mxu1 %v13282_v56 }
 0x22a   :  { %v3430_v34 = vpop.f32.mrf.mxu0  ;;  %2865 = vmatprep.subr.bf16.mxu1 %v9968_v47  ;;  %13290 = vst [vmem:[#allocation14_spill] sm:$0xff] %v11987_v4  ;;  %v9972_v47 = vld [vmem:[%s13251_s3 + $0x2a0] ss:$16 sps:$4 sm:$0xff]  }
 0x22b   :  { %6532 = vmatpush1.bf16.msra.mxu0 %v9963_v7  ;;  %v9980_v7 = vld [vmem:[%s13251_s3 + $0x284] ss:$16 sps:$4 sm:$0xff]  }
 0x22c   :  { %v3431_v27 = vpop.f32.mrf.mxu0  ;;  %6654 = vmatprep.subr.bf16.mxu0 %v9971_v49  ;;  %v1232_v49 = vmax.f32 %v11409_v60, 0.0  ;;  %v9981_v60 = vld [vmem:[%s13251_s3 + $0xa28] ss:$16 sps:$4 sm:$0xff]  }
 0x22d   :  { %2866 = vmatpush1.bf16.msra.mxu1 %v9966_v30 }
 0x22e   :  { %v11995_v34 = vpop.f32.mrf.mxu0  ;;  %9215 = vmatmul.mubr.msk.bf16.vlgmr.msra.gmra.mxu0 %vm653_vm1, %v11987_v4  ;;  %2988 = vmatprep.subr.bf16.mxu1 %v9974_v14  ;;  %v9983_v14 = vld [vmem:[%s13251_s3 + $0xa2c] ss:$16 sps:$4 sm:$0xff]  }
 0x22f   :  { %6655 = vmatpush1.bf16.msra.mxu0 %v9969_v52  ;;  %6674 = vmatprep.mubr.bf16.mxu0 %v13282_v56  ;;  %v9978_v52 = vld [vmem:[%s13251_s3 + $0x280] ss:$16 sps:$4 sm:$0xff]   ;;  %v9989_v4 = vld [vmem:[%s13251_s3 + $0xa0c] ss:$16 sps:$4 sm:$0xff]  }
 0x230   :  { %8924 = vmatmul.mubr.msk.bf16.vlgmr.msra.gmra.mxu1 %vm653_vm1, %v11054_v37  ;;  %v12009_v30 = vpop.f32.mrf.mxu0  ;;  %6656 = vmatprep.subr.bf16.mxu0 %v9977_v5  ;;  %v9986_v37 = vld [vmem:[%s13251_s3 + $0x2e4] ss:$16 sps:$4 sm:$0xff]   ;;  %v12024_v5 = vpack.c.bf16 %v1232_v49, %v1232_v49  ;;  %v9987_v49 = vld [vmem:[%s13251_s3 + $0xa08] ss:$16 sps:$4 sm:$0xff]  }
 0x231   :  { %2989 = vmatpush1.bf16.msra.mxu1 %v9972_v47  ;;  %3008 = vmatprep.mubr.bf16.mxu1 %v13282_v56 }
 0x232   :  { %v3555_v27 = vpop.f32.mrf.mxu0  ;;  %2990 = vmatprep.subr.bf16.mxu1 %v9980_v7  ;;  %13291 = vst [vmem:[#allocation15_spill] sm:$0xff] %v12024_v5  ;;  %v9984_v7 = vld [vmem:[%s13251_s3 + $0x2e0] ss:$16 sps:$4 sm:$0xff]  }
 0x233   :  { %6657 = vmatpush1.bf16.msra.mxu0 %v9975_v25  ;;  %v9992_v25 = vld [vmem:[%s13251_s3 + $0x2c4] ss:$16 sps:$4 sm:$0xff]  }
 0x234   :  { %v3556_v47 = vpop.f32.mrf.mxu0  ;;  %6779 = vmatprep.subr.bf16.mxu0 %v9983_v14  ;;  %v1233_v14 = vmax.f32 %v11421_v10, 0.0  ;;  %v9993_v10 = vld [vmem:[%s13251_s3 + $0xa68] ss:$16 sps:$4 sm:$0xff]  }
 0x235   :  { %2991 = vmatpush1.bf16.msra.mxu1 %v9978_v52 }
 0x236   :  { %v12032_v27 = vpop.f32.mrf.mxu0  ;;  %9225 = vmatmul.mubr.msk.bf16.vlgmr.msra.gmra.mxu0 %vm653_vm1, %v12024_v5  ;;  %3113 = vmatprep.subr.bf16.mxu1 %v9986_v37  ;;  %v9995_v37 = vld [vmem:[%s13251_s3 + $0xa6c] ss:$16 sps:$4 sm:$0xff]  }
 0x237   :  { %6780 = vmatpush1.bf16.msra.mxu0 %v9981_v60  ;;  %6799 = vmatprep.mubr.bf16.mxu0 %v13282_v56  ;;  %v9990_v60 = vld [vmem:[%s13251_s3 + $0x2c0] ss:$16 sps:$4 sm:$0xff]   ;;  %v10001_v5 = vld [vmem:[%s13251_s3 + $0xa4c] ss:$16 sps:$4 sm:$0xff]  }
 0x238   :  { %8934 = vmatmul.mubr.msk.bf16.vlgmr.msra.gmra.mxu1 %vm653_vm1, %v11082_v8  ;;  %v12046_v52 = vpop.f32.mrf.mxu0  ;;  %6781 = vmatprep.subr.bf16.mxu0 %v9989_v4  ;;  %v9998_v8 = vld [vmem:[%s13251_s3 + $0x324] ss:$16 sps:$4 sm:$0xff]   ;;  %v12061_v4 = vpack.c.bf16 %v1233_v14, %v1233_v14  ;;  %v9999_v14 = vld [vmem:[%s13251_s3 + $0xa48] ss:$16 sps:$4 sm:$0xff]  }
 0x239   :  { %3114 = vmatpush1.bf16.msra.mxu1 %v9984_v7  ;;  %3133 = vmatprep.mubr.bf16.mxu1 %v13282_v56 }
 0x23a   :  { %v3680_v47 = vpop.f32.mrf.mxu0  ;;  %3115 = vmatprep.subr.bf16.mxu1 %v9992_v25  ;;  %13292 = vst [vmem:[#allocation16_spill] sm:$0xff] %v12061_v4  ;;  %v9996_v25 = vld [vmem:[%s13251_s3 + $0x320] ss:$16 sps:$4 sm:$0xff]  }
 0x23b   :  { %6782 = vmatpush1.bf16.msra.mxu0 %v9987_v49  ;;  %v10004_v49 = vld [vmem:[%s13251_s3 + $0x304] ss:$16 sps:$4 sm:$0xff]  }
 0x23c   :  { %v3681_v7 = vpop.f32.mrf.mxu0  ;;  %6904 = vmatprep.subr.bf16.mxu0 %v9995_v37  ;;  %v1234_v37 = vmax.f32 %v11435_v15, 0.0  ;;  %v10005_v15 = vld [vmem:[%s13251_s3 + $0xaa8] ss:$16 sps:$4 sm:$0xff]  }
 0x23d   :  { %3116 = vmatpush1.bf16.msra.mxu1 %v9990_v60 }
 0x23e   :  { %v12069_v47 = vpop.f32.mrf.mxu0  ;;  %9235 = vmatmul.mubr.msk.bf16.vlgmr.msra.gmra.mxu0 %vm653_vm1, %v12061_v4  ;;  %3238 = vmatprep.subr.bf16.mxu1 %v9998_v8  ;;  %v10007_v8 = vld [vmem:[%s13251_s3 + $0xaac] ss:$16 sps:$4 sm:$0xff]  }
 0x23f   :  { %6905 = vmatpush1.bf16.msra.mxu0 %v9993_v10  ;;  %6924 = vmatprep.mubr.bf16.mxu0 %v13282_v56  ;;  %v10002_v10 = vld [vmem:[%s13251_s3 + $0x300] ss:$16 sps:$4 sm:$0xff]   ;;  %v10013_v4 = vld [vmem:[%s13251_s3 + $0xa8c] ss:$16 sps:$4 sm:$0xff]  }
 0x240   :  { %8944 = vmatmul.mubr.msk.bf16.vlgmr.msra.gmra.mxu1 %vm653_vm1, %v11114_v58  ;;  %v12083_v60 = vpop.f32.mrf.mxu0  ;;  %6906 = vmatprep.subr.bf16.mxu0 %v10001_v5  ;;  %v10010_v58 = vld [vmem:[%s13251_s3 + $0x364] ss:$16 sps:$4 sm:$0xff]   ;;  %v12098_v5 = vpack.c.bf16 %v1234_v37, %v1234_v37  ;;  %v10011_v37 = vld [vmem:[%s13251_s3 + $0xa88] ss:$16 sps:$4 sm:$0xff]  }
 0x241   :  { %3239 = vmatpush1.bf16.msra.mxu1 %v9996_v25  ;;  %3258 = vmatprep.mubr.bf16.mxu1 %v13282_v56 }
 0x242   :  { %v3805_v7 = vpop.f32.mrf.mxu0  ;;  %3240 = vmatprep.subr.bf16.mxu1 %v10004_v49  ;;  %13293 = vst [vmem:[#allocation17_spill] sm:$0xff] %v12098_v5  ;;  %v10008_v49 = vld [vmem:[%s13251_s3 + $0x360] ss:$16 sps:$4 sm:$0xff]  }
 0x243   :  { %6907 = vmatpush1.bf16.msra.mxu0 %v9999_v14  ;;  %v10016_v14 = vld [vmem:[%s13251_s3 + $0x344] ss:$16 sps:$4 sm:$0xff]  }
 0x244   :  { %v3806_v25 = vpop.f32.mrf.mxu0  ;;  %7029 = vmatprep.subr.bf16.mxu0 %v10007_v8  ;;  %v1235_v8 = vmax.f32 %v11447_v33, 0.0  ;;  %v10017_v33 = vld [vmem:[%s13251_s3 + $0xae8] ss:$16 sps:$4 sm:$0xff]  }
 0x245   :  { %3241 = vmatpush1.bf16.msra.mxu1 %v10002_v10 }
 0x246   :  { %v12106_v7 = vpop.f32.mrf.mxu0  ;;  %9245 = vmatmul.mubr.msk.bf16.vlgmr.msra.gmra.mxu0 %vm653_vm1, %v12098_v5  ;;  %3363 = vmatprep.subr.bf16.mxu1 %v10010_v58  ;;  %v10019_v58 = vld [vmem:[%s13251_s3 + $0xaec] ss:$16 sps:$4 sm:$0xff]  }
 0x247   :  { %7030 = vmatpush1.bf16.msra.mxu0 %v10005_v15  ;;  %7049 = vmatprep.mubr.bf16.mxu0 %v13282_v56  ;;  %v10014_v15 = vld [vmem:[%s13251_s3 + $0x340] ss:$16 sps:$4 sm:$0xff]   ;;  %v10025_v5 = vld [vmem:[%s13251_s3 + $0xacc] ss:$16 sps:$4 sm:$0xff]  }
 0x248   :  { %8954 = vmatmul.mubr.msk.bf16.vlgmr.msra.gmra.mxu1 %vm653_vm1, %v11146_v54  ;;  %v12120_v10 = vpop.f32.mrf.mxu0  ;;  %7031 = vmatprep.subr.bf16.mxu0 %v10013_v4  ;;  %v10022_v54 = vld [vmem:[%s13251_s3 + $0x3a4] ss:$16 sps:$4 sm:$0xff]   ;;  %v12135_v4 = vpack.c.bf16 %v1235_v8, %v1235_v8  ;;  %v10023_v8 = vld [vmem:[%s13251_s3 + $0xac8] ss:$16 sps:$4 sm:$0xff]  }
 0x249   :  { %3364 = vmatpush1.bf16.msra.mxu1 %v10008_v49  ;;  %3383 = vmatprep.mubr.bf16.mxu1 %v13282_v56 }
 0x24a   :  { %v3930_v25 = vpop.f32.mrf.mxu0  ;;  %3365 = vmatprep.subr.bf16.mxu1 %v10016_v14  ;;  %13294 = vst [vmem:[#allocation18_spill] sm:$0xff] %v12135_v4  ;;  %v10020_v14 = vld [vmem:[%s13251_s3 + $0x3a0] ss:$16 sps:$4 sm:$0xff]  }
 0x24b   :  { %7032 = vmatpush1.bf16.msra.mxu0 %v10011_v37  ;;  %v10028_v37 = vld [vmem:[%s13251_s3 + $0x384] ss:$16 sps:$4 sm:$0xff]  }
 0x24c   :  { %v3931_v49 = vpop.f32.mrf.mxu0  ;;  %7154 = vmatprep.subr.bf16.mxu0 %v10019_v58  ;;  %v1236_v58 = vmax.f32 %v11461_v46, 0.0  ;;  %v10029_v46 = vld [vmem:[%s13251_s3 + $0xb28] ss:$16 sps:$4 sm:$0xff]  }
 0x24d   :  { %3366 = vmatpush1.bf16.msra.mxu1 %v10014_v15 }
 0x24e   :  { %v12143_v25 = vpop.f32.mrf.mxu0  ;;  %9255 = vmatmul.mubr.msk.bf16.vlgmr.msra.gmra.mxu0 %vm653_vm1, %v12135_v4  ;;  %3488 = vmatprep.subr.bf16.mxu1 %v10022_v54  ;;  %v10031_v54 = vld [vmem:[%s13251_s3 + $0xb2c] ss:$16 sps:$4 sm:$0xff]  }
 0x24f   :  { %7155 = vmatpush1.bf16.msra.mxu0 %v10017_v33  ;;  %7174 = vmatprep.mubr.bf16.mxu0 %v13282_v56  ;;  %v10026_v33 = vld [vmem:[%s13251_s3 + $0x380] ss:$16 sps:$4 sm:$0xff]   ;;  %v10037_v4 = vld [vmem:[%s13251_s3 + $0xb0c] ss:$16 sps:$4 sm:$0xff]  }
 0x250   :  { %8964 = vmatmul.mubr.msk.bf16.vlgmr.msra.gmra.mxu1 %vm653_vm1, %v11178_v2  ;;  %v12157_v15 = vpop.f32.mrf.mxu0  ;;  %7156 = vmatprep.subr.bf16.mxu0 %v10025_v5  ;;  %v10034_v2 = vld [vmem:[%s13251_s3 + $0x3e4] ss:$16 sps:$4 sm:$0xff]   ;;  %v12172_v5 = vpack.c.bf16 %v1236_v58, %v1236_v58  ;;  %v10035_v58 = vld [vmem:[%s13251_s3 + $0xb08] ss:$16 sps:$4 sm:$0xff]  }
 0x251   :  { %3489 = vmatpush1.bf16.msra.mxu1 %v10020_v14  ;;  %3508 = vmatprep.mubr.bf16.mxu1 %v13282_v56 }
 0x252   :  { %v4055_v49 = vpop.f32.mrf.mxu0  ;;  %3490 = vmatprep.subr.bf16.mxu1 %v10028_v37  ;;  %13295 = vst [vmem:[#allocation19_spill] sm:$0xff] %v12172_v5  ;;  %v10032_v37 = vld [vmem:[%s13251_s3 + $0x3e0] ss:$16 sps:$4 sm:$0xff]  }
 0x253   :  { %7157 = vmatpush1.bf16.msra.mxu0 %v10023_v8  ;;  %v10040_v8 = vld [vmem:[%s13251_s3 + $0x3c4] ss:$16 sps:$4 sm:$0xff]  }
 0x254   :  { %v4056_v14 = vpop.f32.mrf.mxu0  ;;  %7279 = vmatprep.subr.bf16.mxu0 %v10031_v54  ;;  %v1237_v54 = vmax.f32 %v11473_v36, 0.0  ;;  %v10041_v36 = vld [vmem:[%s13251_s3 + $0xb68] ss:$16 sps:$4 sm:$0xff]  }
 0x255   :  { %3491 = vmatpush1.bf16.msra.mxu1 %v10026_v33 }
 0x256   :  { %v12180_v49 = vpop.f32.mrf.mxu0  ;;  %9265 = vmatmul.mubr.msk.bf16.vlgmr.msra.gmra.mxu0 %vm653_vm1, %v12172_v5  ;;  %3613 = vmatprep.subr.bf16.mxu1 %v10034_v2  ;;  %v10043_v2 = vld [vmem:[%s13251_s3 + $0xb6c] ss:$16 sps:$4 sm:$0xff]  }
 0x257   :  { %7280 = vmatpush1.bf16.msra.mxu0 %v10029_v46  ;;  %7299 = vmatprep.mubr.bf16.mxu0 %v13282_v56  ;;  %v10038_v46 = vld [vmem:[%s13251_s3 + $0x3c0] ss:$16 sps:$4 sm:$0xff]   ;;  %v10049_v5 = vld [vmem:[%s13251_s3 + $0xb4c] ss:$16 sps:$4 sm:$0xff]  }
 0x258   :  { %8974 = vmatmul.mubr.msk.bf16.vlgmr.msra.gmra.mxu1 %vm653_vm1, %v11210_v38  ;;  %v12194_v33 = vpop.f32.mrf.mxu0  ;;  %7281 = vmatprep.subr.bf16.mxu0 %v10037_v4  ;;  %v10046_v38 = vld [vmem:[%s13251_s3 + $0x424] ss:$16 sps:$4 sm:$0xff]   ;;  %v12209_v4 = vpack.c.bf16 %v1237_v54, %v1237_v54  ;;  %v10047_v54 = vld [vmem:[%s13251_s3 + $0xb48] ss:$16 sps:$4 sm:$0xff]  }
 0x259   :  { %3614 = vmatpush1.bf16.msra.mxu1 %v10032_v37  ;;  %3633 = vmatprep.mubr.bf16.mxu1 %v13282_v56 }
 0x25a   :  { %v4180_v14 = vpop.f32.mrf.mxu0  ;;  %3615 = vmatprep.subr.bf16.mxu1 %v10040_v8  ;;  %13296 = vst [vmem:[#allocation20_spill] sm:$0xff] %v12209_v4  ;;  %v10044_v8 = vld [vmem:[%s13251_s3 + $0x420] ss:$16 sps:$4 sm:$0xff]  }
 0x25b   :  { %7282 = vmatpush1.bf16.msra.mxu0 %v10035_v58  ;;  %v10052_v58 = vld [vmem:[%s13251_s3 + $0x404] ss:$16 sps:$4 sm:$0xff]  }
 0x25c   :  { %v4181_v37 = vpop.f32.mrf.mxu0  ;;  %7404 = vmatprep.subr.bf16.mxu0 %v10043_v2  ;;  %v1238_v2 = vmax.f32 %v11487_v55, 0.0  ;;  %v10053_v55 = vld [vmem:[%s13251_s3 + $0xba8] ss:$16 sps:$4 sm:$0xff]  }
 0x25d   :  { %3616 = vmatpush1.bf16.msra.mxu1 %v10038_v46 }
 0x25e   :  { %v12217_v14 = vpop.f32.mrf.mxu0  ;;  %9275 = vmatmul.mubr.msk.bf16.vlgmr.msra.gmra.mxu0 %vm653_vm1, %v12209_v4  ;;  %3738 = vmatprep.subr.bf16.mxu1 %v10046_v38  ;;  %v10055_v38 = vld [vmem:[%s13251_s3 + $0xbac] ss:$16 sps:$4 sm:$0xff]  }
 0x25f   :  { %7405 = vmatpush1.bf16.msra.mxu0 %v10041_v36  ;;  %7424 = vmatprep.mubr.bf16.mxu0 %v13282_v56  ;;  %v10050_v36 = vld [vmem:[%s13251_s3 + $0x400] ss:$16 sps:$4 sm:$0xff]   ;;  %v10061_v4 = vld [vmem:[%s13251_s3 + $0xb8c] ss:$16 sps:$4 sm:$0xff]  }
 0x260   :  { %8984 = vmatmul.mubr.msk.bf16.vlgmr.msra.gmra.mxu1 %vm653_vm1, %v11242_v29  ;;  %v12231_v46 = vpop.f32.mrf.mxu0  ;;  %7406 = vmatprep.subr.bf16.mxu0 %v10049_v5  ;;  %v10058_v29 = vld [vmem:[%s13251_s3 + $0x464] ss:$16 sps:$4 sm:$0xff]   ;;  %v12246_v5 = vpack.c.bf16 %v1238_v2, %v1238_v2  ;;  %v10059_v2 = vld [vmem:[%s13251_s3 + $0xb88] ss:$16 sps:$4 sm:$0xff]  }
 0x261   :  { %3739 = vmatpush1.bf16.msra.mxu1 %v10044_v8  ;;  %3758 = vmatprep.mubr.bf16.mxu1 %v13282_v56 }
 0x262   :  { %v4305_v37 = vpop.f32.mrf.mxu0  ;;  %3740 = vmatprep.subr.bf16.mxu1 %v10052_v58  ;;  %13297 = vst [vmem:[#allocation21_spill] sm:$0xff] %v12246_v5  ;;  %v10056_v58 = vld [vmem:[%s13251_s3 + $0x460] ss:$16 sps:$4 sm:$0xff]  }
 0x263   :  { %7407 = vmatpush1.bf16.msra.mxu0 %v10047_v54  ;;  %v10064_v54 = vld [vmem:[%s13251_s3 + $0x444] ss:$16 sps:$4 sm:$0xff]  }
 0x264   :  { %v4306_v8 = vpop.f32.mrf.mxu0  ;;  %7529 = vmatprep.subr.bf16.mxu0 %v10055_v38  ;;  %v1239_v38 = vmax.f32 %v11504_v42, 0.0  ;;  %v10065_v42 = vld [vmem:[%s13251_s3 + $0xbe8] ss:$16 sps:$4 sm:$0xff]  }
 0x265   :  { %3741 = vmatpush1.bf16.msra.mxu1 %v10050_v36 }
 0x266   :  { %v12254_v37 = vpop.f32.mrf.mxu0  ;;  %9285 = vmatmul.mubr.msk.bf16.vlgmr.msra.gmra.mxu0 %vm653_vm1, %v12246_v5  ;;  %3863 = vmatprep.subr.bf16.mxu1 %v10058_v29  ;;  %v10067_v29 = vld [vmem:[%s13251_s3 + $0xbec] ss:$16 sps:$4 sm:$0xff]  }
 0x267   :  { %7530 = vmatpush1.bf16.msra.mxu0 %v10053_v55  ;;  %7549 = vmatprep.mubr.bf16.mxu0 %v13282_v56  ;;  %v10062_v55 = vld [vmem:[%s13251_s3 + $0x440] ss:$16 sps:$4 sm:$0xff]   ;;  %v10073_v5 = vld [vmem:[%s13251_s3 + $0xbcc] ss:$16 sps:$4 sm:$0xff]  }
 0x268   :  { %8994 = vmatmul.mubr.msk.bf16.vlgmr.msra.gmra.mxu1 %vm653_vm1, %v11274_v41  ;;  %v12268_v36 = vpop.f32.mrf.mxu0  ;;  %7531 = vmatprep.subr.bf16.mxu0 %v10061_v4  ;;  %v10070_v41 = vld [vmem:[%s13251_s3 + $0x4a4] ss:$16 sps:$4 sm:$0xff]   ;;  %v12283_v4 = vpack.c.bf16 %v1239_v38, %v1239_v38  ;;  %v10071_v38 = vld [vmem:[%s13251_s3 + $0xbc8] ss:$16 sps:$4 sm:$0xff]  }
 0x269   :  { %3864 = vmatpush1.bf16.msra.mxu1 %v10056_v58  ;;  %3883 = vmatprep.mubr.bf16.mxu1 %v13282_v56 }
 0x26a   :  { %v4430_v8 = vpop.f32.mrf.mxu0  ;;  %3865 = vmatprep.subr.bf16.mxu1 %v10064_v54  ;;  %13298 = vst [vmem:[#allocation22_spill] sm:$0xff] %v12283_v4  ;;  %v10068_v54 = vld [vmem:[%s13251_s3 + $0x4a0] ss:$16 sps:$4 sm:$0xff]  }
 0x26b   :  { %7532 = vmatpush1.bf16.msra.mxu0 %v10059_v2  ;;  %v10076_v2 = vld [vmem:[%s13251_s3 + $0x484] ss:$16 sps:$4 sm:$0xff]  }
 0x26c   :  { %v4431_v58 = vpop.f32.mrf.mxu0  ;;  %7654 = vmatprep.subr.bf16.mxu0 %v10067_v29  ;;  %v1240_v29 = vmax.f32 %v11518_v22, 0.0  ;;  %v10077_v22 = vld [vmem:[%s13251_s3 + $0xc28] ss:$16 sps:$4 sm:$0xff]  }
 0x26d   :  { %3866 = vmatpush1.bf16.msra.mxu1 %v10062_v55 }
 0x26e   :  { %v12291_v8 = vpop.f32.mrf.mxu0  ;;  %9295 = vmatmul.mubr.msk.bf16.vlgmr.msra.gmra.mxu0 %vm653_vm1, %v12283_v4  ;;  %3988 = vmatprep.subr.bf16.mxu1 %v10070_v41  ;;  %v10079_v41 = vld [vmem:[%s13251_s3 + $0xc2c] ss:$16 sps:$4 sm:$0xff]  }
 0x26f   :  { %7655 = vmatpush1.bf16.msra.mxu0 %v10065_v42  ;;  %7674 = vmatprep.mubr.bf16.mxu0 %v13282_v56  ;;  %v10074_v42 = vld [vmem:[%s13251_s3 + $0x480] ss:$16 sps:$4 sm:$0xff]   ;;  %v10085_v4 = vld [vmem:[%s13251_s3 + $0xc0c] ss:$16 sps:$4 sm:$0xff]  }
 0x270   :  { %9004 = vmatmul.mubr.msk.bf16.vlgmr.msra.gmra.mxu1 %vm653_vm1, %v11306_v59  ;;  %v12305_v55 = vpop.f32.mrf.mxu0  ;;  %7656 = vmatprep.subr.bf16.mxu0 %v10073_v5  ;;  %v10082_v59 = vld [vmem:[%s13251_s3 + $0x4e4] ss:$16 sps:$4 sm:$0xff]   ;;  %v12320_v5 = vpack.c.bf16 %v1240_v29, %v1240_v29  ;;  %v10083_v29 = vld [vmem:[%s13251_s3 + $0xc08] ss:$16 sps:$4 sm:$0xff]  }
 0x271   :  { %3989 = vmatpush1.bf16.msra.mxu1 %v10068_v54  ;;  %4008 = vmatprep.mubr.bf16.mxu1 %v13282_v56 }
 0x272   :  { %v4555_v58 = vpop.f32.mrf.mxu0  ;;  %3990 = vmatprep.subr.bf16.mxu1 %v10076_v2  ;;  %13299 = vst [vmem:[#allocation23_spill] sm:$0xff] %v12320_v5  ;;  %v10080_v2 = vld [vmem:[%s13251_s3 + $0x4e0] ss:$16 sps:$4 sm:$0xff]  }
 0x273   :  { %7657 = vmatpush1.bf16.msra.mxu0 %v10071_v38  ;;  %v10088_v38 = vld [vmem:[%s13251_s3 + $0x4c4] ss:$16 sps:$4 sm:$0xff]  }
 0x274   :  { %v4556_v54 = vpop.f32.mrf.mxu0  ;;  %7779 = vmatprep.subr.bf16.mxu0 %v10079_v41  ;;  %v1241_v41 = vmax.f32 %v11530_v39, 0.0 }
 0x275   :  { %3991 = vmatpush1.bf16.msra.mxu1 %v10074_v42  ;;  %v10091_v54 = vld [vmem:[%s13251_s3 + $0x524] ss:$16 sps:$4 sm:$0xff]  }
 0x276   :  { %v12328_v58 = vpop.f32.mrf.mxu0  ;;  %9305 = vmatmul.mubr.msk.bf16.vlgmr.msra.gmra.mxu0 %vm653_vm1, %v12320_v5  ;;  %4113 = vmatprep.subr.bf16.mxu1 %v10082_v59  ;;  %v10086_v59 = vld [vmem:[%s13251_s3 + $0x4c0] ss:$16 sps:$4 sm:$0xff]   ;;  %v12351_v39 = vpack.c.bf16 %v1241_v41, %v1241_v41 }
 0x277   :  { %7780 = vmatpush1.bf16.msra.mxu0 %v10077_v22  ;;  %7799 = vmatprep.mubr.bf16.mxu0 %v13282_v56  ;;  %v10092_v41 = vld [vmem:[%s13251_s3 + $0x500] ss:$16 sps:$4 sm:$0xff]  }
 0x278   :  { %9014 = vmatmul.mubr.msk.bf16.vlgmr.msra.gmra.mxu1 %vm653_vm1, %v11336_v16  ;;  %v12342_v42 = vpop.f32.mrf.mxu0  ;;  %7781 = vmatprep.subr.bf16.mxu0 %v10085_v4  ;;  %13301 = vst [vmem:[#allocation25_spill] sm:$0xff] %v12351_v39  ;;  %v10089_v4 = vld [vmem:[%s13251_s3 + $0x520] ss:$16 sps:$4 sm:$0xff]  }
 0x279   :  { %13300 = vst [vmem:[#allocation24_spill] sm:$0xff] %v12342_v42  ;;  %4114 = vmatpush1.bf16.msra.mxu1 %v10080_v2  ;;  %4133 = vmatprep.mubr.bf16.mxu1 %v13282_v56  ;;  %v10101_v5 = vld [vmem:[%s13251_s3 + $0x5a0] ss:$16 sps:$4 sm:$0xff]  }
 0x27a   :  { %v4680_v22 = vpop.f32.mrf.mxu0  ;;  %4115 = vmatprep.subr.bf16.mxu1 %v10088_v38  ;;  %v10094_v38 = vld [vmem:[%s13251_s3 + $0x504] ss:$16 sps:$4 sm:$0xff]  }
 0x27b   :  { %7782 = vmatpush1.bf16.msra.mxu0 %v10083_v29  ;;  %v10097_v22 = vld [vmem:[%s13251_s3 + $0x564] ss:$16 sps:$4 sm:$0xff]  }
 0x27c   :  { %v4681_v16 = vpop.f32.mrf.mxu0 }
 0x27d   :  { %4116 = vmatpush1.bf16.msra.mxu1 %v10086_v59 }
 0x27e   :  { %v12356_v2 = vpop.f32.mrf.mxu0  ;;  %9315 = vmatmul.mubr.msk.bf16.vlgmr.msra.gmra.mxu0 %vm653_vm1, %v12351_v39  ;;  %4238 = vmatprep.subr.bf16.mxu1 %v10091_v54 }
 0x27f   :  { %13302 = vst [vmem:[#allocation26_spill] sm:$0xff] %v12356_v2 }
 0x280   :  { %9024 = vmatmul.mubr.msk.bf16.vlgmr.msra.gmra.mxu1 %vm653_vm1, %v11366_v31  ;;  %v12365_v29 = vpop.f32.mrf.mxu0  ;;  %v10095_v31 = vld [vmem:[%s13251_s3 + $0x560] ss:$16 sps:$4 sm:$0xff]  }
 0x281   :  { %13303 = vst [vmem:[#allocation27_spill] sm:$0xff] %v12365_v29  ;;  %4239 = vmatpush1.bf16.msra.mxu1 %v10089_v4  ;;  %4258 = vmatprep.mubr.bf16.mxu1 %v13282_v56  ;;  %v10100_v4 = vld [vmem:[%s13251_s3 + $0x544] ss:$16 sps:$4 sm:$0xff]   ;;  %v10107_v29 = vld [vmem:[%s13251_s3 + $0x5e0] ss:$16 sps:$4 sm:$0xff]  }
 0x282   :  { %v4805_v59 = vpop.f32.mrf.mxu0  ;;  %4240 = vmatprep.subr.bf16.mxu1 %v10094_v38 }
 0x283   :  { %v10098_v59 = vld [vmem:[%s13251_s3 + $0x540] ss:$16 sps:$4 sm:$0xff]  }
 0x284   :  { %v4806_v54 = vpop.f32.mrf.mxu0 }
 0x285   :  { %4241 = vmatpush1.bf16.msra.mxu1 %v10092_v41  ;;  %v10196_v41 = vld [vmem:[%s13253_s5 + $0x174] ss:$8 sps:$4 sm:$0xff]  }
 0x286   :  { %v12377_v16 = vpop.f32.mrf.mxu0  ;;  %4363 = vmatprep.subr.bf16.mxu1 %v10097_v22  ;;  %v10194_v22 = vld [vmem:[%s13253_s5 + $0x170] ss:$8 sps:$4 sm:$0xff]   ;;  %8471 = vmatprep.subr.bf16.mxu0 %v10196_v41 }
 0x287   :  { %13304 = vst [vmem:[#allocation28_spill] sm:$0xff] %v12377_v16  ;;  %8472 = vmatpush1.bf16.msra.mxu0 %v10194_v22  ;;  %v10208_v22 = vld [vmem:[%s13253_s5 + $0x154] ss:$8 sps:$4 sm:$0xff]  }
 0x288   :  { %9034 = vmatmul.mubr.msk.bf16.vlgmr.msra.gmra.mxu1 %vm653_vm1, %v11392_v62  ;;  %v12384_v38 = vpop.f32.mrf.mxu0  ;;  %v10103_v62 = vld [vmem:[%s13251_s3 + $0x5a4] ss:$16 sps:$4 sm:$0xff]  }
 0x289   :  { %13305 = vst [vmem:[#allocation29_spill] sm:$0xff] %v12384_v38  ;;  %4364 = vmatpush1.bf16.msra.mxu1 %v10095_v31  ;;  %4383 = vmatprep.mubr.bf16.mxu1 %v13282_v56  ;;  %v10202_v31 = vld [vmem:[%s13253_s5 + $0x164] ss:$8 sps:$4 sm:$0xff]  }
 0x28a   :  { %v4930_v54 = vpop.f32.mrf.mxu0  ;;  %4365 = vmatprep.subr.bf16.mxu1 %v10100_v4  ;;  %v10200_v4 = vld [vmem:[%s13253_s5 + $0x160] ss:$8 sps:$4 sm:$0xff]   ;;  %8473 = vmatprep.subr.bf16.mxu0 %v10202_v31  ;;  %v10206_v31 = vld [vmem:[%s13253_s5 + $0x150] ss:$8 sps:$4 sm:$0xff]  }
 0x28b   :  { %8474 = vmatpush1.bf16.msra.mxu0 %v10200_v4 }
 0x28c   :  { %v4931_v39 = vpop.f32.mrf.mxu0  ;;  %8475 = vmatprep.subr.bf16.mxu0 %v10208_v22 }
 0x28d   :  { %4366 = vmatpush1.bf16.msra.mxu1 %v10098_v59  ;;  %v10106_v39 = vld [vmem:[%s13251_s3 + $0x584] ss:$16 sps:$4 sm:$0xff]  }
 0x28e   :  { %v12408_v54 = vpop.f32.mrf.mxu0  ;;  %4488 = vmatprep.subr.bf16.mxu1 %v10103_v62  ;;  %v10104_v62 = vld [vmem:[%s13251_s3 + $0x580] ss:$16 sps:$4 sm:$0xff]  }
 0x28f   :  { %13306 = vst [vmem:[#allocation30_spill] sm:$0xff] %v12408_v54  ;;  %8476 = vmatpush1.bf16.msra.mxu0 %v10206_v31  ;;  %v10214_v54 = vld [vmem:[%s13253_s5 + $0x144] ss:$8 sps:$4 sm:$0xff]   ;;  %v10220_v31 = vld [vmem:[%s13253_s5 + $0x134] ss:$8 sps:$4 sm:$0xff]  }
 0x290   :  { %v1760_v41 = vpop.f32.mrf.mxu1  ;;  %9044 = vmatmul.mubr.msk.bf16.vlgmr.msra.gmra.mxu1 %vm653_vm1, %v11418_v51  ;;  %v12415_v59 = vpop.f32.mrf.mxu0  ;;  %v10109_v51 = vld [vmem:[%s13251_s3 + $0x5e4] ss:$16 sps:$4 sm:$0xff]   ;;  %8477 = vmatprep.subr.bf16.mxu0 %v10214_v54  ;;  %v10218_v54 = vld [vmem:[%s13253_s5 + $0x130] ss:$8 sps:$4 sm:$0xff]  }
 0x291   :  { %13307 = vst [vmem:[#allocation31_spill] sm:$0xff] %v12415_v59  ;;  %4489 = vmatpush1.bf16.msra.mxu1 %v10101_v5  ;;  %4508 = vmatprep.mubr.bf16.mxu1 %v13282_v56 }
 0x292   :  { %v1762_v4 = vpop.f32.mrf.mxu1  ;;  %v5055_v38 = vpop.f32.mrf.mxu0  ;;  %4490 = vmatprep.subr.bf16.mxu1 %v10106_v39 }
 0x293   :  { %v10212_v38 = vld [vmem:[%s13253_s5 + $0x140] ss:$8 sps:$4 sm:$0xff]  }
 0x294   :  { %v1764_v5 = vpop.f32.mrf.mxu1  ;;  %v5056_v59 = vpop.f32.mrf.mxu0  ;;  %8478 = vmatpush1.bf16.msra.mxu0 %v10212_v38  ;;  %v10115_v38 = vld [vmem:[%s13251_s3 + $0x624] ss:$16 sps:$4 sm:$0xff]  }
 0x295   :  { %4491 = vmatpush1.bf16.msra.mxu1 %v10104_v62  ;;  %v10112_v59 = vld [vmem:[%s13251_s3 + $0x5c4] ss:$16 sps:$4 sm:$0xff]   ;;  %8479 = vmatprep.subr.bf16.mxu0 %v10220_v31 }
 0x296   :  { %v1765_v39 = vpop.f32.mrf.mxu1  ;;  %v12439_v16 = vpop.f32.mrf.mxu0  ;;  %4613 = vmatprep.subr.bf16.mxu1 %v10109_v51  ;;  %v10110_v51 = vld [vmem:[%s13251_s3 + $0x5c0] ss:$16 sps:$4 sm:$0xff]   ;;  %v10118_v31 = vld [vmem:[%s13251_s3 + $0x604] ss:$16 sps:$4 sm:$0xff]  }
 0x297   :  { %13308 = vst [vmem:[#allocation32_spill] sm:$0xff] %v12439_v16  ;;  %v10113_v16 = vld [vmem:[%s13251_s3 + $0x620] ss:$16 sps:$4 sm:$0xff]  }
 0x298   :  { %v12444_v22 = vpop.f32.mrf.mxu1  ;;  %9054 = vmatmul.mubr.msk.bf16.vlgmr.msra.gmra.mxu1 %vm653_vm1, %v11444_v44  ;;  %v12448_v62 = vpop.f32.mrf.mxu0  ;;  %8480 = vmatpush1.bf16.msra.mxu0 %v10218_v54 }
 0x299   :  { %13309 = vst [vmem:[#allocation33_spill] sm:$0xff] %v12448_v62  ;;  %4614 = vmatpush1.bf16.msra.mxu1 %v10107_v29  ;;  %4633 = vmatprep.mubr.bf16.mxu1 %v13282_v56  ;;  %v10226_v62 = vld [vmem:[%s13253_s5 + $0x124] ss:$8 sps:$4 sm:$0xff]  }
 0x29a   :  { %v12460_v5 = vpop.f32.mrf.mxu1  ;;  %v5180_v44 = vpop.f32.mrf.mxu0  ;;  %4615 = vmatprep.subr.bf16.mxu1 %v10112_v59  ;;  %v10224_v59 = vld [vmem:[%s13253_s5 + $0x120] ss:$8 sps:$4 sm:$0xff]   ;;  %8481 = vmatprep.subr.bf16.mxu0 %v10226_v62  ;;  %v10230_v62 = vld [vmem:[%s13253_s5 + $0x110] ss:$8 sps:$4 sm:$0xff]  }
 0x29c   :  { %v1805_v29 = vpop.f32.mrf.mxu1  ;;  %v5181_v39 = vpop.f32.mrf.mxu0  ;;  %8482 = vmatpush1.bf16.msra.mxu0 %v10224_v59 }
 0x29d   :  { %4616 = vmatpush1.bf16.msra.mxu1 %v10110_v51  ;;  %v10232_v29 = vld [vmem:[%s13253_s5 + $0x114] ss:$8 sps:$4 sm:$0xff]  }
 0x29e   :  { %v1806_v44 = vpop.f32.mrf.mxu1  ;;  %v12474_v42 = vpop.f32.mrf.mxu0  ;;  %4738 = vmatprep.subr.bf16.mxu1 %v10115_v38  ;;  %v10116_v38 = vld [vmem:[%s13251_s3 + $0x600] ss:$16 sps:$4 sm:$0xff]   ;;  %8483 = vmatprep.subr.bf16.mxu0 %v10232_v29 }
 0x29f   :  { %13310 = vst [vmem:[#allocation34_spill] sm:$0xff] %v12474_v42  ;;  %v10121_v44 = vld [vmem:[%s13251_s3 + $0x664] ss:$16 sps:$4 sm:$0xff]   ;;  %v10119_v42 = vld [vmem:[%s13251_s3 + $0x660] ss:$16 sps:$4 sm:$0xff]  }
 0x2a0   :  { %v1885_v54 = vpop.f32.mrf.mxu1  ;;  %9064 = vmatmul.mubr.msk.bf16.vlgmr.msra.gmra.mxu1 %vm653_vm1, %v11470_v21  ;;  %v12481_v51 = vpop.f32.mrf.mxu0  ;;  %8484 = vmatpush1.bf16.msra.mxu0 %v10230_v62  ;;  %v10244_v62 = vld [vmem:[%s13253_s5 + $0x1f4] ss:$8 sps:$4 sm:$0xff]  }
 0x2a1   :  { %13311 = vst [vmem:[#allocation35_spill] sm:$0xff] %v12481_v51  ;;  %v7808_v39 = vadd.f32 %v1885_v54, %v1760_v41  ;;  %4739 = vmatpush1.bf16.msra.mxu1 %v10113_v16  ;;  %4758 = vmatprep.mubr.bf16.mxu1 %v13282_v56  ;;  %v10238_v51 = vld [vmem:[%s13253_s5 + $0x104] ss:$8 sps:$4 sm:$0xff]  }
 0x2a2   :  { %v1887_v59 = vpop.f32.mrf.mxu1  ;;  %v5305_v21 = vpop.f32.mrf.mxu0  ;;  %4740 = vmatprep.subr.bf16.mxu1 %v10118_v31  ;;  %v10236_v31 = vld [vmem:[%s13253_s5 + $0x100] ss:$8 sps:$4 sm:$0xff]   ;;  %8485 = vmatprep.subr.bf16.mxu0 %v10238_v51  ;;  %v10242_v51 = vld [vmem:[%s13253_s5 + $0x1f0] ss:$8 sps:$4 sm:$0xff]  }
 0x2a3   :  { %v7856_v41 = vadd.f32 %v1887_v59, %v1762_v4  ;;  %v10124_v4 = vld [vmem:[%s13251_s3 + $0x644] ss:$16 sps:$4 sm:$0xff]   ;;  %v10122_v59 = vld [vmem:[%s13251_s3 + $0x640] ss:$16 sps:$4 sm:$0xff]  }
 0x2a4   :  { %v1889_v16 = vpop.f32.mrf.mxu1  ;;  %v5306_v54 = vpop.f32.mrf.mxu0  ;;  %8486 = vmatpush1.bf16.msra.mxu0 %v10236_v31  ;;  %v10250_v31 = vld [vmem:[%s13253_s5 + $0x1e4] ss:$8 sps:$4 sm:$0xff]  }
 0x2a5   :  { %4741 = vmatpush1.bf16.msra.mxu1 %v10116_v38  ;;  %8487 = vmatprep.subr.bf16.mxu0 %v10244_v62  ;;  %v10130_v62 = vld [vmem:[%s13251_s3 + $0x684] ss:$16 sps:$4 sm:$0xff]  }
 0x2a6   :  { %v1890_v21 = vpop.f32.mrf.mxu1  ;;  %v12505_v2 = vpop.f32.mrf.mxu0  ;;  %4863 = vmatprep.subr.bf16.mxu1 %v10121_v44 }
 0x2a7   :  { %v10125_v21 = vld [vmem:[%s13251_s3 + $0x6a0] ss:$16 sps:$4 sm:$0xff]  }
 0x2a8   :  { %v1926_v29 = vpop.f32.mrf.mxu1  ;;  %9074 = vmatmul.mubr.msk.bf16.vlgmr.msra.gmra.mxu1 %vm653_vm1, %v11501_v40  ;;  %v12512_v38 = vpop.f32.mrf.mxu0  ;;  %v10127_v40 = vld [vmem:[%s13251_s3 + $0x6a4] ss:$16 sps:$4 sm:$0xff]   ;;  %8488 = vmatpush2.bf16.msra.mxu0 %v10242_v51 }
 0x2a9   :  { %13312 = vst [vmem:[#allocation36_spill] sm:$0xff] %v12512_v38  ;;  %4864 = vmatpush1.bf16.msra.mxu1 %v10119_v42  ;;  %4883 = vmatprep.mubr.bf16.mxu1 %v13282_v56 }
 0x2aa   :  { %v1928_v44 = vpop.f32.mrf.mxu1  ;;  %v5430_v16 = vpop.f32.mrf.mxu0  ;;  %4865 = vmatprep.subr.bf16.mxu1 %v10124_v4  ;;  %v10248_v4 = vld [vmem:[%s13253_s5 + $0x1e0] ss:$8 sps:$4 sm:$0xff]   ;;  %8489 = vmatprep.subr.bf16.mxu0 %v10250_v31  ;;  %v10254_v31 = vld [vmem:[%s13253_s5 + $0x1d0] ss:$8 sps:$4 sm:$0xff]  }
 0x2ac   :  { %v1930_v42 = vpop.f32.mrf.mxu1  ;;  %v5431_v54 = vpop.f32.mrf.mxu0  ;;  %8490 = vmatpush2.bf16.msra.mxu0 %v10248_v4 }
 0x2ad   :  { %4866 = vmatpush1.bf16.msra.mxu1 %v10122_v59  ;;  %v10256_v42 = vld [vmem:[%s13253_s5 + $0x1d4] ss:$8 sps:$4 sm:$0xff]  }
 0x2ae   :  { %v1931_v16 = vpop.f32.mrf.mxu1  ;;  %v12536_v38 = vpop.f32.mrf.mxu0  ;;  %4988 = vmatprep.subr.bf16.mxu1 %v10127_v40  ;;  %v10128_v40 = vld [vmem:[%s13251_s3 + $0x680] ss:$16 sps:$4 sm:$0xff]   ;;  %8491 = vmatprep.subr.bf16.mxu0 %v10256_v42 }
 0x2af   :  { %13313 = vst [vmem:[#allocation37_spill] sm:$0xff] %v12536_v38  ;;  %v10133_v16 = vld [vmem:[%s13251_s3 + $0x6e4] ss:$16 sps:$4 sm:$0xff]  }
 0x2b0   :  { %v2010_v51 = vpop.f32.mrf.mxu1  ;;  %9084 = vmatmul.mubr.msk.bf16.vlgmr.msra.gmra.mxu1 %vm653_vm1, %v11527_v17  ;;  %v12543_v59 = vpop.f32.mrf.mxu0  ;;  %8492 = vmatpush2.bf16.msra.mxu0 %v10254_v31  ;;  %v7904_v31 = vadd.f32 %v1926_v29, %v12444_v22 }
 0x2b1   :  { %13314 = vst [vmem:[#allocation38_spill] sm:$0xff] %v12543_v59  ;;  %v12548_v54 = vadd.f32 %v7808_v39, %v2010_v51  ;;  %4989 = vmatpush1.bf16.msra.mxu1 %v10125_v21  ;;  %5008 = vmatprep.mubr.bf16.mxu1 %v13282_v56  ;;  %v10262_v59 = vld [vmem:[%s13253_s5 + $0x1c4] ss:$8 sps:$4 sm:$0xff]  }
 0x2b2   :  { %v2012_v17 = vpop.f32.mrf.mxu1  ;;  %v5555_v4 = vpop.f32.mrf.mxu0  ;;  %4990 = vmatprep.subr.bf16.mxu1 %v10130_v62  ;;  %v10260_v62 = vld [vmem:[%s13253_s5 + $0x1c0] ss:$8 sps:$4 sm:$0xff]   ;;  %8493 = vmatprep.subr.bf16.mxu0 %v10262_v59 }
 0x2b3   :  { %v12560_v39 = vadd.f32 %v7856_v41, %v2012_v17  ;;  %v10131_v4 = vld [vmem:[%s13251_s3 + $0x6e0] ss:$16 sps:$4 sm:$0xff]   ;;  %v10136_v41 = vld [vmem:[%s13251_s3 + $0x6c4] ss:$16 sps:$4 sm:$0xff]  }
 0x2b4   :  { %v2014_v21 = vpop.f32.mrf.mxu1  ;;  %v5556_v51 = vpop.f32.mrf.mxu0  ;;  %8494 = vmatpush2.bf16.msra.mxu0 %v10260_v62  ;;  %v10134_v59 = vld [vmem:[%s13251_s3 + $0x6c0] ss:$16 sps:$4 sm:$0xff]  }
 0x2b5   :  { %4991 = vmatpush1.bf16.msra.mxu1 %v10128_v40  ;;  %v10139_v51 = vld [vmem:[%s13251_s3 + $0x724] ss:$16 sps:$4 sm:$0xff]  }
 0x2b6   :  { %v2015_v38 = vpop.f32.mrf.mxu1  ;;  %v12571_v42 = vpop.f32.mrf.mxu0  ;;  %5113 = vmatprep.subr.bf16.mxu1 %v10133_v16  ;;  %v7952_v16 = vadd.f32 %v1928_v44, %v12460_v5 }
 0x2b7   :  { %v10268_v38 = vld [vmem:[%s13253_s5 + $0x1b4] ss:$8 sps:$4 sm:$0xff]  }
 0x2b8   :  { %v2051_v40 = vpop.f32.mrf.mxu1  ;;  %9094 = vmatmul.mubr.msk.bf16.vlgmr.msra.gmra.mxu1 %vm653_vm1, %v11550_v63  ;;  %v12579_v17 = vpop.f32.mrf.mxu0  ;;  %v10266_v63 = vld [vmem:[%s13253_s5 + $0x1b0] ss:$8 sps:$4 sm:$0xff]   ;;  %8495 = vmatprep.subr.bf16.mxu0 %v10268_v38 }
 0x2b9   :  { %v7905_v21 = vadd.f32 %v7904_v31, %v2051_v40  ;;  %5114 = vmatpush1.bf16.msra.mxu1 %v10131_v4  ;;  %5133 = vmatprep.mubr.bf16.mxu1 %v13282_v56  ;;  %v10274_v31 = vld [vmem:[%s13253_s5 + $0x1a4] ss:$8 sps:$4 sm:$0xff]  }
 0x2ba   :  { %v2053_v22 = vpop.f32.mrf.mxu1  ;;  %v5680_v29 = vpop.f32.mrf.mxu0  ;;  %5115 = vmatprep.subr.bf16.mxu1 %v10136_v41  ;;  %8496 = vmatpush2.bf16.msra.mxu0 %v10266_v63  ;;  %v10137_v41 = vld [vmem:[%s13251_s3 + $0x720] ss:$16 sps:$4 sm:$0xff]  }
 0x2bb   :  { %v7906_v5 = vadd.f32 %v7905_v21, %v11592_v3  ;;  %v7953_v44 = vadd.f32 %v7952_v16, %v2053_v22  ;;  %v10272_v3 = vld [vmem:[%s13253_s5 + $0x1a0] ss:$8 sps:$4 sm:$0xff]   ;;  %v10142_v21 = vld [vmem:[%s13251_s3 + $0x704] ss:$16 sps:$4 sm:$0xff]   ;;  %8497 = vmatprep.subr.bf16.mxu0 %v10274_v31 }
 0x2bc   :  { %v2055_v4 = vpop.f32.mrf.mxu1  ;;  %v5681_v62 = vpop.f32.mrf.mxu0  ;;  %v10280_v22 = vld [vmem:[%s13253_s5 + $0x194] ss:$8 sps:$4 sm:$0xff]  }
 0x2bd   :  { %v7907_v40 = vadd.f32 %v7906_v5, %v11628_v28  ;;  %v7954_v29 = vadd.f32 %v7953_v44, %v11605_v0  ;;  %5116 = vmatpush1.bf16.msra.mxu1 %v10134_v59 }
 0x2be   :  { %v2056_v38 = vpop.f32.mrf.mxu1  ;;  %v12607_v16 = vpop.f32.mrf.mxu0  ;;  %5238 = vmatprep.subr.bf16.mxu1 %v10139_v51  ;;  %8498 = vmatpush2.bf16.msra.mxu0 %v10272_v3 }
 0x2bf   :  { %v7908_v0 = vadd.f32 %v7907_v40, %v11664_v61  ;;  %v7955_v28 = vadd.f32 %v7954_v29, %v11641_v53  ;;  %v10140_v53 = vld [vmem:[%s13251_s3 + $0x700] ss:$16 sps:$4 sm:$0xff]   ;;  %8499 = vmatprep.subr.bf16.mxu0 %v10280_v22  ;;  %v10286_v29 = vld [vmem:[%s13253_s5 + $0x184] ss:$8 sps:$4 sm:$0xff]  }
 0x2c0   :  { %v2135_v59 = vpop.f32.mrf.mxu1  ;;  %9104 = vmatmul.mubr.msk.bf16.vlgmr.msra.gmra.mxu1 %vm653_vm1, %v11584_v20  ;;  %v12616_v63 = vpop.f32.mrf.mxu0  ;;  %v10278_v20 = vld [vmem:[%s13253_s5 + $0x190] ss:$8 sps:$4 sm:$0xff]  }
 0x2c1   :  { %v7909_v51 = vadd.f32 %v7908_v0, %v11701_v23  ;;  %v7956_v5 = vadd.f32 %v7955_v28, %v11677_v48  ;;  %v7810_v44 = vadd.f32 %v12548_v54, %v2135_v59  ;;  %5239 = vmatpush1.bf16.msra.mxu1 %v10137_v41  ;;  %5258 = vmatprep.mubr.bf16.mxu1 %v13282_v56  ;;  %v10145_v48 = vld [vmem:[%s13251_s3 + $0x764] ss:$16 sps:$4 sm:$0xff]  }
 0x2c2   :  { %v2137_v61 = vpop.f32.mrf.mxu1  ;;  %v5805_v4 = vpop.f32.mrf.mxu0  ;;  %5240 = vmatprep.subr.bf16.mxu1 %v10142_v21  ;;  %8500 = vmatpush2.bf16.msra.mxu0 %v10278_v20  ;;  %v10148_v21 = vld [vmem:[%s13251_s3 + $0x744] ss:$16 sps:$4 sm:$0xff]  }
 0x2c3   :  { %v7910_v23 = vadd.f32 %v7909_v51, %v11737_v9  ;;  %v7957_v54 = vadd.f32 %v7956_v5, %v11714_v50  ;;  %v7858_v62 = vadd.f32 %v12560_v39, %v2137_v61  ;;  %v10143_v9 = vld [vmem:[%s13251_s3 + $0x760] ss:$16 sps:$4 sm:$0xff]   ;;  %8501 = vmatprep.subr.bf16.mxu0 %v10286_v29 }
 0x2c4   :  { %v2139_v31 = vpop.f32.mrf.mxu1  ;;  %v5806_v40 = vpop.f32.mrf.mxu0  ;;  %v10284_v50 = vld [vmem:[%s13253_s5 + $0x180] ss:$8 sps:$4 sm:$0xff]  }
 0x2c5   :  { %v7911_v41 = vadd.f32 %v7910_v23, %v11773_v13  ;;  %v7958_v3 = vadd.f32 %v7957_v54, %v11750_v57  ;;  %5241 = vmatpush1.bf16.msra.mxu1 %v10140_v53  ;;  %v10146_v5 = vld [vmem:[%s13251_s3 + $0x740] ss:$16 sps:$4 sm:$0xff]  }
 0x2c6   :  { %v2140_v39 = vpop.f32.mrf.mxu1  ;;  %v12648_v38 = vpop.f32.mrf.mxu0  ;;  %5363 = vmatprep.subr.bf16.mxu1 %v10145_v48  ;;  %8502 = vmatpush2.bf16.msra.mxu0 %v10284_v50  ;;  %v10149_v48 = vld [vmem:[%s13251_s3 + $0x7a0] ss:$16 sps:$4 sm:$0xff]  }
 0x2c7   :  { %v7912_v57 = vadd.f32 %v7911_v41, %v11810_v32  ;;  %v7959_v13 = vadd.f32 %v7958_v3, %v11787_v1  ;;  %v13315_v31 = vld [vmem:[#allocation5_spill] sm:$0xff] }
 0x2c8   :  { %v2260_v0 = vpop.f32.mrf.mxu1  ;;  %9114 = vmatmul.mubr.msk.bf16.vlgmr.msra.gmra.mxu1 %vm653_vm1, %v11620_v12  ;;  %v12657_v28 = vpop.f32.mrf.mxu0  ;;  %v10151_v12 = vld [vmem:[%s13251_s3 + $0x7a4] ss:$16 sps:$4 sm:$0xff]   ;;  %v10152_v3 = vld [vmem:[%s13251_s3 + $0x780] ss:$16 sps:$4 sm:$0xff]  }
 0x2c9   :  { %v7913_v59 = vadd.f32 %v7912_v57, %v11847_v11  ;;  %v7960_v22 = vadd.f32 %v7959_v13, %v11824_v18  ;;  %v7811_v51 = vadd.f32 %v7810_v44, %v2260_v0  ;;  %5364 = vmatpush1.bf16.msra.mxu1 %v10143_v9  ;;  %5383 = vmatprep.mubr.bf16.mxu1 %v13282_v56  ;;  %v10157_v9 = vld [vmem:[%s13251_s3 + $0x7e4] ss:$16 sps:$4 sm:$0xff]   ;;  %v10155_v0 = vld [vmem:[%s13251_s3 + $0x7e0] ss:$16 sps:$4 sm:$0xff]  }
 0x2ca   :  { %v2262_v1 = vpop.f32.mrf.mxu1  ;;  %v5930_v32 = vpop.f32.mrf.mxu0  ;;  %5365 = vmatprep.subr.bf16.mxu1 %v10148_v21 }
 0x2cb   :  { %v7914_v53 = vadd.f32 %v7913_v59, %v11884_v19  ;;  %v7961_v11 = vadd.f32 %v7960_v22, %v11861_v35  ;;  %v7859_v18 = vadd.f32 %v7858_v62, %v2262_v1  ;;  %v10154_v35 = vld [vmem:[%s13251_s3 + $0x784] ss:$16 sps:$4 sm:$0xff]  }
 0x2cc   :  { %v2264_v44 = vpop.f32.mrf.mxu1  ;;  %v5931_v20 = vpop.f32.mrf.mxu0 }
 0x2cd   :  { %v7915_v61 = vadd.f32 %v7914_v53, %v11921_v43  ;;  %v7962_v4 = vadd.f32 %v7961_v11, %v11898_v6  ;;  %5366 = vmatpush1.bf16.msra.mxu1 %v10146_v5  ;;  %v13316_v5 = vld [vmem:[#allocation6_spill] sm:$0xff]  ;;  %v10163_v11 = vld [vmem:[%s13251_s3 + $0x824] ss:$16 sps:$4 sm:$0xff]  }
 0x2ce   :  { %v2265_v23 = vpop.f32.mrf.mxu1  ;;  %v12675_v54 = vpop.f32.mrf.mxu0  ;;  %5488 = vmatprep.subr.bf16.mxu1 %v10151_v12  ;;  %v10158_v53 = vld [vmem:[%s13251_s3 + $0x7c0] ss:$16 sps:$4 sm:$0xff]  }
 0x2cf   :  { %v7916_v19 = vadd.f32 %v7915_v61, %v11958_v26  ;;  %v7963_v62 = vadd.f32 %v7962_v4, %v11935_v45 }
 0x2d0   :  { %v2385_v43 = vpop.f32.mrf.mxu1  ;;  %9124 = vmatmul.mubr.msk.bf16.vlgmr.msra.gmra.mxu1 %vm653_vm1, %v13315_v31  ;;  %v12684_v6 = vpop.f32.mrf.mxu0 }
 0x2d1   :  { %v7917_v40 = vadd.f32 %v7916_v19, %v11995_v34  ;;  %v7964_v29 = vadd.f32 %v7963_v62, %v11972_v24  ;;  %v7812_v41 = vadd.f32 %v7811_v51, %v2385_v43  ;;  %5489 = vmatpush1.bf16.msra.mxu1 %v10149_v48  ;;  %5508 = vmatprep.mubr.bf16.mxu1 %v13282_v56  ;;  %v10161_v48 = vld [vmem:[%s13251_s3 + $0x820] ss:$16 sps:$4 sm:$0xff]  }
 0x2d2   :  { %v2387_v26 = vpop.f32.mrf.mxu1  ;;  %v6055_v45 = vpop.f32.mrf.mxu0  ;;  %5490 = vmatprep.subr.bf16.mxu1 %v10154_v35  ;;  %v13317_v62 = vld [vmem:[#allocation7_spill] sm:$0xff] }
 0x2d3   :  { %v7918_v50 = vadd.f32 %v7917_v40, %v12032_v27  ;;  %v7965_v34 = vadd.f32 %v7964_v29, %v12009_v30  ;;  %v7860_v24 = vadd.f32 %v7859_v18, %v2387_v26  ;;  %v10160_v30 = vld [vmem:[%s13251_s3 + $0x7c4] ss:$16 sps:$4 sm:$0xff]   ;;  %v10164_v29 = vld [vmem:[%s13251_s3 + $0x800] ss:$16 sps:$4 sm:$0xff]  }
 0x2d4   :  { %v2389_v39 = vpop.f32.mrf.mxu1  ;;  %v6056_v21 = vpop.f32.mrf.mxu0 }
 0x2d5   :  { %v7919_v57 = vadd.f32 %v7918_v50, %v12069_v47  ;;  %v7966_v13 = vadd.f32 %v7965_v34, %v12046_v52  ;;  %5491 = vmatpush1.bf16.msra.mxu1 %v10152_v3  ;;  %v13319_v34 = vld [vmem:[#allocation24_spill] sm:$0xff] }
 0x2d6   :  { %v2390_v59 = vpop.f32.mrf.mxu1  ;;  %v12702_v22 = vpop.f32.mrf.mxu0  ;;  %5613 = vmatprep.subr.bf16.mxu1 %v10157_v9  ;;  %v13318_v9 = vld [vmem:[#allocation26_spill] sm:$0xff] }
 0x2d7   :  { %v7967_v27 = vadd.f32 %v7966_v13, %v12083_v60  ;;  %v7920_v51 = vadd.f32 %v7919_v57, %v12106_v7  ;;  %v10167_v39 = vld [vmem:[%s13251_s3 + $0x860] ss:$16 sps:$4 sm:$0xff]  }
 0x2d8   :  { %v2510_v47 = vpop.f32.mrf.mxu1  ;;  %9134 = vmatmul.mubr.msk.bf16.vlgmr.msra.gmra.mxu1 %vm653_vm1, %v13316_v5  ;;  %v12711_v52 = vpop.f32.mrf.mxu0 }
 0x2d9   :  { %v7921_v1 = vadd.f32 %v7920_v51, %v12143_v25  ;;  %v7968_v32 = vadd.f32 %v7967_v27, %v12120_v10  ;;  %v7813_v12 = vadd.f32 %v7812_v41, %v2510_v47  ;;  %5614 = vmatpush1.bf16.msra.mxu1 %v10155_v0  ;;  %5633 = vmatprep.mubr.bf16.mxu1 %v13282_v56  ;;  %v10169_v41 = vld [vmem:[%s13251_s3 + $0x864] ss:$16 sps:$4 sm:$0xff]   ;;  %v13322_v27 = vld [vmem:[#allocation8_spill] sm:$0xff]  ;;  %v13323_v47 = vld [vmem:[#allocation30_spill] sm:$0xff] }
 0x2da   :  { %v2512_v60 = vpop.f32.mrf.mxu1  ;;  %v6180_v7 = vpop.f32.mrf.mxu0  ;;  %5615 = vmatprep.subr.bf16.mxu1 %v10160_v30  ;;  %v13321_v0 = vld [vmem:[#allocation27_spill] sm:$0xff] }
 0x2db   :  { %v7922_v18 = vadd.f32 %v7921_v1, %v12180_v49  ;;  %v7969_v25 = vadd.f32 %v7968_v32, %v12157_v15  ;;  %v7861_v10 = vadd.f32 %v7860_v24, %v2512_v60  ;;  %v10166_v15 = vld [vmem:[%s13251_s3 + $0x804] ss:$16 sps:$4 sm:$0xff]  }
 0x2dc   :  { %v2514_v44 = vpop.f32.mrf.mxu1  ;;  %v6181_v20 = vpop.f32.mrf.mxu0  ;;  %v13324_v1 = vld [vmem:[#allocation29_spill] sm:$0xff] }
 0x2dd   :  { %v7923_v61 = vadd.f32 %v7922_v18, %v12217_v14  ;;  %v7970_v4 = vadd.f32 %v7969_v25, %v12194_v33  ;;  %5616 = vmatpush1.bf16.msra.mxu1 %v10158_v53  ;;  %v10170_v53 = vld [vmem:[%s13251_s3 + $0x840] ss:$16 sps:$4 sm:$0xff]  }
 0x2de   :  { %v2515_v23 = vpop.f32.mrf.mxu1  ;;  %v12729_v35 = vpop.f32.mrf.mxu0  ;;  %5738 = vmatprep.subr.bf16.mxu1 %v10163_v11  ;;  %v10175_v11 = vld [vmem:[%s13251_s3 + $0x8a4] ss:$16 sps:$4 sm:$0xff]   ;;  %v13325_v18 = vld [vmem:[#allocation32_spill] sm:$0xff] }
 0x2df   :  { %v7924_v49 = vadd.f32 %v7923_v61, %v12254_v37  ;;  %v7971_v19 = vadd.f32 %v7970_v4, %v12231_v46 }
 0x2e0   :  { %v2635_v14 = vpop.f32.mrf.mxu1  ;;  %9144 = vmatmul.mubr.msk.bf16.vlgmr.msra.gmra.mxu1 %vm653_vm1, %v13317_v62  ;;  %v12738_v33 = vpop.f32.mrf.mxu0 }
 0x2e1   :  { %v7925_v43 = vadd.f32 %v7924_v49, %v12291_v8  ;;  %v7972_v31 = vadd.f32 %v7971_v19, %v12268_v36  ;;  %v7814_v40 = vadd.f32 %v7813_v12, %v2635_v14  ;;  %5739 = vmatpush1.bf16.msra.mxu1 %v10161_v48  ;;  %5758 = vmatprep.mubr.bf16.mxu1 %v13282_v56  ;;  %v13327_v48 = vld [vmem:[#allocation34_spill] sm:$0xff] }
 0x2e2   :  { %v2637_v37 = vpop.f32.mrf.mxu1  ;;  %v6305_v46 = vpop.f32.mrf.mxu0  ;;  %5740 = vmatprep.subr.bf16.mxu1 %v10166_v15  ;;  %v13328_v15 = vld [vmem:[#allocation33_spill] sm:$0xff] }
 0x2e3   :  { %v7926_v3 = vadd.f32 %v7925_v43, %v12328_v58  ;;  %v7973_v8 = vadd.f32 %v7972_v31, %v12305_v55  ;;  %v7862_v36 = vadd.f32 %v7861_v10, %v2637_v37  ;;  %v10172_v55 = vld [vmem:[%s13251_s3 + $0x844] ss:$16 sps:$4 sm:$0xff]   ;;  %v13320_v58 = vld [vmem:[#allocation28_spill] sm:$0xff] }
 0x2e4   :  { %v2639_v26 = vpop.f32.mrf.mxu1  ;;  %v6306_v45 = vpop.f32.mrf.mxu0  ;;  %v13326_v10 = vld [vmem:[#allocation31_spill] sm:$0xff]  ;;  %v13330_v46 = vld [vmem:[#allocation9_spill] sm:$0xff] }
 0x2e5   :  { %v7927_v50 = vadd.f32 %v7926_v3, %v13318_v9  ;;  %v7974_v24 = vadd.f32 %v7973_v8, %v13319_v34  ;;  %5741 = vmatpush1.bf16.msra.mxu1 %v10164_v29  ;;  %v10173_v19 = vld [vmem:[%s13251_s3 + $0x8a0] ss:$16 sps:$4 sm:$0xff]   ;;  %v10178_v43 = vld [vmem:[%s13251_s3 + $0x884] ss:$16 sps:$4 sm:$0xff]  }
 0x2e6   :  { %v2640_v21 = vpop.f32.mrf.mxu1  ;;  %v12756_v57 = vpop.f32.mrf.mxu0  ;;  %5863 = vmatprep.subr.bf16.mxu1 %v10169_v41  ;;  %v13331_v3 = vld [vmem:[#allocation37_spill] sm:$0xff] }
 0x2e7   :  { %v7928_v13 = vadd.f32 %v7927_v50, %v13320_v58  ;;  %v7975_v59 = vadd.f32 %v7974_v24, %v13321_v0  ;;  %v10176_v9 = vld [vmem:[%s13251_s3 + $0x880] ss:$16 sps:$4 sm:$0xff]   ;;  %v10181_v34 = vld [vmem:[%s13251_s3 + $0x8e4] ss:$16 sps:$4 sm:$0xff]  }
 0x2e8   :  { %v2760_v30 = vpop.f32.mrf.mxu1  ;;  %9154 = vmatmul.mubr.msk.bf16.vlgmr.msra.gmra.mxu1 %vm653_vm1, %v13322_v27  ;;  %v12765_v51 = vpop.f32.mrf.mxu0 }
 0x2e9   :  { %v7929_v5 = vadd.f32 %v7928_v13, %v13323_v47  ;;  %v7976_v32 = vadd.f32 %v7975_v59, %v13324_v1  ;;  %v7815_v12 = vadd.f32 %v7814_v40, %v2760_v30  ;;  %5864 = vmatpush1.bf16.msra.mxu1 %v10167_v39  ;;  %5883 = vmatprep.mubr.bf16.mxu1 %v13282_v56  ;;  %v13329_v40 = vld [vmem:[#allocation35_spill] sm:$0xff]  ;;  %v13333_v39 = vld [vmem:[#allocation38_spill] sm:$0xff] }
 0x2ea   :  { %v2762_v60 = vpop.f32.mrf.mxu1  ;;  %v6430_v7 = vpop.f32.mrf.mxu0  ;;  %5865 = vmatprep.subr.bf16.mxu1 %v10172_v55  ;;  %v10179_v30 = vld [vmem:[%s13251_s3 + $0x8e0] ss:$16 sps:$4 sm:$0xff]  }
 0x2eb   :  { %v7930_v25 = vadd.f32 %v7929_v5, %v13325_v18  ;;  %v7977_v44 = vadd.f32 %v7976_v32, %v13326_v10  ;;  %v7863_v20 = vadd.f32 %v7862_v36, %v2762_v60  ;;  %v13332_v36 = vld [vmem:[#allocation36_spill] sm:$0xff]  ;;  %v13334_v32 = vld [vmem:[#allocation10_spill] sm:$0xff] }
 0x2ec   :  { %v2764_v61 = vpop.f32.mrf.mxu1  ;;  %v6431_v4 = vpop.f32.mrf.mxu0  ;;  %v10182_v7 = vld [vmem:[%s13251_s3 + $0x8c0] ss:$16 sps:$4 sm:$0xff]  }
 0x2ed   :  { %v7931_v23 = vadd.f32 %v7930_v25, %v13327_v48  ;;  %v7978_v49 = vadd.f32 %v7977_v44, %v13328_v15  ;;  %5866 = vmatpush1.bf16.msra.mxu1 %v10170_v53  ;;  %v10185_v61 = vld [vmem:[%s13251_s3 + $0x920] ss:$16 sps:$4 sm:$0xff]  }
 0x2ee   :  { %v2765_v14 = vpop.f32.mrf.mxu1  ;;  %v12783_v62 = vpop.f32.mrf.mxu0  ;;  %5988 = vmatprep.subr.bf16.mxu1 %v10175_v11  ;;  %v10187_v11 = vld [vmem:[%s13251_s3 + $0x924] ss:$16 sps:$4 sm:$0xff]  }
 0x2ef   :  { %v7932_v31 = vadd.f32 %v7931_v23, %v12505_v2  ;;  %v7979_v29 = vadd.f32 %v7978_v49, %v13329_v40  ;;  %v10188_v14 = vld [vmem:[%s13251_s3 + $0x900] ss:$16 sps:$4 sm:$0xff]  }
 0x2f0   :  { %v2885_v37 = vpop.f32.mrf.mxu1  ;;  %9164 = vmatmul.mubr.msk.bf16.vlgmr.msra.gmra.mxu1 %vm653_vm1, %v13330_v46  ;;  %v12792_v41 = vpop.f32.mrf.mxu0 }
 0x2f1   :  { %v7933_v8 = vadd.f32 %v7932_v31, %v13331_v3  ;;  %v7980_v26 = vadd.f32 %v7979_v29, %v13332_v36  ;;  %v7816_v45 = vadd.f32 %v7815_v12, %v2885_v37  ;;  %5989 = vmatpush1.bf16.msra.mxu1 %v10173_v19  ;;  %6008 = vmatprep.mubr.bf16.mxu1 %v13282_v56  ;;  %v10199_v3 = vld [vmem:[%s13251_s3 + $0x944] ss:$16 sps:$4 sm:$0xff]   ;;  %v13336_v36 = vld [vmem:[#allocation12_spill] sm:$0xff] }
 0x2f2   :  { %v2887_v2 = vpop.f32.mrf.mxu1  ;;  %v6555_v50 = vpop.f32.mrf.mxu0  ;;  %5990 = vmatprep.subr.bf16.mxu1 %v10178_v43  ;;  %v10193_v43 = vld [vmem:[%s13251_s3 + $0x964] ss:$16 sps:$4 sm:$0xff]  }
 0x2f3   :  { %v7934_v24 = vadd.f32 %v7933_v8, %v12571_v42  ;;  %v7981_v21 = vadd.f32 %v7980_v26, %v13333_v39  ;;  %v7864_v55 = vadd.f32 %v7863_v20, %v2887_v2  ;;  %v10184_v42 = vld [vmem:[%s13251_s3 + $0x8c4] ss:$16 sps:$4 sm:$0xff]  }
 0x2f4   :  { %v2889_v58 = vpop.f32.mrf.mxu1  ;;  %v6556_v13 = vpop.f32.mrf.mxu0 }
 0x2f5   :  { %v7935_v0 = vadd.f32 %v7934_v24, %v12607_v16  ;;  %v7982_v59 = vadd.f32 %v7981_v21, %v12579_v17  ;;  %5991 = vmatpush1.bf16.msra.mxu1 %v10176_v9  ;;  %v10197_v9 = vld [vmem:[%s13251_s3 + $0x940] ss:$16 sps:$4 sm:$0xff]  }
 0x2f6   :  { %v2890_v27 = vpop.f32.mrf.mxu1  ;;  %v12810_v47 = vpop.f32.mrf.mxu0  ;;  %6113 = vmatprep.subr.bf16.mxu1 %v10181_v34  ;;  %v10205_v34 = vld [vmem:[%s13251_s3 + $0x9a4] ss:$16 sps:$4 sm:$0xff]  }
 0x2f7   :  { %v7983_v5 = vadd.f32 %v7982_v59, %v12616_v63  ;;  %v7936_v1 = vadd.f32 %v7935_v0, %v12648_v38  ;;  %v10211_v0 = vld [vmem:[%s13251_s3 + $0x984] ss:$16 sps:$4 sm:$0xff]  }
 0x2f8   :  { %v3010_v16 = vpop.f32.mrf.mxu1  ;;  %9174 = vmatmul.mubr.msk.bf16.vlgmr.msra.gmra.mxu1 %vm653_vm1, %v13334_v32  ;;  %v12819_v17 = vpop.f32.mrf.mxu0  ;;  %v10217_v32 = vld [vmem:[%s13251_s3 + $0x9e4] ss:$16 sps:$4 sm:$0xff]  }
 0x2f9   :  { %v7984_v12 = vadd.f32 %v7983_v5, %v12657_v28  ;;  %v7937_v53 = vadd.f32 %v7936_v1, %v12675_v54  ;;  %v7817_v60 = vadd.f32 %v7816_v45, %v3010_v16  ;;  %6114 = vmatpush1.bf16.msra.mxu1 %v10179_v30  ;;  %6133 = vmatprep.mubr.bf16.mxu1 %v13282_v56  ;;  %v13337_v30 = vld [vmem:[#allocation13_spill] sm:$0xff] }
 0x2fa   :  { %v3012_v63 = vpop.f32.mrf.mxu1  ;;  %v6680_v38 = vpop.f32.mrf.mxu0  ;;  %6115 = vmatprep.subr.bf16.mxu1 %v10184_v42  ;;  %v10209_v5 = vld [vmem:[%s13251_s3 + $0x980] ss:$16 sps:$4 sm:$0xff]  }
 0x2fb   :  { %v7985_v18 = vadd.f32 %v7984_v12, %v12684_v6  ;;  %v7938_v28 = vadd.f32 %v7937_v53, %v12702_v22  ;;  %v7865_v54 = vadd.f32 %v7864_v55, %v3012_v63  ;;  %v10190_v6 = vld [vmem:[%s13251_s3 + $0x904] ss:$16 sps:$4 sm:$0xff]   ;;  %v10203_v55 = vld [vmem:[%s13251_s3 + $0x9a0] ss:$16 sps:$4 sm:$0xff]  }
 0x2fc   :  { %v3014_v25 = vpop.f32.mrf.mxu1  ;;  %v6681_v10 = vpop.f32.mrf.mxu0 }
 0x2fd   :  { %v7986_v44 = vadd.f32 %v7985_v18, %v12711_v52  ;;  %v7939_v20 = vadd.f32 %v7938_v28, %v12729_v35  ;;  %6116 = vmatpush1.bf16.msra.mxu1 %v10182_v7  ;;  %v13335_v35 = vld [vmem:[#allocation11_spill] sm:$0xff]  ;;  %v13338_v28 = vld [vmem:[#allocation14_spill] sm:$0xff] }
 0x2fe   :  { %v3015_v4 = vpop.f32.mrf.mxu1  ;;  %v12837_v48 = vpop.f32.mrf.mxu0  ;;  %6238 = vmatprep.subr.bf16.mxu1 %v10187_v11  ;;  %v10215_v7 = vld [vmem:[%s13251_s3 + $0x9e0] ss:$16 sps:$4 sm:$0xff]   ;;  %v10223_v11 = vld [vmem:[%s13251_s3 + $0x9c4] ss:$16 sps:$4 sm:$0xff]  }
 0x2ff   :  { %v7987_v22 = vadd.f32 %v7986_v44, %v12738_v33  ;;  %v12844_v23 = vadd.f32 %v7939_v20, %v12756_v57  ;;  %v10221_v10 = vld [vmem:[%s13251_s3 + $0x9c0] ss:$16 sps:$4 sm:$0xff]  }
 0x300   :  { %v3135_v52 = vpop.f32.mrf.mxu1  ;;  %9184 = vmatmul.mubr.msk.bf16.vlgmr.msra.gmra.mxu1 %vm653_vm1, %v13335_v35  ;;  %v12848_v15 = vpop.f32.mrf.mxu0 }
 0x301   :  { %v12851_v49 = vadd.f32 %v7987_v22, %v12765_v51  ;;  %v7818_v19 = vadd.f32 %v7817_v60, %v3135_v52  ;;  %6239 = vmatpush1.bf16.msra.mxu1 %v10185_v61  ;;  %6258 = vmatprep.mubr.bf16.mxu1 %v13282_v56  ;;  %v10191_v51 = vld [vmem:[%s13251_s3 + $0x960] ss:$16 sps:$4 sm:$0xff]   ;;  %v10229_v61 = vld [vmem:[%s13251_s3 + $0xa24] ss:$16 sps:$4 sm:$0xff]  }
 0x302   :  { %v3137_v33 = vpop.f32.mrf.mxu1  ;;  %v6805_v57 = vpop.f32.mrf.mxu0  ;;  %6240 = vmatprep.subr.bf16.mxu1 %v10190_v6  ;;  %v10227_v52 = vld [vmem:[%s13251_s3 + $0xa20] ss:$16 sps:$4 sm:$0xff]  }
 0x303   :  { %v7866_v31 = vadd.f32 %v7865_v54, %v3137_v33  ;;  %v13339_v57 = vld [vmem:[#allocation15_spill] sm:$0xff] }
 0x304   :  { %v3139_v40 = vpop.f32.mrf.mxu1  ;;  %v6806_v29 = vpop.f32.mrf.mxu0 }
 0x305   :  { %6241 = vmatpush1.bf16.msra.mxu1 %v10188_v14  ;;  %v10235_v14 = vld [vmem:[%s13251_s3 + $0xa04] ss:$16 sps:$4 sm:$0xff]   ;;  %v10233_v40 = vld [vmem:[%s13251_s3 + $0xa00] ss:$16 sps:$4 sm:$0xff]  }
 0x306   :  { %v3140_v37 = vpop.f32.mrf.mxu1  ;;  %v12863_v46 = vpop.f32.mrf.mxu0  ;;  %6363 = vmatprep.subr.bf16.mxu1 %v10193_v43 }
 0x307   :  { %v10241_v37 = vld [vmem:[%s13251_s3 + $0xa64] ss:$16 sps:$4 sm:$0xff]  }
 0x308   :  { %v3260_v8 = vpop.f32.mrf.mxu1  ;;  %9194 = vmatmul.mubr.msk.bf16.vlgmr.msra.gmra.mxu1 %vm653_vm1, %v13336_v36  ;;  %v12870_v26 = vpop.f32.mrf.mxu0 }
 0x309   :  { %v7819_v45 = vadd.f32 %v7818_v19, %v3260_v8  ;;  %6364 = vmatpush1.bf16.msra.mxu1 %v10191_v51  ;;  %6383 = vmatprep.mubr.bf16.mxu1 %v13282_v56 }
 0x30a   :  { %v3262_v2 = vpop.f32.mrf.mxu1  ;;  %v6930_v50 = vpop.f32.mrf.mxu0  ;;  %6365 = vmatprep.subr.bf16.mxu1 %v10199_v3 }
 0x30b   :  { %v7867_v24 = vadd.f32 %v7866_v31, %v3262_v2 }
 0x30c   :  { %v3264_v39 = vpop.f32.mrf.mxu1  ;;  %v6931_v21 = vpop.f32.mrf.mxu0 }
 0x30d   :  { %6366 = vmatpush1.bf16.msra.mxu1 %v10197_v9  ;;  %v10239_v9 = vld [vmem:[%s13251_s3 + $0xa60] ss:$16 sps:$4 sm:$0xff]  }
 0x30e   :  { %v3265_v58 = vpop.f32.mrf.mxu1  ;;  %v12882_v13 = vpop.f32.mrf.mxu0  ;;  %6488 = vmatprep.subr.bf16.mxu1 %v10205_v34  ;;  %v10247_v34 = vld [vmem:[%s13251_s3 + $0xa44] ss:$16 sps:$4 sm:$0xff]   ;;  %v13340_v21 = vld [vmem:[#allocation16_spill] sm:$0xff] }
 0x30f   :  { %v10245_v58 = vld [vmem:[%s13251_s3 + $0xa40] ss:$16 sps:$4 sm:$0xff]  }
 0x310   :  { %v3385_v59 = vpop.f32.mrf.mxu1  ;;  %9204 = vmatmul.mubr.msk.bf16.vlgmr.msra.gmra.mxu1 %vm653_vm1, %v13337_v30  ;;  %v12889_v27 = vpop.f32.mrf.mxu0 }
 0x311   :  { %v7820_v42 = vadd.f32 %v7819_v45, %v3385_v59  ;;  %6489 = vmatpush1.bf16.msra.mxu1 %v10203_v55  ;;  %6508 = vmatprep.mubr.bf16.mxu1 %v13282_v56  ;;  %v7941_v45 = vadd.f32 %v12844_v23, %v12783_v62 }
 0x312   :  { %v3387_v1 = vpop.f32.mrf.mxu1  ;;  %v7055_v16 = vpop.f32.mrf.mxu0  ;;  %6490 = vmatprep.subr.bf16.mxu1 %v10211_v0 }
 0x313   :  { %v7868_v12 = vadd.f32 %v7867_v24, %v3387_v1  ;;  %v7989_v24 = vadd.f32 %v12851_v49, %v12792_v41  ;;  %v7942_v23 = vadd.f32 %v7941_v45, %v12810_v47  ;;  %v10253_v41 = vld [vmem:[%s13251_s3 + $0xaa4] ss:$16 sps:$4 sm:$0xff]   ;;  %v10251_v1 = vld [vmem:[%s13251_s3 + $0xaa0] ss:$16 sps:$4 sm:$0xff]  }
 0x314   :  { %v3389_v53 = vpop.f32.mrf.mxu1  ;;  %v7056_v60 = vpop.f32.mrf.mxu0 }
 0x315   :  { %6491 = vmatpush1.bf16.msra.mxu1 %v10209_v5  ;;  %v7990_v49 = vadd.f32 %v7989_v24, %v12819_v17  ;;  %v7943_v5 = vadd.f32 %v7942_v23, %v12837_v48  ;;  %v13341_v60 = vld [vmem:[#allocation17_spill] sm:$0xff] }
 0x316   :  { %v3390_v63 = vpop.f32.mrf.mxu1  ;;  %v12901_v38 = vpop.f32.mrf.mxu0  ;;  %6613 = vmatprep.subr.bf16.mxu1 %v10217_v32 }
 0x317   :  { %v7991_v53 = vadd.f32 %v7990_v49, %v12848_v15  ;;  %v7944_v48 = vadd.f32 %v7943_v5, %v12863_v46  ;;  %v10265_v15 = vld [vmem:[%s13251_s3 + $0xae4] ss:$16 sps:$4 sm:$0xff]  }
 0x318   :  { %v3510_v18 = vpop.f32.mrf.mxu1  ;;  %9214 = vmatmul.mubr.msk.bf16.vlgmr.msra.gmra.mxu1 %vm653_vm1, %v13338_v28  ;;  %v12908_v54 = vpop.f32.mrf.mxu0  ;;  %v13343_v49 = vld [vmem:[#allocation19_spill] sm:$0xff] }
 0x319   :  { %v7821_v25 = vadd.f32 %v7820_v42, %v3510_v18  ;;  %6614 = vmatpush1.bf16.msra.mxu1 %v10215_v7  ;;  %6633 = vmatprep.mubr.bf16.mxu1 %v13282_v56  ;;  %v8002_v18 = vlaneseq  ;;  %v7945_v46 = vadd.f32 %v7944_v48, %v12882_v13 }
 0x31a   :  { %v3512_v44 = vpop.f32.mrf.mxu1  ;;  %v7180_v20 = vpop.f32.mrf.mxu0  ;;  %6615 = vmatprep.subr.bf16.mxu1 %v10223_v11  ;;  %v10257_v11 = vld [vmem:[%s13251_s3 + $0xa80] ss:$16 sps:$4 sm:$0xff]  }
 0x31b   :  { %v7869_v4 = vadd.f32 %v7868_v12, %v3512_v44  ;;  %v10259_v12 = vld [vmem:[%s13251_s3 + $0xa84] ss:$16 sps:$4 sm:$0xff]  }
 0x31c   :  { %v3514_v6 = vpop.f32.mrf.mxu1  ;;  %v7181_v22 = vpop.f32.mrf.mxu0 }
 0x31d   :  { %6616 = vmatpush1.bf16.msra.mxu1 %v10221_v10  ;;  %v7992_v10 = vadd.f32 %v7991_v53, %v12870_v26  ;;  %v7946_v6 = vadd.f32 %v7945_v46, %v12901_v38  ;;  %v10263_v22 = vld [vmem:[%s13251_s3 + $0xae0] ss:$16 sps:$4 sm:$0xff]   ;;  %v10271_v26 = vld [vmem:[%s13251_s3 + $0xac4] ss:$16 sps:$4 sm:$0xff]  }
 0x31e   :  { %v3515_v35 = vpop.f32.mrf.mxu1  ;;  %v12920_v19 = vpop.f32.mrf.mxu0  ;;  %6738 = vmatprep.subr.bf16.mxu1 %v10229_v61  ;;  %v13342_v38 = vld [vmem:[#allocation18_spill] sm:$0xff]  ;;  %v13344_v46 = vld [vmem:[#allocation20_spill] sm:$0xff] }
 0x320   :  { %v3635_v33 = vpop.f32.mrf.mxu1  ;;  %9224 = vmatmul.mubr.msk.bf16.vlgmr.msra.gmra.mxu1 %vm653_vm1, %v13339_v57  ;;  %v12927_v43 = vpop.f32.mrf.mxu0 }
 0x321   :  { %v7822_v31 = vadd.f32 %v7821_v25, %v3635_v33  ;;  %6739 = vmatpush1.bf16.msra.mxu1 %v10227_v52  ;;  %6758 = vmatprep.mubr.bf16.mxu1 %v13282_v56  ;;  %v12984_v52 = vshrl.u32 %v8002_v18, 7 }
 0x322   :  { %v3637_v29 = vpop.f32.mrf.mxu1  ;;  %v7305_v51 = vpop.f32.mrf.mxu0  ;;  %6740 = vmatprep.subr.bf16.mxu1 %v10235_v14 }
 0x323   :  { %v7870_v3 = vadd.f32 %v7869_v4, %v3637_v29  ;;  %v7993_v4 = vadd.f32 %v7992_v10, %v12889_v27  ;;  %v7947_v27 = vadd.f32 %v7946_v6, %v12920_v19  ;;  %v10269_v51 = vld [vmem:[%s13251_s3 + $0xac0] ss:$16 sps:$4 sm:$0xff]  }
 0x324   :  { %v3639_v8 = vpop.f32.mrf.mxu1  ;;  %v7306_v36 = vpop.f32.mrf.mxu0 }
 0x325   :  { %6741 = vmatpush1.bf16.msra.mxu1 %v10233_v40  ;;  %v7994_v13 = vadd.f32 %v7993_v4, %v12908_v54  ;;  %v10295_v4 = vld [vmem:[%s13251_s3 + $0xba4] ss:$16 sps:$4 sm:$0xff]  }
 0x326   :  { %v3640_v2 = vpop.f32.mrf.mxu1  ;;  %v7426_v50 = vpop.f32.mrf.mxu0  ;;  %6863 = vmatprep.subr.bf16.mxu1 %v10241_v37  ;;  %v8012_v37 = vsub.s32 2, %v12984_v52 }
 0x327   :  { %v7948_v40 = vadd.f32 %v7947_v27, %v7426_v50  ;;  %v13345_v27 = vld [vmem:[#allocation21_spill] sm:$0xff] }
 0x328   :  { %v3760_v39 = vpop.f32.mrf.mxu1  ;;  %9234 = vmatmul.mubr.msk.bf16.vlgmr.msra.gmra.mxu1 %vm653_vm1, %v13340_v21  ;;  %v12948_v62 = vpop.f32.mrf.mxu0  ;;  %v10275_v21 = vld [vmem:[%s13251_s3 + $0xb20] ss:$16 sps:$4 sm:$0xff]  }
 0x329   :  { %v7823_v55 = vadd.f32 %v7822_v31, %v3760_v39  ;;  %6864 = vmatpush1.bf16.msra.mxu1 %v10239_v9  ;;  %6883 = vmatprep.mubr.bf16.mxu1 %v13282_v56  ;;  %v7995_v31 = vadd.f32 %v7994_v13, %v12927_v43  ;;  %v10277_v43 = vld [vmem:[%s13251_s3 + $0xb24] ss:$16 sps:$4 sm:$0xff]   ;;  %v8016_v9 = vsub.s32 3, %v12984_v52 }
 0x32a   :  { %v3762_v0 = vpop.f32.mrf.mxu1  ;;  %v7430_v59 = vpop.f32.mrf.mxu0  ;;  %6865 = vmatprep.subr.bf16.mxu1 %v10247_v34 }
 0x32b   :  { %v7871_v30 = vadd.f32 %v7870_v3, %v3762_v0  ;;  %v13002_v3 = vld [vmem:[%s13252_s4] sm:$0xf]  ;;  %v7996_v8 = vadd.f32 %v7995_v31, %v12948_v62  ;;  %v10283_v62 = vld [vmem:[%s13251_s3 + $0xb04] ss:$16 sps:$4 sm:$0xff]  }
 0x32c   :  { %v3764_v42 = vpop.f32.mrf.mxu1  ;;  %v7431_v47 = vpop.f32.mrf.mxu0  ;;  %v8013_v39 = vrot.slane %v13002_v3, %v8012_v37  ;;  %v8017_v59 = vrot.slane %v13002_v3, %v8016_v9  ;;  %v10301_v31 = vld [vmem:[%s13251_s3 + $0xbe4] ss:$16 sps:$4 sm:$0xff]  }
 0x32d   :  { %6866 = vmatpush1.bf16.msra.mxu1 %v10245_v58  ;;  %v10307_v9 = vld [vmem:[%s13251_s3 + $0xc24] ss:$16 sps:$4 sm:$0xff]  }
 0x32e   :  { %v3765_v16 = vpop.f32.mrf.mxu1  ;;  %v7551_v32 = vpop.f32.mrf.mxu0  ;;  %6988 = vmatprep.subr.bf16.mxu1 %v10253_v41 }
 0x32f   :  { %v7949_v36 = vadd.f32 %v7948_v40, %v7551_v32 }
 0x330   :  { %v3885_v17 = vpop.f32.mrf.mxu1  ;;  %9244 = vmatmul.mubr.msk.bf16.vlgmr.msra.gmra.mxu1 %vm653_vm1, %v13341_v60  ;;  %v7553_v7 = vpop.f32.mrf.mxu0 }
 0x331   :  { %v7824_v63 = vadd.f32 %v7823_v55, %v3885_v17  ;;  %6989 = vmatpush1.bf16.msra.mxu1 %v10251_v1  ;;  %7008 = vmatprep.mubr.bf16.mxu1 %v13282_v56  ;;  %v7997_v34 = vadd.f32 %v7996_v8, %v7553_v7  ;;  %v10281_v1 = vld [vmem:[%s13251_s3 + $0xb00] ss:$16 sps:$4 sm:$0xff]  }
 0x332   :  { %v3887_v28 = vpop.f32.mrf.mxu1  ;;  %v7555_v25 = vpop.f32.mrf.mxu0  ;;  %6990 = vmatprep.subr.bf16.mxu1 %v10259_v12  ;;  %v10289_v12 = vld [vmem:[%s13251_s3 + $0xb64] ss:$16 sps:$4 sm:$0xff]  }
 0x333   :  { %v7872_v44 = vadd.f32 %v7871_v30, %v3887_v28  ;;  %v10292_v28 = vld [vmem:[%s13251_s3 + $0xb44] ss:$16 sps:$4 sm:$0xff]  }
 0x334   :  { %v3889_v20 = vpop.f32.mrf.mxu1  ;;  %v7556_v61 = vpop.f32.mrf.mxu0 }
 0x335   :  { %6991 = vmatpush1.bf16.msra.mxu1 %v10257_v11  ;;  %v10287_v11 = vld [vmem:[%s13251_s3 + $0xb60] ss:$16 sps:$4 sm:$0xff]  }
 0x336   :  { %v3890_v35 = vpop.f32.mrf.mxu1  ;;  %v7676_v14 = vpop.f32.mrf.mxu0  ;;  %7113 = vmatprep.subr.bf16.mxu1 %v10265_v15  ;;  %v10290_v20 = vld [vmem:[%s13251_s3 + $0xb40] ss:$16 sps:$4 sm:$0xff]  }
 0x337   :  { %v7950_v24 = vadd.f32 %v7949_v36, %v7676_v14  ;;  %v10293_v35 = vld [vmem:[%s13251_s3 + $0xba0] ss:$16 sps:$4 sm:$0xff]  }
 0x338   :  { %v4010_v33 = vpop.f32.mrf.mxu1  ;;  %9254 = vmatmul.mubr.msk.bf16.vlgmr.msra.gmra.mxu1 %vm653_vm1, %v13342_v38  ;;  %v7678_v57 = vpop.f32.mrf.mxu0  ;;  %v10296_v38 = vld [vmem:[%s13251_s3 + $0xb80] ss:$16 sps:$4 sm:$0xff]  }
 0x339   :  { %v7825_v29 = vadd.f32 %v7824_v63, %v4010_v33  ;;  %7114 = vmatpush1.bf16.msra.mxu1 %v10263_v22  ;;  %7133 = vmatprep.mubr.bf16.mxu1 %v13282_v56  ;;  %v7998_v58 = vadd.f32 %v7997_v34, %v7678_v57  ;;  %v10302_v36 = vld [vmem:[%s13251_s3 + $0xbc0] ss:$16 sps:$4 sm:$0xff]  }
 0x33a   :  { %v4012_v54 = vpop.f32.mrf.mxu1  ;;  %v7680_v19 = vpop.f32.mrf.mxu0  ;;  %7115 = vmatprep.subr.bf16.mxu1 %v10271_v26  ;;  %v10298_v26 = vld [vmem:[%s13251_s3 + $0xb84] ss:$16 sps:$4 sm:$0xff]   ;;  %v10305_v34 = vld [vmem:[%s13251_s3 + $0xc20] ss:$16 sps:$4 sm:$0xff]  }
 0x33b   :  { %v7873_v45 = vadd.f32 %v7872_v44, %v4012_v54  ;;  %v10304_v54 = vld [vmem:[%s13251_s3 + $0xbc4] ss:$16 sps:$4 sm:$0xff]  }
 0x33c   :  { %v4014_v2 = vpop.f32.mrf.mxu1  ;;  %v7681_v50 = vpop.f32.mrf.mxu0 }
 0x33d   :  { %7116 = vmatpush1.bf16.msra.mxu1 %v10269_v51  ;;  %v10299_v51 = vld [vmem:[%s13251_s3 + $0xbe0] ss:$16 sps:$4 sm:$0xff]  }
 0x33e   :  { %v4015_v23 = vpop.f32.mrf.mxu1  ;;  %v7801_v55 = vpop.f32.mrf.mxu0  ;;  %7238 = vmatprep.subr.bf16.mxu1 %v10277_v43  ;;  %v13346_v43 = vld [vmem:[#allocation22_spill] sm:$0xff] }
 0x33f   :  { %v7951_v0 = vadd.f32 %v7950_v24, %v7801_v55  ;;  %v13347_v23 = vld [vmem:[#allocation23_spill] sm:$0xff] }
 0x340   :  { %v4135_v41 = vpop.f32.mrf.mxu1  ;;  %9264 = vmatmul.mubr.msk.bf16.vlgmr.msra.gmra.mxu1 %vm653_vm1, %v13343_v49  ;;  %v7803_v30 = vpop.f32.mrf.mxu0 }
 0x341   :  { %v8024_v42 = vadd.f32 %v8013_v39, %v7951_v0  ;;  %v7826_v47 = vadd.f32 %v7825_v29, %v4135_v41  ;;  %v7999_v5 = vadd.f32 %v7998_v58, %v7803_v30  ;;  %7239 = vmatpush1.bf16.msra.mxu1 %v10275_v21  ;;  %7258 = vmatprep.mubr.bf16.mxu1 %v13282_v56  ;;  %v10310_v39 = vld [vmem:[%s13251_s3 + $0xc04] ss:$16 sps:$4 sm:$0xff]  }
 0x342   :  { %v4137_v16 = vpop.f32.mrf.mxu1  ;;  %v7805_v32 = vpop.f32.mrf.mxu0  ;;  %7240 = vmatprep.subr.bf16.mxu1 %v10283_v62  ;;  %v10308_v62 = vld [vmem:[%s13251_s3 + $0xc00] ss:$16 sps:$4 sm:$0xff]  }
 0x343   :  { %v8025_v53 = vadd.f32 %v8017_v59, %v7999_v5  ;;  %v7874_v17 = vadd.f32 %v7873_v45, %v4137_v16  ;;  %v8028_v60 = vmax.f32 %v8024_v42, 0.0  ;;  %v13348_v30 = vld [vmem:[#allocation25_spill] sm:$0xff] }
 0x344   :  { %v4139_v7 = vpop.f32.mrf.mxu1  ;;  %v7806_v48 = vpop.f32.mrf.mxu0 }
 0x345   :  { %v8029_v63 = vmax.f32 %v8025_v53, 0.0  ;;  %7241 = vmatpush1.bf16.msra.mxu1 %v10281_v1  ;;  %v8032_v15 = vpack.c.bf16 %v8028_v60, %v8028_v60  ;;  %v10311_v60 = vld [vmem:[%s13253_s5 + $0x70] ss:$8 sps:$4 sm:$0xff]  }
 0x346   :  { %v4140_v18 = vpop.f32.mrf.mxu1  ;;  %7363 = vmatprep.subr.bf16.mxu1 %v10289_v12 }
 0x347   :  { %v8033_v25 = vpack.c.bf16 %v8029_v63, %v8029_v63  ;;  %v10316_v63 = vld [vmem:[%s13253_s5 + $0x64] ss:$8 sps:$4 sm:$0xff]  }
 0x348   :  { %v4260_v10 = vpop.f32.mrf.mxu1  ;;  %9274 = vmatmul.mubr.msk.bf16.vlgmr.msra.gmra.mxu1 %vm653_vm1, %v13344_v46  ;;  %v10317_v46 = vld [vmem:[%s13253_s5 + $0x50] ss:$8 sps:$4 sm:$0xff]  }
 0x349   :  { %v7827_v44 = vadd.f32 %v7826_v47, %v4260_v10  ;;  %7364 = vmatpush1.bf16.msra.mxu1 %v10287_v11  ;;  %8503 = vmatprep.mubr.bf16.mxu0 %v8033_v25  ;;  %v10314_v11 = vld [vmem:[%s13253_s5 + $0x60] ss:$8 sps:$4 sm:$0xff]  }
 0x34a   :  { %v4262_v61 = vpop.f32.mrf.mxu1  ;;  %8504 = vmatmul.mubr.bf16.vlgmr.msra.gmra.mxu0 %v8032_v15  ;;  %7365 = vmatprep.subr.bf16.mxu1 %v10292_v28  ;;  %v10319_v15 = vld [vmem:[%s13253_s5 + $0x54] ss:$8 sps:$4 sm:$0xff]  }
 0x34b   :  { %v7875_v6 = vadd.f32 %v7874_v17, %v4262_v61  ;;  %7383 = vmatprep.mubr.bf16.mxu1 %v13282_v56  ;;  %v10322_v61 = vld [vmem:[%s13253_s5 + $0x44] ss:$8 sps:$4 sm:$0xff]  }
 0x34c   :  { %v4264_v22 = vpop.f32.mrf.mxu1 }
 0x34d   :  { %7366 = vmatpush1.bf16.msra.mxu1 %v10290_v20 }
 0x34e   :  { %v4265_v14 = vpop.f32.mrf.mxu1  ;;  %7488 = vmatprep.subr.bf16.mxu1 %v10295_v4  ;;  %v10320_v4 = vld [vmem:[%s13253_s5 + $0x40] ss:$8 sps:$4 sm:$0xff]  }
 0x34f   :  { %v10325_v14 = vld [vmem:[%s13253_s5 + $0x34] ss:$8 sps:$4 sm:$0xff]  }
 0x350   :  { %v4385_v13 = vpop.f32.mrf.mxu1  ;;  %9284 = vmatmul.mubr.msk.bf16.vlgmr.msra.gmra.mxu1 %vm653_vm1, %v13345_v27 }
 0x351   :  { %v7828_v33 = vadd.f32 %v7827_v44, %v4385_v13  ;;  %7489 = vmatpush1.bf16.msra.mxu1 %v10293_v35  ;;  %7508 = vmatprep.mubr.bf16.mxu1 %v13282_v56  ;;  %v10323_v13 = vld [vmem:[%s13253_s5 + $0x30] ss:$8 sps:$4 sm:$0xff]  }
 0x352   :  { %v4387_v57 = vpop.f32.mrf.mxu1  ;;  %7490 = vmatprep.subr.bf16.mxu1 %v10298_v26 }
 0x353   :  { %v7876_v40 = vadd.f32 %v7875_v6, %v4387_v57  ;;  %v10326_v57 = vld [vmem:[%s13253_s5 + $0x20] ss:$8 sps:$4 sm:$0xff]  }
 0x354   :  { %v4389_v29 = vpop.f32.mrf.mxu1 }
 0x355   :  { %7491 = vmatpush1.bf16.msra.mxu1 %v10296_v38  ;;  %v10328_v38 = vld [vmem:[%s13253_s5 + $0x24] ss:$8 sps:$4 sm:$0xff]  }
 0x356   :  { %v4390_v37 = vpop.f32.mrf.mxu1  ;;  %7613 = vmatprep.subr.bf16.mxu1 %v10301_v31 }
 0x358   :  { %v4510_v19 = vpop.f32.mrf.mxu1  ;;  %9294 = vmatmul.mubr.msk.bf16.vlgmr.msra.gmra.mxu1 %vm653_vm1, %v13346_v43 }
 0x359   :  { %v7829_v8 = vadd.f32 %v7828_v33, %v4510_v19  ;;  %7614 = vmatpush1.bf16.msra.mxu1 %v10299_v51  ;;  %7633 = vmatprep.mubr.bf16.mxu1 %v13282_v56  ;;  %v10331_v51 = vld [vmem:[%s13253_s5 + $0x14] ss:$8 sps:$4 sm:$0xff]  }
 0x35a   :  { %v4512_v45 = vpop.f32.mrf.mxu1  ;;  %7615 = vmatprep.subr.bf16.mxu1 %v10304_v54  ;;  %v10329_v54 = vld [vmem:[%s13253_s5 + $0x10] ss:$8 sps:$4 sm:$0xff]  }
 0x35b   :  { %v7877_v2 = vadd.f32 %v7876_v40, %v4512_v45 }
 0x35c   :  { %v4514_v50 = vpop.f32.mrf.mxu1 }
 0x35d   :  { %7616 = vmatpush1.bf16.msra.mxu1 %v10302_v36  ;;  %v10332_v36 = vld [vmem:[%s13253_s5] ss:$8 sps:$4 sm:$0xff]   ;;  %v10337_v50 = vld [vmem:[%s13253_s5 + $0xf4] ss:$8 sps:$4 sm:$0xff]  }
 0x35e   :  { %v4515_v24 = vpop.f32.mrf.mxu1  ;;  %7738 = vmatprep.subr.bf16.mxu1 %v10307_v9 }
 0x35f   :  { %v10335_v24 = vld [vmem:[%s13253_s5 + $0xf0] ss:$8 sps:$4 sm:$0xff]  }
 0x360   :  { %v4635_v21 = vpop.f32.mrf.mxu1  ;;  %9304 = vmatmul.mubr.msk.bf16.vlgmr.msra.gmra.mxu1 %vm653_vm1, %v13347_v23  ;;  %v10340_v23 = vld [vmem:[%s13253_s5 + $0xe4] ss:$8 sps:$4 sm:$0xff]  }
 0x361   :  { %v7830_v55 = vadd.f32 %v7829_v8, %v4635_v21  ;;  %7739 = vmatpush1.bf16.msra.mxu1 %v10305_v34  ;;  %7758 = vmatprep.mubr.bf16.mxu1 %v13282_v56  ;;  %v10313_v56 = vld [vmem:[%s13253_s5 + $0x74] ss:$8 sps:$4 sm:$0xff]   ;;  %v10334_v8 = vld [vmem:[%s13253_s5 + $0x4] ss:$8 sps:$4 sm:$0xff]  }
 0x362   :  { %v4637_v58 = vpop.f32.mrf.mxu1  ;;  %7740 = vmatprep.subr.bf16.mxu1 %v10310_v39 }
 0x363   :  { %v7878_v0 = vadd.f32 %v7877_v2, %v4637_v58 }
 0x364   :  { %v4639_v59 = vpop.f32.mrf.mxu1 }
 0x365   :  { %7741 = vmatpush1.bf16.msra.mxu1 %v10308_v62  ;;  %v10343_v59 = vld [vmem:[%s13253_s5 + $0xd4] ss:$8 sps:$4 sm:$0xff]  }
 0x366   :  { %v4640_v41 = vpop.f32.mrf.mxu1  ;;  %8430 = vmatprep.subr.bf16.mxu1 %v10313_v56  ;;  %v10347_v56 = vld [vmem:[%s13253_s5 + $0xb0] ss:$8 sps:$4 sm:$0xff]  }
 0x368   :  { %v4760_v49 = vpop.f32.mrf.mxu1  ;;  %9314 = vmatmul.mubr.msk.bf16.vlgmr.msra.gmra.mxu1 %vm653_vm1, %v13348_v30 }
 0x369   :  { %v7831_v42 = vadd.f32 %v7830_v55, %v4760_v49  ;;  %8431 = vmatpush1.bf16.msra.mxu1 %v10311_v60  ;;  %v10338_v55 = vld [vmem:[%s13253_s5 + $0xe0] ss:$8 sps:$4 sm:$0xff]   ;;  %v10341_v49 = vld [vmem:[%s13253_s5 + $0xd0] ss:$8 sps:$4 sm:$0xff]  }
 0x36a   :  { %v4762_v47 = vpop.f32.mrf.mxu1  ;;  %8432 = vmatprep.subr.bf16.mxu1 %v10316_v63 }
 0x36b   :  { %v7879_v5 = vadd.f32 %v7878_v0, %v4762_v47  ;;  %v10346_v47 = vld [vmem:[%s13253_s5 + $0xc4] ss:$8 sps:$4 sm:$0xff]  }
 0x36c   :  { %v4764_v1 = vpop.f32.mrf.mxu1 }
 0x36d   :  { %8433 = vmatpush1.bf16.msra.mxu1 %v10314_v11 }
 0x36e   :  { %v4765_v16 = vpop.f32.mrf.mxu1  ;;  %8434 = vmatprep.subr.bf16.mxu1 %v10319_v15  ;;  %v10353_v15 = vld [vmem:[%s13253_s5 + $0x90] ss:$8 sps:$4 sm:$0xff]  }
 0x370   :  { %v4885_v32 = vpop.f32.mrf.mxu1 }
 0x371   :  { %v7832_v12 = vadd.f32 %v7831_v42, %v4885_v32  ;;  %8435 = vmatpush1.bf16.msra.mxu1 %v10317_v46 }
 0x372   :  { %v4887_v53 = vpop.f32.mrf.mxu1  ;;  %8436 = vmatprep.subr.bf16.mxu1 %v10322_v61 }
 0x373   :  { %v7880_v17 = vadd.f32 %v7879_v5, %v4887_v53  ;;  %v10344_v5 = vld [vmem:[%s13253_s5 + $0xc0] ss:$8 sps:$4 sm:$0xff]  }
 0x374   :  { %v4889_v7 = vpop.f32.mrf.mxu1 }
 0x375   :  { %8437 = vmatpush1.bf16.msra.mxu1 %v10320_v4  ;;  %v10352_v7 = vld [vmem:[%s13253_s5 + $0xa4] ss:$8 sps:$4 sm:$0xff]  }
 0x376   :  { %v4890_v48 = vpop.f32.mrf.mxu1  ;;  %8438 = vmatprep.subr.bf16.mxu1 %v10325_v14  ;;  %v10359_v14 = vld [vmem:[%s13255_s7 + $0x78] sm:$0xff]  }
 0x377   :  { %v10350_v48 = vld [vmem:[%s13253_s5 + $0xa0] ss:$8 sps:$4 sm:$0xff]  }
 0x378   :  { %v5010_v18 = vpop.f32.mrf.mxu1 }
 0x379   :  { %v7833_v28 = vadd.f32 %v7832_v12, %v5010_v18  ;;  %8439 = vmatpush1.bf16.msra.mxu1 %v10323_v13  ;;  %v10349_v12 = vld [vmem:[%s13253_s5 + $0xb4] ss:$8 sps:$4 sm:$0xff]  }
 0x37a   :  { %v5012_v25 = vpop.f32.mrf.mxu1  ;;  %8440 = vmatprep.subr.bf16.mxu1 %v10328_v38 }
 0x37b   :  { %v7881_v10 = vadd.f32 %v7880_v17, %v5012_v25 }
 0x37c   :  { %v5014_v44 = vpop.f32.mrf.mxu1 }
 0x37d   :  { %8441 = vmatpush1.bf16.msra.mxu1 %v10326_v57  ;;  %v10358_v44 = vld [vmem:[%s13253_s5 + $0x84] ss:$8 sps:$4 sm:$0xff]  }
 0x37e   :  { %v5015_v20 = vpop.f32.mrf.mxu1  ;;  %8442 = vmatprep.subr.bf16.mxu1 %v10331_v51 }
 0x37f   :  { %v10356_v20 = vld [vmem:[%s13253_s5 + $0x80] ss:$8 sps:$4 sm:$0xff]  }
 0x380   :  { %v5135_v6 = vpop.f32.mrf.mxu1 }
 0x381   :  { %v7834_v22 = vadd.f32 %v7833_v28, %v5135_v6  ;;  %8443 = vmatpush1.bf16.msra.mxu1 %v10329_v54  ;;  %v10355_v28 = vld [vmem:[%s13253_s5 + $0x94] ss:$8 sps:$4 sm:$0xff]  }
 0x382   :  { %v5137_v35 = vpop.f32.mrf.mxu1  ;;  %8444 = vmatprep.subr.bf16.mxu1 %v10334_v8 }
 0x383   :  { %v7882_v26 = vadd.f32 %v7881_v10, %v5137_v35 }
 0x384   :  { %v5139_v27 = vpop.f32.mrf.mxu1 }
 0x385   :  { %8445 = vmatpush1.bf16.msra.mxu1 %v10332_v36 }
 0x386   :  { %v5140_v33 = vpop.f32.mrf.mxu1  ;;  %8446 = vmatprep.subr.bf16.mxu1 %v10337_v50 }
 0x388   :  { %v5260_v31 = vpop.f32.mrf.mxu1 }
 0x389   :  { %v7835_v40 = vadd.f32 %v7834_v22, %v5260_v31  ;;  %8447 = vmatpush2.bf16.msra.mxu1 %v10335_v24 }
 0x38a   :  { %v5262_v29 = vpop.f32.mrf.mxu1  ;;  %8448 = vmatprep.subr.bf16.mxu1 %v10340_v23 }
 0x38b   :  { %v7883_v37 = vadd.f32 %v7882_v26, %v5262_v29 }
 0x38c   :  { %v5264_v19 = vpop.f32.mrf.mxu1 }
 0x38d   :  { %8449 = vmatpush2.bf16.msra.mxu1 %v10338_v55 }
 0x38e   :  { %v5265_v43 = vpop.f32.mrf.mxu1  ;;  %8450 = vmatprep.subr.bf16.mxu1 %v10343_v59 }
 0x390   :  { %v5385_v45 = vpop.f32.mrf.mxu1 }
 0x391   :  { %v7836_v9 = vadd.f32 %v7835_v40, %v5385_v45  ;;  %8451 = vmatpush2.bf16.msra.mxu1 %v10341_v49 }
 0x392   :  { %v5387_v2 = vpop.f32.mrf.mxu1  ;;  %8452 = vmatprep.subr.bf16.mxu1 %v10346_v47 }
 0x393   :  { %v7884_v34 = vadd.f32 %v7883_v37, %v5387_v2 }
 0x394   :  { %v5389_v39 = vpop.f32.mrf.mxu1 }
 0x395   :  { %8453 = vmatpush2.bf16.msra.mxu1 %v10344_v5 }
 0x396   :  { %v5390_v21 = vpop.f32.mrf.mxu1  ;;  %8454 = vmatprep.subr.bf16.mxu1 %v10349_v12 }
 0x398   :  { %v5510_v62 = vpop.f32.mrf.mxu1 }
 0x399   :  { %v7837_v58 = vadd.f32 %v7836_v9, %v5510_v62  ;;  %8455 = vmatpush2.bf16.msra.mxu1 %v10347_v56 }
 0x39a   :  { %v5512_v0 = vpop.f32.mrf.mxu1  ;;  %8456 = vmatprep.subr.bf16.mxu1 %v10352_v7 }
 0x39b   :  { %v7885_v41 = vadd.f32 %v7884_v34, %v5512_v0 }
 0x39c   :  { %v5514_v30 = vpop.f32.mrf.mxu1 }
 0x39d   :  { %8457 = vmatpush2.bf16.msra.mxu1 %v10350_v48 }
 0x39e   :  { %v5515_v42 = vpop.f32.mrf.mxu1  ;;  %8458 = vmatprep.subr.bf16.mxu1 %v10355_v28 }
 0x3a0   :  { %v5635_v1 = vpop.f32.mrf.mxu1 }
 0x3a1   :  { %v7838_v16 = vadd.f32 %v7837_v58, %v5635_v1  ;;  %8459 = vmatpush2.bf16.msra.mxu1 %v10353_v15 }
 0x3a2   :  { %v5637_v32 = vpop.f32.mrf.mxu1  ;;  %8460 = vmatprep.subr.bf16.mxu1 %v10358_v44 }
 0x3a3   :  { %v7886_v53 = vadd.f32 %v7885_v41, %v5637_v32 }
 0x3a4   :  { %v5639_v17 = vpop.f32.mrf.mxu1 }
 0x3a5   :  { %8461 = vmatpush2.bf16.msra.mxu1 %v10356_v20 }
 0x3a6   :  { %v5640_v60 = vpop.f32.mrf.mxu1  ;;  %9424 = vmatprep.subr.bf16.mxu1 %v10359_v14 }
 0x3a8   :  { %v5760_v63 = vpop.f32.mrf.mxu1 }
 0x3a9   :  { %v7839_v11 = vadd.f32 %v7838_v16, %v5760_v63 }
 0x3aa   :  { %v5762_v18 = vpop.f32.mrf.mxu1 }
 0x3ab   :  { %v7887_v25 = vadd.f32 %v7886_v53, %v5762_v18 }
 0x3ac   :  { %v5764_v10 = vpop.f32.mrf.mxu1 }
 0x3ae   :  { %v5765_v46 = vpop.f32.mrf.mxu1 }
 0x3b0   :  { %v5885_v61 = vpop.f32.mrf.mxu1 }
 0x3b1   :  { %v7840_v4 = vadd.f32 %v7839_v11, %v5885_v61 }
 0x3b2   :  { %v5887_v6 = vpop.f32.mrf.mxu1 }
 0x3b3   :  { %v7888_v22 = vadd.f32 %v7887_v25, %v5887_v6 }
 0x3b4   :  { %v5889_v35 = vpop.f32.mrf.mxu1 }
 0x3b6   :  { %v5890_v26 = vpop.f32.mrf.mxu1 }
 0x3b8   :  { %v6010_v13 = vpop.f32.mrf.mxu1 }
 0x3b9   :  { %v7841_v27 = vadd.f32 %v7840_v4, %v6010_v13 }
 0x3ba   :  { %v6012_v33 = vpop.f32.mrf.mxu1 }
 0x3bb   :  { %v7889_v38 = vadd.f32 %v7888_v22, %v6012_v33 }
 0x3bc   :  { %v6014_v57 = vpop.f32.mrf.mxu1 }
 0x3be   :  { %v6015_v31 = vpop.f32.mrf.mxu1 }
 0x3c0   :  { %v6135_v40 = vpop.f32.mrf.mxu1 }
 0x3c1   :  { %v7842_v29 = vadd.f32 %v7841_v27, %v6135_v40 }
 0x3c2   :  { %v6137_v51 = vpop.f32.mrf.mxu1 }
 0x3c3   :  { %v7890_v37 = vadd.f32 %v7889_v38, %v6137_v51 }
 0x3c4   :  { %v6139_v54 = vpop.f32.mrf.mxu1 }
 0x3c6   :  { %v6140_v19 = vpop.f32.mrf.mxu1 }
 0x3c8   :  { %v6260_v43 = vpop.f32.mrf.mxu1 }
 0x3c9   :  { %v7843_v8 = vadd.f32 %v7842_v29, %v6260_v43 }
 0x3ca   :  { %v6262_v36 = vpop.f32.mrf.mxu1 }
 0x3cb   :  { %v7891_v45 = vadd.f32 %v7890_v37, %v6262_v36 }
 0x3cc   :  { %v6264_v9 = vpop.f32.mrf.mxu1 }
 0x3ce   :  { %v6265_v2 = vpop.f32.mrf.mxu1 }
 0x3d0   :  { %v6385_v50 = vpop.f32.mrf.mxu1 }
 0x3d1   :  { %v7844_v34 = vadd.f32 %v7843_v8, %v6385_v50 }
 0x3d2   :  { %v6387_v24 = vpop.f32.mrf.mxu1 }
 0x3d3   :  { %v7892_v39 = vadd.f32 %v7891_v45, %v6387_v24 }
 0x3d4   :  { %v6389_v21 = vpop.f32.mrf.mxu1 }
 0x3d6   :  { %v6390_v23 = vpop.f32.mrf.mxu1 }
 0x3d7   :  { %v8008_v23 = vsub.s32 1, %v12984_v52 }
 0x3d8   :  { %v6510_v55 = vpop.f32.mrf.mxu1 }
 0x3d9   :  { %v7845_v35 = vadd.f32 %v7844_v34, %v6510_v55  ;;  %v8004_v34 = vsub.s32 0, %v12984_v52  ;;  %v10360_v52 = vld [vmem:[%s13255_s7 + $0x38] sm:$0xff]  }
 0x3da   :  { %v6512_v62 = vpop.f32.mrf.mxu1 }
 0x3db   :  { %v7893_v26 = vadd.f32 %v7892_v39, %v6512_v62 }
 0x3dc   :  { %v6514_v58 = vpop.f32.mrf.mxu1 }
 0x3de   :  { %v6515_v0 = vpop.f32.mrf.mxu1 }
 0x3df   :  { %v8005_v0 = vrot.slane %v13002_v3, %v8004_v34 }
 0x3e0   :  { %v6635_v59 = vpop.f32.mrf.mxu1 }
 0x3e1   :  { %v7846_v13 = vadd.f32 %v7845_v35, %v6635_v59 }
 0x3e2   :  { %v6637_v41 = vpop.f32.mrf.mxu1 }
 0x3e3   :  { %v7894_v33 = vadd.f32 %v7893_v26, %v6637_v41 }
 0x3e4   :  { %v6639_v49 = vpop.f32.mrf.mxu1 }
 0x3e6   :  { %v6640_v30 = vpop.f32.mrf.mxu1 }
 0x3e7   :  { %v8009_v30 = vrot.slane %v13002_v3, %v8008_v23  ;;  %v10362_v3 = vld [vmem:[%s13255_s7 + $0x30] sm:$0xff]  }
 0x3e8   :  { %v6760_v42 = vpop.f32.mrf.mxu1 }
 0x3e9   :  { %v7847_v38 = vadd.f32 %v7846_v13, %v6760_v42 }
 0x3ea   :  { %v6762_v47 = vpop.f32.mrf.mxu1 }
 0x3eb   :  { %v7895_v31 = vadd.f32 %v7894_v33, %v6762_v47 }
 0x3ec   :  { %v6764_v5 = vpop.f32.mrf.mxu1 }
 0x3ee   :  { %v6765_v1 = vpop.f32.mrf.mxu1 }
 0x3f0   :  { %v6885_v16 = vpop.f32.mrf.mxu1 }
 0x3f1   :  { %v7848_v40 = vadd.f32 %v7847_v38, %v6885_v16 }
 0x3f2   :  { %v6887_v32 = vpop.f32.mrf.mxu1 }
 0x3f3   :  { %v7896_v51 = vadd.f32 %v7895_v31, %v6887_v32 }
 0x3f4   :  { %v6889_v12 = vpop.f32.mrf.mxu1 }
 0x3f6   :  { %v6890_v53 = vpop.f32.mrf.mxu1 }
 0x3f8   :  { %v7010_v56 = vpop.f32.mrf.mxu1 }
 0x3f9   :  { %v7849_v37 = vadd.f32 %v7848_v40, %v7010_v56 }
 0x3fa   :  { %v7012_v17 = vpop.f32.mrf.mxu1 }
 0x3fb   :  { %v7897_v19 = vadd.f32 %v7896_v51, %v7012_v17 }
 0x3fc   :  { %v7014_v60 = vpop.f32.mrf.mxu1 }
 0x3fd   :  { %v10361_v60 = vld [vmem:[%s13255_s7 + $0x70] sm:$0xff]  }
 0x3fe   :  { %v7015_v7 = vpop.f32.mrf.mxu1 }
 0x3ff   :  { %v10363_v7 = vld [vmem:[%s13255_s7 + $0x68] sm:$0xff]  }
 0x400   :  { %v7135_v48 = vpop.f32.mrf.mxu1 }
 0x401   :  { %v7850_v43 = vadd.f32 %v7849_v37, %v7135_v48  ;;  %v10364_v48 = vld [vmem:[%s13255_s7 + $0x28] sm:$0xff]  }
 0x402   :  { %v7137_v63 = vpop.f32.mrf.mxu1 }
 0x403   :  { %v7898_v36 = vadd.f32 %v7897_v19, %v7137_v63  ;;  %v10365_v63 = vld [vmem:[%s13255_s7 + $0x60] sm:$0xff]  }
 0x404   :  { %v7139_v11 = vpop.f32.mrf.mxu1  ;;  %v9380_v19 = vld [vmem:[%s13256_s8] ss:$0 sm:$0xff] }
 0x405   :  { %v10366_v11 = vld [vmem:[%s13255_s7 + $0x20] sm:$0xff]  }
 0x406   :  { %v7140_v18 = vpop.f32.mrf.mxu1 }
 0x407   :  { %v10367_v18 = vld [vmem:[%s13255_s7 + $0x58] sm:$0xff]  }
 0x408   :  { %v7260_v28 = vpop.f32.mrf.mxu1 }
 0x409   :  { %v7851_v45 = vadd.f32 %v7850_v43, %v7260_v28  ;;  %v10368_v28 = vld [vmem:[%s13255_s7 + $0x18] sm:$0xff]  }
 0x40a   :  { %v7262_v25 = vpop.f32.mrf.mxu1  ;;  %v13184_v15 = vpop.f32.mrf.mxu0 }
 0x40b   :  { %v7899_v2 = vadd.f32 %v7898_v36, %v7262_v25  ;;  %v10369_v25 = vld [vmem:[%s13255_s7 + $0x50] sm:$0xff]  }
 0x40c   :  { %v7264_v10 = vpop.f32.mrf.mxu1  ;;  %v13186_v46 = vpop.f32.mrf.mxu0 }
 0x40d   :  { %v10370_v10 = vld [vmem:[%s13255_s7 + $0x10] sm:$0xff]  }
 0x40e   :  { %v7265_v44 = vpop.f32.mrf.mxu1  ;;  %v8509_v20 = vpop.f32.mrf.mxu0 }
 0x40f   :  { %v10371_v44 = vld [vmem:[%s13255_s7 + $0x48] sm:$0xff]  }
 0x410   :  { %v7385_v61 = vpop.f32.mrf.mxu1  ;;  %v8510_v4 = vpop.f32.mrf.mxu0  ;;  %v10372_v20 = vld [vmem:[%s13255_s7 + $0x8] sm:$0xff]  }
 0x411   :  { %v7852_v50 = vadd.f32 %v7851_v45, %v7385_v61  ;;  %v10373_v61 = vld [vmem:[%s13255_s7 + $0x40] sm:$0xff]  }
 0x412   :  { %v7387_v6 = vpop.f32.mrf.mxu1  ;;  %v10374_v4 = vld [vmem:[%s13255_s7] sm:$0xff]  }
 0x413   :  { %v7900_v39 = vadd.f32 %v7899_v2, %v7387_v6  ;;  %v8098_v6 = vld [vmem:[%s13254_s6] sm:$0x3] }
 0x414   :  { %v7389_v22 = vpop.f32.mrf.mxu1  ;;  %v8107_v35 = vrot.slane %v8098_v6, %v8008_v23 }
 0x415   :  { %v8103_v22 = vrot.slane %v8098_v6, %v8004_v34 }
 0x416   :  { %v7390_v14 = vpop.f32.mrf.mxu1 }
 0x418   :  { %v7510_v27 = vpop.f32.mrf.mxu1 }
 0x419   :  { %v7853_v21 = vadd.f32 %v7852_v50, %v7510_v27 }
 0x41a   :  { %v7512_v57 = vpop.f32.mrf.mxu1 }
 0x41b   :  { %v7901_v62 = vadd.f32 %v7900_v39, %v7512_v57 }
 0x41c   :  { %v7514_v29 = vpop.f32.mrf.mxu1 }
 0x41e   :  { %v7515_v54 = vpop.f32.mrf.mxu1 }
 0x420   :  { %v7635_v8 = vpop.f32.mrf.mxu1 }
 0x421   :  { %v7854_v58 = vadd.f32 %v7853_v21, %v7635_v8 }
 0x422   :  { %v7637_v9 = vpop.f32.mrf.mxu1 }
 0x423   :  { %v7902_v41 = vadd.f32 %v7901_v62, %v7637_v9 }
 0x424   :  { %v7639_v24 = vpop.f32.mrf.mxu1 }
 0x426   :  { %v7640_v55 = vpop.f32.mrf.mxu1 }
 0x428   :  { %v7760_v59 = vpop.f32.mrf.mxu1 }
 0x429   :  { %v7855_v49 = vadd.f32 %v7854_v58, %v7760_v59 }
 0x42a   :  { %v7762_v42 = vpop.f32.mrf.mxu1 }
 0x42b   :  { %v8022_v47 = vadd.f32 %v8005_v0, %v7855_v49  ;;  %v7903_v5 = vadd.f32 %v7902_v41, %v7762_v42 }
 0x42c   :  { %v7764_v1 = vpop.f32.mrf.mxu1 }
 0x42d   :  { %v8023_v16 = vadd.f32 %v8009_v30, %v7903_v5  ;;  %v8026_v32 = vmax.f32 %v8022_v47, 0.0 }
 0x42e   :  { %v7765_v12 = vpop.f32.mrf.mxu1 }
 0x42f   :  { %v8027_v53 = vmax.f32 %v8023_v16, 0.0  ;;  %v8030_v17 = vpack.c.bf16 %v8026_v32, %v8026_v32 }
 0x431   :  { %v8031_v56 = vpack.c.bf16 %v8027_v53, %v8027_v53 }
 0x433   :  { %8462 = vmatprep.mubr.bf16.mxu1 %v8031_v56 }
 0x434   :  { %8463 = vmatmul.mubr.bf16.vlgmr.msra.gmra.mxu1 %v8030_v17 }
 0x435   :  { %9425 = vmatpush3.bf16.msra.mxu1 %v10360_v52 }
 0x436   :  { %9426 = vmatprep.subr.bf16.mxu1 %v10361_v60 }
 0x439   :  { %9427 = vmatpush3.bf16.msra.mxu1 %v10362_v3 }
 0x43a   :  { %9428 = vmatprep.subr.bf16.mxu1 %v10363_v7 }
 0x43d   :  { %9429 = vmatpush3.bf16.msra.mxu1 %v10364_v48 }
 0x43e   :  { %9430 = vmatprep.subr.bf16.mxu1 %v10365_v63 }
 0x441   :  { %9431 = vmatpush3.bf16.msra.mxu1 %v10366_v11 }
 0x442   :  { %9432 = vmatprep.subr.bf16.mxu1 %v10367_v18 }
 0x445   :  { %9433 = vmatpush3.bf16.msra.mxu1 %v10368_v28 }
 0x446   :  { %9434 = vmatprep.subr.bf16.mxu1 %v10369_v25 }
 0x449   :  { %9435 = vmatpush3.bf16.msra.mxu1 %v10370_v10 }
 0x44a   :  { %9436 = vmatprep.subr.bf16.mxu1 %v10371_v44 }
 0x44d   :  { %9437 = vmatpush3.bf16.msra.mxu1 %v10372_v20 }
 0x44e   :  { %9438 = vmatprep.subr.bf16.mxu1 %v10373_v61 }
 0x451   :  { %9439 = vmatpush3.bf16.msra.mxu1 %v10374_v4 }
 0x4f4   :  { %v8464_v14 = vpop.f32.mrf.mxu1 }
 0x4f5   :  { %v8465_v26 = vadd.f32 %v8464_v14, %v8103_v22 }
 0x4f6   :  { %v8466_v13 = vpop.f32.mrf.mxu1 }
 0x4f7   :  { %v8506_v27 = vadd.f32 %v13184_v15, %v8465_v26  ;;  %v8467_v33 = vadd.f32 %v8466_v13, %v8107_v35 }
 0x4f8   :  { %v8468_v38 = vpop.f32.mrf.mxu1 }
 0x4f9   :  { %v8508_v57 = vadd.f32 %v13186_v46, %v8467_v33  ;;  %v8512_v31 = vmax.f32 %v8506_v27, 0.0 }
 0x4fa   :  { %v8469_v40 = vpop.f32.mrf.mxu1 }
 0x4fb   :  { %v8513_v29 = vmax.f32 %v8508_v57, 0.0  ;;  %v8514_v37 = vpack.c.bf16 %v8512_v31, %v8512_v31 }
 0x4fd   :  { %v8515_v51 = vpack.c.bf16 %v8513_v29, %v8513_v29 }
 0x4ff   :  { %8683 = vmatprep.mubr.bf16.mxu1 %v8515_v51 }
 0x500   :  { %8684 = vmatmul.mubr.bf16.vlgmr.msra.gmra.mxu1 %v8514_v37 }
 0x5c0   :  { %v9440_v54 = vpop.f32.mrf.mxu1 }
 0x5c2   :  { %v9441_v43 = vpop.f32.mrf.mxu1 }
 0x5c3   :  { %v9442_v15 = vadd.f32 %v9441_v43, %v9440_v54 }
 0x5c4   :  { %v9443_v8 = vpop.f32.mrf.mxu1 }
 0x5c5   :  { %v8686_v36 = vadd.f32 %v9442_v15, %v9380_v19 }
 0x5c6   :  { %v9444_v46 = vpop.f32.mrf.mxu1 }
 0x5c7   :  { %8692 = vst.msk [vmem:[#allocation2] sm:$0x3] %vm8691_vm2, %v8686_v36 }
 0x5c8   :  { %10387 = shalt.err (!%p10384_p4)
}
 0x5c9   :  { %8702 = dma.vmem_to_hbm [thread:$0]  %s8700_s30, 32, %s13257_s9, [#allocation3]  }
 0x5ca   :  { %10396 = dma.done.wait [#allocation3], 32  }
 0x5cb   :  { %10397 = vsyncadd [#allocation3], 4294967264 }
 0x5cc   :  { %8706 = vsyncpa [#allocation3], 1 }

</bundles_post_ra>
